<compile_context>
chip_gen: v5e
topology: v5e:2x2
jax: 0.10.0
libtpu: 0.0.40
codegen_flags: <defaults>
</compile_context>

<pallas_src>
import functools

import jax
import jax.numpy as jnp
from jax.experimental import pallas as pl
from jax.experimental.pallas import tpu as pltpu

EPS = 1e-5   # nn.InstanceNorm2d default eps (affine=False, no running stats)
LANE = 128


def _round_up(x, m):
    return (x + m - 1) // m * m


def _resblock_kernel(xp_ref, w1_ref, w2_ref, o_ref, col_ref, acc_ref, h1p_ref,
                     *, H, W):
    """Fused residual block for one image.

    xp_ref : (1, H+2, W+2, Cp)  f32   zero-padded NHWC input (channels padded to 128)
    w1_ref : (9*Cp, Cp)         bf16  conv1 weights, tap-major im2col layout
    w2_ref : (9*Cp, Cp)         bf16  conv2 weights, tap-major im2col layout
    o_ref  : (1, H*W, Cp)       f32   lane-dense output block (written ONCE)
    col_ref: (H*W, 9*Cp)        bf16  im2col slab scratch (reused by both convs)
    acc_ref: (H*W, Cp)          f32   conv result scratch (reused by both convs)
    h1p_ref: (H+2, W+2, Cp)     bf16  zero-haloed IN(conv1(x)), VMEM-resident
    """
    HW = H * W
    Cp = xp_ref.shape[-1]
    inv_hw = 1.0 / HW

    # ---- conv1: pack im2col slab (cast f32 -> bf16 while packing) --------------
    for kh in range(3):
        for kw in range(3):
            t = kh * 3 + kw
            tap = xp_ref[0, kh:kh + H, kw:kw + W, :].reshape(HW, Cp)
            col_ref[:, t * Cp:(t + 1) * Cp] = tap.astype(jnp.bfloat16)

    # one K = 9*Cp MXU matmul, stored once into the f32 scratch
    acc_ref[...] = jnp.dot(col_ref[...], w1_ref[...],
                           preferred_element_type=jnp.float32)

    # ---- InstanceNorm1 (two-pass variance, f32) --------------------------------
    y1 = acc_ref[...]
    mean1 = jnp.sum(y1, axis=0, keepdims=True) * inv_hw
    c1 = y1 - mean1
    var1 = jnp.sum(c1 * c1, axis=0, keepdims=True) * inv_hw
    h1 = (c1 * jax.lax.rsqrt(var1 + EPS)).astype(jnp.bfloat16)     # (HW, Cp)

    # ---- stage-1 activation stays in VMEM (bf16); zero only the halo perimeter --
    zrow = jnp.zeros((1, W + 2, Cp), jnp.bfloat16)
    h1p_ref[0:1] = zrow
    h1p_ref[H + 1:H + 2] = zrow
    zcol = jnp.zeros((H, 1, Cp), jnp.bfloat16)
    h1p_ref[1:H + 1, 0:1] = zcol
    h1p_ref[1:H + 1, W + 1:W + 2] = zcol
    h1p_ref[1:H + 1, 1:W + 1, :] = h1.reshape(H, W, Cp)

    # ---- conv2: pack im2col slab from the bf16 resident activation --------------
    for kh in range(3):
        for kw in range(3):
            t = kh * 3 + kw
            col_ref[:, t * Cp:(t + 1) * Cp] = \
                h1p_ref[kh:kh + H, kw:kw + W, :].reshape(HW, Cp)

    acc_ref[...] = jnp.dot(col_ref[...], w2_ref[...],
                           preferred_element_type=jnp.float32)

    # ---- InstanceNorm2 + exact f32 residual; single final store of o_ref --------
    y2 = acc_ref[...]
    mean2 = jnp.sum(y2, axis=0, keepdims=True) * inv_hw
    c2 = y2 - mean2
    var2 = jnp.sum(c2 * c2, axis=0, keepdims=True) * inv_hw
    xres = xp_ref[0, 1:H + 1, 1:W + 1, :].reshape(HW, Cp)          # f32, unrounded
    o_ref[0] = xres + c2 * jax.lax.rsqrt(var2 + EPS)


def residual_block(x_nchw, w1, w2):
    """x: (N, Cin, H, W); w1: (Cout, Cin, 3, 3); w2: (Cout, Cout, 3, 3) — OIHW, no bias."""
    N, Cin, H, W = x_nchw.shape
    Cmid, Cout = w1.shape[0], w2.shape[0]
    assert Cin == Cout and Cmid == Cout, "residual block requires dim_in == dim_out"
    HW = H * W
    Cp = _round_up(Cout, LANE)

    # NHWC, zero spatial halo, channels padded to a lane multiple. Kept f32 so the
    # residual add is exact; MXU operands are cast to bf16 inside the kernel.
    x_nhwc = jnp.transpose(x_nchw, (0, 2, 3, 1)).astype(jnp.float32)
    xp = jnp.pad(x_nhwc, ((0, 0), (1, 1), (1, 1), (0, Cp - Cin)))

    # Torch OIHW -> tap-major im2col weight matrices (9*Cp, Cp), bf16.
    def flat_w(w, cin, cout):
        wt = jnp.transpose(w, (2, 3, 1, 0))                                 # (3,3,ci,co)
        wt = jnp.pad(wt, ((0, 0), (0, 0), (0, Cp - cin), (0, Cp - cout)))
        return wt.reshape(9 * Cp, Cp).astype(jnp.bfloat16)

    w1_m = flat_w(w1, Cin, Cmid)
    w2_m = flat_w(w2, Cmid, Cout)

    # VMEM budget: double-buffered image/output blocks, weights once (constant
    # index_map), persistent scratch, plus headroom for reshape temporaries.
    xp_blk = (H + 2) * (W + 2) * Cp * 4
    out_blk = HW * Cp * 4
    w_bytes = 2 * (9 * Cp * Cp * 2)
    scratch = HW * 9 * Cp * 2 + HW * Cp * 4 + (H + 2) * (W + 2) * Cp * 2
    need = 2 * (xp_blk + out_blk) + w_bytes + scratch + (8 << 20)
    try:
        cap = pltpu.get_tpu_info().vmem_capacity_bytes
    except Exception:  # pragma: no cover - conservative fallback
        cap = 64 << 20
    vmem_limit = int(min(0.9 * cap, max(need, 32 << 20)))

    out = pl.pallas_call(
        functools.partial(_resblock_kernel, H=H, W=W),
        out_shape=jax.ShapeDtypeStruct((N, HW, Cp), jnp.float32),
        grid=(N,),
        in_specs=[
            pl.BlockSpec((1, H + 2, W + 2, Cp), lambda n: (n, 0, 0, 0)),
            pl.BlockSpec((9 * Cp, Cp), lambda n: (0, 0)),
            pl.BlockSpec((9 * Cp, Cp), lambda n: (0, 0)),
        ],
        out_specs=pl.BlockSpec((1, HW, Cp), lambda n: (n, 0, 0)),
        scratch_shapes=[
            pltpu.VMEM((HW, 9 * Cp), jnp.bfloat16),         # im2col slab (both convs)
            pltpu.VMEM((HW, Cp), jnp.float32),              # conv result scratch
            pltpu.VMEM((H + 2, W + 2, Cp), jnp.bfloat16),   # padded IN(conv1(x))
        ],
        compiler_params=pltpu.CompilerParams(
            dimension_semantics=("parallel",),
            vmem_limit_bytes=vmem_limit,
        ),
    )(xp, w1_m, w2_m)

    out = out[:, :, :Cout].reshape(N, H, W, Cout)
    return jnp.transpose(out, (0, 3, 1, 2))


def _reference(x, w1, w2):
    """Pure-JAX reference mirroring the PyTorch module (f32 throughout)."""
    def conv(y, w):
        return jax.lax.conv_general_dilated(
            y, w, (1, 1), ((1, 1), (1, 1)),
            dimension_numbers=("NCHW", "OIHW", "NCHW"))

    def inorm(y):
        m = jnp.mean(y, axis=(2, 3), keepdims=True)
        v = jnp.mean((y - m) ** 2, axis=(2, 3), keepdims=True)
        return (y - m) * jax.lax.rsqrt(v + EPS)

    return x + inorm(conv(inorm(conv(x, w1)), w2))


if __name__ == "__main__":
    key = jax.random.PRNGKey(0)
    kx, k1, k2 = jax.random.split(key, 3)

    # Residual add requires dim_in == dim_out, as in the PyTorch module's usage.
    N, C, H, W = 2, 4, 16, 16
    x = jax.random.normal(kx, (N, C, H, W), jnp.float32)
    w1 = 0.1 * jax.random.normal(k1, (C, C, 3, 3), jnp.float32)  # Conv2d(dim_in, dim_out, 3)
    w2 = 0.1 * jax.random.normal(k2, (C, C, 3, 3), jnp.float32)  # Conv2d(dim_out, dim_out, 3)

    out = jax.jit(residual_block)(x, w1, w2)
    jax.block_until_ready(out)

    ref = _reference(x, w1, w2)
    assert out.shape == (N, C, H, W)
    max_err = float(jnp.max(jnp.abs(out - ref)))
    # bf16 MXU operands with f32 accumulation/stats: tolerance relaxed vs pure-f32 ref.
    assert jnp.allclose(out, ref, atol=2e-2, rtol=2e-2), f"max_err={max_err}"
    print("KERNEL_OK")
</pallas_src>

<mosaic_0001>
module attributes {stable_mosaic.version = 11 : i64} {
  func.func @_resblock_kernel(%arg0: i32, %arg1: memref<1x18x18x128xf32, #tpu.memory_space<vmem>>, %arg2: memref<1152x128xbf16, #tpu.memory_space<vmem>>, %arg3: memref<1152x128xbf16, #tpu.memory_space<vmem>>, %arg4: memref<1x256x128xf32, #tpu.memory_space<vmem>>, %arg5: memref<256x1152xbf16, #tpu.memory_space<vmem>>, %arg6: memref<256x128xf32, #tpu.memory_space<vmem>>, %arg7: memref<18x18x128xbf16, #tpu.memory_space<vmem>>) attributes {dimension_semantics = [#tpu.dimension_semantics<parallel>], iteration_bounds = array<i64: 2>, scalar_prefetch = 0 : i64, scratch_operands = 3 : i64, tpu.core_type = #tpu.core_type<tc>, window_params = [{transform_indices = @transform_0, window_bounds = array<i64: 1, 18, 18, 128>}, {pipeline_mode = #tpu.pipeline_mode<synchronous>, transform_indices = @transform_1, window_bounds = array<i64: 1152, 128>}, {pipeline_mode = #tpu.pipeline_mode<synchronous>, transform_indices = @transform_2, window_bounds = array<i64: 1152, 128>}, {transform_indices = @transform_3, window_bounds = array<i64: 1, 256, 128>}]} {
    %c0 = arith.constant 0 : index
    %c0_0 = arith.constant 0 : index
    %c0_1 = arith.constant 0 : index
    %c0_2 = arith.constant 0 : index
    %0 = vector.load %arg1[%c0, %c0_0, %c0_1, %c0_2] : memref<1x18x18x128xf32, #tpu.memory_space<vmem>>, vector<1x16x16x128xf32>
    %1 = vector.shape_cast %0 : vector<1x16x16x128xf32> to vector<16x16x128xf32>
    %2 = vector.shape_cast %1 : vector<16x16x128xf32> to vector<256x128xf32>
    %3 = arith.truncf %2 : vector<256x128xf32> to vector<256x128xbf16>
    %c0_3 = arith.constant 0 : index
    %c0_4 = arith.constant 0 : index
    %4 = vector.load %arg5[%c0_3, %c0_4] : memref<256x1152xbf16, #tpu.memory_space<vmem>>, vector<256x128xbf16>
    tpu.vector_store %arg5[%c0_3, %c0_4], %3 {strides = array<i32>} : memref<256x1152xbf16, #tpu.memory_space<vmem>>, vector<256x128xbf16>,
    %c0_5 = arith.constant 0 : index
    %c0_6 = arith.constant 0 : index
    %c1 = arith.constant 1 : index
    %c0_7 = arith.constant 0 : index
    %5 = vector.load %arg1[%c0_5, %c0_6, %c1, %c0_7] : memref<1x18x18x128xf32, #tpu.memory_space<vmem>>, vector<1x16x16x128xf32>
    %6 = vector.shape_cast %5 : vector<1x16x16x128xf32> to vector<16x16x128xf32>
    %7 = vector.shape_cast %6 : vector<16x16x128xf32> to vector<256x128xf32>
    %8 = arith.truncf %7 : vector<256x128xf32> to vector<256x128xbf16>
    %c0_8 = arith.constant 0 : index
    %c128 = arith.constant 128 : index
    %9 = vector.load %arg5[%c0_8, %c128] : memref<256x1152xbf16, #tpu.memory_space<vmem>>, vector<256x128xbf16>
    tpu.vector_store %arg5[%c0_8, %c128], %8 {strides = array<i32>} : memref<256x1152xbf16, #tpu.memory_space<vmem>>, vector<256x128xbf16>,
    %c0_9 = arith.constant 0 : index
    %c0_10 = arith.constant 0 : index
    %c2 = arith.constant 2 : index
    %c0_11 = arith.constant 0 : index
    %10 = vector.load %arg1[%c0_9, %c0_10, %c2, %c0_11] : memref<1x18x18x128xf32, #tpu.memory_space<vmem>>, vector<1x16x16x128xf32>
    %11 = vector.shape_cast %10 : vector<1x16x16x128xf32> to vector<16x16x128xf32>
    %12 = vector.shape_cast %11 : vector<16x16x128xf32> to vector<256x128xf32>
    %13 = arith.truncf %12 : vector<256x128xf32> to vector<256x128xbf16>
    %c0_12 = arith.constant 0 : index
    %c256 = arith.constant 256 : index
    %14 = vector.load %arg5[%c0_12, %c256] : memref<256x1152xbf16, #tpu.memory_space<vmem>>, vector<256x128xbf16>
    tpu.vector_store %arg5[%c0_12, %c256], %13 {strides = array<i32>} : memref<256x1152xbf16, #tpu.memory_space<vmem>>, vector<256x128xbf16>,
    %c0_13 = arith.constant 0 : index
    %c1_14 = arith.constant 1 : index
    %c0_15 = arith.constant 0 : index
    %c0_16 = arith.constant 0 : index
    %15 = vector.load %arg1[%c0_13, %c1_14, %c0_15, %c0_16] : memref<1x18x18x128xf32, #tpu.memory_space<vmem>>, vector<1x16x16x128xf32>
    %16 = vector.shape_cast %15 : vector<1x16x16x128xf32> to vector<16x16x128xf32>
    %17 = vector.shape_cast %16 : vector<16x16x128xf32> to vector<256x128xf32>
    %18 = arith.truncf %17 : vector<256x128xf32> to vector<256x128xbf16>
    %c0_17 = arith.constant 0 : index
    %c384 = arith.constant 384 : index
    %19 = vector.load %arg5[%c0_17, %c384] : memref<256x1152xbf16, #tpu.memory_space<vmem>>, vector<256x128xbf16>
    tpu.vector_store %arg5[%c0_17, %c384], %18 {strides = array<i32>} : memref<256x1152xbf16, #tpu.memory_space<vmem>>, vector<256x128xbf16>,
    %c0_18 = arith.constant 0 : index
    %c1_19 = arith.constant 1 : index
    %c1_20 = arith.constant 1 : index
    %c0_21 = arith.constant 0 : index
    %20 = vector.load %arg1[%c0_18, %c1_19, %c1_20, %c0_21] : memref<1x18x18x128xf32, #tpu.memory_space<vmem>>, vector<1x16x16x128xf32>
    %21 = vector.shape_cast %20 : vector<1x16x16x128xf32> to vector<16x16x128xf32>
    %22 = vector.shape_cast %21 : vector<16x16x128xf32> to vector<256x128xf32>
    %23 = arith.truncf %22 : vector<256x128xf32> to vector<256x128xbf16>
    %c0_22 = arith.constant 0 : index
    %c512 = arith.constant 512 : index
    %24 = vector.load %arg5[%c0_22, %c512] : memref<256x1152xbf16, #tpu.memory_space<vmem>>, vector<256x128xbf16>
    tpu.vector_store %arg5[%c0_22, %c512], %23 {strides = array<i32>} : memref<256x1152xbf16, #tpu.memory_space<vmem>>, vector<256x128xbf16>,
    %c0_23 = arith.constant 0 : index
    %c1_24 = arith.constant 1 : index
    %c2_25 = arith.constant 2 : index
    %c0_26 = arith.constant 0 : index
    %25 = vector.load %arg1[%c0_23, %c1_24, %c2_25, %c0_26] : memref<1x18x18x128xf32, #tpu.memory_space<vmem>>, vector<1x16x16x128xf32>
    %26 = vector.shape_cast %25 : vector<1x16x16x128xf32> to vector<16x16x128xf32>
    %27 = vector.shape_cast %26 : vector<16x16x128xf32> to vector<256x128xf32>
    %28 = arith.truncf %27 : vector<256x128xf32> to vector<256x128xbf16>
    %c0_27 = arith.constant 0 : index
    %c640 = arith.constant 640 : index
    %29 = vector.load %arg5[%c0_27, %c640] : memref<256x1152xbf16, #tpu.memory_space<vmem>>, vector<256x128xbf16>
    tpu.vector_store %arg5[%c0_27, %c640], %28 {strides = array<i32>} : memref<256x1152xbf16, #tpu.memory_space<vmem>>, vector<256x128xbf16>,
    %c0_28 = arith.constant 0 : index
    %c2_29 = arith.constant 2 : index
    %c0_30 = arith.constant 0 : index
    %c0_31 = arith.constant 0 : index
    %30 = vector.load %arg1[%c0_28, %c2_29, %c0_30, %c0_31] : memref<1x18x18x128xf32, #tpu.memory_space<vmem>>, vector<1x16x16x128xf32>
    %31 = vector.shape_cast %30 : vector<1x16x16x128xf32> to vector<16x16x128xf32>
    %32 = vector.shape_cast %31 : vector<16x16x128xf32> to vector<256x128xf32>
    %33 = arith.truncf %32 : vector<256x128xf32> to vector<256x128xbf16>
    %c0_32 = arith.constant 0 : index
    %c768 = arith.constant 768 : index
    %34 = vector.load %arg5[%c0_32, %c768] : memref<256x1152xbf16, #tpu.memory_space<vmem>>, vector<256x128xbf16>
    tpu.vector_store %arg5[%c0_32, %c768], %33 {strides = array<i32>} : memref<256x1152xbf16, #tpu.memory_space<vmem>>, vector<256x128xbf16>,
    %c0_33 = arith.constant 0 : index
    %c2_34 = arith.constant 2 : index
    %c1_35 = arith.constant 1 : index
    %c0_36 = arith.constant 0 : index
    %35 = vector.load %arg1[%c0_33, %c2_34, %c1_35, %c0_36] : memref<1x18x18x128xf32, #tpu.memory_space<vmem>>, vector<1x16x16x128xf32>
    %36 = vector.shape_cast %35 : vector<1x16x16x128xf32> to vector<16x16x128xf32>
    %37 = vector.shape_cast %36 : vector<16x16x128xf32> to vector<256x128xf32>
    %38 = arith.truncf %37 : vector<256x128xf32> to vector<256x128xbf16>
    %c0_37 = arith.constant 0 : index
    %c896 = arith.constant 896 : index
    %39 = vector.load %arg5[%c0_37, %c896] : memref<256x1152xbf16, #tpu.memory_space<vmem>>, vector<256x128xbf16>
    tpu.vector_store %arg5[%c0_37, %c896], %38 {strides = array<i32>} : memref<256x1152xbf16, #tpu.memory_space<vmem>>, vector<256x128xbf16>,
    %c0_38 = arith.constant 0 : index
    %c2_39 = arith.constant 2 : index
    %c2_40 = arith.constant 2 : index
    %c0_41 = arith.constant 0 : index
    %40 = vector.load %arg1[%c0_38, %c2_39, %c2_40, %c0_41] : memref<1x18x18x128xf32, #tpu.memory_space<vmem>>, vector<1x16x16x128xf32>
    %41 = vector.shape_cast %40 : vector<1x16x16x128xf32> to vector<16x16x128xf32>
    %42 = vector.shape_cast %41 : vector<16x16x128xf32> to vector<256x128xf32>
    %43 = arith.truncf %42 : vector<256x128xf32> to vector<256x128xbf16>
    %c0_42 = arith.constant 0 : index
    %c1024 = arith.constant 1024 : index
    %44 = vector.load %arg5[%c0_42, %c1024] : memref<256x1152xbf16, #tpu.memory_space<vmem>>, vector<256x128xbf16>
    tpu.vector_store %arg5[%c0_42, %c1024], %43 {strides = array<i32>} : memref<256x1152xbf16, #tpu.memory_space<vmem>>, vector<256x128xbf16>,
    %c0_43 = arith.constant 0 : index
    %c0_44 = arith.constant 0 : index
    %45 = vector.load %arg5[%c0_43, %c0_44] : memref<256x1152xbf16, #tpu.memory_space<vmem>>, vector<256x1152xbf16>
    %c0_45 = arith.constant 0 : index
    %c0_46 = arith.constant 0 : index
    %46 = vector.load %arg2[%c0_45, %c0_46] : memref<1152x128xbf16, #tpu.memory_space<vmem>>, vector<1152x128xbf16>
    %cst = arith.constant dense<0.000000e+00> : vector<256x128xf32>
    %47 = tpu.matmul %45, %46, %cst {dimension_numbers = #tpu.dot_dimension_numbers<[1], [0], [0], [1], [0, 0, 1, 1], [], []>} : vector<256x1152xbf16>, vector<1152x128xbf16>, vector<256x128xf32> -> vector<256x128xf32>
    %c0_47 = arith.constant 0 : index
    %c0_48 = arith.constant 0 : index
    %48 = vector.load %arg6[%c0_47, %c0_48] : memref<256x128xf32, #tpu.memory_space<vmem>>, vector<256x128xf32>
    tpu.vector_store %arg6[%c0_47, %c0_48], %47 {strides = array<i32>} : memref<256x128xf32, #tpu.memory_space<vmem>>, vector<256x128xf32>,
    %c0_49 = arith.constant 0 : index
    %c0_50 = arith.constant 0 : index
    %49 = vector.load %arg6[%c0_49, %c0_50] : memref<256x128xf32, #tpu.memory_space<vmem>>, vector<256x128xf32>
    %cst_51 = arith.constant dense<0.000000e+00> : vector<128xf32>
    %50 = vector.multi_reduction <add>, %49, %cst_51 [0] : vector<256x128xf32> to vector<128xf32>
    %51 = vector.shape_cast %50 : vector<128xf32> to vector<1x128xf32>
    %cst_52 = arith.constant 3.906250e-03 : f32
    %52 = vector.broadcast %cst_52 : f32 to vector<1x128xf32>
    %53 = arith.mulf %51, %52 : vector<1x128xf32>
    %54 = vector.broadcast %53 : vector<1x128xf32> to vector<256x128xf32>
    %55 = arith.subf %49, %54 : vector<256x128xf32>
    %56 = arith.mulf %55, %55 : vector<256x128xf32>
    %cst_53 = arith.constant dense<0.000000e+00> : vector<128xf32>
    %57 = vector.multi_reduction <add>, %56, %cst_53 [0] : vector<256x128xf32> to vector<128xf32>
    %58 = vector.shape_cast %57 : vector<128xf32> to vector<1x128xf32>
    %cst_54 = arith.constant 3.906250e-03 : f32
    %59 = vector.broadcast %cst_54 : f32 to vector<1x128xf32>
    %60 = arith.mulf %58, %59 : vector<1x128xf32>
    %cst_55 = arith.constant 9.99999974E-6 : f32
    %61 = vector.broadcast %cst_55 : f32 to vector<1x128xf32>
    %62 = arith.addf %60, %61 : vector<1x128xf32>
    %63 = math.rsqrt %62 : vector<1x128xf32>
    %64 = vector.broadcast %63 : vector<1x128xf32> to vector<256x128xf32>
    %65 = arith.mulf %55, %64 : vector<256x128xf32>
    %66 = arith.truncf %65 : vector<256x128xf32> to vector<256x128xbf16>
    %cst_56 = arith.constant 0.000000e+00 : bf16
    %67 = vector.broadcast %cst_56 : bf16 to vector<1x18x128xbf16>
    %c0_57 = arith.constant 0 : index
    %c0_58 = arith.constant 0 : index
    %c0_59 = arith.constant 0 : index
    %68 = vector.load %arg7[%c0_57, %c0_58, %c0_59] : memref<18x18x128xbf16, #tpu.memory_space<vmem>>, vector<1x18x128xbf16>
    tpu.vector_store %arg7[%c0_57, %c0_58, %c0_59], %67 {strides = array<i32>} : memref<18x18x128xbf16, #tpu.memory_space<vmem>>, vector<1x18x128xbf16>,
    %c17 = arith.constant 17 : index
    %c0_60 = arith.constant 0 : index
    %c0_61 = arith.constant 0 : index
    %69 = vector.load %arg7[%c17, %c0_60, %c0_61] : memref<18x18x128xbf16, #tpu.memory_space<vmem>>, vector<1x18x128xbf16>
    tpu.vector_store %arg7[%c17, %c0_60, %c0_61], %67 {strides = array<i32>} : memref<18x18x128xbf16, #tpu.memory_space<vmem>>, vector<1x18x128xbf16>,
    %cst_62 = arith.constant 0.000000e+00 : bf16
    %70 = vector.broadcast %cst_62 : bf16 to vector<16x1x128xbf16>
    %c1_63 = arith.constant 1 : index
    %c0_64 = arith.constant 0 : index
    %c0_65 = arith.constant 0 : index
    %71 = vector.load %arg7[%c1_63, %c0_64, %c0_65] : memref<18x18x128xbf16, #tpu.memory_space<vmem>>, vector<16x1x128xbf16>
    tpu.vector_store %arg7[%c1_63, %c0_64, %c0_65], %70 {strides = array<i32>} : memref<18x18x128xbf16, #tpu.memory_space<vmem>>, vector<16x1x128xbf16>,
    %c1_66 = arith.constant 1 : index
    %c17_67 = arith.constant 17 : index
    %c0_68 = arith.constant 0 : index
    %72 = vector.load %arg7[%c1_66, %c17_67, %c0_68] : memref<18x18x128xbf16, #tpu.memory_space<vmem>>, vector<16x1x128xbf16>
    tpu.vector_store %arg7[%c1_66, %c17_67, %c0_68], %70 {strides = array<i32>} : memref<18x18x128xbf16, #tpu.memory_space<vmem>>, vector<16x1x128xbf16>,
    %73 = vector.shape_cast %66 : vector<256x128xbf16> to vector<16x16x128xbf16>
    %c1_69 = arith.constant 1 : index
    %c1_70 = arith.constant 1 : index
    %c0_71 = arith.constant 0 : index
    %74 = vector.load %arg7[%c1_69, %c1_70, %c0_71] : memref<18x18x128xbf16, #tpu.memory_space<vmem>>, vector<16x16x128xbf16>
    tpu.vector_store %arg7[%c1_69, %c1_70, %c0_71], %73 {strides = array<i32>} : memref<18x18x128xbf16, #tpu.memory_space<vmem>>, vector<16x16x128xbf16>,
    %c0_72 = arith.constant 0 : index
    %c0_73 = arith.constant 0 : index
    %c0_74 = arith.constant 0 : index
    %75 = vector.load %arg7[%c0_72, %c0_73, %c0_74] : memref<18x18x128xbf16, #tpu.memory_space<vmem>>, vector<16x16x128xbf16>
    %76 = vector.shape_cast %75 : vector<16x16x128xbf16> to vector<256x128xbf16>
    %c0_75 = arith.constant 0 : index
    %c0_76 = arith.constant 0 : index
    %77 = vector.load %arg5[%c0_75, %c0_76] : memref<256x1152xbf16, #tpu.memory_space<vmem>>, vector<256x128xbf16>
    tpu.vector_store %arg5[%c0_75, %c0_76], %76 {strides = array<i32>} : memref<256x1152xbf16, #tpu.memory_space<vmem>>, vector<256x128xbf16>,
    %c0_77 = arith.constant 0 : index
    %c1_78 = arith.constant 1 : index
    %c0_79 = arith.constant 0 : index
    %78 = vector.load %arg7[%c0_77, %c1_78, %c0_79] : memref<18x18x128xbf16, #tpu.memory_space<vmem>>, vector<16x16x128xbf16>
    %79 = vector.shape_cast %78 : vector<16x16x128xbf16> to vector<256x128xbf16>
    %c0_80 = arith.constant 0 : index
    %c128_81 = arith.constant 128 : index
    %80 = vector.load %arg5[%c0_80, %c128_81] : memref<256x1152xbf16, #tpu.memory_space<vmem>>, vector<256x128xbf16>
    tpu.vector_store %arg5[%c0_80, %c128_81], %79 {strides = array<i32>} : memref<256x1152xbf16, #tpu.memory_space<vmem>>, vector<256x128xbf16>,
    %c0_82 = arith.constant 0 : index
    %c2_83 = arith.constant 2 : index
    %c0_84 = arith.constant 0 : index
    %81 = vector.load %arg7[%c0_82, %c2_83, %c0_84] : memref<18x18x128xbf16, #tpu.memory_space<vmem>>, vector<16x16x128xbf16>
    %82 = vector.shape_cast %81 : vector<16x16x128xbf16> to vector<256x128xbf16>
    %c0_85 = arith.constant 0 : index
    %c256_86 = arith.constant 256 : index
    %83 = vector.load %arg5[%c0_85, %c256_86] : memref<256x1152xbf16, #tpu.memory_space<vmem>>, vector<256x128xbf16>
    tpu.vector_store %arg5[%c0_85, %c256_86], %82 {strides = array<i32>} : memref<256x1152xbf16, #tpu.memory_space<vmem>>, vector<256x128xbf16>,
    %c1_87 = arith.constant 1 : index
    %c0_88 = arith.constant 0 : index
    %c0_89 = arith.constant 0 : index
    %84 = vector.load %arg7[%c1_87, %c0_88, %c0_89] : memref<18x18x128xbf16, #tpu.memory_space<vmem>>, vector<16x16x128xbf16>
    %85 = vector.shape_cast %84 : vector<16x16x128xbf16> to vector<256x128xbf16>
    %c0_90 = arith.constant 0 : index
    %c384_91 = arith.constant 384 : index
    %86 = vector.load %arg5[%c0_90, %c384_91] : memref<256x1152xbf16, #tpu.memory_space<vmem>>, vector<256x128xbf16>
    tpu.vector_store %arg5[%c0_90, %c384_91], %85 {strides = array<i32>} : memref<256x1152xbf16, #tpu.memory_space<vmem>>, vector<256x128xbf16>,
    %c1_92 = arith.constant 1 : index
    %c1_93 = arith.constant 1 : index
    %c0_94 = arith.constant 0 : index
    %87 = vector.load %arg7[%c1_92, %c1_93, %c0_94] : memref<18x18x128xbf16, #tpu.memory_space<vmem>>, vector<16x16x128xbf16>
    %88 = vector.shape_cast %87 : vector<16x16x128xbf16> to vector<256x128xbf16>
    %c0_95 = arith.constant 0 : index
    %c512_96 = arith.constant 512 : index
    %89 = vector.load %arg5[%c0_95, %c512_96] : memref<256x1152xbf16, #tpu.memory_space<vmem>>, vector<256x128xbf16>
    tpu.vector_store %arg5[%c0_95, %c512_96], %88 {strides = array<i32>} : memref<256x1152xbf16, #tpu.memory_space<vmem>>, vector<256x128xbf16>,
    %c1_97 = arith.constant 1 : index
    %c2_98 = arith.constant 2 : index
    %c0_99 = arith.constant 0 : index
    %90 = vector.load %arg7[%c1_97, %c2_98, %c0_99] : memref<18x18x128xbf16, #tpu.memory_space<vmem>>, vector<16x16x128xbf16>
    %91 = vector.shape_cast %90 : vector<16x16x128xbf16> to vector<256x128xbf16>
    %c0_100 = arith.constant 0 : index
    %c640_101 = arith.constant 640 : index
    %92 = vector.load %arg5[%c0_100, %c640_101] : memref<256x1152xbf16, #tpu.memory_space<vmem>>, vector<256x128xbf16>
    tpu.vector_store %arg5[%c0_100, %c640_101], %91 {strides = array<i32>} : memref<256x1152xbf16, #tpu.memory_space<vmem>>, vector<256x128xbf16>,
    %c2_102 = arith.constant 2 : index
    %c0_103 = arith.constant 0 : index
    %c0_104 = arith.constant 0 : index
    %93 = vector.load %arg7[%c2_102, %c0_103, %c0_104] : memref<18x18x128xbf16, #tpu.memory_space<vmem>>, vector<16x16x128xbf16>
    %94 = vector.shape_cast %93 : vector<16x16x128xbf16> to vector<256x128xbf16>
    %c0_105 = arith.constant 0 : index
    %c768_106 = arith.constant 768 : index
    %95 = vector.load %arg5[%c0_105, %c768_106] : memref<256x1152xbf16, #tpu.memory_space<vmem>>, vector<256x128xbf16>
    tpu.vector_store %arg5[%c0_105, %c768_106], %94 {strides = array<i32>} : memref<256x1152xbf16, #tpu.memory_space<vmem>>, vector<256x128xbf16>,
    %c2_107 = arith.constant 2 : index
    %c1_108 = arith.constant 1 : index
    %c0_109 = arith.constant 0 : index
    %96 = vector.load %arg7[%c2_107, %c1_108, %c0_109] : memref<18x18x128xbf16, #tpu.memory_space<vmem>>, vector<16x16x128xbf16>
    %97 = vector.shape_cast %96 : vector<16x16x128xbf16> to vector<256x128xbf16>
    %c0_110 = arith.constant 0 : index
    %c896_111 = arith.constant 896 : index
    %98 = vector.load %arg5[%c0_110, %c896_111] : memref<256x1152xbf16, #tpu.memory_space<vmem>>, vector<256x128xbf16>
    tpu.vector_store %arg5[%c0_110, %c896_111], %97 {strides = array<i32>} : memref<256x1152xbf16, #tpu.memory_space<vmem>>, vector<256x128xbf16>,
    %c2_112 = arith.constant 2 : index
    %c2_113 = arith.constant 2 : index
    %c0_114 = arith.constant 0 : index
    %99 = vector.load %arg7[%c2_112, %c2_113, %c0_114] : memref<18x18x128xbf16, #tpu.memory_space<vmem>>, vector<16x16x128xbf16>
    %100 = vector.shape_cast %99 : vector<16x16x128xbf16> to vector<256x128xbf16>
    %c0_115 = arith.constant 0 : index
    %c1024_116 = arith.constant 1024 : index
    %101 = vector.load %arg5[%c0_115, %c1024_116] : memref<256x1152xbf16, #tpu.memory_space<vmem>>, vector<256x128xbf16>
    tpu.vector_store %arg5[%c0_115, %c1024_116], %100 {strides = array<i32>} : memref<256x1152xbf16, #tpu.memory_space<vmem>>, vector<256x128xbf16>,
    %c0_117 = arith.constant 0 : index
    %c0_118 = arith.constant 0 : index
    %102 = vector.load %arg5[%c0_117, %c0_118] : memref<256x1152xbf16, #tpu.memory_space<vmem>>, vector<256x1152xbf16>
    %c0_119 = arith.constant 0 : index
    %c0_120 = arith.constant 0 : index
    %103 = vector.load %arg3[%c0_119, %c0_120] : memref<1152x128xbf16, #tpu.memory_space<vmem>>, vector<1152x128xbf16>
    %cst_121 = arith.constant dense<0.000000e+00> : vector<256x128xf32>
    %104 = tpu.matmul %102, %103, %cst_121 {dimension_numbers = #tpu.dot_dimension_numbers<[1], [0], [0], [1], [0, 0, 1, 1], [], []>} : vector<256x1152xbf16>, vector<1152x128xbf16>, vector<256x128xf32> -> vector<256x128xf32>
    %c0_122 = arith.constant 0 : index
    %c0_123 = arith.constant 0 : index
    %105 = vector.load %arg6[%c0_122, %c0_123] : memref<256x128xf32, #tpu.memory_space<vmem>>, vector<256x128xf32>
    tpu.vector_store %arg6[%c0_122, %c0_123], %104 {strides = array<i32>} : memref<256x128xf32, #tpu.memory_space<vmem>>, vector<256x128xf32>,
    %c0_124 = arith.constant 0 : index
    %c0_125 = arith.constant 0 : index
    %106 = vector.load %arg6[%c0_124, %c0_125] : memref<256x128xf32, #tpu.memory_space<vmem>>, vector<256x128xf32>
    %cst_126 = arith.constant dense<0.000000e+00> : vector<128xf32>
    %107 = vector.multi_reduction <add>, %106, %cst_126 [0] : vector<256x128xf32> to vector<128xf32>
    %108 = vector.shape_cast %107 : vector<128xf32> to vector<1x128xf32>
    %cst_127 = arith.constant 3.906250e-03 : f32
    %109 = vector.broadcast %cst_127 : f32 to vector<1x128xf32>
    %110 = arith.mulf %108, %109 : vector<1x128xf32>
    %111 = vector.broadcast %110 : vector<1x128xf32> to vector<256x128xf32>
    %112 = arith.subf %106, %111 : vector<256x128xf32>
    %113 = arith.mulf %112, %112 : vector<256x128xf32>
    %cst_128 = arith.constant dense<0.000000e+00> : vector<128xf32>
    %114 = vector.multi_reduction <add>, %113, %cst_128 [0] : vector<256x128xf32> to vector<128xf32>
    %115 = vector.shape_cast %114 : vector<128xf32> to vector<1x128xf32>
    %cst_129 = arith.constant 3.906250e-03 : f32
    %116 = vector.broadcast %cst_129 : f32 to vector<1x128xf32>
    %117 = arith.mulf %115, %116 : vector<1x128xf32>
    %c0_130 = arith.constant 0 : index
    %c1_131 = arith.constant 1 : index
    %c1_132 = arith.constant 1 : index
    %c0_133 = arith.constant 0 : index
    %118 = vector.load %arg1[%c0_130, %c1_131, %c1_132, %c0_133] : memref<1x18x18x128xf32, #tpu.memory_space<vmem>>, vector<1x16x16x128xf32>
    %119 = vector.shape_cast %118 : vector<1x16x16x128xf32> to vector<16x16x128xf32>
    %120 = vector.shape_cast %119 : vector<16x16x128xf32> to vector<256x128xf32>
    %cst_134 = arith.constant 9.99999974E-6 : f32
    %121 = vector.broadcast %cst_134 : f32 to vector<1x128xf32>
    %122 = arith.addf %117, %121 : vector<1x128xf32>
    %123 = math.rsqrt %122 : vector<1x128xf32>
    %124 = vector.broadcast %123 : vector<1x128xf32> to vector<256x128xf32>
    %125 = arith.mulf %112, %124 : vector<256x128xf32>
    %126 = arith.addf %120, %125 : vector<256x128xf32>
    %c0_135 = arith.constant 0 : index
    %c0_136 = arith.constant 0 : index
    %c0_137 = arith.constant 0 : index
    %127 = vector.load %arg4[%c0_135, %c0_136, %c0_137] : memref<1x256x128xf32, #tpu.memory_space<vmem>>, vector<1x256x128xf32>
    %128 = vector.shape_cast %127 : vector<1x256x128xf32> to vector<256x128xf32>
    %129 = vector.shape_cast %126 : vector<256x128xf32> to vector<1x256x128xf32>
    tpu.vector_store %arg4[%c0_135, %c0_136, %c0_137], %129 {strides = array<i32>} : memref<1x256x128xf32, #tpu.memory_space<vmem>>, vector<1x256x128xf32>,
    return
  }
  func.func @transform_0(%arg0: i32) -> (i32, i32, i32, i32) {
    %c0_i32 = arith.constant 0 : i32
    %c0_i32_0 = arith.constant 0 : i32
    %c0_i32_1 = arith.constant 0 : i32
    %c0_i32_2 = arith.constant 0 : i32
    return %arg0, %c0_i32, %c0_i32_0, %c0_i32_1 : i32, i32, i32, i32
  }
  func.func @transform_1(%arg0: i32) -> (i32, i32) {
    %c0_i32 = arith.constant 0 : i32
    %c0_i32_0 = arith.constant 0 : i32
    %c0_i32_1 = arith.constant 0 : i32
    return %c0_i32, %c0_i32_0 : i32, i32
  }
  func.func @transform_2(%arg0: i32) -> (i32, i32) {
    %c0_i32 = arith.constant 0 : i32
    %c0_i32_0 = arith.constant 0 : i32
    %c0_i32_1 = arith.constant 0 : i32
    return %c0_i32, %c0_i32_0 : i32, i32
  }
  func.func @transform_3(%arg0: i32) -> (i32, i32, i32) {
    %c0_i32 = arith.constant 0 : i32
    %c0_i32_0 = arith.constant 0 : i32
    %c0_i32_1 = arith.constant 0 : i32
    return %arg0, %c0_i32, %c0_i32_0 : i32, i32, i32
  }
}

</mosaic_0001>

<bundles_post_ra>
// kernel: residual_block.1
= control target key start
LH: loop header
LB: loop body
LE: loop exit
PB: predicated region body
PF: predicated region fallthrough
CT: control target
= control target key end

     0   :  { %s11811_s12 = smov 0   ;;  %s14870_s0 = inlined_call_operand.vmem [shape: f32[2,18,18,128], index: 0, kind: input, shape index: {}]   ;;  %s14871_s1 = inlined_call_operand.vmem [shape: bf16[1152,128], index: 1, kind: input, shape index: {}]   ;;  %s14872_s2 = inlined_call_operand.vmem [shape: bf16[1152,128], index: 2, kind: input, shape index: {}]   ;;  %s14873_s3 = inlined_call_operand.vmem [shape: f32[2,256,128], index: 3, kind: output, shape index: {}]  }
   0x1 LB: > { %s9309_s13 = sadd.s32 4294967295, %s11788_s12   ;;  %p9313_p0 = scmp.ge.s32.totalorder %s11788_s12, 1  ;;  %s11788_s12 = sphi %s11811_s12, %s13_s12  }
   0x2   : > { %p137_p1 = scmp.lt.s32.totalorder %s11788_s12, 3 }
   0x4   : > { %p138_p2 = pnand %p9313_p0, %p137_p1 }
   0x6   : > { %141 = sbr.rel (%p138_p2) target bundleno = 2056 (0x808), region = 32 }
   0xb   : > { %v11471_v0 = vld [vmem:[%s14871_s1 + $0x38] sm:$0xff]  ;;  %p161_p3 = scmp.lt.s32.totalorder %s9309_s13, 1  ;;  %v11470_v2 = vld [vmem:[%s14871_s1 + $0x30] sm:$0xff]  ;;  %v11790_v4 = vmov 0   ;;  %v11469_v5 = vld [vmem:[%s14871_s1 + $0x28] sm:$0xff]  ;;  %v14883_v51 = vmov 0 }
   0xc   : > { %v11479_v1 = vld [vmem:[%s14871_s1 + $0x78] sm:$0xff]  ;;  %11752 = vmatpush.bf16.msra.mxu2 %v11471_v0  ;;  %v11478_v3 = vld [vmem:[%s14871_s1 + $0x70] sm:$0xff]  ;;  %2510 = vmatpush.bf16.msra.mxu0 %v11471_v0  ;;  %3590 = vst [vmem:[#allocation4] sm:$0xf] %v11790_v4  ;;  %v11477_v6 = vld [vmem:[%s14871_s1 + $0x68] sm:$0xff]  ;;  %vm4794_vm3 = vcmask 1042432  }
   0xd   : > { %11760 = vmatpush.bf16.msra.mxu3 %v11479_v1  ;;  %s14950_s13 = smov (!%p161_p3, %s9309_s13), 1  ;;  %2599 = vmatpush.bf16.msra.mxu1 %v11479_v1  ;;  %3591 = vst [vmem:[#allocation4 + $0x4] sm:$0xf] %v11790_v4  ;;  %v11468_v16 = vld [vmem:[%s14871_s1 + $0x20] sm:$0xff]  ;;  %vm4247_vm0 = vsmask.f32 3328 }
   0xe   : > { %s11768_s22 = smul.u32 432, %s14950_s13  ;;  %3592 = vst [vmem:[#allocation4 + $0x8] sm:$0x1] %v11790_v4  ;;  %v11476_v19 = vld [vmem:[%s14871_s1 + $0x60] sm:$0xff]  ;;  %vm4248_vm1 = vsmask.f32 7440 }
   0xf   : > { %3594 = vst [vmem:[#allocation4 + $0xcc] sm:$0xf] %v11790_v4  ;;  %v11467_v25 = vld [vmem:[%s14871_s1 + $0x18] sm:$0xff]  ;;  %v11466_v49 = vld [vmem:[%s14871_s1 + $0x10] sm:$0xff]  ;;  %vm11877_vm2 = vmor %vm4247_vm0, %vm4248_vm1  ;;  %vm4795_vm4 = vcmask 1046532   ;;  %vm3598_vm6 = vcmask 1040384  }
  0x10   : > { %11753 = vmatpush.bf16.msra.mxu2 %v11470_v2  ;;  %s11843_s29 = scalar_lea.vmem %s14870_s0, %s11768_s22  ;;  %2511 = vmatpush.bf16.msra.mxu0 %v11470_v2  ;;  %3595 = vst [vmem:[#allocation4 + $0xd0] sm:$0xf] %v11790_v4  ;;  %v11475_v26 = vld [vmem:[%s14871_s1 + $0x58] sm:$0xff]  ;;  %v11474_v50 = vld [vmem:[%s14871_s1 + $0x50] sm:$0xff]  ;;  %v14884_v51 = vsel %vm11877_vm2, 4294967295, %v14883_v51  ;;  %v11465_v59 = vld [vmem:[%s14871_s1 + $0x8] sm:$0xff] }
  0x11   : > { %11761 = vmatpush.bf16.msra.mxu3 %v11478_v3  ;;  %2600 = vmatpush.bf16.msra.mxu1 %v11478_v3  ;;  %v188_v7 = vld [vmem:[%s11843_s29 + $0xc0] sm:$0xff]  ;;  %v189_v8 = vld [vmem:[%s11843_s29 + $0xc8] sm:$0xff]  ;;  %3596 = vst [vmem:[#allocation4 + $0xd4] sm:$0x1] %v11790_v4  ;;  %v190_v35 = vld [vmem:[%s11843_s29 + $0xd8] sm:$0xff]  ;;  %vm4021_vm0 = vcmask 1043456  }
  0x12   : > { %v284_v9 = vld [vmem:[%s11843_s29 + $0xc1] sm:$0xff]  ;;  %v220_v10 = vpack.c.bf16 %v188_v7, %v188_v7  ;;  %v221_v11 = vpack.c.bf16 %v189_v8, %v189_v8  ;;  %v285_v12 = vld [vmem:[%s11843_s29 + $0xc9] sm:$0xff]  ;;  %v222_v39 = vpack.c.bf16 %v190_v35, %v190_v35  ;;  %v286_v40 = vld [vmem:[%s11843_s29 + $0xd9] sm:$0xff]  ;;  %14885 = vst [vmem:[#allocation5_spill] sm:$0xff] %v14884_v51  ;;  %vm3599_vm7 = vsmask.f32 256 }
  0x13   : > { %v316_v13 = vpack.c.bf16 %v284_v9, %v284_v9  ;;  %v172_v14 = vld [vmem:[%s11843_s29] sm:$0xff]  ;;  %v173_v15 = vld [vmem:[%s11843_s29 + $0x8] sm:$0xff]  ;;  %v317_v17 = vpack.c.bf16 %v285_v12, %v285_v12  ;;  %v318_v46 = vpack.c.bf16 %v286_v40, %v286_v40  ;;  %v174_v56 = vld [vmem:[%s11843_s29 + $0x18] sm:$0xff]  ;;  %vm3649_vm9 = vsmask.f32 7938  ;;  %s11319_s17 = sshll.u32 %s14950_s13, 8 }
  0x14   : > { %v268_v18 = vld [vmem:[%s11843_s29 + $0x1] sm:$0xff]  ;;  %11754 = vmatpush.bf16.msra.mxu2 %v11469_v5  ;;  %252 = vst [vmem:[#allocation2 + $0x240] sm:$0xf] %v220_v10  ;;  %v204_v20 = vpack.c.bf16 %v172_v14, %v172_v14  ;;  %v269_v21 = vld [vmem:[%s11843_s29 + $0x9] sm:$0xff]  ;;  %2512 = vmatpush.bf16.msra.mxu0 %v11469_v5  ;;  %v205_v23 = vpack.c.bf16 %v173_v15, %v173_v15  ;;  %v270_v62 = vld [vmem:[%s11843_s29 + $0x19] sm:$0xff]  ;;  %s14751_s19 = scalar_lea.vmem %s14873_s3, %s11319_s17 }
  0x15   : > { %11762 = vmatpush.bf16.msra.mxu3 %v11477_v6  ;;  %v4199_v22 = vld [vmem:[#allocation4] sm:$0xf]  ;;  %2601 = vmatpush.bf16.msra.mxu1 %v11477_v6  ;;  %253 = vst [vmem:[#allocation2 + $0x264] sm:$0xf] %v221_v11  ;;  %v4200_v24 = vld [vmem:[#allocation4 + $0x4] sm:$0xf]  ;;  %v300_v27 = vpack.c.bf16 %v268_v18, %v268_v18  ;;  %v301_v31 = vpack.c.bf16 %v269_v21, %v269_v21  ;;  %vm12101_vm5 = vmor %vm4794_vm3, %vm4795_vm4 }
  0x16   : > { %348 = vst [vmem:[#allocation2 + $0x244] sm:$0xf] %v316_v13  ;;  %v4201_v28 = vld [vmem:[#allocation4 + $0x8] sm:$0x1]  ;;  %v4251_v29 = vshrl.u32 %v4199_v22, 16  ;;  %v4254_v30 = vshll.u32 %v4199_v22, 16  ;;  %v11898_v2 = vpack.c.bf16 %v174_v56, %v174_v56  ;;  %v11904_v10 = vpack.c.bf16 %v270_v62, %v270_v62  ;;  %vm12474_vm8 = vmand %vm3598_vm6, %vm3599_vm7 }
  0x17   : > { %349 = vst [vmem:[#allocation2 + $0x268] sm:$0xf] %v317_v17  ;;  %v4260_v32 = vshll.u32 %v4200_v24, 16  ;;  %v4264_v33 = vshrl.u32 %v4200_v24, 16  ;;  %v4270_v34 = vshll.u32 %v4201_v28, 16  ;;  %v191_v38 = vld [vmem:[%s11843_s29 + $0xe0] sm:$0xff]  ;;  %vm12485_vm10 = vmand %vm3598_vm6, %vm3649_vm9 }
  0x18   : > { %11755 = vmatpush.bf16.msra.mxu2 %v11468_v16  ;;  %236 = vst [vmem:[#allocation2] sm:$0xf] %v204_v20  ;;  %v4253_v36 = vrot.slane %v4251_v29, 4  ;;  %v4256_v37 = vrot.slane %v4254_v30, 5  ;;  %2513 = vmatpush.bf16.msra.mxu0 %v11468_v16  ;;  %v223_v43 = vpack.c.bf16 %v191_v38, %v191_v38  ;;  %v287_v44 = vld [vmem:[%s11843_s29 + $0xe1] sm:$0xff]  ;;  %v192_v6 = vld [vmem:[%s11843_s29 + $0xf0] sm:$0xff]  ;;  %vm13358_vm1 = vmand %vm4021_vm0, %vm3649_vm9 }
  0x19   : > { %11763 = vmatpush.bf16.msra.mxu3 %v11476_v19  ;;  %2602 = vmatpush.bf16.msra.mxu1 %v11476_v19  ;;  %237 = vst [vmem:[#allocation2 + $0x24] sm:$0xf] %v205_v23  ;;  %v4262_v41 = vrot.slane %v4260_v32, 5  ;;  %v4266_v42 = vrot.slane %v4264_v33, 4  ;;  %v319_v48 = vpack.c.bf16 %v287_v44, %v287_v44  ;;  %v4272_v53 = vrot.slane %v4270_v34, 5  ;;  %v175_v58 = vld [vmem:[%s11843_s29 + $0x20] sm:$0xff] }
  0x1a   : > { %332 = vst [vmem:[#allocation2 + $0x4] sm:$0xf] %v300_v27  ;;  %v4257_v45 = vor.u32 %v4256_v37, %v4253_v36  ;;  %v4135_v54 = vld [vmem:[#allocation4] sm:$0xf]  ;;  %v4136_v57 = vld [vmem:[#allocation4 + $0x4] sm:$0xf]  ;;  %v11901_v5 = vpack.c.bf16 %v175_v58, %v175_v58  ;;  %v224_v18 = vpack.c.bf16 %v192_v6, %v192_v6 }
  0x1b   : > { %333 = vst [vmem:[#allocation2 + $0x28] sm:$0xf] %v301_v31  ;;  %v4267_v47 = vor.u32 %v4266_v42, %v4262_v41  ;;  %v11473_v63 = vld [vmem:[%s14871_s1 + $0x48] sm:$0xff]  ;;  %v9799_v7 = vld [vmem:[#allocation2 + $0x240] sm:$0xf]  ;;  %v193_v11 = vld [vmem:[%s11843_s29 + $0xf8] sm:$0xff] }
  0x1c   : > { %11756 = vmatpush.bf16.msra.mxu2 %v11467_v25  ;;  %v4258_v52 = vrot.slane %v4257_v45, 4  ;;  %254 = vst [vmem:[#allocation2 + $0x288] sm:$0xf] %v222_v39  ;;  %2514 = vmatpush.bf16.msra.mxu0 %v11467_v25  ;;  %v271_v3 = vld [vmem:[%s11843_s29 + $0x21] sm:$0xff]  ;;  %v288_v15 = vld [vmem:[%s11843_s29 + $0xf1] sm:$0xff]  ;;  %v289_v19 = vld [vmem:[%s11843_s29 + $0xf9] sm:$0xff]  ;;  %v225_v20 = vpack.c.bf16 %v193_v11, %v193_v11 }
  0x1d   : > { %11764 = vmatpush.bf16.msra.mxu3 %v11475_v26  ;;  %2603 = vmatpush.bf16.msra.mxu1 %v11475_v26  ;;  %v4268_v55 = vrot.slane %v4267_v47, 4  ;;  %255 = vst [vmem:[#allocation2 + $0x2ac] sm:$0xf] %v223_v43  ;;  %v11396_v8 = vld [vmem:[#allocation2 + $0x260] sm:$0xf0]  ;;  %v11910_v14 = vpack.c.bf16 %v271_v3, %v271_v3  ;;  %v176_v21 = vld [vmem:[%s11843_s29 + $0x30] sm:$0xff]  ;;  %v320_v24 = vpack.c.bf16 %v288_v15, %v288_v15 }
  0x1e   : > { %350 = vst [vmem:[#allocation2 + $0x28c] sm:$0xf] %v318_v46  ;;  %v4263_v61 = vsel %vm11877_vm2, %v4258_v52, %v4262_v41  ;;  %v11464_v12 = vld [vmem:[%s14871_s1] sm:$0xff]  ;;  %v9801_v17 = vld [vmem:[#allocation2 + $0x264] sm:$0xf0]  ;;  %v11487_v22 = vld [vmem:[%s14871_s1 + $0xb8] sm:$0xff]  ;;  %v9800_v26 = vor.u32 %v11396_v8, %v9799_v7  ;;  %v321_v28 = vpack.c.bf16 %v289_v19, %v289_v19  ;;  %v11932_v32 = vpack.c.bf16 %v176_v21, %v176_v21 }
  0x1f   : > { %v11886_v60 = vld [vmem:[#allocation2] sm:$0xf]  ;;  %351 = vst [vmem:[#allocation2 + $0x2b0] sm:$0xf] %v319_v48  ;;  %v4273_v1 = vsel %vm11877_vm2, %v4268_v55, %v4272_v53  ;;  %v11392_v13 = vld [vmem:[#allocation2 + $0x244] sm:$0xf] }
  0x20   : > { %11757 = vmatpush.bf16.msra.mxu2 %v11466_v49  ;;  %v11894_v0 = vld [vmem:[#allocation2 + $0x20] sm:$0xf0]  ;;  %4167 = vst [vmem:[#allocation2] sm:$0xf] %v4135_v54  ;;  %2515 = vmatpush.bf16.msra.mxu0 %v11466_v49  ;;  %v11495_v23 = vld [vmem:[%s14871_s1 + $0xf8] sm:$0xff]  ;;  %v9804_v27 = vor.u32 %v11392_v13, %v9801_v17  ;;  %v11486_v36 = vld [vmem:[%s14871_s1 + $0xb0] sm:$0xff] }
  0x21   : > { %11765 = vmatpush.bf16.msra.mxu3 %v11474_v50  ;;  %2604 = vmatpush.bf16.msra.mxu1 %v11474_v50  ;;  %4168 = vst [vmem:[#allocation2 + $0x24] sm:$0xf] %v4136_v57  ;;  %v11320_v4 = vld [vmem:[#allocation2 + $0x4] sm:$0xf]  ;;  %v177_v25 = vld [vmem:[%s11843_s29 + $0x38] sm:$0xff]  ;;  %v9512_v30 = vor.u32 %v11894_v0, %v11886_v60  ;;  %v11494_v37 = vld [vmem:[%s14871_s1 + $0xf0] sm:$0xff] }
  0x22   : > { %v9513_v9 = vld [vmem:[#allocation2 + $0x24] sm:$0xf0]  ;;  %4666 = vst [vmem:[#allocation2 + $0x4] sm:$0xf] %v4263_v61  ;;  %v11472_v16 = vld [vmem:[%s14871_s1 + $0x40] sm:$0xff]  ;;  %v272_v29 = vld [vmem:[%s11843_s29 + $0x31] sm:$0xff]  ;;  %v11938_v35 = vpack.c.bf16 %v177_v25, %v177_v25 }
  0x23   : > { %4667 = vst [vmem:[#allocation2 + $0x28] sm:$0xf] %v4273_v1  ;;  %v9516_v31 = vor.u32 %v11320_v4, %v9513_v9  ;;  %v273_v33 = vld [vmem:[%s11843_s29 + $0x39] sm:$0xff]  ;;  %v11946_v38 = vpack.c.bf16 %v272_v29, %v272_v29  ;;  %v11502_v40 = vld [vmem:[%s14871_s1 + $0x130] sm:$0xff]  ;;  %v11485_v41 = vld [vmem:[%s14871_s1 + $0xa8] sm:$0xff] }
  0x24   : > { %11758 = vmatpush.bf16.msra.mxu2 %v11465_v59  ;;  %238 = vst [vmem:[#allocation2 + $0x48] sm:$0xf] %v11898_v2  ;;  %2516 = vmatpush.bf16.msra.mxu0 %v11465_v59  ;;  %v11503_v34 = vld [vmem:[%s14871_s1 + $0x138] sm:$0xff]  ;;  %v11948_v39 = vpack.c.bf16 %v273_v33, %v273_v33  ;;  %v194_v42 = vld [vmem:[%s11843_s29 + $0x108] sm:$0xff]  ;;  %v195_v43 = vld [vmem:[%s11843_s29 + $0x110] sm:$0xff] }
  0x25   : > { %11766 = vmatpush.bf16.msra.mxu3 %v11473_v63  ;;  %2605 = vmatpush.bf16.msra.mxu1 %v11473_v63  ;;  %239 = vst [vmem:[#allocation2 + $0x6c] sm:$0xf] %v11901_v5  ;;  %v11493_v44 = vld [vmem:[%s14871_s1 + $0xe8] sm:$0xff]  ;;  %v226_v45 = vpack.c.bf16 %v194_v42, %v194_v42  ;;  %v227_v46 = vpack.c.bf16 %v195_v43, %v195_v43  ;;  %v291_v48 = vld [vmem:[%s11843_s29 + $0x111] sm:$0xff]  ;;  %vm3699_vm14 = vsmask.f32 4368 }
  0x26   : > { %334 = vst [vmem:[#allocation2 + $0x4c] sm:$0xf] %v11904_v10  ;;  %v290_v47 = vld [vmem:[%s11843_s29 + $0x109] sm:$0xff]  ;;  %v323_v50 = vpack.c.bf16 %v291_v48, %v291_v48  ;;  %v275_v58 = vld [vmem:[%s11843_s29 + $0x51] sm:$0xff]  ;;  %v295_v48 = vld [vmem:[%s11843_s29 + $0x141] sm:$0xff] }
  0x27   : > { %335 = vst [vmem:[#allocation2 + $0x70] sm:$0xf] %v11910_v14  ;;  %v322_v49 = vpack.c.bf16 %v290_v47, %v290_v47  ;;  %v178_v52 = vld [vmem:[%s11843_s29 + $0x48] sm:$0xff]  ;;  %v179_v53 = vld [vmem:[%s11843_s29 + $0x50] sm:$0xff]  ;;  %v11980_v0 = vpack.c.bf16 %v275_v58, %v275_v58  ;;  %v11499_v42 = vld [vmem:[%s14871_s1 + $0x118] sm:$0xff] }
  0x28   : > { %11759 = vmatpush.bf16.msra.mxu2 %v11464_v12  ;;  %256 = vst [vmem:[#allocation2 + $0x2d0] sm:$0xf] %v224_v18  ;;  %2517 = vmatpush.bf16.msra.mxu0 %v11464_v12  ;;  %v11501_v54 = vld [vmem:[%s14871_s1 + $0x128] sm:$0xff]  ;;  %v11972_v55 = vpack.c.bf16 %v178_v52, %v178_v52  ;;  %v11974_v56 = vpack.c.bf16 %v179_v53, %v179_v53  ;;  %v9837_v63 = vld [vmem:[#allocation2 + $0x2ac] sm:$0xf0]  ;;  %v11484_v12 = vld [vmem:[%s14871_s1 + $0xa0] sm:$0xff] }
  0x29   : > { %11767 = vmatpush.bf16.msra.mxu3 %v11472_v16  ;;  %2606 = vmatpush.bf16.msra.mxu1 %v11472_v16  ;;  %257 = vst [vmem:[#allocation2 + $0x2f4] sm:$0xf] %v225_v20  ;;  %v274_v57 = vld [vmem:[%s11843_s29 + $0x49] sm:$0xff]  ;;  %v292_v16 = vld [vmem:[%s11843_s29 + $0x121] sm:$0xff]  ;;  %v198_v43 = vld [vmem:[%s11843_s29 + $0x138] sm:$0xff] }
  0x2a   : > { %352 = vst [vmem:[#allocation2 + $0x2d4] sm:$0xf] %v320_v24  ;;  %v9835_v59 = vld [vmem:[#allocation2 + $0x288] sm:$0xf]  ;;  %v11405_v60 = vld [vmem:[#allocation2 + $0x2a8] sm:$0xf0]  ;;  %v11978_v61 = vpack.c.bf16 %v274_v57, %v274_v57  ;;  %v324_v18 = vpack.c.bf16 %v292_v16, %v292_v16  ;;  %vm13025_vm15 = vmor %vm3599_vm7, %vm3699_vm14 }
  0x2b   : > { %2558 = vmatmul.bf16.vlgmr.msra.gmra.mxu2 %v9800_v26  ;;  %353 = vst [vmem:[#allocation2 + $0x2f8] sm:$0xf] %v321_v28  ;;  %2518 = vmatmul.bf16.vlgmr.msra.gmra.mxu0 %v9512_v30  ;;  %v11401_v62 = vld [vmem:[#allocation2 + $0x28c] sm:$0xf]  ;;  %v9547_v1 = vld [vmem:[#allocation2 + $0x48] sm:$0xf]  ;;  %v9836_v7 = vor.u32 %v11405_v60, %v9835_v59 }
  0x2c   : > { %2688 = vmatpush.bf16.msrb.mxu2 %v11487_v22  ;;  %2647 = vmatmul.bf16.vlgmr.msra.gmra.mxu3 %v9804_v27  ;;  %240 = vst [vmem:[#allocation2 + $0x90] sm:$0xf] %v11932_v32  ;;  %v11333_v3 = vld [vmem:[#allocation2 + $0x68] sm:$0xf0]  ;;  %v9840_v8 = vor.u32 %v11401_v62, %v9837_v63  ;;  %v180_v20 = vld [vmem:[%s11843_s29 + $0x60] sm:$0xff]  ;;  %v182_v52 = vld [vmem:[%s11843_s29 + $0x78] sm:$0xff] }
  0x2d   : > { %2777 = vmatpush.bf16.msrb.mxu3 %v11495_v23  ;;  %2607 = vmatmul.bf16.vlgmr.msra.gmra.mxu1 %v9516_v31  ;;  %241 = vst [vmem:[#allocation2 + $0xb4] sm:$0xf] %v11938_v35  ;;  %v11329_v4 = vld [vmem:[#allocation2 + $0x4c] sm:$0xf]  ;;  %v9548_v9 = vor.u32 %v11333_v3, %v9547_v1  ;;  %v276_v22 = vld [vmem:[%s11843_s29 + $0x61] sm:$0xff]  ;;  %v212_v23 = vpack.c.bf16 %v180_v20, %v180_v20  ;;  %v294_v47 = vld [vmem:[%s11843_s29 + $0x139] sm:$0xff] }
  0x2e   : > { %2866 = vmatpush.bf16.msrb.mxu0 %v11503_v34  ;;  %336 = vst [vmem:[#allocation2 + $0x94] sm:$0xf] %v11946_v38  ;;  %v9549_v6 = vld [vmem:[#allocation2 + $0x6c] sm:$0xf0]  ;;  %v197_v13 = vld [vmem:[%s11843_s29 + $0x128] sm:$0xff]  ;;  %v308_v28 = vpack.c.bf16 %v276_v22, %v276_v22  ;;  %v183_v53 = vld [vmem:[%s11843_s29 + $0x80] sm:$0xff] }
  0x2f   : > { %337 = vst [vmem:[#allocation2 + $0xb8] sm:$0xf] %v11948_v39  ;;  %v9552_v11 = vor.u32 %v11329_v4, %v9549_v6  ;;  %v229_v15 = vpack.c.bf16 %v197_v13, %v197_v13  ;;  %v293_v17 = vld [vmem:[%s11843_s29 + $0x129] sm:$0xff]  ;;  %v279_v57 = vld [vmem:[%s11843_s29 + $0x81] sm:$0xff]  ;;  %v297_v16 = vld [vmem:[%s11843_s29 + $0x159] sm:$0xff] }
  0x30   : > { %2689 = vmatpush.bf16.msrb.mxu2 %v11486_v36  ;;  %258 = vst [vmem:[#allocation2 + $0x318] sm:$0xf] %v226_v45  ;;  %v325_v19 = vpack.c.bf16 %v293_v17, %v293_v17  ;;  %v181_v21 = vld [vmem:[%s11843_s29 + $0x68] sm:$0xff]  ;;  %v9871_v26 = vld [vmem:[#allocation2 + $0x2d0] sm:$0xf]  ;;  %v230_v45 = vpack.c.bf16 %v198_v43, %v198_v43  ;;  %v311_v63 = vpack.c.bf16 %v279_v57, %v279_v57  ;;  %v185_v20 = vld [vmem:[%s11843_s29 + $0x98] sm:$0xff] }
  0x31   : > { %2778 = vmatpush.bf16.msrb.mxu3 %v11494_v37  ;;  %259 = vst [vmem:[#allocation2 + $0x33c] sm:$0xf] %v227_v46  ;;  %v213_v24 = vpack.c.bf16 %v181_v21, %v181_v21  ;;  %v277_v25 = vld [vmem:[%s11843_s29 + $0x69] sm:$0xff]  ;;  %v11414_v27 = vld [vmem:[#allocation2 + $0x2f0] sm:$0xf0] }
  0x32   : > { %2867 = vmatpush.bf16.msrb.mxu0 %v11502_v40  ;;  %354 = vst [vmem:[#allocation2 + $0x31c] sm:$0xf] %v322_v49  ;;  %v11410_v29 = vld [vmem:[#allocation2 + $0x2d4] sm:$0xf]  ;;  %v9873_v30 = vld [vmem:[#allocation2 + $0x2f4] sm:$0xf0]  ;;  %v309_v31 = vpack.c.bf16 %v277_v25, %v277_v25  ;;  %v9872_v36 = vor.u32 %v11414_v27, %v9871_v26  ;;  %v326_v49 = vpack.c.bf16 %v294_v47, %v294_v47 }
  0x33   : > { %355 = vst [vmem:[#allocation2 + $0x340] sm:$0xf] %v323_v50  ;;  %v9876_v37 = vor.u32 %v11410_v29, %v9873_v30  ;;  %v11483_v40 = vld [vmem:[%s14871_s1 + $0x98] sm:$0xff]  ;;  %v327_v50 = vpack.c.bf16 %v295_v48, %v295_v48  ;;  %v202_v43 = vld [vmem:[%s11843_s29 + $0x168] sm:$0xff] }
  0x34   : > { %2690 = vmatpush.bf16.msrb.mxu2 %v11485_v41  ;;  %242 = vst [vmem:[#allocation2 + $0xd8] sm:$0xf] %v11972_v55  ;;  %v11342_v33 = vld [vmem:[#allocation2 + $0xb0] sm:$0xf0]  ;;  %v11491_v41 = vld [vmem:[%s14871_s1 + $0xd8] sm:$0xff] }
  0x35   : > { %2779 = vmatpush.bf16.msrb.mxu3 %v11493_v44  ;;  %243 = vst [vmem:[#allocation2 + $0xfc] sm:$0xf] %v11974_v56  ;;  %v11338_v34 = vld [vmem:[#allocation2 + $0x94] sm:$0xf]  ;;  %v199_v44 = vld [vmem:[%s11843_s29 + $0x140] sm:$0xff] }
  0x36   : > { %2868 = vmatpush.bf16.msrb.mxu0 %v11501_v54  ;;  %338 = vst [vmem:[#allocation2 + $0xdc] sm:$0xf] %v11978_v61  ;;  %v231_v46 = vpack.c.bf16 %v199_v44, %v199_v44  ;;  %v278_v54 = vld [vmem:[%s11843_s29 + $0x79] sm:$0xff]  ;;  %v280_v21 = vld [vmem:[%s11843_s29 + $0x91] sm:$0xff] }
  0x37   : > { %339 = vst [vmem:[#allocation2 + $0x100] sm:$0xf] %v11980_v0  ;;  %v9907_v58 = vld [vmem:[#allocation2 + $0x318] sm:$0xf]  ;;  %v310_v60 = vpack.c.bf16 %v278_v54, %v278_v54  ;;  %v312_v27 = vpack.c.bf16 %v280_v21, %v280_v21  ;;  %v203_v44 = vld [vmem:[%s11843_s29 + $0x170] sm:$0xff] }
  0x38   : > { %525 = vst [vmem:[#allocation2 + $0xc] sm:$0xf] %v11898_v2  ;;  %v11492_v2 = vld [vmem:[%s14871_s1 + $0xe0] sm:$0xff]  ;;  %2691 = vmatpush.bf16.msrb.mxu2 %v11484_v12  ;;  %v11423_v59 = vld [vmem:[#allocation2 + $0x338] sm:$0xf0]  ;;  %v11490_v12 = vld [vmem:[%s14871_s1 + $0xd0] sm:$0xff]  ;;  %v235_v47 = vpack.c.bf16 %v203_v44, %v203_v44 }
  0x39   : > { %526 = vst [vmem:[#allocation2 + $0x30] sm:$0xf] %v11901_v5  ;;  %v11500_v5 = vld [vmem:[%s14871_s1 + $0x120] sm:$0xff]  ;;  %2780 = vmatpush.bf16.msrb.mxu3 %v11492_v2  ;;  %v9908_v6 = vor.u32 %v11423_v59, %v9907_v58  ;;  %v11498_v2 = vld [vmem:[%s14871_s1 + $0x110] sm:$0xff] }
  0x3a   : > { %621 = vst [vmem:[#allocation2 + $0x10] sm:$0xf] %v11904_v10  ;;  %v196_v10 = vld [vmem:[%s11843_s29 + $0x120] sm:$0xff]  ;;  %2869 = vmatpush.bf16.msrb.mxu0 %v11500_v5  ;;  %v200_v5 = vld [vmem:[%s11843_s29 + $0x150] sm:$0xff] }
  0x3b   : > { %2563 = vmatmul.bf16.gmra.mxu2 %v9836_v7  ;;  %622 = vst [vmem:[#allocation2 + $0x34] sm:$0xf] %v11910_v14  ;;  %2523 = vmatmul.bf16.gmra.mxu0 %v9548_v9  ;;  %v228_v14 = vpack.c.bf16 %v196_v10, %v196_v10  ;;  %v9909_v62 = vld [vmem:[#allocation2 + $0x33c] sm:$0xf0]  ;;  %v201_v10 = vld [vmem:[%s11843_s29 + $0x158] sm:$0xff]  ;;  %v232_v13 = vpack.c.bf16 %v200_v5, %v200_v5  ;;  %v282_v54 = vld [vmem:[%s11843_s29 + $0xa9] sm:$0xff] }
  0x3c   : > { %2652 = vmatmul.bf16.gmra.mxu3 %v9840_v8  ;;  %527 = vst [vmem:[#allocation2 + $0x54] sm:$0xf] %v11932_v32  ;;  %v9583_v32 = vld [vmem:[#allocation2 + $0x90] sm:$0xf]  ;;  %2692 = vmatpush.bf16.msrb.mxu2 %v11483_v40  ;;  %v11351_v1 = vld [vmem:[#allocation2 + $0xf8] sm:$0xf0] }
  0x3d   : > { %2612 = vmatmul.bf16.gmra.mxu1 %v9552_v11  ;;  %528 = vst [vmem:[#allocation2 + $0x78] sm:$0xf] %v11938_v35  ;;  %v9585_v35 = vld [vmem:[#allocation2 + $0xb4] sm:$0xf0]  ;;  %2781 = vmatpush.bf16.msrb.mxu3 %v11491_v41  ;;  %v11347_v3 = vld [vmem:[#allocation2 + $0xdc] sm:$0xf] }
  0x3e   : > { %623 = vst [vmem:[#allocation2 + $0x58] sm:$0xf] %v11946_v38  ;;  %v9584_v38 = vor.u32 %v11342_v33, %v9583_v32  ;;  %2870 = vmatpush.bf16.msrb.mxu0 %v11499_v42  ;;  %v9621_v4 = vld [vmem:[#allocation2 + $0xfc] sm:$0xf0]  ;;  %v11482_v11 = vld [vmem:[%s14871_s1 + $0x90] sm:$0xff]  ;;  %v11489_v40 = vld [vmem:[%s14871_s1 + $0xc8] sm:$0xff] }
  0x3f   : > { %624 = vst [vmem:[#allocation2 + $0x7c] sm:$0xf] %v11948_v39  ;;  %v9588_v39 = vor.u32 %v11338_v34, %v9585_v35  ;;  %v9624_v9 = vor.u32 %v11347_v3, %v9621_v4  ;;  %v11497_v41 = vld [vmem:[%s14871_s1 + $0x108] sm:$0xff]  ;;  %v11511_v42 = vld [vmem:[%s14871_s1 + $0x178] sm:$0xff] }
  0x40   : > { %260 = vst [vmem:[#allocation2 + $0x360] sm:$0xf] %v228_v14  ;;  %2693 = vmatpush.bf16.msrb.mxu2 %v11482_v11  ;;  %v233_v14 = vpack.c.bf16 %v201_v10, %v201_v10  ;;  %2955 = vmatpush.bf16.msrb.mxu1 %v11511_v42  ;;  %v299_v48 = vld [vmem:[%s11843_s29 + $0x171] sm:$0xff]  ;;  %v11509_v5 = vld [vmem:[%s14871_s1 + $0x168] sm:$0xff]  ;;  %v11496_v10 = vld [vmem:[%s14871_s1 + $0x100] sm:$0xff] }
  0x41   : > { %261 = vst [vmem:[#allocation2 + $0x384] sm:$0xf] %v229_v15  ;;  %2782 = vmatpush.bf16.msrb.mxu3 %v11490_v12  ;;  %v296_v15 = vld [vmem:[%s11843_s29 + $0x151] sm:$0xff]  ;;  %v11480_v12 = vld [vmem:[%s14871_s1 + $0x80] sm:$0xff] }
  0x42   : > { %356 = vst [vmem:[#allocation2 + $0x364] sm:$0xf] %v324_v18  ;;  %2871 = vmatpush.bf16.msrb.mxu0 %v11498_v2  ;;  %v328_v17 = vpack.c.bf16 %v296_v15, %v296_v15  ;;  %v329_v18 = vpack.c.bf16 %v297_v16, %v297_v16  ;;  %v283_v57 = vld [vmem:[%s11843_s29 + $0xb1] sm:$0xff]  ;;  %v11488_v2 = vld [vmem:[%s14871_s1 + $0xc0] sm:$0xff] }
  0x43   : > { %357 = vst [vmem:[#allocation2 + $0x388] sm:$0xf] %v325_v19  ;;  %v184_v19 = vld [vmem:[%s11843_s29 + $0x90] sm:$0xff]  ;;  %v9382_v42 = vld [vmem:[%s11843_s29 + $0x22] sm:$0xff] }
  0x44   : > { %244 = vst [vmem:[#allocation2 + $0x120] sm:$0xf] %v212_v23  ;;  %v216_v22 = vpack.c.bf16 %v184_v19, %v184_v19  ;;  %v11510_v11 = vld [vmem:[%s14871_s1 + $0x170] sm:$0xff] }
  0x45   : > { %245 = vst [vmem:[#allocation2 + $0x144] sm:$0xf] %v213_v24  ;;  %2783 = vmatpush.bf16.msrb.mxu3 %v11489_v40  ;;  %2956 = vmatpush.bf16.msrb.mxu1 %v11510_v11  ;;  %v9527_v11 = vld [vmem:[#allocation2 + $0x10] sm:$0xf] }
  0x46   : > { %340 = vst [vmem:[#allocation2 + $0x124] sm:$0xf] %v308_v28  ;;  %2872 = vmatpush.bf16.msrb.mxu0 %v11497_v41  ;;  %v9381_v41 = vld [vmem:[%s11843_s29 + $0x1a] sm:$0xff] }
  0x47   : > { %341 = vst [vmem:[#allocation2 + $0x148] sm:$0xf] %v309_v31  ;;  %v9943_v25 = vld [vmem:[#allocation2 + $0x360] sm:$0xf] }
  0x48   : > { %529 = vst [vmem:[#allocation2 + $0x9c] sm:$0xf] %v11972_v55  ;;  %v214_v55 = vpack.c.bf16 %v182_v52, %v182_v52  ;;  %v11432_v26 = vld [vmem:[#allocation2 + $0x380] sm:$0xf0]  ;;  %v186_v52 = vld [vmem:[%s11843_s29 + $0xa8] sm:$0xff] }
  0x49   : > { %530 = vst [vmem:[#allocation2 + $0xc0] sm:$0xf] %v11974_v56  ;;  %v215_v56 = vpack.c.bf16 %v183_v53, %v183_v53  ;;  %v9944_v35 = vor.u32 %v11432_v26, %v9943_v25  ;;  %v187_v53 = vld [vmem:[%s11843_s29 + $0xb0] sm:$0xff]  ;;  %2784 = vmatpush.bf16.msrb.mxu3 %v11488_v2  ;;  %2957 = vmatpush.bf16.msrb.mxu1 %v11509_v5  ;;  %v11507_v26 = vld [vmem:[%s14871_s1 + $0x158] sm:$0xff] }
  0x4a   : > { %625 = vst [vmem:[#allocation2 + $0xa0] sm:$0xf] %v11978_v61  ;;  %v11419_v61 = vld [vmem:[#allocation2 + $0x31c] sm:$0xf]  ;;  %v9945_v29 = vld [vmem:[#allocation2 + $0x384] sm:$0xf0]  ;;  %2873 = vmatpush.bf16.msrb.mxu0 %v11496_v10 }
  0x4b   : > { %2568 = vmatmul.bf16.gmra.mxu2 %v9872_v36  ;;  %626 = vst [vmem:[#allocation2 + $0xc4] sm:$0xf] %v11980_v0  ;;  %2528 = vmatmul.bf16.gmra.mxu0 %v9584_v38  ;;  %v9619_v0 = vld [vmem:[#allocation2 + $0xd8] sm:$0xf]  ;;  %v9912_v7 = vor.u32 %v11419_v61, %v9909_v62 }
  0x4c   : > { %2657 = vmatmul.bf16.gmra.mxu3 %v9876_v37  ;;  %531 = vst [vmem:[#allocation2 + $0xe4] sm:$0xf] %v212_v23  ;;  %v9620_v8 = vor.u32 %v11351_v1, %v9619_v0  ;;  %v217_v23 = vpack.c.bf16 %v185_v20, %v185_v20  ;;  %v11360_v32 = vld [vmem:[#allocation2 + $0x140] sm:$0xf0] }
  0x4d   : > { %2617 = vmatmul.bf16.gmra.mxu1 %v9588_v39  ;;  %532 = vst [vmem:[#allocation2 + $0x108] sm:$0xf] %v213_v24  ;;  %v281_v24 = vld [vmem:[%s11843_s29 + $0x99] sm:$0xff]  ;;  %v11356_v33 = vld [vmem:[#allocation2 + $0x124] sm:$0xf]  ;;  %v11481_v39 = vld [vmem:[%s14871_s1 + $0x88] sm:$0xff] }
  0x4e   : > { %627 = vst [vmem:[#allocation2 + $0xe8] sm:$0xf] %v308_v28  ;;  %v11428_v28 = vld [vmem:[#allocation2 + $0x364] sm:$0xf]  ;;  %v313_v30 = vpack.c.bf16 %v281_v24, %v281_v24  ;;  %v9657_v34 = vld [vmem:[#allocation2 + $0x144] sm:$0xf0]  ;;  %2694 = vmatpush.bf16.msrb.mxu2 %v11481_v39 }
  0x4f   : > { %628 = vst [vmem:[#allocation2 + $0x10c] sm:$0xf] %v309_v31  ;;  %v9655_v31 = vld [vmem:[#allocation2 + $0x120] sm:$0xf]  ;;  %v9948_v36 = vor.u32 %v11428_v28, %v9945_v29  ;;  %v9660_v38 = vor.u32 %v11356_v33, %v9657_v34  ;;  %v4699_v33 = vld [vmem:[#allocation4 + $0x4] sm:$0xf] }
  0x50   : > { %262 = vst [vmem:[#allocation2 + $0x3a8] sm:$0xf] %v230_v45  ;;  %v9656_v37 = vor.u32 %v11360_v32, %v9655_v31  ;;  %v234_v45 = vpack.c.bf16 %v202_v43, %v202_v43  ;;  %v11506_v31 = vld [vmem:[%s14871_s1 + $0x150] sm:$0xff]  ;;  %v4698_v32 = vld [vmem:[#allocation4] sm:$0xe]  ;;  %v14886_v39 = vmov 0 }
  0x51   : > { %263 = vst [vmem:[#allocation2 + $0x3cc] sm:$0xf] %v231_v46  ;;  %v298_v46 = vld [vmem:[%s11843_s29 + $0x169] sm:$0xff]  ;;  %v4700_v34 = vld [vmem:[#allocation4 + $0x8] sm:$0x1]  ;;  %v14887_v39 = vsel %vm12101_vm5, 4294967295, %v14886_v39 }
  0x52   : > { %358 = vst [vmem:[#allocation2 + $0x3ac] sm:$0xf] %v326_v49  ;;  %v330_v49 = vpack.c.bf16 %v298_v46, %v298_v46  ;;  %2695 = vmatpush.bf16.msrb.mxu2 %v11480_v12  ;;  %v4802_v40 = vrot.slane %v4700_v34, 5  ;;  %v11505_v46 = vld [vmem:[%s14871_s1 + $0x148] sm:$0xff]  ;;  %v11326_v12 = vld [vmem:[#allocation2 + $0x30] sm:$0xf0] }
  0x53   : > { %359 = vst [vmem:[#allocation2 + $0x3d0] sm:$0xf] %v327_v50  ;;  %v331_v50 = vpack.c.bf16 %v299_v48, %v299_v48  ;;  %v686_v48 = vpack.c.bf16 %v9382_v42, %v9382_v42 }
  0x54   : > { %246 = vst [vmem:[#allocation2 + $0x168] sm:$0xf] %v214_v55 }
  0x55   : > { %247 = vst [vmem:[#allocation2 + $0x18c] sm:$0xf] %v215_v56 }
  0x56   : > { %342 = vst [vmem:[#allocation2 + $0x16c] sm:$0xf] %v310_v60 }
  0x57   : > { %343 = vst [vmem:[#allocation2 + $0x190] sm:$0xf] %v311_v63  ;;  %v9979_v58 = vld [vmem:[#allocation2 + $0x3a8] sm:$0xf] }
  0x58   : > { %533 = vst [vmem:[#allocation2 + $0x12c] sm:$0xf] %v214_v55  ;;  %v218_v55 = vpack.c.bf16 %v186_v52, %v186_v52  ;;  %v11441_v59 = vld [vmem:[#allocation2 + $0x3c8] sm:$0xf0] }
  0x59   : > { %534 = vst [vmem:[#allocation2 + $0x150] sm:$0xf] %v215_v56  ;;  %v219_v56 = vpack.c.bf16 %v187_v53, %v187_v53  ;;  %v11437_v61 = vld [vmem:[#allocation2 + $0x3ac] sm:$0xf]  ;;  %v11504_v53 = vld [vmem:[%s14871_s1 + $0x140] sm:$0xff] }
  0x5a   : > { %629 = vst [vmem:[#allocation2 + $0x130] sm:$0xf] %v310_v60  ;;  %v314_v60 = vpack.c.bf16 %v282_v54, %v282_v54  ;;  %v9981_v62 = vld [vmem:[#allocation2 + $0x3cc] sm:$0xf0]  ;;  %v11535_v54 = vld [vmem:[%s14871_s1 + $0x238] sm:$0xff] }
  0x5b   : > { %2573 = vmatmul.bf16.gmra.mxu2 %v9908_v6  ;;  %630 = vst [vmem:[#allocation2 + $0x154] sm:$0xf] %v311_v63  ;;  %2533 = vmatmul.bf16.gmra.mxu0 %v9620_v8  ;;  %v315_v63 = vpack.c.bf16 %v283_v57, %v283_v57  ;;  %v9691_v0 = vld [vmem:[#allocation2 + $0x168] sm:$0xf]  ;;  %v9980_v6 = vor.u32 %v11441_v59, %v9979_v58 }
  0x5c   : > { %2662 = vmatmul.bf16.gmra.mxu3 %v9912_v7  ;;  %264 = vst [vmem:[#allocation2 + $0x3f0] sm:$0xf] %v232_v13  ;;  %v11369_v1 = vld [vmem:[#allocation2 + $0x188] sm:$0xf0]  ;;  %v9984_v7 = vor.u32 %v11437_v61, %v9981_v62  ;;  %v364_v13 = vld [vmem:[%s11843_s29 + $0x2] sm:$0xff]  ;;  %3222 = vmatpush.bf16.msra.mxu0 %v11535_v54 }
  0x5d   : > { %2622 = vmatmul.bf16.gmra.mxu1 %v9624_v9  ;;  %265 = vst [vmem:[#allocation2 + $0x414] sm:$0xf] %v233_v14  ;;  %v11365_v3 = vld [vmem:[#allocation2 + $0x16c] sm:$0xf]  ;;  %v9692_v8 = vor.u32 %v11369_v1, %v9691_v0  ;;  %v396_v15 = vpack.c.bf16 %v364_v13, %v364_v13 }
  0x5e   : > { %360 = vst [vmem:[#allocation2 + $0x3f4] sm:$0xf] %v328_v17  ;;  %v9693_v4 = vld [vmem:[#allocation2 + $0x18c] sm:$0xf0]  ;;  %v11508_v17 = vld [vmem:[%s14871_s1 + $0x160] sm:$0xff] }
  0x5f   : > { %361 = vst [vmem:[#allocation2 + $0x418] sm:$0xf] %v329_v18  ;;  %v9696_v9 = vor.u32 %v11365_v3, %v9693_v4  ;;  %v365_v14 = vld [vmem:[%s11843_s29 + $0xa] sm:$0xff]  ;;  %2958 = vmatpush.bf16.msrb.mxu1 %v11508_v17  ;;  %v9383_v3 = vld [vmem:[%s11843_s29 + $0x32] sm:$0xff]  ;;  %v9384_v4 = vld [vmem:[%s11843_s29 + $0x3a] sm:$0xff] }
  0x60   : > { %248 = vst [vmem:[#allocation2 + $0x1b0] sm:$0xf] %v216_v22  ;;  %v397_v16 = vpack.c.bf16 %v365_v14, %v365_v14  ;;  %v9528_v14 = vor.u32 %v11326_v12, %v9527_v11 }
  0x61   : > { %249 = vst [vmem:[#allocation2 + $0x1d4] sm:$0xf] %v217_v23 }
  0x62   : > { %344 = vst [vmem:[#allocation2 + $0x1b4] sm:$0xf] %v312_v27 }
  0x63   : > { %345 = vst [vmem:[#allocation2 + $0x1d8] sm:$0xf] %v313_v30  ;;  %v10015_v18 = vld [vmem:[#allocation2 + $0x3f0] sm:$0xf]  ;;  %2959 = vmatpush.bf16.msrb.mxu1 %v11507_v26 }
  0x64   : > { %535 = vst [vmem:[#allocation2 + $0x174] sm:$0xf] %v216_v22  ;;  %v11450_v19 = vld [vmem:[#allocation2 + $0x410] sm:$0xf0] }
  0x65   : > { %536 = vst [vmem:[#allocation2 + $0x198] sm:$0xf] %v217_v23  ;;  %v11446_v20 = vld [vmem:[#allocation2 + $0x3f4] sm:$0xf] }
  0x66   : > { %631 = vst [vmem:[#allocation2 + $0x178] sm:$0xf] %v312_v27  ;;  %v10017_v21 = vld [vmem:[#allocation2 + $0x414] sm:$0xf0]  ;;  %v10016_v27 = vor.u32 %v11450_v19, %v10015_v18  ;;  %v9385_v19 = vld [vmem:[%s11843_s29 + $0x4a] sm:$0xff] }
  0x67   : > { %632 = vst [vmem:[#allocation2 + $0x19c] sm:$0xf] %v313_v30  ;;  %v9727_v22 = vld [vmem:[#allocation2 + $0x1b0] sm:$0xf]  ;;  %v10020_v28 = vor.u32 %v11446_v20, %v10017_v21  ;;  %2960 = vmatpush.bf16.msrb.mxu1 %v11506_v31 }
  0x68   : > { %266 = vst [vmem:[#allocation2 + $0x438] sm:$0xf] %v234_v45  ;;  %v11378_v23 = vld [vmem:[#allocation2 + $0x1d0] sm:$0xf0] }
  0x69   : > { %267 = vst [vmem:[#allocation2 + $0x45c] sm:$0xf] %v235_v47  ;;  %v11374_v24 = vld [vmem:[#allocation2 + $0x1b4] sm:$0xf]  ;;  %v9728_v29 = vor.u32 %v11378_v23, %v9727_v22  ;;  %v685_v47 = vpack.c.bf16 %v9381_v41, %v9381_v41  ;;  %v689_v22 = vpack.c.bf16 %v9385_v19, %v9385_v19  ;;  %v9390_v19 = vld [vmem:[%s11843_s29 + $0x82] sm:$0xff] }
  0x6a   : > { %362 = vst [vmem:[#allocation2 + $0x43c] sm:$0xf] %v330_v49  ;;  %v9729_v25 = vld [vmem:[#allocation2 + $0x1d4] sm:$0xf0]  ;;  %v11518_v20 = vld [vmem:[%s14871_s1 + $0x1b0] sm:$0xff] }
  0x6b   : > { %2578 = vmatmul.bf16.gmra.mxu2 %v9944_v35  ;;  %2538 = vmatmul.bf16.gmra.mxu0 %v9656_v37  ;;  %363 = vst [vmem:[#allocation2 + $0x460] sm:$0xf] %v331_v50  ;;  %v9732_v30 = vor.u32 %v11374_v24, %v9729_v25  ;;  %v10373_v35 = vrot.slane %v4698_v32, 9  ;;  %v11519_v37 = vld [vmem:[%s14871_s1 + $0x1b8] sm:$0xff]  ;;  %v11526_v23 = vld [vmem:[%s14871_s1 + $0x1f0] sm:$0xff] }
  0x6c   : > { %2667 = vmatmul.bf16.gmra.mxu3 %v9948_v36  ;;  %250 = vst [vmem:[#allocation2 + $0x1f8] sm:$0xf] %v218_v55  ;;  %v4799_v36 = vrot.slane %v4699_v33, 5  ;;  %3044 = vmatpush.bf16.msra.mxu2 %v11519_v37  ;;  %v9386_v21 = vld [vmem:[%s11843_s29 + $0x52] sm:$0xff]  ;;  %v11335_v37 = vld [vmem:[#allocation2 + $0x78] sm:$0xf0] }
  0x6d   : > { %2627 = vmatmul.bf16.gmra.mxu1 %v9660_v38  ;;  %251 = vst [vmem:[#allocation2 + $0x21c] sm:$0xf] %v219_v56  ;;  %v11527_v38 = vld [vmem:[%s14871_s1 + $0x1f8] sm:$0xff]  ;;  %v690_v24 = vpack.c.bf16 %v9386_v21, %v9386_v21  ;;  %v11534_v31 = vld [vmem:[%s14871_s1 + $0x230] sm:$0xff]  ;;  %v11525_v21 = vld [vmem:[%s14871_s1 + $0x1e8] sm:$0xff] }
  0x6e   : > { %346 = vst [vmem:[#allocation2 + $0x1fc] sm:$0xf] %v314_v60  ;;  %v4800_v44 = vsel %vm12101_vm5, %v10373_v35, %v4799_v36  ;;  %v4801_v45 = vrot.slane %v4799_v36, 4  ;;  %3133 = vmatpush.bf16.msra.mxu3 %v11527_v38  ;;  %2961 = vmatpush.bf16.msrb.mxu1 %v11505_v46  ;;  %v11330_v32 = vld [vmem:[#allocation2 + $0x54] sm:$0xf] }
  0x6f   : > { %347 = vst [vmem:[#allocation2 + $0x220] sm:$0xf] %v315_v63  ;;  %v10051_v52 = vld [vmem:[#allocation2 + $0x438] sm:$0xf]  ;;  %3223 = vmatpush.bf16.msra.mxu0 %v11534_v31  ;;  %v11533_v31 = vld [vmem:[%s14871_s1 + $0x228] sm:$0xff] }
  0x70   : > { %537 = vst [vmem:[#allocation2 + $0x1bc] sm:$0xf] %v218_v55  ;;  %v4803_v50 = vsel %vm12101_vm5, %v4801_v45, %v4802_v40  ;;  %v11459_v55 = vld [vmem:[#allocation2 + $0x458] sm:$0xf0]  ;;  %3045 = vmatpush.bf16.msra.mxu2 %v11518_v20  ;;  %v9557_v33 = vld [vmem:[#allocation2 + $0x74] sm:$0xf0] }
  0x71   : > { %538 = vst [vmem:[#allocation2 + $0x1e0] sm:$0xf] %v219_v56  ;;  %v11455_v56 = vld [vmem:[#allocation2 + $0x43c] sm:$0xf]  ;;  %v10052_v62 = vor.u32 %v11459_v55, %v10051_v52  ;;  %v9563_v36 = vld [vmem:[#allocation2 + $0x58] sm:$0xf]  ;;  %v9560_v45 = vor.u32 %v11330_v32, %v9557_v33 }
  0x72   : > { %633 = vst [vmem:[#allocation2 + $0x1c0] sm:$0xf] %v314_v60  ;;  %v10053_v57 = vld [vmem:[#allocation2 + $0x45c] sm:$0xf0]  ;;  %2962 = vmatpush.bf16.msrb.mxu1 %v11504_v53  ;;  %3134 = vmatpush.bf16.msra.mxu3 %v11526_v23  ;;  %v9564_v46 = vor.u32 %v11335_v37, %v9563_v36  ;;  %v9388_v53 = vld [vmem:[%s11843_s29 + $0x6a] sm:$0xff] }
  0x73   : > { %634 = vst [vmem:[#allocation2 + $0x1e4] sm:$0xf] %v315_v63  ;;  %v9763_v58 = vld [vmem:[#allocation2 + $0x1f8] sm:$0xf]  ;;  %v10056_v63 = vor.u32 %v11455_v56, %v10053_v57  ;;  %v9387_v52 = vld [vmem:[%s11843_s29 + $0x62] sm:$0xff]  ;;  %v692_v55 = vpack.c.bf16 %v9388_v53, %v9388_v53  ;;  %3224 = vmatpush.bf16.msra.mxu0 %v11533_v31 }
  0x74   : > { %428 = vst [vmem:[#allocation2 + $0x8] sm:$0xf] %v396_v15  ;;  %v11387_v59 = vld [vmem:[#allocation2 + $0x218] sm:$0xf0]  ;;  %v691_v54 = vpack.c.bf16 %v9387_v52, %v9387_v52  ;;  %v9635_v36 = vld [vmem:[#allocation2 + $0xe8] sm:$0xf] }
  0x75   : > { %429 = vst [vmem:[#allocation2 + $0x2c] sm:$0xf] %v397_v16  ;;  %v11383_v60 = vld [vmem:[#allocation2 + $0x1fc] sm:$0xf]  ;;  %v9764_v0 = vor.u32 %v11387_v59, %v9763_v58  ;;  %v11353_v37 = vld [vmem:[#allocation2 + $0x108] sm:$0xf0] }
  0x76   : > { %14888 = vst [vmem:[#allocation6_spill] sm:$0xff] %v14887_v39  ;;  %v9765_v61 = vld [vmem:[#allocation2 + $0x21c] sm:$0xf0]  ;;  %3135 = vmatpush.bf16.msra.mxu3 %v11525_v21 }
  0x77   : > { %717 = vst [vmem:[#allocation2 + $0x14] sm:$0xf] %v685_v47  ;;  %v9768_v1 = vor.u32 %v11383_v60, %v9765_v61  ;;  %v11524_v31 = vld [vmem:[%s14871_s1 + $0x1e0] sm:$0xff] }
  0x78   : > { %718 = vst [vmem:[#allocation2 + $0x38] sm:$0xf] %v686_v48 }
  0x79   : > { %430 = vst [vmem:[#allocation2 + $0x50] sm:$0xf] %v685_v47 }
  0x7a   : > { %431 = vst [vmem:[#allocation2 + $0x74] sm:$0xf] %v686_v48  ;;  %3136 = vmatpush.bf16.msra.mxu3 %v11524_v31 }
  0x7b   : > { %2583 = vmatmul.bf16.gmra.mxu2 %v9980_v6  ;;  %2543 = vmatmul.bf16.gmra.mxu0 %v9692_v8  ;;  %v9519_v43 = vld [vmem:[#allocation2 + $0x8] sm:$0xf]  ;;  %v687_v6 = vpack.c.bf16 %v9383_v3, %v9383_v3  ;;  %v11321_v8 = vld [vmem:[#allocation2 + $0xc] sm:$0xf]  ;;  %721 = vst [vmem:[#allocation2 + $0xa4] sm:$0xf] %v689_v22 }
  0x7c   : > { %2672 = vmatmul.bf16.gmra.mxu3 %v9984_v7  ;;  %4941 = vst [vmem:[#allocation2 + $0x8] sm:$0xf] %v4800_v44  ;;  %v11325_v49 = vld [vmem:[#allocation2 + $0x28] sm:$0xf0]  ;;  %v688_v7 = vpack.c.bf16 %v9384_v4, %v9384_v4  ;;  %v9599_v3 = vld [vmem:[#allocation2 + $0xa0] sm:$0xf] }
  0x7d   : > { %2632 = vmatmul.bf16.gmra.mxu1 %v9696_v9  ;;  %4942 = vst [vmem:[#allocation2 + $0x2c] sm:$0xf] %v4803_v50  ;;  %v9521_v9 = vld [vmem:[#allocation2 + $0x2c] sm:$0xf0]  ;;  %v9520_v10 = vor.u32 %v11325_v49, %v9519_v43  ;;  %v11344_v4 = vld [vmem:[#allocation2 + $0xc0] sm:$0xf0] }
  0x7e   : > { %719 = vst [vmem:[#allocation2 + $0x5c] sm:$0xf] %v687_v6  ;;  %v11322_v2 = vld [vmem:[#allocation2 + $0x14] sm:$0xf]  ;;  %v9524_v13 = vor.u32 %v11321_v8, %v9521_v9 }
  0x7f   : > { %720 = vst [vmem:[#allocation2 + $0x80] sm:$0xf] %v688_v7  ;;  %v9529_v5 = vld [vmem:[#allocation2 + $0x34] sm:$0xf0] }
  0x80   : > { %432 = vst [vmem:[#allocation2 + $0x98] sm:$0xf] %v687_v6  ;;  %v9532_v15 = vor.u32 %v11322_v2, %v9529_v5  ;;  %v9555_v34 = vld [vmem:[#allocation2 + $0x50] sm:$0xf]  ;;  %v9600_v5 = vor.u32 %v11344_v4, %v9599_v3 }
  0x81   : > { %433 = vst [vmem:[#allocation2 + $0xbc] sm:$0xf] %v688_v7  ;;  %v11334_v35 = vld [vmem:[#allocation2 + $0x70] sm:$0xf0] }
  0x82   : > { %722 = vst [vmem:[#allocation2 + $0xc8] sm:$0xf] %v690_v24  ;;  %v9556_v44 = vor.u32 %v11334_v35, %v9555_v34  ;;  %v11340_v6 = vld [vmem:[#allocation2 + $0xa4] sm:$0xf]  ;;  %v9629_v35 = vld [vmem:[#allocation2 + $0x104] sm:$0xf0] }
  0x83   : > { %434 = vst [vmem:[#allocation2 + $0xe0] sm:$0xf] %v689_v22  ;;  %v694_v22 = vpack.c.bf16 %v9390_v19, %v9390_v19  ;;  %v11348_v34 = vld [vmem:[#allocation2 + $0xe4] sm:$0xf] }
  0x84   : > { %435 = vst [vmem:[#allocation2 + $0x104] sm:$0xf] %v690_v24 }
  0x85   : > { %v11331_v38 = vld [vmem:[#allocation2 + $0x5c] sm:$0xf]  ;;  %723 = vst [vmem:[#allocation2 + $0xec] sm:$0xf] %v691_v54 }
  0x86   : > { %v9565_v40 = vld [vmem:[#allocation2 + $0x7c] sm:$0xf0]  ;;  %724 = vst [vmem:[#allocation2 + $0x110] sm:$0xf] %v692_v55 }
  0x87   : > { %v9568_v47 = vor.u32 %v11331_v38, %v9565_v40  ;;  %436 = vst [vmem:[#allocation2 + $0x128] sm:$0xf] %v691_v54  ;;  %v9391_v54 = vld [vmem:[%s11843_s29 + $0x92] sm:$0xff] }
  0x88   : > { %437 = vst [vmem:[#allocation2 + $0x14c] sm:$0xf] %v692_v55  ;;  %v9392_v55 = vld [vmem:[%s11843_s29 + $0x9a] sm:$0xff] }
  0x89   : > { %v9601_v7 = vld [vmem:[#allocation2 + $0xc4] sm:$0xf0]  ;;  %726 = vst [vmem:[#allocation2 + $0x158] sm:$0xf] %v694_v22 }
  0x8a   : > { %439 = vst [vmem:[#allocation2 + $0x194] sm:$0xf] %v694_v22  ;;  %v9627_v32 = vld [vmem:[#allocation2 + $0xe0] sm:$0xf] }
  0x8b   : > { %2588 = vmatmul.bf16.gmra.mxu2 %v10016_v27  ;;  %2548 = vmatmul.bf16.gmra.mxu0 %v9728_v29  ;;  %v11352_v33 = vld [vmem:[#allocation2 + $0x100] sm:$0xf0] }
  0x8c   : > { %2677 = vmatmul.bf16.gmra.mxu3 %v10020_v28  ;;  %v11349_v38 = vld [vmem:[#allocation2 + $0xec] sm:$0xf] }
  0x8d   : > { %2637 = vmatmul.bf16.gmra.mxu1 %v9732_v30  ;;  %v9637_v40 = vld [vmem:[#allocation2 + $0x10c] sm:$0xf0] }
  0x8e   : > { %v9663_v3 = vld [vmem:[#allocation2 + $0x128] sm:$0xf] }
  0x8f   : > { %v11361_v4 = vld [vmem:[#allocation2 + $0x148] sm:$0xf0] }
  0x9b   : > { %2593 = vmatmul.bf16.gmra.mxu2 %v10052_v62  ;;  %2553 = vmatmul.bf16.gmra.mxu0 %v9764_v0  ;;  %v9591_v62 = vld [vmem:[#allocation2 + $0x98] sm:$0xf]  ;;  %v11339_v0 = vld [vmem:[#allocation2 + $0x9c] sm:$0xf] }
  0x9c   : > { %2682 = vmatmul.bf16.gmra.mxu3 %v10056_v63  ;;  %v11343_v63 = vld [vmem:[#allocation2 + $0xb8] sm:$0xf0] }
  0x9d   : > { %2642 = vmatmul.bf16.gmra.mxu1 %v9768_v1  ;;  %v9593_v1 = vld [vmem:[#allocation2 + $0xbc] sm:$0xf0]  ;;  %v9592_v12 = vor.u32 %v11343_v63, %v9591_v62 }
  0x9e   : > { %v9596_v2 = vor.u32 %v11339_v0, %v9593_v1 }
  0xa8   : > { %v2519_v16 = vpop.f32.mrf.mxu0 }
  0xaa   : > { %v2608_v17 = vpop.f32.mrf.mxu1 }
  0xab   : > { %v12122_v18 = vadd.f32 %v2608_v17, %v2519_v16  ;;  %2696 = vmatmul.bf16.vlgmr.msrb.gmra.mxu2 %v9520_v10  ;;  %2874 = vmatmul.bf16.vlgmr.msrb.gmra.mxu0 %v9528_v14  ;;  %v9604_v10 = vor.u32 %v11340_v6, %v9601_v7  ;;  %v9389_v16 = vld [vmem:[%s11843_s29 + $0x7a] sm:$0xff]  ;;  %v11517_v17 = vld [vmem:[%s14871_s1 + $0x1a8] sm:$0xff]  ;;  %v9665_v7 = vld [vmem:[#allocation2 + $0x14c] sm:$0xf0] }
  0xac   : > { %2785 = vmatmul.bf16.vlgmr.msrb.gmra.mxu3 %v9524_v13  ;;  %v693_v20 = vpack.c.bf16 %v9389_v16, %v9389_v16  ;;  %3046 = vmatpush.bf16.msra.mxu2 %v11517_v17  ;;  %v11357_v6 = vld [vmem:[#allocation2 + $0x12c] sm:$0xf] }
  0xad   : > { %2963 = vmatmul.bf16.vlgmr.msrb.gmra.mxu1 %v9532_v15  ;;  %v9668_v16 = vor.u32 %v11357_v6, %v9665_v7 }
  0xae   : > { %v2559_v25 = vpop.f32.mrf.mxu2  ;;  %725 = vst [vmem:[#allocation2 + $0x134] sm:$0xf] %v693_v20 }
  0xaf   : > { %v2648_v26 = vpop.f32.mrf.mxu3  ;;  %438 = vst [vmem:[#allocation2 + $0x170] sm:$0xf] %v693_v20 }
  0xb0   : > { %v12132_v27 = vadd.f32 %v2648_v26, %v2559_v25  ;;  %v2521_v28 = vpop.f32.mrf.mxu0 }
  0xb2   : > { %v2610_v29 = vpop.f32.mrf.mxu1 }
  0xb3   : > { %v12134_v30 = vadd.f32 %v2610_v29, %v2521_v28 }
  0xb6   : > { %v2561_v41 = vpop.f32.mrf.mxu2 }
  0xb7   : > { %v2650_v42 = vpop.f32.mrf.mxu3 }
  0xb8   : > { %v12139_v43 = vadd.f32 %v2650_v42, %v2561_v41  ;;  %v2524_v48 = vpop.f32.mrf.mxu0 }
  0xba   : > { %v2613_v49 = vpop.f32.mrf.mxu1 }
  0xbb   : > { %v12141_v50 = vadd.f32 %v2613_v49, %v2524_v48  ;;  %2701 = vmatmul.bf16.gmra.mxu2 %v9556_v44  ;;  %2879 = vmatmul.bf16.gmra.mxu0 %v9564_v46  ;;  %v9632_v46 = vor.u32 %v11348_v34, %v9629_v35  ;;  %v9640_v48 = vor.u32 %v11349_v38, %v9637_v40  ;;  %v9331_v35 = vld [vmem:[%s11843_s29 + $0xc0] sm:$0xff] }
  0xbc   : > { %2790 = vmatmul.bf16.gmra.mxu3 %v9560_v45  ;;  %v9628_v45 = vor.u32 %v11352_v33, %v9627_v32  ;;  %v507_v38 = vpack.c.bf16 %v9331_v35, %v9331_v35 }
  0xbd   : > { %2968 = vmatmul.bf16.gmra.mxu1 %v9568_v47  ;;  %v9636_v47 = vor.u32 %v11353_v37, %v9635_v36  ;;  %v9332_v36 = vld [vmem:[%s11843_s29 + $0xc8] sm:$0xff] }
  0xbe   : > { %v2564_v56 = vpop.f32.mrf.mxu2  ;;  %v508_v40 = vpack.c.bf16 %v9332_v36, %v9332_v36  ;;  %539 = vst [vmem:[#allocation2 + $0x204] sm:$0xf] %v507_v38 }
  0xbf   : > { %v2653_v57 = vpop.f32.mrf.mxu3 }
  0xc0   : > { %v12145_v58 = vadd.f32 %v2653_v57, %v2564_v56  ;;  %v2526_v59 = vpop.f32.mrf.mxu0  ;;  %v695_v56 = vpack.c.bf16 %v9391_v54, %v9391_v54  ;;  %v696_v57 = vpack.c.bf16 %v9392_v55, %v9392_v55  ;;  %v11532_v54 = vld [vmem:[%s14871_s1 + $0x220] sm:$0xff]  ;;  %540 = vst [vmem:[#allocation2 + $0x228] sm:$0xf] %v508_v40  ;;  %v11370_v55 = vld [vmem:[#allocation2 + $0x190] sm:$0xf0] }
  0xc1   : > { %3225 = vmatpush.bf16.msra.mxu0 %v11532_v54 }
  0xc2   : > { %v2615_v60 = vpop.f32.mrf.mxu1  ;;  %727 = vst [vmem:[#allocation2 + $0x17c] sm:$0xf] %v695_v56 }
  0xc3   : > { %v12147_v61 = vadd.f32 %v2615_v60, %v2526_v59  ;;  %728 = vst [vmem:[#allocation2 + $0x1a0] sm:$0xf] %v696_v57 }
  0xc4   : > { %440 = vst [vmem:[#allocation2 + $0x1b8] sm:$0xf] %v695_v56  ;;  %v11366_v56 = vld [vmem:[#allocation2 + $0x174] sm:$0xf] }
  0xc5   : > { %441 = vst [vmem:[#allocation2 + $0x1dc] sm:$0xf] %v696_v57  ;;  %v9701_v57 = vld [vmem:[#allocation2 + $0x194] sm:$0xf0] }
  0xc6   : > { %v2566_v8 = vpop.f32.mrf.mxu2 }
  0xc7   : > { %v2655_v9 = vpop.f32.mrf.mxu3 }
  0xc8   : > { %v12149_v11 = vadd.f32 %v2655_v9, %v2566_v8  ;;  %v2529_v13 = vpop.f32.mrf.mxu0  ;;  %v9671_v8 = vld [vmem:[#allocation2 + $0x130] sm:$0xf]  ;;  %v11362_v9 = vld [vmem:[#allocation2 + $0x150] sm:$0xf0] }
  0xc9   : > { %v9672_v17 = vor.u32 %v11362_v9, %v9671_v8  ;;  %v9704_v8 = vor.u32 %v11366_v56, %v9701_v57 }
  0xca   : > { %v2618_v14 = vpop.f32.mrf.mxu1 }
  0xcb   : > { %v12151_v15 = vadd.f32 %v2618_v14, %v2529_v13  ;;  %2706 = vmatmul.bf16.gmra.mxu2 %v9592_v12  ;;  %2884 = vmatmul.bf16.gmra.mxu0 %v9600_v5  ;;  %v11358_v12 = vld [vmem:[#allocation2 + $0x134] sm:$0xf]  ;;  %v9664_v14 = vor.u32 %v11361_v4, %v9663_v3 }
  0xcc   : > { %2795 = vmatmul.bf16.gmra.mxu3 %v9596_v2  ;;  %v9673_v2 = vld [vmem:[#allocation2 + $0x154] sm:$0xf0] }
  0xcd   : > { %2973 = vmatmul.bf16.gmra.mxu1 %v9604_v10  ;;  %v9676_v19 = vor.u32 %v11358_v12, %v9673_v2 }
  0xce   : > { %v2569_v23 = vpop.f32.mrf.mxu2 }
  0xcf   : > { %v2658_v24 = vpop.f32.mrf.mxu3 }
  0xd0   : > { %v12161_v25 = vadd.f32 %v2658_v24, %v2569_v23  ;;  %v2531_v26 = vpop.f32.mrf.mxu0  ;;  %v9393_v23 = vld [vmem:[%s11843_s29 + $0xaa] sm:$0xff]  ;;  %v11516_v24 = vld [vmem:[%s14871_s1 + $0x1a0] sm:$0xff] }
  0xd1   : > { %3047 = vmatpush.bf16.msra.mxu2 %v11516_v24  ;;  %v9334_v24 = vld [vmem:[%s11843_s29 + $0xe0] sm:$0xff] }
  0xd2   : > { %v2620_v28 = vpop.f32.mrf.mxu1  ;;  %v510_v31 = vpack.c.bf16 %v9334_v24, %v9334_v24 }
  0xd3   : > { %v12163_v29 = vadd.f32 %v2620_v28, %v2531_v26  ;;  %v9394_v26 = vld [vmem:[%s11843_s29 + $0xb2] sm:$0xff]  ;;  %v697_v28 = vpack.c.bf16 %v9393_v23, %v9393_v23 }
  0xd4   : > { %v698_v32 = vpack.c.bf16 %v9394_v26, %v9394_v26  ;;  %v9333_v23 = vld [vmem:[%s11843_s29 + $0xd8] sm:$0xff]  ;;  %542 = vst [vmem:[#allocation2 + $0x270] sm:$0xf] %v510_v31 }
  0xd5   : > { %729 = vst [vmem:[#allocation2 + $0x1c4] sm:$0xf] %v697_v28  ;;  %v9368_v31 = vld [vmem:[%s11843_s29 + $0xf9] sm:$0xff] }
  0xd6   : > { %v2571_v41 = vpop.f32.mrf.mxu2  ;;  %730 = vst [vmem:[#allocation2 + $0x1e8] sm:$0xf] %v698_v32 }
  0xd7   : > { %v2660_v42 = vpop.f32.mrf.mxu3  ;;  %442 = vst [vmem:[#allocation2 + $0x200] sm:$0xf] %v697_v28  ;;  %v509_v28 = vpack.c.bf16 %v9333_v23, %v9333_v23 }
  0xd8   : > { %v12168_v44 = vadd.f32 %v2660_v42, %v2571_v41  ;;  %v2534_v49 = vpop.f32.mrf.mxu0  ;;  %443 = vst [vmem:[#allocation2 + $0x224] sm:$0xf] %v698_v32  ;;  %v9363_v41 = vld [vmem:[%s11843_s29 + $0xc1] sm:$0xff]  ;;  %v9364_v42 = vld [vmem:[%s11843_s29 + $0xc9] sm:$0xff]  ;;  %v9365_v32 = vld [vmem:[%s11843_s29 + $0xd9] sm:$0xff] }
  0xd9   : > { %541 = vst [vmem:[#allocation2 + $0x24c] sm:$0xf] %v509_v28  ;;  %v605_v36 = vpack.c.bf16 %v9365_v32, %v9365_v32  ;;  %v9367_v28 = vld [vmem:[%s11843_s29 + $0xf1] sm:$0xff] }
  0xda   : > { %v2623_v52 = vpop.f32.mrf.mxu1 }
  0xdb   : > { %v12170_v53 = vadd.f32 %v2623_v52, %v2534_v49  ;;  %2711 = vmatmul.bf16.gmra.mxu2 %v9628_v45  ;;  %2889 = vmatmul.bf16.gmra.mxu0 %v9636_v47  ;;  %v603_v47 = vpack.c.bf16 %v9363_v41, %v9363_v41  ;;  %v9699_v52 = vld [vmem:[#allocation2 + $0x170] sm:$0xf]  ;;  %v9735_v41 = vld [vmem:[#allocation2 + $0x1b8] sm:$0xf]  ;;  %637 = vst [vmem:[#allocation2 + $0x250] sm:$0xf] %v605_v36 }
  0xdc   : > { %2800 = vmatmul.bf16.gmra.mxu3 %v9632_v46  ;;  %v9700_v7 = vor.u32 %v11370_v55, %v9699_v52  ;;  %v11376_v52 = vld [vmem:[#allocation2 + $0x1c4] sm:$0xf] }
  0xdd   : > { %2978 = vmatmul.bf16.gmra.mxu1 %v9640_v48  ;;  %v604_v48 = vpack.c.bf16 %v9364_v42, %v9364_v42  ;;  %635 = vst [vmem:[#allocation2 + $0x208] sm:$0xf] %v603_v47  ;;  %v11379_v42 = vld [vmem:[#allocation2 + $0x1d8] sm:$0xf0]  ;;  %v9743_v47 = vld [vmem:[#allocation2 + $0x1c0] sm:$0xf] }
  0xde   : > { %v2574_v59 = vpop.f32.mrf.mxu2  ;;  %v9745_v54 = vld [vmem:[#allocation2 + $0x1e4] sm:$0xf0] }
  0xdf   : > { %v2663_v60 = vpop.f32.mrf.mxu3  ;;  %636 = vst [vmem:[#allocation2 + $0x22c] sm:$0xf] %v604_v48  ;;  %v11380_v48 = vld [vmem:[#allocation2 + $0x1e0] sm:$0xf0] }
  0xe0   : > { %v12174_v62 = vadd.f32 %v2663_v60, %v2574_v59  ;;  %v2536_v63 = vpop.f32.mrf.mxu0  ;;  %v9707_v59 = vld [vmem:[#allocation2 + $0x178] sm:$0xf]  ;;  %v11371_v60 = vld [vmem:[#allocation2 + $0x198] sm:$0xf0] }
  0xe1   : > { %v9708_v9 = vor.u32 %v11371_v60, %v9707_v59  ;;  %v9736_v59 = vor.u32 %v11379_v42, %v9735_v41  ;;  %v11388_v41 = vld [vmem:[#allocation2 + $0x220] sm:$0xf0] }
  0xe2   : > { %v2625_v0 = vpop.f32.mrf.mxu1  ;;  %v11384_v42 = vld [vmem:[#allocation2 + $0x204] sm:$0xf] }
  0xe3   : > { %v12176_v1 = vadd.f32 %v2625_v0, %v2536_v63  ;;  %v11367_v63 = vld [vmem:[#allocation2 + $0x17c] sm:$0xf]  ;;  %v9709_v0 = vld [vmem:[#allocation2 + $0x19c] sm:$0xf0] }
  0xe4   : > { %v9712_v12 = vor.u32 %v11367_v63, %v9709_v0  ;;  %v9744_v63 = vor.u32 %v11380_v48, %v9743_v47  ;;  %v9748_v0 = vor.u32 %v11376_v52, %v9745_v54  ;;  %v11531_v54 = vld [vmem:[%s14871_s1 + $0x218] sm:$0xff] }
  0xe5   : > { %3226 = vmatpush.bf16.msra.mxu0 %v11531_v54 }
  0xe6   : > { %v2576_v5 = vpop.f32.mrf.mxu2  ;;  %v11389_v47 = vld [vmem:[#allocation2 + $0x228] sm:$0xf0] }
  0xe7   : > { %v2665_v10 = vpop.f32.mrf.mxu3 }
  0xe8   : > { %v12178_v13 = vadd.f32 %v2665_v10, %v2576_v5  ;;  %v2539_v20 = vpop.f32.mrf.mxu0 }
  0xea   : > { %v2628_v21 = vpop.f32.mrf.mxu1 }
  0xeb   : > { %v12180_v22 = vadd.f32 %v2628_v21, %v2539_v20  ;;  %2716 = vmatmul.bf16.gmra.mxu2 %v9664_v14  ;;  %2894 = vmatmul.bf16.gmra.mxu0 %v9672_v17  ;;  %v9395_v14 = vld [vmem:[%s11843_s29 + $0xc2] sm:$0xff] }
  0xec   : > { %2805 = vmatmul.bf16.gmra.mxu3 %v9668_v16  ;;  %v9396_v16 = vld [vmem:[%s11843_s29 + $0xca] sm:$0xff]  ;;  %v699_v17 = vpack.c.bf16 %v9395_v14, %v9395_v14  ;;  %v11523_v14 = vld [vmem:[%s14871_s1 + $0x1d8] sm:$0xff] }
  0xed   : > { %2983 = vmatmul.bf16.gmra.mxu1 %v9676_v19  ;;  %v700_v19 = vpack.c.bf16 %v9396_v16, %v9396_v16  ;;  %3137 = vmatpush.bf16.msra.mxu3 %v11523_v14 }
  0xee   : > { %v2579_v33 = vpop.f32.mrf.mxu2  ;;  %731 = vst [vmem:[#allocation2 + $0x20c] sm:$0xf] %v699_v17 }
  0xef   : > { %v2668_v34 = vpop.f32.mrf.mxu3  ;;  %732 = vst [vmem:[#allocation2 + $0x230] sm:$0xf] %v700_v19 }
  0xf0   : > { %v12192_v37 = vadd.f32 %v2668_v34, %v2579_v33  ;;  %v2541_v45 = vpop.f32.mrf.mxu0  ;;  %444 = vst [vmem:[#allocation2 + $0x248] sm:$0xf] %v699_v17  ;;  %v9366_v33 = vld [vmem:[%s11843_s29 + $0xe1] sm:$0xff] }
  0xf1   : > { %445 = vst [vmem:[#allocation2 + $0x26c] sm:$0xf] %v700_v19  ;;  %v606_v38 = vpack.c.bf16 %v9366_v33, %v9366_v33  ;;  %v9335_v19 = vld [vmem:[%s11843_s29 + $0xf0] sm:$0xff] }
  0xf2   : > { %v2630_v46 = vpop.f32.mrf.mxu1  ;;  %v511_v23 = vpack.c.bf16 %v9335_v19, %v9335_v19  ;;  %v9337_v19 = vld [vmem:[%s11843_s29 + $0x108] sm:$0xff] }
  0xf3   : > { %v12196_v49 = vadd.f32 %v2630_v46, %v2541_v45  ;;  %v11375_v45 = vld [vmem:[#allocation2 + $0x1bc] sm:$0xf]  ;;  %v9737_v46 = vld [vmem:[#allocation2 + $0x1dc] sm:$0xf0]  ;;  %638 = vst [vmem:[#allocation2 + $0x274] sm:$0xf] %v606_v38 }
  0xf4   : > { %v9740_v60 = vor.u32 %v11375_v45, %v9737_v46  ;;  %543 = vst [vmem:[#allocation2 + $0x294] sm:$0xf] %v511_v23  ;;  %v9771_v38 = vld [vmem:[#allocation2 + $0x200] sm:$0xf]  ;;  %v9773_v45 = vld [vmem:[#allocation2 + $0x224] sm:$0xf0] }
  0xf5   : > { %v9779_v46 = vld [vmem:[#allocation2 + $0x208] sm:$0xf]  ;;  %v11385_v48 = vld [vmem:[#allocation2 + $0x20c] sm:$0xf] }
  0xf6   : > { %v2581_v3 = vpop.f32.mrf.mxu2  ;;  %v9781_v52 = vld [vmem:[#allocation2 + $0x22c] sm:$0xf0] }
  0xf7   : > { %v2670_v4 = vpop.f32.mrf.mxu3 }
  0xf8   : > { %v12201_v6 = vadd.f32 %v2670_v4, %v2581_v3  ;;  %v2544_v2 = vpop.f32.mrf.mxu0 }
  0xfa   : > { %v2633_v5 = vpop.f32.mrf.mxu1 }
  0xfb   : > { %v12203_v10 = vadd.f32 %v2633_v5, %v2544_v2  ;;  %2721 = vmatmul.bf16.gmra.mxu2 %v9700_v7  ;;  %2899 = vmatmul.bf16.gmra.mxu0 %v9708_v9  ;;  %v9398_v9 = vld [vmem:[%s11843_s29 + $0xe2] sm:$0xff] }
  0xfc   : > { %2810 = vmatmul.bf16.gmra.mxu3 %v9704_v8  ;;  %v9397_v8 = vld [vmem:[%s11843_s29 + $0xda] sm:$0xff]  ;;  %v702_v5 = vpack.c.bf16 %v9398_v9, %v9398_v9 }
  0xfd   : > { %2988 = vmatmul.bf16.gmra.mxu1 %v9712_v12  ;;  %v11515_v12 = vld [vmem:[%s14871_s1 + $0x198] sm:$0xff]  ;;  %v701_v2 = vpack.c.bf16 %v9397_v8, %v9397_v8 }
  0xfe   : > { %v2584_v20 = vpop.f32.mrf.mxu2  ;;  %3048 = vmatpush.bf16.msra.mxu2 %v11515_v12  ;;  %734 = vst [vmem:[#allocation2 + $0x278] sm:$0xf] %v702_v5  ;;  %v9399_v12 = vld [vmem:[%s11843_s29 + $0xf2] sm:$0xff] }
  0xff   : > { %v2673_v21 = vpop.f32.mrf.mxu3  ;;  %733 = vst [vmem:[#allocation2 + $0x254] sm:$0xf] %v701_v2 }
 0x100   : > { %v12209_v26 = vadd.f32 %v2673_v21, %v2584_v20  ;;  %v2546_v34 = vpop.f32.mrf.mxu0  ;;  %v9336_v20 = vld [vmem:[%s11843_s29 + $0xf8] sm:$0xff]  ;;  %446 = vst [vmem:[#allocation2 + $0x290] sm:$0xf] %v701_v2 }
 0x101   : > { %v512_v24 = vpack.c.bf16 %v9336_v20, %v9336_v20  ;;  %447 = vst [vmem:[#allocation2 + $0x2b4] sm:$0xf] %v702_v5  ;;  %v9400_v2 = vld [vmem:[%s11843_s29 + $0xfa] sm:$0xff]  ;;  %v703_v5 = vpack.c.bf16 %v9399_v12, %v9399_v12  ;;  %v9338_v20 = vld [vmem:[%s11843_s29 + $0x110] sm:$0xff] }
 0x102   : > { %v2635_v35 = vpop.f32.mrf.mxu1  ;;  %v704_v14 = vpack.c.bf16 %v9400_v2, %v9400_v2 }
 0x103   : > { %v12213_v40 = vadd.f32 %v2635_v35, %v2546_v34  ;;  %v607_v34 = vpack.c.bf16 %v9367_v28, %v9367_v28  ;;  %v608_v35 = vpack.c.bf16 %v9368_v31, %v9368_v31  ;;  %544 = vst [vmem:[#allocation2 + $0x2b8] sm:$0xf] %v512_v24  ;;  %v513_v24 = vpack.c.bf16 %v9337_v19, %v9337_v19  ;;  %v9369_v31 = vld [vmem:[%s11843_s29 + $0x109] sm:$0xff] }
 0x104   : > { %735 = vst [vmem:[#allocation2 + $0x29c] sm:$0xf] %v703_v5  ;;  %v514_v28 = vpack.c.bf16 %v9338_v20, %v9338_v20  ;;  %v11522_v20 = vld [vmem:[%s14871_s1 + $0x1d0] sm:$0xff] }
 0x105   : > { %639 = vst [vmem:[#allocation2 + $0x298] sm:$0xf] %v607_v34  ;;  %3138 = vmatpush.bf16.msra.mxu3 %v11522_v20 }
 0x106   : > { %v2586_v55 = vpop.f32.mrf.mxu2  ;;  %640 = vst [vmem:[#allocation2 + $0x2bc] sm:$0xf] %v608_v35  ;;  %v609_v35 = vpack.c.bf16 %v9369_v31, %v9369_v31  ;;  %v11394_v54 = vld [vmem:[#allocation2 + $0x254] sm:$0xf]  ;;  %v9339_v31 = vld [vmem:[%s11843_s29 + $0x120] sm:$0xff] }
 0x107   : > { %v2675_v56 = vpop.f32.mrf.mxu3  ;;  %736 = vst [vmem:[#allocation2 + $0x2c0] sm:$0xf] %v704_v14 }
 0x108   : > { %v12215_v57 = vadd.f32 %v2675_v56, %v2586_v55  ;;  %v2549_v3 = vpop.f32.mrf.mxu0  ;;  %448 = vst [vmem:[#allocation2 + $0x2d8] sm:$0xf] %v703_v5  ;;  %v9401_v5 = vld [vmem:[%s11843_s29 + $0x10a] sm:$0xff] }
 0x109   : > { %449 = vst [vmem:[#allocation2 + $0x2fc] sm:$0xf] %v704_v14  ;;  %v9402_v14 = vld [vmem:[%s11843_s29 + $0x112] sm:$0xff] }
 0x10a   : > { %v2638_v4 = vpop.f32.mrf.mxu1  ;;  %545 = vst [vmem:[#allocation2 + $0x2dc] sm:$0xf] %v513_v24  ;;  %v706_v19 = vpack.c.bf16 %v9402_v14, %v9402_v14  ;;  %v11530_v14 = vld [vmem:[%s14871_s1 + $0x210] sm:$0xff] }
 0x10b   : > { %v12217_v7 = vadd.f32 %v2638_v4, %v2549_v3  ;;  %2726 = vmatmul.bf16.gmra.mxu2 %v9736_v59  ;;  %2904 = vmatmul.bf16.gmra.mxu0 %v9744_v63  ;;  %v9776_v63 = vor.u32 %v11384_v42, %v9773_v45  ;;  %v9784_v3 = vor.u32 %v11385_v48, %v9781_v52  ;;  %v9807_v42 = vld [vmem:[#allocation2 + $0x248] sm:$0xf]  ;;  %v11397_v45 = vld [vmem:[#allocation2 + $0x268] sm:$0xf0]  ;;  %v9815_v48 = vld [vmem:[#allocation2 + $0x250] sm:$0xf] }
 0x10c   : > { %2815 = vmatmul.bf16.gmra.mxu3 %v9740_v60  ;;  %v9772_v60 = vor.u32 %v11388_v41, %v9771_v38  ;;  %546 = vst [vmem:[#allocation2 + $0x300] sm:$0xf] %v514_v28  ;;  %v11398_v52 = vld [vmem:[#allocation2 + $0x270] sm:$0xf0]  ;;  %3227 = vmatpush.bf16.msra.mxu0 %v11530_v14 }
 0x10d   : > { %2993 = vmatmul.bf16.gmra.mxu1 %v9748_v0  ;;  %v9780_v0 = vor.u32 %v11389_v47, %v9779_v46  ;;  %v11393_v46 = vld [vmem:[#allocation2 + $0x24c] sm:$0xf]  ;;  %641 = vst [vmem:[#allocation2 + $0x2e0] sm:$0xf] %v609_v35  ;;  %v9809_v47 = vld [vmem:[#allocation2 + $0x26c] sm:$0xf0] }
 0x10e   : > { %v2589_v16 = vpop.f32.mrf.mxu2  ;;  %738 = vst [vmem:[#allocation2 + $0x308] sm:$0xf] %v706_v19 }
 0x10f   : > { %v2678_v17 = vpop.f32.mrf.mxu3  ;;  %451 = vst [vmem:[#allocation2 + $0x344] sm:$0xf] %v706_v19  ;;  %v9879_v14 = vld [vmem:[#allocation2 + $0x2d8] sm:$0xf] }
 0x110   : > { %v12229_v21 = vadd.f32 %v2678_v17, %v2589_v16  ;;  %v2551_v32 = vpop.f32.mrf.mxu0 }
 0x112   : > { %v2640_v33 = vpop.f32.mrf.mxu1 }
 0x113   : > { %v12233_v36 = vadd.f32 %v2640_v33, %v2551_v32  ;;  %v9370_v32 = vld [vmem:[%s11843_s29 + $0x111] sm:$0xff] }
 0x114   : > { %v610_v38 = vpack.c.bf16 %v9370_v32, %v9370_v32  ;;  %v9340_v32 = vld [vmem:[%s11843_s29 + $0x128] sm:$0xff] }
 0x115   : > { %v516_v35 = vpack.c.bf16 %v9340_v32, %v9340_v32 }
 0x116   : > { %v2591_v55 = vpop.f32.mrf.mxu2  ;;  %642 = vst [vmem:[#allocation2 + $0x304] sm:$0xf] %v610_v38  ;;  %v9371_v38 = vld [vmem:[%s11843_s29 + $0x121] sm:$0xff] }
 0x117   : > { %v2680_v56 = vpop.f32.mrf.mxu3  ;;  %548 = vst [vmem:[#allocation2 + $0x348] sm:$0xf] %v516_v35 }
 0x118   : > { %v12238_v59 = vadd.f32 %v2680_v56, %v2591_v55  ;;  %v2554_v4 = vpop.f32.mrf.mxu0  ;;  %v9817_v55 = vld [vmem:[#allocation2 + $0x274] sm:$0xf0] }
 0x11a   : > { %v2643_v8 = vpop.f32.mrf.mxu1 }
 0x11b   : > { %v12240_v9 = vadd.f32 %v2643_v8, %v2554_v4  ;;  %2731 = vmatmul.bf16.gmra.mxu2 %v9772_v60  ;;  %2909 = vmatmul.bf16.gmra.mxu0 %v9780_v0  ;;  %v9808_v0 = vor.u32 %v11397_v45, %v9807_v42  ;;  %v9816_v4 = vor.u32 %v11398_v52, %v9815_v48  ;;  %v9372_v42 = vld [vmem:[%s11843_s29 + $0x129] sm:$0xff] }
 0x11c   : > { %2820 = vmatmul.bf16.gmra.mxu3 %v9776_v63  ;;  %v9820_v8 = vor.u32 %v11394_v54, %v9817_v55  ;;  %v611_v48 = vpack.c.bf16 %v9371_v38, %v9371_v38  ;;  %v612_v52 = vpack.c.bf16 %v9372_v42, %v9372_v42  ;;  %v9843_v54 = vld [vmem:[#allocation2 + $0x290] sm:$0xf]  ;;  %v11406_v55 = vld [vmem:[#allocation2 + $0x2b0] sm:$0xf0] }
 0x11d   : > { %2998 = vmatmul.bf16.gmra.mxu1 %v9784_v3  ;;  %v9812_v3 = vor.u32 %v11393_v46, %v9809_v47  ;;  %v9844_v19 = vor.u32 %v11406_v55, %v9843_v54  ;;  %v9342_v54 = vld [vmem:[%s11843_s29 + $0x140] sm:$0xff] }
 0x11e   : > { %v2594_v16 = vpop.f32.mrf.mxu2  ;;  %643 = vst [vmem:[#allocation2 + $0x328] sm:$0xf] %v611_v48 }
 0x11f   : > { %v2683_v17 = vpop.f32.mrf.mxu3  ;;  %644 = vst [vmem:[#allocation2 + $0x34c] sm:$0xf] %v612_v52  ;;  %v9341_v52 = vld [vmem:[%s11843_s29 + $0x138] sm:$0xff] }
 0x120   : > { %v12246_v23 = vadd.f32 %v2683_v17, %v2594_v16  ;;  %v2556_v33 = vpop.f32.mrf.mxu0  ;;  %v11514_v16 = vld [vmem:[%s14871_s1 + $0x190] sm:$0xff]  ;;  %v705_v17 = vpack.c.bf16 %v9401_v5, %v9401_v5  ;;  %v9853_v5 = vld [vmem:[#allocation2 + $0x2bc] sm:$0xf0] }
 0x121   : > { %3049 = vmatpush.bf16.msra.mxu2 %v11514_v16 }
 0x122   : > { %v2645_v34 = vpop.f32.mrf.mxu1  ;;  %737 = vst [vmem:[#allocation2 + $0x2e4] sm:$0xf] %v705_v17 }
 0x123   : > { %v12250_v41 = vadd.f32 %v2645_v34, %v2556_v33  ;;  %450 = vst [vmem:[#allocation2 + $0x320] sm:$0xf] %v705_v17  ;;  %v515_v34 = vpack.c.bf16 %v9339_v31, %v9339_v31 }
 0x125   : > { %547 = vst [vmem:[#allocation2 + $0x324] sm:$0xf] %v515_v34  ;;  %v9404_v34 = vld [vmem:[%s11843_s29 + $0x12a] sm:$0xff] }
 0x126   : > { %v2596_v56 = vpop.f32.mrf.mxu2  ;;  %v708_v42 = vpack.c.bf16 %v9404_v34, %v9404_v34 }
 0x127   : > { %v2685_v60 = vpop.f32.mrf.mxu3 }
 0x128   : > { %v12252_v63 = vadd.f32 %v2685_v60, %v2596_v56  ;;  %v2875_v12 = vpop.f32.mrf.mxu0  ;;  %v11402_v60 = vld [vmem:[#allocation2 + $0x294] sm:$0xf]  ;;  %740 = vst [vmem:[#allocation2 + $0x350] sm:$0xf] %v708_v42 }
 0x129   : > { %453 = vst [vmem:[#allocation2 + $0x38c] sm:$0xf] %v708_v42 }
 0x12a   : > { %v2964_v2 = vpop.f32.mrf.mxu1 }
 0x12b   : > { %2736 = vmatmul.bf16.gmra.mxu2 %v9808_v0  ;;  %2914 = vmatmul.bf16.gmra.mxu0 %v9816_v4  ;;  %v9845_v0 = vld [vmem:[#allocation2 + $0x2b4] sm:$0xf0] }
 0x12c   : > { %2825 = vmatmul.bf16.gmra.mxu3 %v9812_v3  ;;  %v11407_v3 = vld [vmem:[#allocation2 + $0x2b8] sm:$0xf0]  ;;  %v9848_v20 = vor.u32 %v11402_v60, %v9845_v0  ;;  %v518_v60 = vpack.c.bf16 %v9342_v54, %v9342_v54  ;;  %v9374_v0 = vld [vmem:[%s11843_s29 + $0x141] sm:$0xff] }
 0x12d   : > { %3003 = vmatmul.bf16.gmra.mxu1 %v9820_v8  ;;  %v11403_v8 = vld [vmem:[#allocation2 + $0x29c] sm:$0xf] }
 0x12e   : > { %v2697_v24 = vpop.f32.mrf.mxu2  ;;  %550 = vst [vmem:[#allocation2 + $0x390] sm:$0xf] %v518_v60  ;;  %v11513_v60 = vld [vmem:[%s14871_s1 + $0x188] sm:$0xff] }
 0x12f   : > { %v2786_v28 = vpop.f32.mrf.mxu3  ;;  %v2698_v33 = vadd.f32 %v2697_v24, %v12122_v18  ;;  %v9851_v18 = vld [vmem:[#allocation2 + $0x298] sm:$0xf]  ;;  %3050 = vmatpush.bf16.msra.mxu2 %v11513_v60 }
 0x130   : > { %v2877_v46 = vpop.f32.mrf.mxu0  ;;  %v9852_v24 = vor.u32 %v11407_v3, %v9851_v18 }
 0x131   : > { %v2787_v45 = vadd.f32 %v2786_v28, %v2698_v33  ;;  %v9856_v28 = vor.u32 %v11403_v8, %v9853_v5  ;;  %v9403_v33 = vld [vmem:[%s11843_s29 + $0x122] sm:$0xff]  ;;  %v614_v5 = vpack.c.bf16 %v9374_v0, %v9374_v0 }
 0x132   : > { %v2966_v47 = vpop.f32.mrf.mxu1  ;;  %v707_v38 = vpack.c.bf16 %v9403_v33, %v9403_v33 }
 0x133   : > { %v2876_v56 = vadd.f32 %v2875_v12, %v2787_v45  ;;  %646 = vst [vmem:[#allocation2 + $0x394] sm:$0xf] %v614_v5  ;;  %v9343_v5 = vld [vmem:[%s11843_s29 + $0x150] sm:$0xff] }
 0x134   : > { %739 = vst [vmem:[#allocation2 + $0x32c] sm:$0xf] %v707_v38 }
 0x135   : > { %v12267_v4 = vadd.f32 %v2964_v2, %v2876_v56  ;;  %452 = vst [vmem:[#allocation2 + $0x368] sm:$0xf] %v707_v38  ;;  %v517_v56 = vpack.c.bf16 %v9341_v52, %v9341_v52 }
 0x136   : > { %v2699_v16 = vpop.f32.mrf.mxu2 }
 0x137   : > { %v2788_v17 = vpop.f32.mrf.mxu3  ;;  %v2700_v12 = vadd.f32 %v2699_v16, %v12134_v30  ;;  %549 = vst [vmem:[#allocation2 + $0x36c] sm:$0xf] %v517_v56  ;;  %v9406_v56 = vld [vmem:[%s11843_s29 + $0x142] sm:$0xff] }
 0x138   : > { %v2880_v32 = vpop.f32.mrf.mxu0 }
 0x139   : > { %v2789_v31 = vadd.f32 %v2788_v17, %v2700_v12  ;;  %v11415_v17 = vld [vmem:[#allocation2 + $0x2f8] sm:$0xf0] }
 0x13a   : > { %v2969_v2 = vpop.f32.mrf.mxu1  ;;  %v11411_v12 = vld [vmem:[#allocation2 + $0x2dc] sm:$0xf]  ;;  %v9880_v38 = vor.u32 %v11415_v17, %v9879_v14  ;;  %v519_v17 = vpack.c.bf16 %v9343_v5, %v9343_v5 }
 0x13b   : > { %2741 = vmatmul.bf16.gmra.mxu2 %v9844_v19  ;;  %v2878_v35 = vadd.f32 %v2877_v46, %v2789_v31  ;;  %2919 = vmatmul.bf16.gmra.mxu0 %v9852_v24  ;;  %v9373_v46 = vld [vmem:[%s11843_s29 + $0x139] sm:$0xff]  ;;  %v11416_v24 = vld [vmem:[#allocation2 + $0x300] sm:$0xf0]  ;;  %v9889_v31 = vld [vmem:[#allocation2 + $0x304] sm:$0xf0] }
 0x13c   : > { %2830 = vmatmul.bf16.gmra.mxu3 %v9848_v20  ;;  %v9881_v19 = vld [vmem:[#allocation2 + $0x2fc] sm:$0xf0]  ;;  %v9344_v14 = vld [vmem:[%s11843_s29 + $0x158] sm:$0xff]  ;;  %551 = vst [vmem:[#allocation2 + $0x3b4] sm:$0xf] %v519_v17 }
 0x13d   : > { %3008 = vmatmul.bf16.gmra.mxu1 %v9856_v28  ;;  %v12275_v30 = vadd.f32 %v2966_v47, %v2878_v35  ;;  %v613_v47 = vpack.c.bf16 %v9373_v46, %v9373_v46  ;;  %v11412_v28 = vld [vmem:[#allocation2 + $0x2e4] sm:$0xf]  ;;  %v9884_v42 = vor.u32 %v11411_v12, %v9881_v19  ;;  %v520_v12 = vpack.c.bf16 %v9344_v14, %v9344_v14  ;;  %v9376_v19 = vld [vmem:[%s11843_s29 + $0x159] sm:$0xff] }
 0x13e   : > { %v2702_v45 = vpop.f32.mrf.mxu2  ;;  %v9408_v17 = vld [vmem:[%s11843_s29 + $0x15a] sm:$0xff] }
 0x13f   : > { %v2791_v48 = vpop.f32.mrf.mxu3  ;;  %v2703_v55 = vadd.f32 %v2702_v45, %v12141_v50  ;;  %645 = vst [vmem:[#allocation2 + $0x370] sm:$0xf] %v613_v47  ;;  %v9887_v50 = vld [vmem:[#allocation2 + $0x2e0] sm:$0xf]  ;;  %v9892_v45 = vor.u32 %v11412_v28, %v9889_v31 }
 0x140   : > { %v2882_v3 = vpop.f32.mrf.mxu0  ;;  %552 = vst [vmem:[#allocation2 + $0x3d8] sm:$0xf] %v520_v12 }
 0x141   : > { %v2792_v18 = vadd.f32 %v2791_v48, %v2703_v55  ;;  %v9405_v55 = vld [vmem:[%s11843_s29 + $0x13a] sm:$0xff] }
 0x142   : > { %v2971_v8 = vpop.f32.mrf.mxu1  ;;  %v709_v46 = vpack.c.bf16 %v9405_v55, %v9405_v55  ;;  %v11421_v55 = vld [vmem:[#allocation2 + $0x32c] sm:$0xf] }
 0x143   : > { %v2881_v16 = vadd.f32 %v2880_v32, %v2792_v18  ;;  %v9888_v32 = vor.u32 %v11416_v24, %v9887_v50  ;;  %v11521_v18 = vld [vmem:[%s14871_s1 + $0x1c8] sm:$0xff] }
 0x144   : > { %741 = vst [vmem:[#allocation2 + $0x374] sm:$0xf] %v709_v46  ;;  %3139 = vmatpush.bf16.msra.mxu3 %v11521_v18 }
 0x145   : > { %v12282_v20 = vadd.f32 %v2969_v2, %v2881_v16  ;;  %454 = vst [vmem:[#allocation2 + $0x3b0] sm:$0xf] %v709_v46 }
 0x146   : > { %v2704_v33 = vpop.f32.mrf.mxu2 }
 0x147   : > { %v2793_v34 = vpop.f32.mrf.mxu3  ;;  %v2705_v35 = vadd.f32 %v2704_v33, %v12147_v61  ;;  %v710_v61 = vpack.c.bf16 %v9406_v56, %v9406_v56  ;;  %v616_v33 = vpack.c.bf16 %v9376_v19, %v9376_v19  ;;  %v9925_v56 = vld [vmem:[#allocation2 + $0x34c] sm:$0xf0]  ;;  %v712_v19 = vpack.c.bf16 %v9408_v17, %v9408_v17 }
 0x148   : > { %v2885_v52 = vpop.f32.mrf.mxu0 }
 0x149   : > { %v2794_v48 = vadd.f32 %v2793_v34, %v2705_v35  ;;  %742 = vst [vmem:[#allocation2 + $0x398] sm:$0xf] %v710_v61  ;;  %v9915_v34 = vld [vmem:[#allocation2 + $0x320] sm:$0xf]  ;;  %v11424_v35 = vld [vmem:[#allocation2 + $0x340] sm:$0xf0] }
 0x14a   : > { %v2974_v54 = vpop.f32.mrf.mxu1  ;;  %455 = vst [vmem:[#allocation2 + $0x3d4] sm:$0xf] %v710_v61  ;;  %v9916_v61 = vor.u32 %v11424_v35, %v9915_v34  ;;  %v9346_v34 = vld [vmem:[%s11843_s29 + $0x170] sm:$0xff] }
 0x14b   : > { %2746 = vmatmul.bf16.gmra.mxu2 %v9880_v38  ;;  %v2883_v2 = vadd.f32 %v2882_v3, %v2794_v48  ;;  %2924 = vmatmul.bf16.gmra.mxu0 %v9888_v32  ;;  %v9917_v32 = vld [vmem:[#allocation2 + $0x344] sm:$0xf0]  ;;  %648 = vst [vmem:[#allocation2 + $0x3dc] sm:$0xf] %v616_v33 }
 0x14c   : > { %2835 = vmatmul.bf16.gmra.mxu3 %v9884_v42  ;;  %v11420_v42 = vld [vmem:[#allocation2 + $0x324] sm:$0xf]  ;;  %744 = vst [vmem:[#allocation2 + $0x3e0] sm:$0xf] %v712_v19  ;;  %v9345_v33 = vld [vmem:[%s11843_s29 + $0x168] sm:$0xff] }
 0x14d   : > { %3013 = vmatmul.bf16.gmra.mxu1 %v9892_v45  ;;  %v12290_v0 = vadd.f32 %v2971_v8, %v2883_v2  ;;  %v9375_v8 = vld [vmem:[%s11843_s29 + $0x151] sm:$0xff]  ;;  %v11425_v45 = vld [vmem:[#allocation2 + $0x348] sm:$0xf0]  ;;  %v9920_v18 = vor.u32 %v11420_v42, %v9917_v32  ;;  %v522_v42 = vpack.c.bf16 %v9346_v34, %v9346_v34  ;;  %457 = vst [vmem:[#allocation2 + $0x41c] sm:$0xf] %v712_v19 }
 0x14e   : > { %v2707_v47 = vpop.f32.mrf.mxu2  ;;  %v615_v31 = vpack.c.bf16 %v9375_v8, %v9375_v8  ;;  %v11529_v2 = vld [vmem:[%s14871_s1 + $0x208] sm:$0xff]  ;;  %v9378_v32 = vld [vmem:[%s11843_s29 + $0x171] sm:$0xff] }
 0x14f   : > { %v2796_v3 = vpop.f32.mrf.mxu3  ;;  %v2708_v16 = vadd.f32 %v2707_v47, %v12151_v15  ;;  %v9923_v15 = vld [vmem:[#allocation2 + $0x328] sm:$0xf]  ;;  %3228 = vmatpush.bf16.msra.mxu0 %v11529_v2  ;;  %554 = vst [vmem:[#allocation2 + $0x420] sm:$0xf] %v522_v42  ;;  %v11512_v42 = vld [vmem:[%s14871_s1 + $0x180] sm:$0xff] }
 0x150   : > { %v2887_v24 = vpop.f32.mrf.mxu0  ;;  %647 = vst [vmem:[#allocation2 + $0x3b8] sm:$0xf] %v615_v31  ;;  %v9924_v47 = vor.u32 %v11425_v45, %v9923_v15  ;;  %v9951_v2 = vld [vmem:[#allocation2 + $0x368] sm:$0xf]  ;;  %3051 = vmatpush.bf16.msra.mxu2 %v11512_v42 }
 0x151   : > { %v2797_v50 = vadd.f32 %v2796_v3, %v2708_v16  ;;  %v9928_v3 = vor.u32 %v11421_v55, %v9925_v56  ;;  %v9407_v16 = vld [vmem:[%s11843_s29 + $0x152] sm:$0xff]  ;;  %v618_v56 = vpack.c.bf16 %v9378_v32, %v9378_v32 }
 0x152   : > { %v2976_v28 = vpop.f32.mrf.mxu1  ;;  %v711_v8 = vpack.c.bf16 %v9407_v16, %v9407_v16 }
 0x153   : > { %v2886_v38 = vadd.f32 %v2885_v52, %v2797_v50  ;;  %650 = vst [vmem:[#allocation2 + $0x424] sm:$0xf] %v618_v56  ;;  %v9347_v56 = vld [vmem:[%s11843_s29 + $0x180] sm:$0xff] }
 0x154   : > { %743 = vst [vmem:[#allocation2 + $0x3bc] sm:$0xf] %v711_v8 }
 0x155   : > { %v12300_v48 = vadd.f32 %v2974_v54, %v2886_v38  ;;  %456 = vst [vmem:[#allocation2 + $0x3f8] sm:$0xf] %v711_v8  ;;  %v521_v38 = vpack.c.bf16 %v9345_v33, %v9345_v33 }
 0x156   : > { %v2709_v60 = vpop.f32.mrf.mxu2 }
 0x157   : > { %v2798_v46 = vpop.f32.mrf.mxu3  ;;  %v2710_v52 = vadd.f32 %v2709_v60, %v12163_v29  ;;  %553 = vst [vmem:[#allocation2 + $0x3fc] sm:$0xf] %v521_v38  ;;  %v9410_v38 = vld [vmem:[%s11843_s29 + $0x172] sm:$0xff] }
 0x158   : > { %v2890_v14 = vpop.f32.mrf.mxu0 }
 0x159   : > { %v2799_v5 = vadd.f32 %v2798_v46, %v2710_v52  ;;  %v11433_v46 = vld [vmem:[#allocation2 + $0x388] sm:$0xf0] }
 0x15a   : > { %v2979_v54 = vpop.f32.mrf.mxu1  ;;  %v11429_v52 = vld [vmem:[#allocation2 + $0x36c] sm:$0xf]  ;;  %v9952_v8 = vor.u32 %v11433_v46, %v9951_v2  ;;  %v523_v46 = vpack.c.bf16 %v9347_v56, %v9347_v56 }
 0x15b   : > { %2751 = vmatmul.bf16.gmra.mxu2 %v9916_v61  ;;  %v2888_v12 = vadd.f32 %v2887_v24, %v2799_v5  ;;  %2929 = vmatmul.bf16.gmra.mxu0 %v9924_v47  ;;  %v9377_v24 = vld [vmem:[%s11843_s29 + $0x169] sm:$0xff]  ;;  %v11434_v47 = vld [vmem:[#allocation2 + $0x390] sm:$0xf0]  ;;  %v9961_v5 = vld [vmem:[#allocation2 + $0x394] sm:$0xf0] }
 0x15c   : > { %2840 = vmatmul.bf16.gmra.mxu3 %v9920_v18  ;;  %v9953_v61 = vld [vmem:[#allocation2 + $0x38c] sm:$0xf0]  ;;  %v9348_v2 = vld [vmem:[%s11843_s29 + $0x188] sm:$0xff]  ;;  %555 = vst [vmem:[#allocation2 + $0x444] sm:$0xf] %v523_v46 }
 0x15d   : > { %3018 = vmatmul.bf16.gmra.mxu1 %v9928_v3  ;;  %v12308_v29 = vadd.f32 %v2976_v28, %v2888_v12  ;;  %v617_v28 = vpack.c.bf16 %v9377_v24, %v9377_v24  ;;  %v11430_v3 = vld [vmem:[#allocation2 + $0x374] sm:$0xf]  ;;  %v9956_v19 = vor.u32 %v11429_v52, %v9953_v61  ;;  %v524_v52 = vpack.c.bf16 %v9348_v2, %v9348_v2  ;;  %v9380_v61 = vld [vmem:[%s11843_s29 + $0x189] sm:$0xff] }
 0x15e   : > { %v2712_v50 = vpop.f32.mrf.mxu2  ;;  %v9412_v46 = vld [vmem:[%s11843_s29 + $0x18a] sm:$0xff] }
 0x15f   : > { %v2801_v31 = vpop.f32.mrf.mxu3  ;;  %v2713_v35 = vadd.f32 %v2712_v50, %v12170_v53  ;;  %649 = vst [vmem:[#allocation2 + $0x400] sm:$0xf] %v617_v28  ;;  %v9959_v53 = vld [vmem:[#allocation2 + $0x370] sm:$0xf]  ;;  %v9964_v50 = vor.u32 %v11430_v3, %v9961_v5 }
 0x160   : > { %v2892_v45 = vpop.f32.mrf.mxu0  ;;  %556 = vst [vmem:[#allocation2 + $0x468] sm:$0xf] %v524_v52 }
 0x161   : > { %v2802_v15 = vadd.f32 %v2801_v31, %v2713_v35  ;;  %v9409_v35 = vld [vmem:[%s11843_s29 + $0x16a] sm:$0xff] }
 0x162   : > { %v2981_v55 = vpop.f32.mrf.mxu1  ;;  %v713_v24 = vpack.c.bf16 %v9409_v35, %v9409_v35  ;;  %v11439_v35 = vld [vmem:[#allocation2 + $0x3bc] sm:$0xf] }
 0x163   : > { %v2891_v60 = vadd.f32 %v2890_v14, %v2802_v15  ;;  %v9960_v14 = vor.u32 %v11434_v47, %v9959_v53  ;;  %v11520_v15 = vld [vmem:[%s14871_s1 + $0x1c0] sm:$0xff] }
 0x164   : > { %745 = vst [vmem:[#allocation2 + $0x404] sm:$0xf] %v713_v24  ;;  %3140 = vmatpush.bf16.msra.mxu3 %v11520_v15 }
 0x165   : > { %v12315_v18 = vadd.f32 %v2979_v54, %v2891_v60  ;;  %458 = vst [vmem:[#allocation2 + $0x440] sm:$0xf] %v713_v24 }
 0x166   : > { %v2714_v16 = vpop.f32.mrf.mxu2 }
 0x167   : > { %v2803_v17 = vpop.f32.mrf.mxu3  ;;  %v2715_v12 = vadd.f32 %v2714_v16, %v12176_v1  ;;  %v714_v1 = vpack.c.bf16 %v9410_v38, %v9410_v38  ;;  %v620_v16 = vpack.c.bf16 %v9380_v61, %v9380_v61  ;;  %v9997_v38 = vld [vmem:[#allocation2 + $0x3dc] sm:$0xf0] }
 0x168   : > { %v2895_v33 = vpop.f32.mrf.mxu0 }
 0x169   : > { %v2804_v31 = vadd.f32 %v2803_v17, %v2715_v12  ;;  %746 = vst [vmem:[#allocation2 + $0x428] sm:$0xf] %v714_v1  ;;  %v9987_v17 = vld [vmem:[#allocation2 + $0x3b0] sm:$0xf]  ;;  %v11442_v12 = vld [vmem:[#allocation2 + $0x3d0] sm:$0xf0] }
 0x16a   : > { %v2984_v34 = vpop.f32.mrf.mxu1  ;;  %459 = vst [vmem:[#allocation2 + $0x464] sm:$0xf] %v714_v1  ;;  %v9988_v1 = vor.u32 %v11442_v12, %v9987_v17  ;;  %v9445_v17 = vld [vmem:[%s11843_s29 + $0x31] sm:$0xff] }
 0x16b   : > { %2756 = vmatmul.bf16.gmra.mxu2 %v9952_v8  ;;  %v2893_v54 = vadd.f32 %v2892_v45, %v2804_v31  ;;  %2934 = vmatmul.bf16.gmra.mxu0 %v9960_v14  ;;  %v9995_v14 = vld [vmem:[#allocation2 + $0x3b8] sm:$0xf]  ;;  %652 = vst [vmem:[#allocation2 + $0x46c] sm:$0xf] %v620_v16 }
 0x16c   : > { %2845 = vmatmul.bf16.gmra.mxu3 %v9956_v19  ;;  %v11438_v19 = vld [vmem:[#allocation2 + $0x3b4] sm:$0xf]  ;;  %v9414_v16 = vld [vmem:[%s11843_s29 + $0x38] sm:$0xff] }
 0x16d   : > { %3023 = vmatmul.bf16.gmra.mxu1 %v9964_v50  ;;  %v12323_v32 = vadd.f32 %v2981_v55, %v2893_v54  ;;  %v9379_v55 = vld [vmem:[%s11843_s29 + $0x181] sm:$0xff]  ;;  %v11443_v50 = vld [vmem:[#allocation2 + $0x3d8] sm:$0xf0] }
 0x16e   : > { %v2717_v28 = vpop.f32.mrf.mxu2  ;;  %v619_v5 = vpack.c.bf16 %v9379_v55, %v9379_v55  ;;  %v11528_v54 = vld [vmem:[%s14871_s1 + $0x200] sm:$0xff] }
 0x16f   : > { %v2806_v45 = vpop.f32.mrf.mxu3  ;;  %v2718_v60 = vadd.f32 %v2717_v28, %v12180_v22  ;;  %v9989_v22 = vld [vmem:[#allocation2 + $0x3d4] sm:$0xf0]  ;;  %3229 = vmatpush.bf16.msra.mxu0 %v11528_v54  ;;  %v9996_v28 = vor.u32 %v11443_v50, %v9995_v14 }
 0x170   : > { %v2897_v47 = vpop.f32.mrf.mxu0  ;;  %651 = vst [vmem:[#allocation2 + $0x448] sm:$0xf] %v619_v5  ;;  %v9992_v15 = vor.u32 %v11438_v19, %v9989_v22  ;;  %v9413_v5 = vld [vmem:[%s11843_s29 + $0x30] sm:$0xff]  ;;  %v783_v19 = vpack.c.bf16 %v9414_v16, %v9414_v16  ;;  %v9446_v22 = vld [vmem:[%s11843_s29 + $0x39] sm:$0xff] }
 0x171   : > { %v2807_v53 = vadd.f32 %v2806_v45, %v2718_v60  ;;  %v10000_v45 = vor.u32 %v11439_v35, %v9997_v38  ;;  %v9411_v60 = vld [vmem:[%s11843_s29 + $0x182] sm:$0xff]  ;;  %v879_v14 = vpack.c.bf16 %v9446_v22, %v9446_v22  ;;  %v9477_v50 = vld [vmem:[%s11843_s29 + $0x32] sm:$0xff]  ;;  %v9478_v35 = vld [vmem:[%s11843_s29 + $0x3a] sm:$0xff] }
 0x172   : > { %v12333_v3 = vpop.f32.mrf.mxu1  ;;  %v715_v55 = vpack.c.bf16 %v9411_v60, %v9411_v60  ;;  %815 = vst [vmem:[#allocation2 + $0x3c] sm:$0xf] %v783_v19  ;;  %v11452_v60 = vld [vmem:[#allocation2 + $0x420] sm:$0xf0] }
 0x173   : > { %v2896_v8 = vadd.f32 %v2895_v33, %v2807_v53  ;;  %911 = vst [vmem:[#allocation2 + $0x40] sm:$0xf] %v879_v14  ;;  %v9415_v14 = vld [vmem:[%s11843_s29 + $0x48] sm:$0xff] }
 0x174   : > { %747 = vst [vmem:[#allocation2 + $0x44c] sm:$0xf] %v715_v55  ;;  %v11448_v55 = vld [vmem:[#allocation2 + $0x404] sm:$0xf] }
 0x175   : > { %v12335_v31 = vadd.f32 %v2984_v34, %v2896_v8  ;;  %v782_v8 = vpack.c.bf16 %v9413_v5, %v9413_v5 }
 0x176   : > { %v2719_v42 = vpop.f32.mrf.mxu2 }
 0x177   : > { %v2808_v24 = vpop.f32.mrf.mxu3  ;;  %v2720_v33 = vadd.f32 %v2719_v42, %v12196_v49  ;;  %v716_v49 = vpack.c.bf16 %v9412_v46, %v9412_v46  ;;  %814 = vst [vmem:[#allocation2 + $0x18] sm:$0xf] %v782_v8 }
 0x178   : > { %v2900_v34 = vpop.f32.mrf.mxu0 }
 0x179   : > { %v2809_v56 = vadd.f32 %v2808_v24, %v2720_v33  ;;  %748 = vst [vmem:[#allocation2 + $0x470] sm:$0xf] %v716_v49  ;;  %v974_v24 = vpack.c.bf16 %v9477_v50, %v9477_v50  ;;  %v10023_v33 = vld [vmem:[#allocation2 + $0x3f8] sm:$0xf]  ;;  %v10033_v49 = vld [vmem:[#allocation2 + $0x424] sm:$0xf0] }
 0x17a   : > { %v2989_v2 = vpop.f32.mrf.mxu1  ;;  %v9416_v50 = vld [vmem:[%s11843_s29 + $0x50] sm:$0xff] }
 0x17b   : > { %2761 = vmatmul.bf16.gmra.mxu2 %v9988_v1  ;;  %v12343_v52 = vadd.f32 %v2897_v47, %v2809_v56  ;;  %2939 = vmatmul.bf16.gmra.mxu0 %v9996_v28  ;;  %v878_v47 = vpack.c.bf16 %v9445_v17, %v9445_v17  ;;  %v11451_v1 = vld [vmem:[#allocation2 + $0x418] sm:$0xf0]  ;;  %v10031_v56 = vld [vmem:[#allocation2 + $0x400] sm:$0xf]  ;;  %1006 = vst [vmem:[#allocation2 + $0x20] sm:$0xf] %v974_v24 }
 0x17c   : > { %2850 = vmatmul.bf16.gmra.mxu3 %v9992_v15  ;;  %v975_v15 = vpack.c.bf16 %v9478_v35, %v9478_v35  ;;  %v10024_v16 = vor.u32 %v11451_v1, %v10023_v33  ;;  %v10032_v17 = vor.u32 %v11452_v60, %v10031_v56  ;;  %v9447_v35 = vld [vmem:[%s11843_s29 + $0x49] sm:$0xff]  ;;  %v784_v24 = vpack.c.bf16 %v9415_v14, %v9415_v14  ;;  %v9448_v1 = vld [vmem:[%s11843_s29 + $0x51] sm:$0xff] }
 0x17d   : > { %3028 = vmatmul.bf16.gmra.mxu1 %v10000_v45  ;;  %v11447_v45 = vld [vmem:[#allocation2 + $0x3fc] sm:$0xf]  ;;  %910 = vst [vmem:[#allocation2 + $0x1c] sm:$0xf] %v878_v47  ;;  %v785_v33 = vpack.c.bf16 %v9416_v50, %v9416_v50 }
 0x17e   : > { %v2722_v61 = vpop.f32.mrf.mxu2  ;;  %1007 = vst [vmem:[#allocation2 + $0x44] sm:$0xf] %v975_v15  ;;  %v880_v15 = vpack.c.bf16 %v9447_v35, %v9447_v35 }
 0x17f   : > { %v2811_v53 = vpop.f32.mrf.mxu3  ;;  %v2723_v12 = vadd.f32 %v2722_v61, %v12203_v10  ;;  %v10025_v10 = vld [vmem:[#allocation2 + $0x41c] sm:$0xf0]  ;;  %816 = vst [vmem:[#allocation2 + $0x60] sm:$0xf] %v784_v24 }
 0x180   : > { %v2902_v54 = vpop.f32.mrf.mxu0  ;;  %817 = vst [vmem:[#allocation2 + $0x84] sm:$0xf] %v785_v33 }
 0x181   : > { %v2812_v38 = vadd.f32 %v2811_v53, %v2723_v12  ;;  %v10036_v12 = vor.u32 %v11448_v55, %v10033_v49  ;;  %v10059_v49 = vld [vmem:[#allocation2 + $0x440] sm:$0xf]  ;;  %912 = vst [vmem:[#allocation2 + $0x64] sm:$0xf] %v880_v15 }
 0x182   : > { %v12352_v42 = vpop.f32.mrf.mxu1 }
 0x183   : > { %v2901_v28 = vadd.f32 %v2900_v34, %v2812_v38  ;;  %v10028_v34 = vor.u32 %v11447_v45, %v10025_v10  ;;  %v9479_v45 = vld [vmem:[%s11843_s29 + $0x4a] sm:$0xff]  ;;  %v9480_v10 = vld [vmem:[%s11843_s29 + $0x52] sm:$0xff] }
 0x184   : > { %v976_v55 = vpack.c.bf16 %v9479_v45, %v9479_v45  ;;  %v9417_v45 = vld [vmem:[%s11843_s29 + $0x60] sm:$0xff] }
 0x185   : > { %v12354_v46 = vadd.f32 %v2989_v2, %v2901_v28  ;;  %v881_v28 = vpack.c.bf16 %v9448_v1, %v9448_v1 }
 0x186   : > { %v2724_v61 = vpop.f32.mrf.mxu2  ;;  %1008 = vst [vmem:[#allocation2 + $0x68] sm:$0xf] %v976_v55 }
 0x187   : > { %v2813_v53 = vpop.f32.mrf.mxu3  ;;  %v2725_v5 = vadd.f32 %v2724_v61, %v12213_v40  ;;  %v11460_v61 = vld [vmem:[#allocation2 + $0x460] sm:$0xf0]  ;;  %913 = vst [vmem:[#allocation2 + $0x88] sm:$0xf] %v881_v28 }
 0x188   : > { %v2905_v19 = vpop.f32.mrf.mxu0  ;;  %v10060_v35 = vor.u32 %v11460_v61, %v10059_v49  ;;  %v786_v49 = vpack.c.bf16 %v9417_v45, %v9417_v45 }
 0x189   : > { %v2814_v8 = vadd.f32 %v2813_v53, %v2725_v5  ;;  %v977_v53 = vpack.c.bf16 %v9480_v10, %v9480_v10  ;;  %v9418_v10 = vld [vmem:[%s11843_s29 + $0x68] sm:$0xff] }
 0x18a   : > { %v2994_v2 = vpop.f32.mrf.mxu1  ;;  %v787_v61 = vpack.c.bf16 %v9418_v10, %v9418_v10  ;;  %818 = vst [vmem:[#allocation2 + $0xa8] sm:$0xf] %v786_v49 }
 0x18b   : > { %2766 = vmatmul.bf16.gmra.mxu2 %v10024_v16  ;;  %v12357_v22 = vadd.f32 %v2902_v54, %v2814_v8  ;;  %2944 = vmatmul.bf16.gmra.mxu0 %v10032_v17  ;;  %v11456_v16 = vld [vmem:[#allocation2 + $0x444] sm:$0xf]  ;;  %v11461_v17 = vld [vmem:[#allocation2 + $0x468] sm:$0xf0]  ;;  %1009 = vst [vmem:[#allocation2 + $0x8c] sm:$0xf] %v977_v53 }
 0x18c   : > { %2855 = vmatmul.bf16.gmra.mxu3 %v10028_v34  ;;  %v10067_v34 = vld [vmem:[#allocation2 + $0x448] sm:$0xf]  ;;  %v11457_v8 = vld [vmem:[#allocation2 + $0x44c] sm:$0xf]  ;;  %819 = vst [vmem:[#allocation2 + $0xcc] sm:$0xf] %v787_v61 }
 0x18d   : > { %3033 = vmatmul.bf16.gmra.mxu1 %v10036_v12  ;;  %v9450_v53 = vld [vmem:[%s11843_s29 + $0x69] sm:$0xff]  ;;  %v2992_v51 = vadd.f32 %v12352_v42, %v12357_v22 }
 0x18e   : > { %v2727_v47 = vpop.f32.mrf.mxu2 }
 0x18f   : > { %v2816_v40 = vpop.f32.mrf.mxu3  ;;  %v2728_v38 = vadd.f32 %v2727_v47, %v12217_v7  ;;  %v10061_v7 = vld [vmem:[#allocation2 + $0x464] sm:$0xf0]  ;;  %v10069_v47 = vld [vmem:[#allocation2 + $0x46c] sm:$0xf0] }
 0x190   : > { %v2907_v60 = vpop.f32.mrf.mxu0  ;;  %v10072_v24 = vor.u32 %v11457_v8, %v10069_v47 }
 0x191   : > { %v2817_v56 = vadd.f32 %v2816_v40, %v2728_v38  ;;  %v10068_v38 = vor.u32 %v11461_v17, %v10067_v34  ;;  %v9482_v34 = vld [vmem:[%s11843_s29 + $0x6a] sm:$0xff] }
 0x192   : > { %v12366_v54 = vpop.f32.mrf.mxu1 }
 0x193   : > { %v2906_v5 = vadd.f32 %v2905_v19, %v2817_v56  ;;  %v10064_v19 = vor.u32 %v11456_v16, %v10061_v7  ;;  %v9449_v56 = vld [vmem:[%s11843_s29 + $0x61] sm:$0xff]  ;;  %v883_v16 = vpack.c.bf16 %v9450_v53, %v9450_v53 }
 0x194   : > { %v9481_v7 = vld [vmem:[%s11843_s29 + $0x62] sm:$0xff] }
 0x195   : > { %v12368_v12 = vadd.f32 %v2994_v2, %v2906_v5  ;;  %v882_v5 = vpack.c.bf16 %v9449_v56, %v9449_v56  ;;  %v978_v47 = vpack.c.bf16 %v9481_v7, %v9481_v7  ;;  %915 = vst [vmem:[#allocation2 + $0xd0] sm:$0xf] %v883_v16  ;;  %v9419_v16 = vld [vmem:[%s11843_s29 + $0x78] sm:$0xff]  ;;  %v9420_v7 = vld [vmem:[%s11843_s29 + $0x80] sm:$0xff] }
 0x196   : > { %v2729_v40 = vpop.f32.mrf.mxu2 }
 0x197   : > { %v2818_v14 = vpop.f32.mrf.mxu3  ;;  %v2730_v50 = vadd.f32 %v2729_v40, %v12233_v36  ;;  %v979_v40 = vpack.c.bf16 %v9482_v34, %v9482_v34  ;;  %914 = vst [vmem:[#allocation2 + $0xac] sm:$0xf] %v882_v5  ;;  %v9451_v34 = vld [vmem:[%s11843_s29 + $0x79] sm:$0xff] }
 0x198   : > { %v2910_v1 = vpop.f32.mrf.mxu0  ;;  %1010 = vst [vmem:[#allocation2 + $0xb0] sm:$0xf] %v978_v47  ;;  %v789_v47 = vpack.c.bf16 %v9420_v7, %v9420_v7 }
 0x199   : > { %v2819_v33 = vadd.f32 %v2818_v14, %v2730_v50  ;;  %v9535_v50 = vld [vmem:[#allocation2 + $0x18] sm:$0xf]  ;;  %1011 = vst [vmem:[#allocation2 + $0xd4] sm:$0xf] %v979_v40  ;;  %v9452_v40 = vld [vmem:[%s11843_s29 + $0x81] sm:$0xff] }
 0x19a   : > { %v2999_v2 = vpop.f32.mrf.mxu1  ;;  %821 = vst [vmem:[#allocation2 + $0x114] sm:$0xf] %v789_v47 }
 0x19b   : > { %2771 = vmatmul.bf16.gmra.mxu2 %v10060_v35  ;;  %v12371_v15 = vadd.f32 %v2907_v60, %v2819_v33  ;;  %2949 = vmatmul.bf16.gmra.mxu0 %v10068_v38  ;;  %v11327_v35 = vld [vmem:[#allocation2 + $0x38] sm:$0xf0]  ;;  %v11328_v33 = vld [vmem:[#allocation2 + $0x40] sm:$0xf0] }
 0x19c   : > { %2860 = vmatmul.bf16.gmra.mxu3 %v10064_v19  ;;  %v9537_v19 = vld [vmem:[#allocation2 + $0x3c] sm:$0xf0] }
 0x19d   : > { %3038 = vmatmul.bf16.gmra.mxu1 %v10072_v24  ;;  %v9543_v24 = vld [vmem:[#allocation2 + $0x20] sm:$0xf] }
 0x19e   : > { %v2732_v28 = vpop.f32.mrf.mxu2  ;;  %v9544_v56 = vor.u32 %v11328_v33, %v9543_v24 }
 0x19f   : > { %v2821_v36 = vpop.f32.mrf.mxu3  ;;  %v2733_v55 = vadd.f32 %v2732_v28, %v12240_v9  ;;  %v11323_v9 = vld [vmem:[#allocation2 + $0x1c] sm:$0xf] }
 0x1a0   : > { %v2912_v8 = vpop.f32.mrf.mxu0  ;;  %v9540_v10 = vor.u32 %v11323_v9, %v9537_v19  ;;  %v9484_v9 = vld [vmem:[%s11843_s29 + $0x82] sm:$0xff] }
 0x1a1   : > { %v2822_v17 = vadd.f32 %v2821_v36, %v2733_v55  ;;  %v981_v33 = vpack.c.bf16 %v9484_v9, %v9484_v9  ;;  %v9422_v9 = vld [vmem:[%s11843_s29 + $0x98] sm:$0xff] }
 0x1a2   : > { %v12380_v60 = vpop.f32.mrf.mxu1 }
 0x1a3   : > { %v2911_v14 = vadd.f32 %v2910_v1, %v2822_v17  ;;  %v9536_v1 = vor.u32 %v11327_v35, %v9535_v50  ;;  %v788_v17 = vpack.c.bf16 %v9419_v16, %v9419_v16  ;;  %v885_v50 = vpack.c.bf16 %v9452_v40, %v9452_v40  ;;  %v9483_v35 = vld [vmem:[%s11843_s29 + $0x7a] sm:$0xff]  ;;  %1013 = vst [vmem:[#allocation2 + $0x11c] sm:$0xf] %v981_v33 }
 0x1a4   : > { %v791_v33 = vpack.c.bf16 %v9422_v9, %v9422_v9 }
 0x1a5   : > { %v12382_v38 = vadd.f32 %v2999_v2, %v2911_v14  ;;  %v884_v14 = vpack.c.bf16 %v9451_v34, %v9451_v34  ;;  %820 = vst [vmem:[#allocation2 + $0xf0] sm:$0xf] %v788_v17 }
 0x1a6   : > { %v2734_v28 = vpop.f32.mrf.mxu2  ;;  %917 = vst [vmem:[#allocation2 + $0x118] sm:$0xf] %v885_v50 }
 0x1a7   : > { %v2823_v36 = vpop.f32.mrf.mxu3  ;;  %v2735_v45 = vadd.f32 %v2734_v28, %v12250_v41  ;;  %916 = vst [vmem:[#allocation2 + $0xf4] sm:$0xf] %v884_v14 }
 0x1a8   : > { %v2915_v49 = vpop.f32.mrf.mxu0  ;;  %823 = vst [vmem:[#allocation2 + $0x15c] sm:$0xf] %v791_v33 }
 0x1a9   : > { %v2824_v55 = vadd.f32 %v2823_v36, %v2735_v45  ;;  %v9571_v36 = vld [vmem:[#allocation2 + $0x60] sm:$0xf]  ;;  %v11336_v45 = vld [vmem:[#allocation2 + $0x80] sm:$0xf0] }
 0x1aa   : > { %v3004_v61 = vpop.f32.mrf.mxu1  ;;  %v9572_v7 = vor.u32 %v11336_v45, %v9571_v36 }
 0x1ab   : > { %3052 = vmatmul.bf16.vlgmr.msra.gmra.mxu2 %v9536_v1  ;;  %v12385_v2 = vadd.f32 %v2912_v8, %v2824_v55  ;;  %3230 = vmatmul.bf16.vlgmr.msra.gmra.mxu0 %v9544_v56  ;;  %v980_v8 = vpack.c.bf16 %v9483_v35, %v9483_v35  ;;  %v9579_v55 = vld [vmem:[#allocation2 + $0x68] sm:$0xf]  ;;  %v9421_v35 = vld [vmem:[%s11843_s29 + $0x90] sm:$0xff] }
 0x1ac   : > { %3141 = vmatmul.bf16.vlgmr.msra.gmra.mxu3 %v9540_v10  ;;  %v9573_v10 = vld [vmem:[#allocation2 + $0x84] sm:$0xf0] }
 0x1ad   : > { %1012 = vst [vmem:[#allocation2 + $0xf8] sm:$0xf] %v980_v8  ;;  %v790_v8 = vpack.c.bf16 %v9421_v35, %v9421_v35 }
 0x1ae   : > { %v2737_v53 = vpop.f32.mrf.mxu2 }
 0x1af   : > { %v2826_v5 = vpop.f32.mrf.mxu3  ;;  %v2738_v41 = vadd.f32 %v2737_v53, %v12132_v27  ;;  %v11332_v27 = vld [vmem:[#allocation2 + $0x64] sm:$0xf]  ;;  %v11337_v53 = vld [vmem:[#allocation2 + $0x88] sm:$0xf0]  ;;  %822 = vst [vmem:[#allocation2 + $0x138] sm:$0xf] %v790_v8 }
 0x1b0   : > { %v2917_v24 = vpop.f32.mrf.mxu0  ;;  %v9576_v34 = vor.u32 %v11332_v27, %v9573_v10  ;;  %v9485_v27 = vld [vmem:[%s11843_s29 + $0x92] sm:$0xff]  ;;  %v9486_v10 = vld [vmem:[%s11843_s29 + $0x9a] sm:$0xff] }
 0x1b1   : > { %v2827_v19 = vadd.f32 %v2826_v5, %v2738_v41  ;;  %v9580_v41 = vor.u32 %v11337_v53, %v9579_v55 }
 0x1b2   : > { %v12394_v1 = vpop.f32.mrf.mxu1 }
 0x1b3   : > { %v2916_v28 = vadd.f32 %v2915_v49, %v2827_v19  ;;  %v9453_v19 = vld [vmem:[%s11843_s29 + $0x91] sm:$0xff] }
 0x1b4   : > { %v886_v36 = vpack.c.bf16 %v9453_v19, %v9453_v19 }
 0x1b5   : > { %v12396_v56 = vadd.f32 %v3004_v61, %v2916_v28  ;;  %v9454_v28 = vld [vmem:[%s11843_s29 + $0x99] sm:$0xff] }
 0x1b6   : > { %v2739_v5 = vpop.f32.mrf.mxu2  ;;  %v887_v45 = vpack.c.bf16 %v9454_v28, %v9454_v28  ;;  %918 = vst [vmem:[#allocation2 + $0x13c] sm:$0xf] %v886_v36 }
 0x1b7   : > { %v2828_v16 = vpop.f32.mrf.mxu3  ;;  %v2740_v49 = vadd.f32 %v2739_v5, %v12139_v43  ;;  %v983_v5 = vpack.c.bf16 %v9486_v10, %v9486_v10  ;;  %v9424_v10 = vld [vmem:[%s11843_s29 + $0xb0] sm:$0xff] }
 0x1b8   : > { %v2920_v47 = vpop.f32.mrf.mxu0  ;;  %919 = vst [vmem:[#allocation2 + $0x160] sm:$0xf] %v887_v45 }
 0x1b9   : > { %v2829_v17 = vadd.f32 %v2828_v16, %v2740_v49  ;;  %v9607_v49 = vld [vmem:[#allocation2 + $0xa8] sm:$0xf]  ;;  %1015 = vst [vmem:[#allocation2 + $0x164] sm:$0xf] %v983_v5  ;;  %v793_v5 = vpack.c.bf16 %v9424_v10, %v9424_v10 }
 0x1ba   : > { %v3009_v40 = vpop.f32.mrf.mxu1 }
 0x1bb   : > { %3057 = vmatmul.bf16.gmra.mxu2 %v9572_v7  ;;  %v12399_v61 = vadd.f32 %v2917_v24, %v2829_v17  ;;  %3235 = vmatmul.bf16.gmra.mxu0 %v9580_v41  ;;  %v982_v24 = vpack.c.bf16 %v9485_v27, %v9485_v27  ;;  %v11345_v7 = vld [vmem:[#allocation2 + $0xc8] sm:$0xf0]  ;;  %v9609_v41 = vld [vmem:[#allocation2 + $0xcc] sm:$0xf0]  ;;  %825 = vst [vmem:[#allocation2 + $0x1a4] sm:$0xf] %v793_v5 }
 0x1bc   : > { %3146 = vmatmul.bf16.gmra.mxu3 %v9576_v34  ;;  %v11341_v34 = vld [vmem:[#allocation2 + $0xac] sm:$0xf]  ;;  %v9615_v17 = vld [vmem:[#allocation2 + $0xb0] sm:$0xf] }
 0x1bd   : > { %1014 = vst [vmem:[#allocation2 + $0x140] sm:$0xf] %v982_v24  ;;  %v9612_v19 = vor.u32 %v11341_v34, %v9609_v41  ;;  %v9423_v27 = vld [vmem:[%s11843_s29 + $0xa8] sm:$0xff]  ;;  %v9488_v41 = vld [vmem:[%s11843_s29 + $0xb2] sm:$0xff] }
 0x1be   : > { %v2742_v14 = vpop.f32.mrf.mxu2  ;;  %v792_v24 = vpack.c.bf16 %v9423_v27, %v9423_v27  ;;  %v9487_v34 = vld [vmem:[%s11843_s29 + $0xaa] sm:$0xff]  ;;  %v11355_v27 = vld [vmem:[#allocation2 + $0x118] sm:$0xf0] }
 0x1bf   : > { %v2831_v50 = vpop.f32.mrf.mxu3  ;;  %v2743_v43 = vadd.f32 %v2742_v14, %v12145_v58  ;;  %v11346_v14 = vld [vmem:[#allocation2 + $0xd0] sm:$0xf0] }
 0x1c0   : > { %v2922_v53 = vpop.f32.mrf.mxu0  ;;  %v9616_v8 = vor.u32 %v11346_v14, %v9615_v17  ;;  %824 = vst [vmem:[#allocation2 + $0x180] sm:$0xf] %v792_v24 }
 0x1c1   : > { %v2832_v55 = vadd.f32 %v2831_v50, %v2743_v43 }
 0x1c2   : > { %v12411_v43 = vpop.f32.mrf.mxu1 }
 0x1c3   : > { %v2921_v16 = vadd.f32 %v2920_v47, %v2832_v55  ;;  %v9608_v47 = vor.u32 %v11345_v7, %v9607_v49  ;;  %14889 = vst [vmem:[#allocation7_spill] sm:$0xff] %v12411_v43 }
 0x1c5   : > { %v12408_v58 = vadd.f32 %v3009_v40, %v2921_v16  ;;  %v9456_v16 = vld [vmem:[%s11843_s29 + $0xb1] sm:$0xff] }
 0x1c6   : > { %v2744_v35 = vpop.f32.mrf.mxu2  ;;  %v889_v7 = vpack.c.bf16 %v9456_v16, %v9456_v16 }
 0x1c7   : > { %v2833_v50 = vpop.f32.mrf.mxu3  ;;  %v2745_v9 = vadd.f32 %v2744_v35, %v12149_v11  ;;  %v9455_v11 = vld [vmem:[%s11843_s29 + $0xa9] sm:$0xff] }
 0x1c8   : > { %v2925_v40 = vpop.f32.mrf.mxu0  ;;  %v888_v49 = vpack.c.bf16 %v9455_v11, %v9455_v11  ;;  %921 = vst [vmem:[#allocation2 + $0x1a8] sm:$0xf] %v889_v7 }
 0x1c9   : > { %v2834_v33 = vadd.f32 %v2833_v50, %v2745_v9  ;;  %v985_v50 = vpack.c.bf16 %v9488_v41, %v9488_v41  ;;  %v9425_v41 = vld [vmem:[%s11843_s29 + $0xc0] sm:$0xff] }
 0x1ca   : > { %v3014_v35 = vpop.f32.mrf.mxu1  ;;  %920 = vst [vmem:[#allocation2 + $0x184] sm:$0xf] %v888_v49 }
 0x1cb   : > { %3062 = vmatmul.bf16.gmra.mxu2 %v9608_v47  ;;  %v12413_v28 = vadd.f32 %v2922_v53, %v2834_v33  ;;  %3240 = vmatmul.bf16.gmra.mxu0 %v9616_v8  ;;  %v984_v53 = vpack.c.bf16 %v9487_v34, %v9487_v34  ;;  %v9643_v47 = vld [vmem:[#allocation2 + $0xf0] sm:$0xf]  ;;  %v11350_v8 = vld [vmem:[#allocation2 + $0xf4] sm:$0xf]  ;;  %1017 = vst [vmem:[#allocation2 + $0x1ac] sm:$0xf] %v985_v50 }
 0x1cc   : > { %3151 = vmatmul.bf16.gmra.mxu3 %v9612_v19  ;;  %v11354_v19 = vld [vmem:[#allocation2 + $0x110] sm:$0xf0] }
 0x1cd   : > { %14890 = vst [vmem:[#allocation8_spill] sm:$0xff] %v12413_v28 }
 0x1ce   : > { %v2747_v36 = vpop.f32.mrf.mxu2  ;;  %1016 = vst [vmem:[#allocation2 + $0x188] sm:$0xf] %v984_v53  ;;  %v9457_v53 = vld [vmem:[%s11843_s29 + $0xc1] sm:$0xff] }
 0x1cf   : > { %v2836_v45 = vpop.f32.mrf.mxu3  ;;  %v2748_v55 = vadd.f32 %v2747_v36, %v12161_v25  ;;  %v9645_v25 = vld [vmem:[#allocation2 + $0x114] sm:$0xf0] }
 0x1d0   : > { %v2927_v14 = vpop.f32.mrf.mxu0  ;;  %v9651_v36 = vld [vmem:[#allocation2 + $0xf8] sm:$0xf] }
 0x1d1   : > { %v2837_v17 = vadd.f32 %v2836_v45, %v2748_v55  ;;  %v9648_v55 = vor.u32 %v11350_v8, %v9645_v25  ;;  %v9652_v24 = vor.u32 %v11355_v27, %v9651_v36  ;;  %v9489_v8 = vld [vmem:[%s11843_s29 + $0xc2] sm:$0xff]  ;;  %v9490_v25 = vld [vmem:[%s11843_s29 + $0xca] sm:$0xff] }
 0x1d3   : > { %v2926_v9 = vadd.f32 %v2925_v40, %v2837_v17  ;;  %v9644_v40 = vor.u32 %v11354_v19, %v9643_v47  ;;  %v9426_v17 = vld [vmem:[%s11843_s29 + $0xc8] sm:$0xff]  ;;  %v890_v47 = vpack.c.bf16 %v9457_v53, %v9457_v53 }
 0x1d4   : > { %v795_v50 = vpack.c.bf16 %v9426_v17, %v9426_v17 }
 0x1d5   : > { %v12422_v33 = vadd.f32 %v3014_v35, %v2926_v9  ;;  %v794_v35 = vpack.c.bf16 %v9425_v41, %v9425_v41  ;;  %v9458_v9 = vld [vmem:[%s11843_s29 + $0xc9] sm:$0xff]  ;;  %922 = vst [vmem:[#allocation2 + $0x1cc] sm:$0xf] %v890_v47 }
 0x1d6   : > { %v2749_v45 = vpop.f32.mrf.mxu2  ;;  %v891_v19 = vpack.c.bf16 %v9458_v9, %v9458_v9  ;;  %827 = vst [vmem:[#allocation2 + $0x1ec] sm:$0xf] %v795_v50 }
 0x1d7   : > { %v2838_v10 = vpop.f32.mrf.mxu3  ;;  %v2750_v11 = vadd.f32 %v2749_v45, %v12168_v44  ;;  %826 = vst [vmem:[#allocation2 + $0x1c8] sm:$0xf] %v794_v35  ;;  %v987_v45 = vpack.c.bf16 %v9490_v25, %v9490_v25  ;;  %v9459_v25 = vld [vmem:[%s11843_s29 + $0xd9] sm:$0xff] }
 0x1d8   : > { %v2930_v16 = vpop.f32.mrf.mxu0  ;;  %923 = vst [vmem:[#allocation2 + $0x1f0] sm:$0xf] %v891_v19  ;;  %v9427_v19 = vld [vmem:[%s11843_s29 + $0xd8] sm:$0xff] }
 0x1d9   : > { %v2839_v5 = vadd.f32 %v2838_v10, %v2750_v11  ;;  %v9679_v11 = vld [vmem:[#allocation2 + $0x138] sm:$0xf]  ;;  %1019 = vst [vmem:[#allocation2 + $0x1f4] sm:$0xf] %v987_v45  ;;  %v9460_v45 = vld [vmem:[%s11843_s29 + $0xe1] sm:$0xff] }
 0x1db   : > { %3067 = vmatmul.bf16.gmra.mxu2 %v9644_v40  ;;  %v12425_v49 = vadd.f32 %v2927_v14, %v2839_v5  ;;  %3245 = vmatmul.bf16.gmra.mxu0 %v9652_v24  ;;  %v986_v14 = vpack.c.bf16 %v9489_v8, %v9489_v8  ;;  %v11363_v40 = vld [vmem:[#allocation2 + $0x158] sm:$0xf0]  ;;  %v9687_v24 = vld [vmem:[#allocation2 + $0x140] sm:$0xf]  ;;  %v11364_v5 = vld [vmem:[#allocation2 + $0x160] sm:$0xf0] }
 0x1dc   : > { %3156 = vmatmul.bf16.gmra.mxu3 %v9648_v55  ;;  %v11359_v55 = vld [vmem:[#allocation2 + $0x13c] sm:$0xf]  ;;  %v9680_v17 = vor.u32 %v11363_v40, %v9679_v11  ;;  %v9688_v53 = vor.u32 %v11364_v5, %v9687_v24  ;;  %v9428_v8 = vld [vmem:[%s11843_s29 + $0xe0] sm:$0xff]  ;;  %v892_v11 = vpack.c.bf16 %v9459_v25, %v9459_v25  ;;  %v893_v40 = vpack.c.bf16 %v9460_v45, %v9460_v45 }
 0x1dd   : > { %14891 = vst [vmem:[#allocation9_spill] sm:$0xff] %v12425_v49  ;;  %v3622_v49 = vld [vmem:[#allocation4 + $0x60] sm:$0x1] }
 0x1de   : > { %v2752_v7 = vpop.f32.mrf.mxu2  ;;  %1018 = vst [vmem:[#allocation2 + $0x1d0] sm:$0xf] %v986_v14  ;;  %v797_v14 = vpack.c.bf16 %v9428_v8, %v9428_v8 }
 0x1df   : > { %v2841_v34 = vpop.f32.mrf.mxu3  ;;  %v2753_v44 = vadd.f32 %v2752_v7, %v12174_v62  ;;  %v9681_v62 = vld [vmem:[#allocation2 + $0x15c] sm:$0xf0]  ;;  %924 = vst [vmem:[#allocation2 + $0x214] sm:$0xf] %v892_v11 }
 0x1e0   : > { %v2932_v27 = vpop.f32.mrf.mxu0  ;;  %829 = vst [vmem:[#allocation2 + $0x234] sm:$0xf] %v797_v14 }
 0x1e1   : > { %v2842_v36 = vadd.f32 %v2841_v34, %v2753_v44  ;;  %925 = vst [vmem:[#allocation2 + $0x238] sm:$0xf] %v893_v40  ;;  %v9429_v40 = vld [vmem:[%s11843_s29 + $0xf0] sm:$0xff] }
 0x1e3   : > { %v12434_v10 = vadd.f32 %v2930_v16, %v2842_v36  ;;  %v9684_v16 = vor.u32 %v11359_v55, %v9681_v62  ;;  %v796_v36 = vpack.c.bf16 %v9427_v19, %v9427_v19  ;;  %v9491_v55 = vld [vmem:[%s11843_s29 + $0xda] sm:$0xff]  ;;  %v9492_v62 = vld [vmem:[%s11843_s29 + $0xe2] sm:$0xff] }
 0x1e5   : > { %14892 = vst [vmem:[#allocation10_spill] sm:$0xff] %v12434_v10 }
 0x1e6   : > { %v2754_v7 = vpop.f32.mrf.mxu2  ;;  %828 = vst [vmem:[#allocation2 + $0x210] sm:$0xf] %v796_v36 }
 0x1e7   : > { %v2843_v34 = vpop.f32.mrf.mxu3  ;;  %v2755_v41 = vadd.f32 %v2754_v7, %v12178_v13  ;;  %v989_v7 = vpack.c.bf16 %v9492_v62, %v9492_v62  ;;  %v9461_v62 = vld [vmem:[%s11843_s29 + $0xf1] sm:$0xff] }
 0x1e8   : > { %v2935_v35 = vpop.f32.mrf.mxu0 }
 0x1e9   : > { %v2844_v44 = vadd.f32 %v2843_v34, %v2755_v41  ;;  %v9715_v41 = vld [vmem:[#allocation2 + $0x180] sm:$0xf]  ;;  %1021 = vst [vmem:[#allocation2 + $0x23c] sm:$0xf] %v989_v7 }
 0x1ea   : > { %v9462_v7 = vld [vmem:[%s11843_s29 + $0xf9] sm:$0xff] }
 0x1eb   : > { %3072 = vmatmul.bf16.gmra.mxu2 %v9680_v17  ;;  %v12437_v50 = vadd.f32 %v2932_v27, %v2844_v44  ;;  %3250 = vmatmul.bf16.gmra.mxu0 %v9688_v53  ;;  %v988_v27 = vpack.c.bf16 %v9491_v55, %v9491_v55  ;;  %v11372_v17 = vld [vmem:[#allocation2 + $0x1a0] sm:$0xf0]  ;;  %v9723_v53 = vld [vmem:[#allocation2 + $0x188] sm:$0xf]  ;;  %v11373_v44 = vld [vmem:[#allocation2 + $0x1a8] sm:$0xf0] }
 0x1ec   : > { %3161 = vmatmul.bf16.gmra.mxu3 %v9684_v16  ;;  %v11368_v16 = vld [vmem:[#allocation2 + $0x184] sm:$0xf]  ;;  %v9716_v8 = vor.u32 %v11372_v17, %v9715_v41  ;;  %v9724_v25 = vor.u32 %v11373_v44, %v9723_v53  ;;  %v9430_v55 = vld [vmem:[%s11843_s29 + $0xf8] sm:$0xff]  ;;  %v894_v41 = vpack.c.bf16 %v9461_v62, %v9461_v62  ;;  %v895_v17 = vpack.c.bf16 %v9462_v7, %v9462_v7 }
 0x1ed   : > { %14893 = vst [vmem:[#allocation11_spill] sm:$0xff] %v12437_v50 }
 0x1ee   : > { %v2757_v9 = vpop.f32.mrf.mxu2  ;;  %1020 = vst [vmem:[#allocation2 + $0x218] sm:$0xf] %v988_v27  ;;  %v799_v27 = vpack.c.bf16 %v9430_v55, %v9430_v55 }
 0x1ef   : > { %v2846_v47 = vpop.f32.mrf.mxu3  ;;  %v2758_v13 = vadd.f32 %v2757_v9, %v12192_v37  ;;  %v9717_v37 = vld [vmem:[#allocation2 + $0x1a4] sm:$0xf0]  ;;  %926 = vst [vmem:[#allocation2 + $0x25c] sm:$0xf] %v894_v41 }
 0x1f0   : > { %v2937_v5 = vpop.f32.mrf.mxu0  ;;  %831 = vst [vmem:[#allocation2 + $0x27c] sm:$0xf] %v799_v27 }
 0x1f1   : > { %v2847_v24 = vadd.f32 %v2846_v47, %v2758_v13  ;;  %927 = vst [vmem:[#allocation2 + $0x280] sm:$0xf] %v895_v17  ;;  %v9431_v17 = vld [vmem:[%s11843_s29 + $0x108] sm:$0xff] }
 0x1f3   : > { %v12446_v34 = vadd.f32 %v2935_v35, %v2847_v24  ;;  %v9720_v35 = vor.u32 %v11368_v16, %v9717_v37  ;;  %v798_v24 = vpack.c.bf16 %v9429_v40, %v9429_v40  ;;  %v9493_v16 = vld [vmem:[%s11843_s29 + $0xf2] sm:$0xff]  ;;  %v9494_v37 = vld [vmem:[%s11843_s29 + $0xfa] sm:$0xff] }
 0x1f5   : > { %14894 = vst [vmem:[#allocation12_spill] sm:$0xff] %v12446_v34 }
 0x1f6   : > { %v2759_v9 = vpop.f32.mrf.mxu2  ;;  %830 = vst [vmem:[#allocation2 + $0x258] sm:$0xf] %v798_v24 }
 0x1f7   : > { %v2848_v47 = vpop.f32.mrf.mxu3  ;;  %v2760_v19 = vadd.f32 %v2759_v9, %v12201_v6  ;;  %v991_v9 = vpack.c.bf16 %v9494_v37, %v9494_v37  ;;  %v9463_v37 = vld [vmem:[%s11843_s29 + $0x109] sm:$0xff] }
 0x1f8   : > { %v2940_v36 = vpop.f32.mrf.mxu0 }
 0x1f9   : > { %v2849_v13 = vadd.f32 %v2848_v47, %v2760_v19  ;;  %v9751_v19 = vld [vmem:[#allocation2 + $0x1c8] sm:$0xf]  ;;  %1023 = vst [vmem:[#allocation2 + $0x284] sm:$0xf] %v991_v9  ;;  %v9464_v9 = vld [vmem:[%s11843_s29 + $0x111] sm:$0xff] }
 0x1fb   : > { %3077 = vmatmul.bf16.gmra.mxu2 %v9716_v8  ;;  %v12449_v14 = vadd.f32 %v2937_v5, %v2849_v13  ;;  %3255 = vmatmul.bf16.gmra.mxu0 %v9724_v25  ;;  %v990_v5 = vpack.c.bf16 %v9493_v16, %v9493_v16  ;;  %v11381_v8 = vld [vmem:[#allocation2 + $0x1e8] sm:$0xf0]  ;;  %v9759_v25 = vld [vmem:[#allocation2 + $0x1d0] sm:$0xf]  ;;  %v11382_v13 = vld [vmem:[#allocation2 + $0x1f0] sm:$0xf0] }
 0x1fc   : > { %3166 = vmatmul.bf16.gmra.mxu3 %v9720_v35  ;;  %v11377_v35 = vld [vmem:[#allocation2 + $0x1cc] sm:$0xf]  ;;  %v9752_v55 = vor.u32 %v11381_v8, %v9751_v19  ;;  %v9760_v62 = vor.u32 %v11382_v13, %v9759_v25  ;;  %v9432_v16 = vld [vmem:[%s11843_s29 + $0x110] sm:$0xff]  ;;  %v896_v19 = vpack.c.bf16 %v9463_v37, %v9463_v37  ;;  %v897_v25 = vpack.c.bf16 %v9464_v9, %v9464_v9 }
 0x1fd   : > { %14895 = vst [vmem:[#allocation13_spill] sm:$0xff] %v12449_v14  ;;  %v9495_v8 = vld [vmem:[%s11843_s29 + $0x10a] sm:$0xff]  ;;  %v6413_v14 = vld [vmem:[#allocation4 + $0xd4] sm:$0x1] }
 0x1fe   : > { %v2762_v45 = vpop.f32.mrf.mxu2  ;;  %1022 = vst [vmem:[#allocation2 + $0x260] sm:$0xf] %v990_v5  ;;  %v801_v5 = vpack.c.bf16 %v9432_v16, %v9432_v16  ;;  %v9787_v13 = vld [vmem:[#allocation2 + $0x210] sm:$0xf]  ;;  %v6572_v50 = vrot.slane %v6413_v14, 5 }
 0x1ff   : > { %v2851_v11 = vpop.f32.mrf.mxu3  ;;  %v2763_v6 = vadd.f32 %v2762_v45, %v12209_v26  ;;  %v9753_v26 = vld [vmem:[#allocation2 + $0x1ec] sm:$0xf0]  ;;  %928 = vst [vmem:[#allocation2 + $0x2a4] sm:$0xf] %v896_v19 }
 0x200   : > { %v2942_v44 = vpop.f32.mrf.mxu0  ;;  %833 = vst [vmem:[#allocation2 + $0x2c4] sm:$0xf] %v801_v5 }
 0x201   : > { %v2852_v53 = vadd.f32 %v2851_v11, %v2763_v6  ;;  %929 = vst [vmem:[#allocation2 + $0x2c8] sm:$0xf] %v897_v25 }
 0x203   : > { %v12458_v47 = vadd.f32 %v2940_v36, %v2852_v53  ;;  %v9756_v36 = vor.u32 %v11377_v35, %v9753_v26  ;;  %v800_v53 = vpack.c.bf16 %v9431_v17, %v9431_v17 }
 0x205   : > { %14896 = vst [vmem:[#allocation14_spill] sm:$0xff] %v12458_v47 }
 0x206   : > { %v2764_v45 = vpop.f32.mrf.mxu2  ;;  %832 = vst [vmem:[#allocation2 + $0x2a0] sm:$0xf] %v800_v53 }
 0x207   : > { %v2853_v11 = vpop.f32.mrf.mxu3  ;;  %v2765_v40 = vadd.f32 %v2764_v45, %v12215_v57  ;;  %v11390_v45 = vld [vmem:[#allocation2 + $0x230] sm:$0xf0] }
 0x208   : > { %v2945_v24 = vpop.f32.mrf.mxu0 }
 0x209   : > { %v2854_v6 = vadd.f32 %v2853_v11, %v2765_v40  ;;  %v11386_v11 = vld [vmem:[#allocation2 + $0x214] sm:$0xf] }
 0x20b   : > { %3082 = vmatmul.bf16.gmra.mxu2 %v9752_v55  ;;  %v12461_v27 = vadd.f32 %v2942_v44, %v2854_v6  ;;  %3260 = vmatmul.bf16.gmra.mxu0 %v9760_v62  ;;  %v9496_v44 = vld [vmem:[%s11843_s29 + $0x112] sm:$0xff]  ;;  %v3601_v55 = vld [vmem:[#allocation4 + $0xc] sm:$0x1] }
 0x20c   : > { %3171 = vmatmul.bf16.gmra.mxu3 %v9756_v36  ;;  %v9789_v36 = vld [vmem:[#allocation2 + $0x234] sm:$0xf0]  ;;  %v3602_v17 = vsel %vm12474_vm8, 0, %v3601_v55 }
 0x20d   : > { %14897 = vst [vmem:[#allocation15_spill] sm:$0xff] %v12461_v27  ;;  %v9795_v62 = vld [vmem:[#allocation2 + $0x218] sm:$0xf]  ;;  %v9792_v53 = vor.u32 %v11386_v11, %v9789_v36  ;;  %v6411_v27 = vld [vmem:[#allocation4 + $0xcc] sm:$0xe] }
 0x20e   : > { %v2767_v7 = vpop.f32.mrf.mxu2  ;;  %3603 = vst [vmem:[#allocation4 + $0xc] sm:$0x1] %v3602_v17  ;;  %v9498_v17 = vld [vmem:[%s11843_s29 + $0x12a] sm:$0xff] }
 0x20f   : > { %v2856_v41 = vpop.f32.mrf.mxu3  ;;  %v2768_v57 = vadd.f32 %v2767_v7, %v12229_v21  ;;  %v992_v21 = vpack.c.bf16 %v9495_v8, %v9495_v8  ;;  %v993_v7 = vpack.c.bf16 %v9496_v44, %v9496_v44 }
 0x210   : > { %v2947_v26 = vpop.f32.mrf.mxu0 }
 0x211   : > { %v2857_v35 = vadd.f32 %v2856_v41, %v2768_v57  ;;  %v11391_v41 = vld [vmem:[#allocation2 + $0x238] sm:$0xf0]  ;;  %v9788_v57 = vor.u32 %v11390_v45, %v9787_v13  ;;  %1024 = vst [vmem:[#allocation2 + $0x2a8] sm:$0xf] %v992_v21  ;;  %v9433_v45 = vld [vmem:[%s11843_s29 + $0x120] sm:$0xff] }
 0x212   : > { %v9796_v5 = vor.u32 %v11391_v41, %v9795_v62  ;;  %1025 = vst [vmem:[#allocation2 + $0x2cc] sm:$0xf] %v993_v7  ;;  %v802_v55 = vpack.c.bf16 %v9433_v45, %v9433_v45  ;;  %v9465_v21 = vld [vmem:[%s11843_s29 + $0x121] sm:$0xff]  ;;  %v9466_v62 = vld [vmem:[%s11843_s29 + $0x129] sm:$0xff] }
 0x213   : > { %v12470_v40 = vadd.f32 %v2945_v24, %v2857_v35  ;;  %v3651_v35 = vld [vmem:[#allocation4 + $0x14] sm:$0x1]  ;;  %v898_v7 = vpack.c.bf16 %v9465_v21, %v9465_v21  ;;  %v9497_v41 = vld [vmem:[%s11843_s29 + $0x122] sm:$0xff] }
 0x214   : > { %v3652_v13 = vsel %vm12485_vm10, 0, %v3651_v35  ;;  %834 = vst [vmem:[#allocation2 + $0x2e8] sm:$0xf] %v802_v55  ;;  %v11395_v35 = vld [vmem:[#allocation2 + $0x25c] sm:$0xf] }
 0x215   : > { %14898 = vst [vmem:[#allocation16_spill] sm:$0xff] %v12470_v40  ;;  %v11400_v45 = vld [vmem:[#allocation2 + $0x280] sm:$0xf0] }
 0x216   : > { %v2769_v24 = vpop.f32.mrf.mxu2  ;;  %3653 = vst [vmem:[#allocation4 + $0x14] sm:$0x1] %v3652_v13  ;;  %v9831_v13 = vld [vmem:[#allocation2 + $0x260] sm:$0xf] }
 0x217   : > { %v2858_v16 = vpop.f32.mrf.mxu3  ;;  %v2770_v37 = vadd.f32 %v2769_v24, %v12238_v59  ;;  %930 = vst [vmem:[#allocation2 + $0x2ec] sm:$0xf] %v898_v7 }
 0x218   : > { %v2950_v19 = vpop.f32.mrf.mxu0 }
 0x219   : > { %v2859_v9 = vadd.f32 %v2858_v16, %v2770_v37  ;;  %v899_v37 = vpack.c.bf16 %v9466_v62, %v9466_v62  ;;  %v9832_v62 = vor.u32 %v11400_v45, %v9831_v13  ;;  %v9467_v13 = vld [vmem:[%s11843_s29 + $0x139] sm:$0xff]  ;;  %v9468_v45 = vld [vmem:[%s11843_s29 + $0x141] sm:$0xff] }
 0x21b   : > { %3087 = vmatmul.bf16.gmra.mxu2 %v9788_v57  ;;  %v12481_v8 = vadd.f32 %v2947_v26, %v2859_v9  ;;  %3265 = vmatmul.bf16.gmra.mxu0 %v9796_v5  ;;  %v9434_v26 = vld [vmem:[%s11843_s29 + $0x128] sm:$0xff]  ;;  %v994_v57 = vpack.c.bf16 %v9497_v41, %v9497_v41  ;;  %v995_v5 = vpack.c.bf16 %v9498_v17, %v9498_v17 }
 0x21c   : > { %3176 = vmatmul.bf16.gmra.mxu3 %v9792_v53  ;;  %v803_v36 = vpack.c.bf16 %v9434_v26, %v9434_v26  ;;  %v9823_v53 = vld [vmem:[#allocation2 + $0x258] sm:$0xf]  ;;  %931 = vst [vmem:[#allocation2 + $0x310] sm:$0xf] %v899_v37 }
 0x21d   : > { %14901 = vst [vmem:[#allocation17_spill] sm:$0xff] %v12481_v8  ;;  %v3604_v26 = vld [vmem:[#allocation4 + $0x18] sm:$0x1] }
 0x21e   : > { %v2772_v25 = vpop.f32.mrf.mxu2  ;;  %835 = vst [vmem:[#allocation2 + $0x30c] sm:$0xf] %v803_v36 }
 0x21f   : > { %v2861_v44 = vpop.f32.mrf.mxu3  ;;  %v2773_v11 = vadd.f32 %v2772_v25, %v12246_v23  ;;  %v11399_v23 = vld [vmem:[#allocation2 + $0x278] sm:$0xf0]  ;;  %v9825_v25 = vld [vmem:[#allocation2 + $0x27c] sm:$0xf0]  ;;  %1026 = vst [vmem:[#allocation2 + $0x2f0] sm:$0xf] %v994_v57 }
 0x220   : > { %v2952_v16 = vpop.f32.mrf.mxu0  ;;  %1027 = vst [vmem:[#allocation2 + $0x314] sm:$0xf] %v995_v5  ;;  %v9828_v36 = vor.u32 %v11395_v35, %v9825_v25  ;;  %v9436_v5 = vld [vmem:[%s11843_s29 + $0x140] sm:$0xff] }
 0x221   : > { %v2862_v24 = vadd.f32 %v2861_v44, %v2773_v11  ;;  %v3605_v11 = vsel %vm12474_vm8, 0, %v3604_v26  ;;  %v805_v25 = vpack.c.bf16 %v9436_v5, %v9436_v5  ;;  %v901_v26 = vpack.c.bf16 %v9468_v45, %v9468_v45  ;;  %v3607_v5 = vld [vmem:[#allocation4 + $0x24] sm:$0x1] }
 0x222   : > { %3606 = vst [vmem:[#allocation4 + $0x18] sm:$0x1] %v3605_v11 }
 0x223   : > { %v12498_v9 = vadd.f32 %v2950_v19, %v2862_v24  ;;  %v9824_v19 = vor.u32 %v11399_v23, %v9823_v53  ;;  %v3654_v24 = vld [vmem:[#allocation4 + $0x20] sm:$0x1]  ;;  %v9435_v53 = vld [vmem:[%s11843_s29 + $0x138] sm:$0xff]  ;;  %837 = vst [vmem:[#allocation2 + $0x354] sm:$0xf] %v805_v25 }
 0x224   : > { %v804_v35 = vpack.c.bf16 %v9435_v53, %v9435_v53  ;;  %933 = vst [vmem:[#allocation2 + $0x358] sm:$0xf] %v901_v26  ;;  %v11409_v53 = vld [vmem:[#allocation2 + $0x2c8] sm:$0xf0] }
 0x225   : > { %14904 = vst [vmem:[#allocation18_spill] sm:$0xff] %v12498_v9 }
 0x226   : > { %v2774_v21 = vpop.f32.mrf.mxu2  ;;  %836 = vst [vmem:[#allocation2 + $0x330] sm:$0xf] %v804_v35 }
 0x227   : > { %v2863_v44 = vpop.f32.mrf.mxu3  ;;  %v2775_v55 = vadd.f32 %v2774_v21, %v12252_v63  ;;  %v3655_v63 = vsel %vm12485_vm10, 0, %v3654_v24  ;;  %v9499_v21 = vld [vmem:[%s11843_s29 + $0x13a] sm:$0xff]  ;;  %v11408_v24 = vld [vmem:[#allocation2 + $0x2c0] sm:$0xf0] }
 0x228   : > { %v3231_v41 = vpop.f32.mrf.mxu0  ;;  %3656 = vst [vmem:[#allocation4 + $0x20] sm:$0x1] %v3655_v63  ;;  %v9867_v63 = vld [vmem:[#allocation2 + $0x2a8] sm:$0xf] }
 0x229   : > { %v2864_v7 = vadd.f32 %v2863_v44, %v2775_v55  ;;  %v9500_v44 = vld [vmem:[%s11843_s29 + $0x142] sm:$0xff]  ;;  %v9868_v25 = vor.u32 %v11409_v53, %v9867_v63  ;;  %v9470_v63 = vld [vmem:[%s11843_s29 + $0x159] sm:$0xff] }
 0x22b   : > { %3092 = vmatmul.bf16.gmra.mxu2 %v9824_v19  ;;  %v12503_v17 = vadd.f32 %v2952_v16, %v2864_v7  ;;  %3270 = vmatmul.bf16.gmra.mxu0 %v9832_v62  ;;  %v900_v16 = vpack.c.bf16 %v9467_v13, %v9467_v13  ;;  %v996_v19 = vpack.c.bf16 %v9499_v21, %v9499_v21 }
 0x22c   : > { %3181 = vmatmul.bf16.gmra.mxu3 %v9828_v36  ;;  %v9859_v36 = vld [vmem:[#allocation2 + $0x2a0] sm:$0xf]  ;;  %v997_v62 = vpack.c.bf16 %v9500_v44, %v9500_v44  ;;  %v3657_v44 = vld [vmem:[#allocation4 + $0x2c] sm:$0x1] }
 0x22d   : > { %14905 = vst [vmem:[#allocation19_spill] sm:$0xff] %v12503_v17 }
 0x22e   : > { %v3053_v37 = vpop.f32.mrf.mxu2  ;;  %932 = vst [vmem:[#allocation2 + $0x334] sm:$0xf] %v900_v16 }
 0x22f   : > { %v3142_v57 = vpop.f32.mrf.mxu3  ;;  %v3054_v23 = vadd.f32 %v3053_v37, %v12267_v4  ;;  %v11404_v4 = vld [vmem:[#allocation2 + $0x2a4] sm:$0xf]  ;;  %v9861_v37 = vld [vmem:[#allocation2 + $0x2c4] sm:$0xf0]  ;;  %1028 = vst [vmem:[#allocation2 + $0x338] sm:$0xf] %v996_v19 }
 0x230   : > { %v3233_v55 = vpop.f32.mrf.mxu0  ;;  %1029 = vst [vmem:[#allocation2 + $0x35c] sm:$0xf] %v997_v62  ;;  %v9864_v35 = vor.u32 %v11404_v4, %v9861_v37  ;;  %v9438_v62 = vld [vmem:[%s11843_s29 + $0x158] sm:$0xff] }
 0x231   : > { %v3143_v11 = vadd.f32 %v3142_v57, %v3054_v23  ;;  %v3608_v57 = vsel %vm12474_vm8, 0, %v3607_v5  ;;  %v807_v37 = vpack.c.bf16 %v9438_v62, %v9438_v62  ;;  %v903_v5 = vpack.c.bf16 %v9470_v63, %v9470_v63  ;;  %v3610_v62 = vld [vmem:[#allocation4 + $0x30] sm:$0x1] }
 0x232   : > { %3609 = vst [vmem:[#allocation4 + $0x24] sm:$0x1] %v3608_v57 }
 0x233   : > { %v12514_v7 = vadd.f32 %v3231_v41, %v3143_v11  ;;  %v9860_v41 = vor.u32 %v11408_v24, %v9859_v36  ;;  %v9437_v36 = vld [vmem:[%s11843_s29 + $0x150] sm:$0xff]  ;;  %839 = vst [vmem:[#allocation2 + $0x39c] sm:$0xf] %v807_v37 }
 0x234   : > { %v806_v4 = vpack.c.bf16 %v9437_v36, %v9437_v36  ;;  %935 = vst [vmem:[#allocation2 + $0x3a0] sm:$0xf] %v903_v5  ;;  %v11418_v36 = vld [vmem:[#allocation2 + $0x310] sm:$0xf0] }
 0x236   : > { %v3055_v13 = vpop.f32.mrf.mxu2  ;;  %838 = vst [vmem:[#allocation2 + $0x378] sm:$0xf] %v806_v4 }
 0x237   : > { %v3144_v45 = vpop.f32.mrf.mxu3  ;;  %v3056_v23 = vadd.f32 %v3055_v13, %v12275_v30  ;;  %v3658_v30 = vsel %vm12485_vm10, 0, %v3657_v44  ;;  %v9501_v13 = vld [vmem:[%s11843_s29 + $0x152] sm:$0xff]  ;;  %v11417_v44 = vld [vmem:[#allocation2 + $0x308] sm:$0xf0] }
 0x238   : > { %v3236_v26 = vpop.f32.mrf.mxu0  ;;  %3659 = vst [vmem:[#allocation4 + $0x2c] sm:$0x1] %v3658_v30  ;;  %v9903_v30 = vld [vmem:[#allocation2 + $0x2f0] sm:$0xf] }
 0x239   : > { %v3145_v16 = vadd.f32 %v3144_v45, %v3056_v23  ;;  %v9502_v45 = vld [vmem:[%s11843_s29 + $0x15a] sm:$0xff]  ;;  %v9904_v37 = vor.u32 %v11418_v36, %v9903_v30  ;;  %v9472_v30 = vld [vmem:[%s11843_s29 + $0x171] sm:$0xff] }
 0x23b   : > { %v12519_v21 = vadd.f32 %v3233_v55, %v3145_v16  ;;  %3097 = vmatmul.bf16.gmra.mxu2 %v9860_v41  ;;  %3275 = vmatmul.bf16.gmra.mxu0 %v9868_v25  ;;  %v9469_v55 = vld [vmem:[%s11843_s29 + $0x151] sm:$0xff]  ;;  %v998_v41 = vpack.c.bf16 %v9501_v13, %v9501_v13  ;;  %v999_v25 = vpack.c.bf16 %v9502_v45, %v9502_v45 }
 0x23c   : > { %3186 = vmatmul.bf16.gmra.mxu3 %v9864_v35  ;;  %v902_v53 = vpack.c.bf16 %v9469_v55, %v9469_v55  ;;  %v9895_v35 = vld [vmem:[#allocation2 + $0x2e8] sm:$0xf]  ;;  %v3660_v45 = vld [vmem:[#allocation4 + $0x38] sm:$0x1] }
 0x23d   : > { %1030 = vst [vmem:[#allocation2 + $0x380] sm:$0xf] %v998_v41 }
 0x23e   : > { %v3058_v11 = vpop.f32.mrf.mxu2  ;;  %934 = vst [vmem:[#allocation2 + $0x37c] sm:$0xf] %v902_v53 }
 0x23f   : > { %v3147_v19 = vpop.f32.mrf.mxu3  ;;  %v3059_v24 = vadd.f32 %v3058_v11, %v12282_v20  ;;  %v11413_v20 = vld [vmem:[#allocation2 + $0x2ec] sm:$0xf]  ;;  %v9897_v11 = vld [vmem:[#allocation2 + $0x30c] sm:$0xf0]  ;;  %1031 = vst [vmem:[#allocation2 + $0x3a4] sm:$0xf] %v999_v25 }
 0x240   : > { %v3238_v23 = vpop.f32.mrf.mxu0  ;;  %v9900_v4 = vor.u32 %v11413_v20, %v9897_v11  ;;  %v9440_v25 = vld [vmem:[%s11843_s29 + $0x170] sm:$0xff] }
 0x241   : > { %v3148_v57 = vadd.f32 %v3147_v19, %v3059_v24  ;;  %v3611_v19 = vsel %vm12474_vm8, 0, %v3610_v62  ;;  %v809_v11 = vpack.c.bf16 %v9440_v25, %v9440_v25  ;;  %v905_v62 = vpack.c.bf16 %v9472_v30, %v9472_v30  ;;  %v3613_v25 = vld [vmem:[#allocation4 + $0x3c] sm:$0x1] }
 0x242   : > { %3612 = vst [vmem:[#allocation4 + $0x30] sm:$0x1] %v3611_v19 }
 0x243   : > { %v12530_v16 = vadd.f32 %v3236_v26, %v3148_v57  ;;  %v9896_v26 = vor.u32 %v11417_v44, %v9895_v35  ;;  %v9439_v35 = vld [vmem:[%s11843_s29 + $0x168] sm:$0xff]  ;;  %841 = vst [vmem:[#allocation2 + $0x3e4] sm:$0xf] %v809_v11 }
 0x244   : > { %v808_v20 = vpack.c.bf16 %v9439_v35, %v9439_v35  ;;  %937 = vst [vmem:[#allocation2 + $0x3e8] sm:$0xf] %v905_v62  ;;  %v11427_v35 = vld [vmem:[#allocation2 + $0x358] sm:$0xf0] }
 0x246   : > { %v3060_v55 = vpop.f32.mrf.mxu2  ;;  %840 = vst [vmem:[#allocation2 + $0x3c0] sm:$0xf] %v808_v20 }
 0x247   : > { %v3149_v63 = vpop.f32.mrf.mxu3  ;;  %v3061_v24 = vadd.f32 %v3060_v55, %v12290_v0  ;;  %v3661_v0 = vsel %vm12485_vm10, 0, %v3660_v45  ;;  %v9503_v55 = vld [vmem:[%s11843_s29 + $0x16a] sm:$0xff]  ;;  %v11426_v45 = vld [vmem:[#allocation2 + $0x350] sm:$0xf0] }
 0x248   : > { %v3241_v5 = vpop.f32.mrf.mxu0  ;;  %3662 = vst [vmem:[#allocation4 + $0x38] sm:$0x1] %v3661_v0  ;;  %v9939_v0 = vld [vmem:[#allocation2 + $0x338] sm:$0xf] }
 0x249   : > { %v3150_v53 = vadd.f32 %v3149_v63, %v3061_v24  ;;  %v9504_v63 = vld [vmem:[%s11843_s29 + $0x172] sm:$0xff]  ;;  %v9940_v11 = vor.u32 %v11427_v35, %v9939_v0  ;;  %v9474_v0 = vld [vmem:[%s11843_s29 + $0x189] sm:$0xff] }
 0x24b   : > { %v12535_v13 = vadd.f32 %v3238_v23, %v3150_v53  ;;  %3102 = vmatmul.bf16.gmra.mxu2 %v9896_v26  ;;  %3280 = vmatmul.bf16.gmra.mxu0 %v9904_v37  ;;  %v9471_v23 = vld [vmem:[%s11843_s29 + $0x169] sm:$0xff]  ;;  %v1000_v26 = vpack.c.bf16 %v9503_v55, %v9503_v55  ;;  %v1001_v37 = vpack.c.bf16 %v9504_v63, %v9504_v63  ;;  %v3663_v63 = vld [vmem:[#allocation4 + $0x44] sm:$0x1] }
 0x24c   : > { %3191 = vmatmul.bf16.gmra.mxu3 %v9900_v4  ;;  %v904_v36 = vpack.c.bf16 %v9471_v23, %v9471_v23  ;;  %v9931_v4 = vld [vmem:[#allocation2 + $0x330] sm:$0xf] }
 0x24d   : > { %14906 = vst [vmem:[#allocation20_spill] sm:$0xff] %v12535_v13 }
 0x24e   : > { %v3063_v57 = vpop.f32.mrf.mxu2  ;;  %936 = vst [vmem:[#allocation2 + $0x3c4] sm:$0xf] %v904_v36 }
 0x24f   : > { %v3152_v41 = vpop.f32.mrf.mxu3  ;;  %v3064_v44 = vadd.f32 %v3063_v57, %v12300_v48  ;;  %v11422_v48 = vld [vmem:[#allocation2 + $0x334] sm:$0xf]  ;;  %v9933_v57 = vld [vmem:[#allocation2 + $0x354] sm:$0xf0]  ;;  %1032 = vst [vmem:[#allocation2 + $0x3c8] sm:$0xf] %v1000_v26 }
 0x250   : > { %v3243_v24 = vpop.f32.mrf.mxu0  ;;  %1033 = vst [vmem:[#allocation2 + $0x3ec] sm:$0xf] %v1001_v37  ;;  %v9936_v20 = vor.u32 %v11422_v48, %v9933_v57  ;;  %v9442_v37 = vld [vmem:[%s11843_s29 + $0x188] sm:$0xff] }
 0x251   : > { %v3153_v19 = vadd.f32 %v3152_v41, %v3064_v44  ;;  %v3614_v41 = vsel %vm12474_vm8, 0, %v3613_v25  ;;  %v811_v57 = vpack.c.bf16 %v9442_v37, %v9442_v37  ;;  %v907_v25 = vpack.c.bf16 %v9474_v0, %v9474_v0  ;;  %v3616_v37 = vld [vmem:[#allocation4 + $0x48] sm:$0x1] }
 0x252   : > { %3615 = vst [vmem:[#allocation4 + $0x3c] sm:$0x1] %v3614_v41 }
 0x253   : > { %v12546_v53 = vadd.f32 %v3241_v5, %v3153_v19  ;;  %v9932_v5 = vor.u32 %v11426_v45, %v9931_v4  ;;  %v9441_v4 = vld [vmem:[%s11843_s29 + $0x180] sm:$0xff]  ;;  %843 = vst [vmem:[#allocation2 + $0x42c] sm:$0xf] %v811_v57 }
 0x254   : > { %v810_v48 = vpack.c.bf16 %v9441_v4, %v9441_v4  ;;  %939 = vst [vmem:[#allocation2 + $0x430] sm:$0xf] %v907_v25  ;;  %v11436_v4 = vld [vmem:[#allocation2 + $0x3a0] sm:$0xf0] }
 0x256   : > { %v3065_v23 = vpop.f32.mrf.mxu2  ;;  %842 = vst [vmem:[#allocation2 + $0x408] sm:$0xf] %v810_v48 }
 0x257   : > { %v3154_v30 = vpop.f32.mrf.mxu3  ;;  %v3066_v44 = vadd.f32 %v3065_v23, %v12308_v29  ;;  %v3664_v29 = vsel %vm12485_vm10, 0, %v3663_v63  ;;  %v9505_v23 = vld [vmem:[%s11843_s29 + $0x182] sm:$0xff]  ;;  %v11435_v63 = vld [vmem:[#allocation2 + $0x398] sm:$0xf0] }
 0x258   : > { %v3246_v62 = vpop.f32.mrf.mxu0  ;;  %3665 = vst [vmem:[#allocation4 + $0x44] sm:$0x1] %v3664_v29  ;;  %v9975_v29 = vld [vmem:[#allocation2 + $0x380] sm:$0xf] }
 0x259   : > { %v3155_v36 = vadd.f32 %v3154_v30, %v3066_v44  ;;  %v9506_v30 = vld [vmem:[%s11843_s29 + $0x18a] sm:$0xff]  ;;  %v9976_v57 = vor.u32 %v11436_v4, %v9975_v29  ;;  %v9476_v29 = vld [vmem:[%s11843_s29 + $0x1a1] sm:$0xff] }
 0x25b   : > { %v12551_v55 = vadd.f32 %v3243_v24, %v3155_v36  ;;  %3107 = vmatmul.bf16.gmra.mxu2 %v9932_v5  ;;  %3285 = vmatmul.bf16.gmra.mxu0 %v9940_v11  ;;  %v9473_v24 = vld [vmem:[%s11843_s29 + $0x181] sm:$0xff]  ;;  %v1002_v5 = vpack.c.bf16 %v9505_v23, %v9505_v23  ;;  %v1003_v11 = vpack.c.bf16 %v9506_v30, %v9506_v30  ;;  %v3666_v30 = vld [vmem:[#allocation4 + $0x50] sm:$0x1] }
 0x25c   : > { %3196 = vmatmul.bf16.gmra.mxu3 %v9936_v20  ;;  %v906_v35 = vpack.c.bf16 %v9473_v24, %v9473_v24  ;;  %v9967_v20 = vld [vmem:[#allocation2 + $0x378] sm:$0xf] }
 0x25d   : > { %1034 = vst [vmem:[#allocation2 + $0x410] sm:$0xf] %v1002_v5  ;;  %v10039_v9 = vld [vmem:[#allocation2 + $0x408] sm:$0xf] }
 0x25e   : > { %v3068_v19 = vpop.f32.mrf.mxu2  ;;  %938 = vst [vmem:[#allocation2 + $0x40c] sm:$0xf] %v906_v35 }
 0x25f   : > { %v3157_v26 = vpop.f32.mrf.mxu3  ;;  %v3069_v45 = vadd.f32 %v3068_v19, %v12315_v18  ;;  %v11431_v18 = vld [vmem:[#allocation2 + $0x37c] sm:$0xf]  ;;  %v9969_v19 = vld [vmem:[#allocation2 + $0x39c] sm:$0xf0]  ;;  %1035 = vst [vmem:[#allocation2 + $0x434] sm:$0xf] %v1003_v11 }
 0x260   : > { %v3248_v44 = vpop.f32.mrf.mxu0  ;;  %v9972_v48 = vor.u32 %v11431_v18, %v9969_v19  ;;  %v9444_v11 = vld [vmem:[%s11843_s29 + $0x1a0] sm:$0xff] }
 0x261   : > { %v3158_v41 = vadd.f32 %v3157_v26, %v3069_v45  ;;  %v3617_v26 = vsel %vm12474_vm8, 0, %v3616_v37  ;;  %v813_v19 = vpack.c.bf16 %v9444_v11, %v9444_v11  ;;  %v909_v37 = vpack.c.bf16 %v9476_v29, %v9476_v29  ;;  %v3619_v11 = vld [vmem:[#allocation4 + $0x54] sm:$0x1] }
 0x262   : > { %3618 = vst [vmem:[#allocation4 + $0x48] sm:$0x1] %v3617_v26 }
 0x263   : > { %v12562_v36 = vadd.f32 %v3246_v62, %v3158_v41  ;;  %v9968_v62 = vor.u32 %v11435_v63, %v9967_v20  ;;  %v9443_v20 = vld [vmem:[%s11843_s29 + $0x198] sm:$0xff]  ;;  %845 = vst [vmem:[#allocation2 + $0x474] sm:$0xf] %v813_v19 }
 0x264   : > { %v812_v18 = vpack.c.bf16 %v9443_v20, %v9443_v20  ;;  %941 = vst [vmem:[#allocation2 + $0x478] sm:$0xf] %v909_v37  ;;  %v11445_v20 = vld [vmem:[#allocation2 + $0x3e8] sm:$0xf0]  ;;  %v3669_v37 = vld [vmem:[#allocation4 + $0x5c] sm:$0x1] }
 0x265   : > { %v3670_v17 = vsel %vm12485_vm10, 0, %v3669_v37  ;;  %v11453_v37 = vld [vmem:[#allocation2 + $0x428] sm:$0xf0] }
 0x266   : > { %v3070_v24 = vpop.f32.mrf.mxu2  ;;  %844 = vst [vmem:[#allocation2 + $0x450] sm:$0xf] %v812_v18  ;;  %v11449_v8 = vld [vmem:[#allocation2 + $0x40c] sm:$0xf] }
 0x267   : > { %v3159_v0 = vpop.f32.mrf.mxu3  ;;  %v3071_v45 = vadd.f32 %v3070_v24, %v12323_v32  ;;  %v3667_v32 = vsel %vm12485_vm10, 0, %v3666_v30  ;;  %v9507_v24 = vld [vmem:[%s11843_s29 + $0x19a] sm:$0xff]  ;;  %v11440_v30 = vld [vmem:[#allocation2 + $0x3c4] sm:$0xf]  ;;  %3671 = vst [vmem:[#allocation4 + $0x5c] sm:$0x1] %v3670_v17 }
 0x268   : > { %v3251_v25 = vpop.f32.mrf.mxu0  ;;  %3668 = vst [vmem:[#allocation4 + $0x50] sm:$0x1] %v3667_v32  ;;  %v10011_v32 = vld [vmem:[#allocation2 + $0x3c8] sm:$0xf] }
 0x269   : > { %v3160_v35 = vadd.f32 %v3159_v0, %v3071_v45  ;;  %v9508_v0 = vld [vmem:[%s11843_s29 + $0x1a2] sm:$0xff]  ;;  %v10012_v19 = vor.u32 %v11445_v20, %v10011_v32 }
 0x26b   : > { %v12567_v23 = vadd.f32 %v3248_v44, %v3160_v35  ;;  %3112 = vmatmul.bf16.gmra.mxu2 %v9968_v62  ;;  %3290 = vmatmul.bf16.gmra.mxu0 %v9976_v57  ;;  %v9475_v44 = vld [vmem:[%s11843_s29 + $0x199] sm:$0xff]  ;;  %v1004_v62 = vpack.c.bf16 %v9507_v24, %v9507_v24  ;;  %v1005_v57 = vpack.c.bf16 %v9508_v0, %v9508_v0  ;;  %v5836_v24 = vld [vmem:[#allocation4 + $0xcc] sm:$0xf]  ;;  %v5837_v0 = vld [vmem:[#allocation4 + $0xd0] sm:$0xf] }
 0x26c   : > { %3201 = vmatmul.bf16.gmra.mxu3 %v9972_v48  ;;  %v908_v4 = vpack.c.bf16 %v9475_v44, %v9475_v44  ;;  %v10003_v48 = vld [vmem:[#allocation2 + $0x3c0] sm:$0xf]  ;;  %v10077_v28 = vld [vmem:[#allocation2 + $0x474] sm:$0xf0] }
 0x26d   : > { %1036 = vst [vmem:[#allocation2 + $0x458] sm:$0xf] %v1004_v62 }
 0x26e   : > { %v3073_v41 = vpop.f32.mrf.mxu2  ;;  %940 = vst [vmem:[#allocation2 + $0x454] sm:$0xf] %v908_v4  ;;  %v12588_v4 = vld [vmem:[#allocation2 + $0x450] sm:$0xf] }
 0x26f   : > { %v3162_v5 = vpop.f32.mrf.mxu3  ;;  %v3074_v63 = vadd.f32 %v3073_v41, %v12335_v31  ;;  %v11444_v31 = vld [vmem:[#allocation2 + $0x3e0] sm:$0xf0]  ;;  %v10005_v41 = vld [vmem:[#allocation2 + $0x3e4] sm:$0xf0]  ;;  %1037 = vst [vmem:[#allocation2 + $0x47c] sm:$0xf] %v1005_v57 }
 0x270   : > { %v12578_v45 = vpop.f32.mrf.mxu0  ;;  %v10004_v18 = vor.u32 %v11444_v31, %v10003_v48  ;;  %5868 = vst [vmem:[#allocation2 + $0x450] sm:$0xf] %v5836_v24  ;;  %v5915_v57 = vld [vmem:[#allocation4 + $0xcc] sm:$0xf]  ;;  %v5916_v31 = vld [vmem:[#allocation4 + $0xd0] sm:$0xf] }
 0x271   : > { %v3163_v26 = vadd.f32 %v3162_v5, %v3074_v63  ;;  %v3620_v63 = vsel %vm12474_vm8, 0, %v3619_v11  ;;  %v12592_v11 = vld [vmem:[#allocation2 + $0x470] sm:$0xf0]  ;;  %v6282_v32 = vshll.u32 %v5915_v57, 16 }
 0x272   : > { %3621 = vst [vmem:[#allocation4 + $0x54] sm:$0x1] %v3620_v63 }
 0x273   : > { %v12580_v35 = vadd.f32 %v3251_v25, %v3163_v26  ;;  %v10008_v25 = vor.u32 %v11440_v30, %v10005_v41  ;;  %5869 = vst [vmem:[#allocation2 + $0x474] sm:$0xf] %v5837_v0  ;;  %v5917_v30 = vld [vmem:[#allocation4 + $0xd4] sm:$0x1]  ;;  %v6279_v41 = vshrl.u32 %v5915_v57, 16  ;;  %v6284_v24 = vrot.slane %v6282_v32, 5 }
 0x274   : > { %v10047_v57 = vld [vmem:[#allocation2 + $0x410] sm:$0xf] }
 0x275   : > { %v6281_v40 = vrot.slane %v6279_v41, 4 }
 0x276   : > { %v12582_v44 = vpop.f32.mrf.mxu2 }
 0x277   : > { %v12584_v5 = vpop.f32.mrf.mxu3 }
 0x278   : > { %v3256_v29 = vpop.f32.mrf.mxu0 }
 0x27b   : > { %3117 = vmatmul.bf16.gmra.mxu2 %v10004_v18  ;;  %3295 = vmatmul.bf16.gmra.mxu0 %v10012_v19  ;;  %v6288_v18 = vshll.u32 %v5916_v31, 16  ;;  %v6298_v19 = vshll.u32 %v5917_v30, 16 }
 0x27c   : > { %3206 = vmatmul.bf16.gmra.mxu3 %v10008_v25  ;;  %v6292_v25 = vshrl.u32 %v5916_v31, 16  ;;  %v11454_v31 = vld [vmem:[#allocation2 + $0x430] sm:$0xf0] }
 0x27d   : > { %v6290_v0 = vrot.slane %v6288_v18, 5  ;;  %v6300_v10 = vrot.slane %v6298_v19, 5  ;;  %v11458_v19 = vld [vmem:[#allocation2 + $0x454] sm:$0xf] }
 0x27e   : > { %v3078_v26 = vpop.f32.mrf.mxu2  ;;  %v6294_v47 = vrot.slane %v6292_v25, 4 }
 0x27f   : > { %v3167_v62 = vpop.f32.mrf.mxu3  ;;  %v3079_v48 = vadd.f32 %v3078_v26, %v12354_v46  ;;  %v6412_v46 = vld [vmem:[#allocation4 + $0xd0] sm:$0xf] }
 0x280   : > { %v12595_v63 = vpop.f32.mrf.mxu0  ;;  %v10041_v26 = vld [vmem:[#allocation2 + $0x42c] sm:$0xf0]  ;;  %v6569_v34 = vrot.slane %v6412_v46, 5  ;;  %v6295_v30 = vor.u32 %v6294_v47, %v6290_v0  ;;  %v10048_v47 = vor.u32 %v11454_v31, %v10047_v57  ;;  %v11687_v31 = vld [vmem:[%s14872_s2 + $0x38] sm:$0xff] }
 0x281   : > { %v3168_v20 = vadd.f32 %v3167_v62, %v3079_v48  ;;  %v6285_v62 = vor.u32 %v6284_v24, %v6281_v40  ;;  %v10420_v48 = vrot.slane %v6411_v27, 9  ;;  %v3623_v40 = vsel %vm12474_vm8, 0, %v3622_v49  ;;  %v11463_v49 = vld [vmem:[#allocation2 + $0x478] sm:$0xf0]  ;;  %8110 = vmatpush.bf16.msra.mxu1 %v11687_v31  ;;  %v3631_v31 = vld [vmem:[#allocation4 + $0x84] sm:$0x1] }
 0x282   : > { %v6571_v18 = vrot.slane %v6569_v34, 4  ;;  %v10040_v27 = vor.u32 %v11453_v37, %v10039_v9  ;;  %v10044_v25 = vor.u32 %v11449_v8, %v10041_v26  ;;  %v6296_v14 = vrot.slane %v6295_v30, 4  ;;  %3624 = vst [vmem:[#allocation4 + $0x60] sm:$0x1] %v3623_v40  ;;  %v3672_v8 = vld [vmem:[#allocation4 + $0x68] sm:$0x1] }
 0x283   : > { %v12597_v17 = vadd.f32 %v3256_v29, %v3168_v20  ;;  %v6286_v32 = vrot.slane %v6285_v62, 4  ;;  %v10083_v29 = vld [vmem:[#allocation2 + $0x458] sm:$0xf]  ;;  %v6570_v20 = vsel %vm12101_vm5, %v10420_v48, %v6569_v34  ;;  %v3673_v26 = vsel %vm12485_vm10, 0, %v3672_v8  ;;  %v3625_v48 = vld [vmem:[#allocation4 + $0x6c] sm:$0x1] }
 0x284   : > { %6636 = vst [vmem:[#allocation2 + $0x458] sm:$0xf] %v6570_v20  ;;  %v6573_v46 = vsel %vm12101_vm5, %v6571_v18, %v6572_v50  ;;  %v6301_v34 = vsel %vm11877_vm2, %v6296_v14, %v6300_v10  ;;  %v3626_v20 = vsel %vm12474_vm8, 0, %v3625_v48  ;;  %v10080_v18 = vor.u32 %v11458_v19, %v10077_v28  ;;  %v3678_v8 = vld [vmem:[#allocation4 + $0x80] sm:$0x1] }
 0x285   : > { %v6291_v24 = vsel %vm11877_vm2, %v6286_v32, %v6290_v0  ;;  %6365 = vst [vmem:[#allocation2 + $0x478] sm:$0xf] %v6301_v34  ;;  %v10084_v40 = vor.u32 %v11463_v49, %v10083_v29 }
 0x286   : > { %v12599_v43 = vpop.f32.mrf.mxu2  ;;  %6364 = vst [vmem:[#allocation2 + $0x454] sm:$0xf] %v6291_v24 }
 0x287   : > { %v12601_v41 = vpop.f32.mrf.mxu3  ;;  %6637 = vst [vmem:[#allocation2 + $0x47c] sm:$0xf] %v6573_v46 }
 0x288   : > { %v3261_v62 = vpop.f32.mrf.mxu0  ;;  %3674 = vst [vmem:[#allocation4 + $0x68] sm:$0x1] %v3673_v26 }
 0x289   : > { %3627 = vst [vmem:[#allocation4 + $0x6c] sm:$0x1] %v3626_v20  ;;  %v11686_v20 = vld [vmem:[%s14872_s2 + $0x30] sm:$0xff] }
 0x28a   : > { %8111 = vmatpush.bf16.msra.mxu1 %v11686_v20 }
 0x28b   : > { %3122 = vmatmul.bf16.gmra.mxu2 %v10040_v27  ;;  %3300 = vmatmul.bf16.gmra.mxu0 %v10048_v47 }
 0x28c   : > { %3211 = vmatmul.bf16.gmra.mxu3 %v10044_v25  ;;  %v3675_v25 = vld [vmem:[#allocation4 + $0x74] sm:$0x1] }
 0x28d   : > { %v3676_v24 = vsel %vm12485_vm10, 0, %v3675_v25  ;;  %v3681_v25 = vld [vmem:[#allocation4 + $0x8c] sm:$0x1] }
 0x28e   : > { %v3083_v9 = vpop.f32.mrf.mxu2  ;;  %3677 = vst [vmem:[#allocation4 + $0x74] sm:$0x1] %v3676_v24  ;;  %v3682_v24 = vsel %vm12485_vm10, 0, %v3681_v25 }
 0x28f   : > { %v3172_v37 = vpop.f32.mrf.mxu3  ;;  %v3084_v50 = vadd.f32 %v3083_v9, %v12368_v12  ;;  %v10076_v12 = vor.u32 %v12592_v11, %v12588_v4  ;;  %v3628_v4 = vld [vmem:[#allocation4 + $0x78] sm:$0x1]  ;;  %3683 = vst [vmem:[#allocation4 + $0x8c] sm:$0x1] %v3682_v24  ;;  %v3637_v24 = vld [vmem:[#allocation4 + $0x9c] sm:$0x1] }
 0x290   : > { %v12616_v57 = vpop.f32.mrf.mxu0  ;;  %v3629_v19 = vsel %vm12474_vm8, 0, %v3628_v4 }
 0x291   : > { %v3173_v0 = vadd.f32 %v3172_v37, %v3084_v50  ;;  %3630 = vst [vmem:[#allocation4 + $0x78] sm:$0x1] %v3629_v19 }
 0x293   : > { %v12618_v10 = vadd.f32 %v3261_v62, %v3173_v0 }
 0x296   : > { %v12623_v30 = vpop.f32.mrf.mxu2 }
 0x297   : > { %v12625_v32 = vpop.f32.mrf.mxu3 }
 0x298   : > { %v3266_v27 = vpop.f32.mrf.mxu0 }
 0x29b   : > { %3127 = vmatmul.bf16.gmra.mxu2 %v10076_v12  ;;  %3305 = vmatmul.bf16.gmra.mxu0 %v10084_v40  ;;  %v3632_v40 = vsel %vm12474_vm8, 0, %v3631_v31 }
 0x29c   : > { %3216 = vmatmul.bf16.gmra.mxu3 %v10080_v18  ;;  %3633 = vst [vmem:[#allocation4 + $0x84] sm:$0x1] %v3632_v40 }
 0x29e   : > { %v3088_v14 = vpop.f32.mrf.mxu2 }
 0x29f   : > { %v3177_v47 = vpop.f32.mrf.mxu3  ;;  %v3089_v46 = vadd.f32 %v3088_v14, %v12382_v38  ;;  %v3679_v38 = vsel %vm12485_vm10, 0, %v3678_v8 }
 0x2a0   : > { %v12634_v34 = vpop.f32.mrf.mxu0  ;;  %3680 = vst [vmem:[#allocation4 + $0x80] sm:$0x1] %v3679_v38 }
 0x2a1   : > { %v3178_v62 = vadd.f32 %v3177_v47, %v3089_v46 }
 0x2a3   : > { %v12636_v28 = vadd.f32 %v3266_v27, %v3178_v62  ;;  %v12660_v27 = vpop.f32.mrf.mxu1 }
 0x2a6   : > { %v12638_v11 = vpop.f32.mrf.mxu2 }
 0x2a7   : > { %v12640_v29 = vpop.f32.mrf.mxu3 }
 0x2a8   : > { %v3271_v49 = vpop.f32.mrf.mxu0 }
 0x2ab   : > { %v12675_v38 = vpop.f32.mrf.mxu1 }
 0x2ae   : > { %v3093_v9 = vpop.f32.mrf.mxu2 }
 0x2af   : > { %v3182_v37 = vpop.f32.mrf.mxu3  ;;  %v3094_v26 = vadd.f32 %v3093_v9, %v12396_v56 }
 0x2b0   : > { %v12647_v0 = vpop.f32.mrf.mxu0 }
 0x2b1   : > { %v3183_v50 = vadd.f32 %v3182_v37, %v3094_v26 }
 0x2b3   : > { %v12649_v48 = vadd.f32 %v3271_v49, %v3183_v50  ;;  %v3634_v49 = vld [vmem:[#allocation4 + $0x90] sm:$0x1]  ;;  %v3684_v50 = vld [vmem:[#allocation4 + $0x98] sm:$0x1] }
 0x2b4   : > { %v3635_v37 = vsel %vm12474_vm8, 0, %v3634_v49  ;;  %v3685_v20 = vsel %vm12485_vm10, 0, %v3684_v50 }
 0x2b5   : > { %3636 = vst [vmem:[#allocation4 + $0x90] sm:$0x1] %v3635_v37  ;;  %v3375_v37 = vadd.f32 %v12519_v21, %v12514_v7 }
 0x2b6   : > { %v12654_v12 = vpop.f32.mrf.mxu2  ;;  %3686 = vst [vmem:[#allocation4 + $0x98] sm:$0x1] %v3685_v20 }
 0x2b7   : > { %v12656_v18 = vpop.f32.mrf.mxu3 }
 0x2b8   : > { %v3276_v56 = vpop.f32.mrf.mxu0 }
 0x2be   : > { %v3098_v14 = vpop.f32.mrf.mxu2 }
 0x2bf   : > { %v3187_v47 = vpop.f32.mrf.mxu3  ;;  %v3099_v46 = vadd.f32 %v3098_v14, %v12408_v58 }
 0x2c0   : > { %v12665_v4 = vpop.f32.mrf.mxu0 }
 0x2c1   : > { %v3188_v62 = vadd.f32 %v3187_v47, %v3099_v46  ;;  %v11685_v46 = vld [vmem:[%s14872_s2 + $0x28] sm:$0xff] }
 0x2c2   : > { %8112 = vmatpush.bf16.msra.mxu1 %v11685_v46 }
 0x2c3   : > { %v12667_v19 = vadd.f32 %v3276_v56, %v3188_v62  ;;  %v12680_v56 = vpop.f32.mrf.mxu1 }
 0x2c6   : > { %v12669_v8 = vpop.f32.mrf.mxu2 }
 0x2c7   : > { %v12671_v9 = vpop.f32.mrf.mxu3 }
 0x2c8   : > { %v3281_v26 = vpop.f32.mrf.mxu0 }
 0x2ce   : > { %v3103_v58 = vpop.f32.mrf.mxu2 }
 0x2cf   : > { %v3192_v31 = vpop.f32.mrf.mxu3  ;;  %v3104_v40 = vadd.f32 %v3103_v58, %v12422_v33  ;;  %v3638_v33 = vsel %vm12474_vm8, 0, %v3637_v24  ;;  %v12701_v58 = vpop.f32.mrf.mxu1 }
 0x2d0   : > { %v12682_v14 = vpop.f32.mrf.mxu0  ;;  %3639 = vst [vmem:[#allocation4 + $0x9c] sm:$0x1] %v3638_v33 }
 0x2d1   : > { %v3193_v25 = vadd.f32 %v3192_v31, %v3104_v40  ;;  %v3376_v31 = vadd.f32 %v3375_v37, %v12530_v16 }
 0x2d3   : > { %v12684_v47 = vadd.f32 %v3281_v26, %v3193_v25  ;;  %v2987_v26 = vadd.f32 %v12333_v3, %v12343_v52  ;;  %v3377_v20 = vadd.f32 %v3376_v31, %v12535_v13  ;;  %v3687_v25 = vld [vmem:[#allocation4 + $0xa4] sm:$0x1]  ;;  %v3081_v31 = vadd.f32 %v12599_v43, %v2992_v51 }
 0x2d4   : > { %v3688_v46 = vsel %vm12485_vm10, 0, %v3687_v25 }
 0x2d5   : > { %v3076_v40 = vadd.f32 %v12582_v44, %v2987_v26  ;;  %v3378_v3 = vadd.f32 %v3377_v20, %v12546_v53  ;;  %3689 = vst [vmem:[#allocation4 + $0xa4] sm:$0x1] %v3688_v46  ;;  %v2997_v26 = vadd.f32 %v12366_v54, %v12371_v15  ;;  %v3170_v22 = vadd.f32 %v12601_v41, %v3081_v31 }
 0x2d6   : > { %v12689_v62 = vpop.f32.mrf.mxu2  ;;  %v3002_v54 = vadd.f32 %v12380_v60, %v12385_v2 }
 0x2d7   : > { %v12691_v49 = vpop.f32.mrf.mxu3  ;;  %v3379_v52 = vadd.f32 %v3378_v3, %v12551_v55  ;;  %v3165_v37 = vadd.f32 %v12584_v5, %v3076_v40  ;;  %v3026_v25 = vpop.f32.mrf.mxu1  ;;  %v3086_v20 = vadd.f32 %v12623_v30, %v2997_v26  ;;  %v3640_v5 = vld [vmem:[#allocation4 + $0xa8] sm:$0x1]  ;;  %v3007_v3 = vadd.f32 %v12394_v1, %v12399_v61  ;;  %v14907_v26 = vld [vmem:[#allocation8_spill] sm:$0xff] }
 0x2d8   : > { %v12697_v50 = vpop.f32.mrf.mxu0  ;;  %v3641_v43 = vsel %vm12474_vm8, 0, %v3640_v5  ;;  %v3091_v30 = vadd.f32 %v12638_v11, %v3002_v54  ;;  %v14909_v54 = vld [vmem:[#allocation9_spill] sm:$0xff] }
 0x2d9   : > { %v3380_v39 = vadd.f32 %v3379_v52, %v12562_v36  ;;  %v12723_v42 = vadd.f32 %v12578_v45, %v3165_v37  ;;  %3642 = vst [vmem:[#allocation4 + $0xa8] sm:$0x1] %v3641_v43  ;;  %v12734_v45 = vadd.f32 %v12595_v63, %v3170_v22  ;;  %v3175_v41 = vadd.f32 %v12625_v32, %v3086_v20  ;;  %v3690_v37 = vld [vmem:[#allocation4 + $0xb0] sm:$0x1]  ;;  %v14908_v22 = vld [vmem:[#allocation7_spill] sm:$0xff] }
 0x2da   : > { %v3096_v63 = vadd.f32 %v12654_v12, %v3007_v3  ;;  %v3691_v11 = vsel %vm12485_vm10, 0, %v3690_v37  ;;  %v3012_v1 = vadd.f32 %v14908_v22, %v14907_v26 }
 0x2db   : > { %v3381_v13 = vadd.f32 %v3380_v39, %v12567_v23  ;;  %v12745_v2 = vadd.f32 %v12616_v57, %v3175_v41  ;;  %3692 = vst [vmem:[#allocation4 + $0xb0] sm:$0x1] %v3691_v11  ;;  %v14910_v41 = vld [vmem:[#allocation10_spill] sm:$0xff] }
 0x2dc   : > { %v3101_v12 = vadd.f32 %v12669_v8, %v3012_v1  ;;  %v11684_v8 = vld [vmem:[%s14872_s2 + $0x20] sm:$0xff] }
 0x2dd   : > { %v3382_v15 = vadd.f32 %v3381_v13, %v12580_v35  ;;  %v3180_v13 = vadd.f32 %v12640_v29, %v3091_v30  ;;  %v3185_v29 = vadd.f32 %v12656_v18, %v3096_v63  ;;  %v3020_v30 = vadd.f32 %v12675_v38, %v14910_v41  ;;  %v14911_v38 = vld [vmem:[#allocation11_spill] sm:$0xff]  ;;  %8113 = vmatpush.bf16.msra.mxu1 %v11684_v8 }
 0x2de   : > { %v3108_v24 = vpop.f32.mrf.mxu2  ;;  %v3022_v37 = vadd.f32 %v12680_v56, %v14911_v38 }
 0x2df   : > { %v12706_v33 = vpop.f32.mrf.mxu3  ;;  %v3383_v39 = vadd.f32 %v3382_v15, %v12723_v42  ;;  %v3029_v61 = vpop.f32.mrf.mxu1  ;;  %v12756_v5 = vadd.f32 %v12634_v34, %v3180_v13  ;;  %v3017_v15 = vadd.f32 %v12660_v27, %v14909_v54  ;;  %v3190_v34 = vadd.f32 %v12671_v9, %v3101_v12  ;;  %v14912_v9 = vld [vmem:[#allocation12_spill] sm:$0xff]  ;;  %v14913_v12 = vld [vmem:[#allocation13_spill] sm:$0xff] }
 0x2e0   : > { %v12716_v44 = vpop.f32.mrf.mxu0  ;;  %v3109_v11 = vadd.f32 %v3108_v24, %v3020_v30  ;;  %v3027_v56 = vadd.f32 %v3026_v25, %v14913_v12 }
 0x2e1   : > { %v3384_v52 = vadd.f32 %v3383_v39, %v12597_v17  ;;  %v3106_v18 = vadd.f32 %v12689_v62, %v3017_v15  ;;  %v3025_v62 = vadd.f32 %v12701_v58, %v14912_v9  ;;  %v12783_v1 = vadd.f32 %v12665_v4, %v3190_v34  ;;  %v3693_v34 = vld [vmem:[#allocation4 + $0xbc] sm:$0x1]  ;;  %v3646_v9 = vld [vmem:[#allocation4 + $0xc0] sm:$0x1] }
 0x2e2   : > { %v3198_v24 = vadd.f32 %v12706_v33, %v3109_v11  ;;  %v3694_v25 = vsel %vm12485_vm10, 0, %v3693_v34 }
 0x2e3   : > { %v3385_v60 = vadd.f32 %v3384_v52, %v12734_v45  ;;  %v12767_v52 = vadd.f32 %v12647_v0, %v3185_v29  ;;  %3695 = vst [vmem:[#allocation4 + $0xbc] sm:$0x1] %v3694_v25 }
 0x2e4   : > { %v12798_v33 = vadd.f32 %v12697_v50, %v3198_v24  ;;  %v14916_v24 = vld [vmem:[#allocation16_spill] sm:$0xff] }
 0x2e5   : > { %v3386_v20 = vadd.f32 %v3385_v60, %v12618_v10  ;;  %v3643_v60 = vld [vmem:[#allocation4 + $0xb4] sm:$0x1] }
 0x2e6   : > { %v3110_v40 = vpop.f32.mrf.mxu2  ;;  %v3644_v63 = vsel %vm12474_vm8, 0, %v3643_v60 }
 0x2e7   : > { %v3199_v51 = vpop.f32.mrf.mxu3  ;;  %v3387_v57 = vadd.f32 %v3386_v20, %v12745_v2  ;;  %3645 = vst [vmem:[#allocation4 + $0xb4] sm:$0x1] %v3644_v63  ;;  %v3031_v26 = vpop.f32.mrf.mxu1  ;;  %v3195_v20 = vadd.f32 %v12691_v49, %v3106_v18 }
 0x2e8   : > { %v12738_v46 = vpop.f32.mrf.mxu0 }
 0x2e9   : > { %v3388_v39 = vadd.f32 %v3387_v57, %v12636_v28  ;;  %v3111_v57 = vadd.f32 %v3110_v40, %v3022_v37  ;;  %v12792_v30 = vadd.f32 %v12682_v14, %v3195_v20 }
 0x2eb   : > { %v3389_v3 = vadd.f32 %v3388_v39, %v12756_v5  ;;  %v14914_v39 = vld [vmem:[#allocation14_spill] sm:$0xff]  ;;  %v3200_v4 = vadd.f32 %v3199_v51, %v3111_v57 }
 0x2ec   : > { %v3030_v41 = vadd.f32 %v3029_v61, %v14914_v39 }
 0x2ed   : > { %v3390_v0 = vadd.f32 %v3389_v3, %v12649_v48  ;;  %v12802_v14 = vadd.f32 %v12716_v44, %v3200_v4  ;;  %v3647_v44 = vsel %vm12474_vm8, 0, %v3646_v9 }
 0x2ee   : > { %v3113_v32 = vpop.f32.mrf.mxu2  ;;  %3648 = vst [vmem:[#allocation4 + $0xc0] sm:$0x1] %v3647_v44 }
 0x2ef   : > { %v3202_v31 = vpop.f32.mrf.mxu3  ;;  %v3391_v22 = vadd.f32 %v3390_v0, %v12767_v52  ;;  %v3114_v15 = vadd.f32 %v3113_v32, %v3025_v62  ;;  %v14915_v0 = vld [vmem:[#allocation15_spill] sm:$0xff] }
 0x2f0   : > { %v3293_v43 = vpop.f32.mrf.mxu0  ;;  %v3032_v50 = vadd.f32 %v3031_v26, %v14915_v0 }
 0x2f1   : > { %v3392_v54 = vadd.f32 %v3391_v22, %v12667_v19  ;;  %v3203_v32 = vadd.f32 %v3202_v31, %v3114_v15 }
 0x2f3   : > { %v3393_v58 = vadd.f32 %v3392_v54, %v12783_v1  ;;  %v12806_v38 = vadd.f32 %v12738_v46, %v3203_v32 }
 0x2f5   : > { %v3394_v18 = vadd.f32 %v3393_v58, %v12684_v47 }
 0x2f6   : > { %v3115_v27 = vpop.f32.mrf.mxu2 }
 0x2f7   : > { %v3204_v13 = vpop.f32.mrf.mxu3  ;;  %v3116_v3 = vadd.f32 %v3115_v27, %v3027_v56  ;;  %v3395_v60 = vadd.f32 %v3394_v18, %v12792_v30  ;;  %v3034_v27 = vpop.f32.mrf.mxu1 }
 0x2f8   : > { %v3296_v29 = vpop.f32.mrf.mxu0 }
 0x2f9   : > { %v3205_v51 = vadd.f32 %v3204_v13, %v3116_v3  ;;  %v3396_v63 = vadd.f32 %v3395_v60, %v12798_v33 }
 0x2fb   : > { %v3397_v31 = vadd.f32 %v3396_v63, %v12802_v14  ;;  %v12810_v11 = vadd.f32 %v3293_v43, %v3205_v51  ;;  %v3035_v43 = vadd.f32 %v3034_v27, %v14916_v24  ;;  %v14918_v63 = vld [vmem:[#allocation18_spill] sm:$0xff] }
 0x2fd   : > { %v3398_v13 = vadd.f32 %v3397_v31, %v12806_v38 }
 0x2fe   : > { %v3118_v49 = vpop.f32.mrf.mxu2 }
 0x2ff   : > { %v3207_v40 = vpop.f32.mrf.mxu3  ;;  %v3119_v61 = vadd.f32 %v3118_v49, %v3030_v41  ;;  %v3399_v46 = vadd.f32 %v3398_v13, %v12810_v11  ;;  %v3036_v15 = vpop.f32.mrf.mxu1  ;;  %v14917_v49 = vld [vmem:[#allocation17_spill] sm:$0xff]  ;;  %v14919_v13 = vld [vmem:[#allocation19_spill] sm:$0xff] }
 0x300   : > { %v3298_v8 = vpop.f32.mrf.mxu0 }
 0x301   : > { %v3208_v37 = vadd.f32 %v3207_v40, %v3119_v61  ;;  %v3037_v40 = vadd.f32 %v3036_v15, %v14917_v49 }
 0x303   : > { %v3297_v20 = vadd.f32 %v3296_v29, %v3208_v37 }
 0x305   : > { %v3400_v56 = vadd.f32 %v3399_v46, %v3297_v20 }
 0x306   : > { %v3120_v62 = vpop.f32.mrf.mxu2 }
 0x307   : > { %v3209_v22 = vpop.f32.mrf.mxu3  ;;  %v3121_v57 = vadd.f32 %v3120_v62, %v3032_v50  ;;  %v3039_v60 = vpop.f32.mrf.mxu1 }
 0x308   : > { %v3301_v54 = vpop.f32.mrf.mxu0  ;;  %v3040_v37 = vadd.f32 %v3039_v60, %v14918_v63 }
 0x309   : > { %v3210_v12 = vadd.f32 %v3209_v22, %v3121_v57 }
 0x30b   : > { %v3299_v26 = vadd.f32 %v3298_v8, %v3210_v12 }
 0x30d   : > { %v3401_v39 = vadd.f32 %v3400_v56, %v3299_v26 }
 0x30e   : > { %v3123_v41 = vpop.f32.mrf.mxu2 }
 0x30f   : > { %v3212_v58 = vpop.f32.mrf.mxu3  ;;  %v3124_v4 = vadd.f32 %v3123_v41, %v3035_v43  ;;  %v3041_v22 = vpop.f32.mrf.mxu1 }
 0x310   : > { %v3303_v25 = vpop.f32.mrf.mxu0  ;;  %v3042_v57 = vadd.f32 %v3041_v22, %v14919_v13 }
 0x311   : > { %v3213_v3 = vadd.f32 %v3212_v58, %v3124_v4 }
 0x313   : > { %v3302_v34 = vadd.f32 %v3301_v54, %v3213_v3 }
 0x315   : > { %v3402_v29 = vadd.f32 %v3401_v39, %v3302_v34 }
 0x316   : > { %v3125_v18 = vpop.f32.mrf.mxu2 }
 0x317   : > { %v3214_v32 = vpop.f32.mrf.mxu3  ;;  %v3126_v61 = vadd.f32 %v3125_v18, %v3037_v40 }
 0x318   : > { %v3306_v9 = vpop.f32.mrf.mxu0 }
 0x319   : > { %v3215_v51 = vadd.f32 %v3214_v32, %v3126_v61 }
 0x31b   : > { %v3304_v8 = vadd.f32 %v3303_v25, %v3215_v51 }
 0x31d   : > { %v3403_v27 = vadd.f32 %v3402_v29, %v3304_v8 }
 0x31e   : > { %v3128_v0 = vpop.f32.mrf.mxu2 }
 0x31f   : > { %v3217_v50 = vpop.f32.mrf.mxu3  ;;  %v3129_v31 = vadd.f32 %v3128_v0, %v3040_v37  ;;  %v14920_v37 = vld [vmem:[#allocation20_spill] sm:$0xff] }
 0x320   : > { %v3308_v43 = vpop.f32.mrf.mxu0 }
 0x321   : > { %v3218_v62 = vadd.f32 %v3217_v50, %v3129_v31 }
 0x323   : > { %v3307_v44 = vadd.f32 %v3306_v9, %v3218_v62 }
 0x325   : > { %v3404_v46 = vadd.f32 %v3403_v27, %v3307_v44 }
 0x326   : > { %v3130_v12 = vpop.f32.mrf.mxu2 }
 0x327   : > { %v3131_v56 = vadd.f32 %v3130_v12, %v3042_v57  ;;  %v3219_v54 = vpop.f32.mrf.mxu3 }
 0x329   : > { %v3220_v24 = vadd.f32 %v3219_v54, %v3131_v56 }
 0x32b   : > { %v3309_v15 = vadd.f32 %v3308_v43, %v3220_v24 }
 0x32d   : > { %v3405_v39 = vadd.f32 %v3404_v46, %v3309_v15 }
 0x32f   : > { %v3406_v41 = vrot.slane %v3405_v39, 4 }
 0x331   : > { %v3407_v58 = vadd.f32 %v3406_v41, %v3405_v39 }
 0x333   : > { %v3408_v4 = vrot.slane %v3407_v58, 2 }
 0x335   : > { %v3409_v3 = vadd.f32 %v3408_v4, %v3407_v58 }
 0x337   : > { %v3410_v49 = vrot.slane %v3409_v3, 1 }
 0x339   : > { %v3411_v40 = vadd.f32 %v3410_v49, %v3409_v3 }
 0x33b   : > { %v12820_v29 = vmul.f32 0.00390625, %v3411_v40 }
 0x33d   : > { %v12823_v25 = vsub.f32 %v3297_v20, %v12820_v29  ;;  %v12826_v18 = vsub.f32 %v3299_v26, %v12820_v29  ;;  %v12829_v32 = vsub.f32 %v3302_v34, %v12820_v29  ;;  %v12832_v61 = vsub.f32 %v3304_v8, %v12820_v29 }
 0x33e   : > { %v12835_v60 = vsub.f32 %v3307_v44, %v12820_v29  ;;  %v12838_v51 = vsub.f32 %v3309_v15, %v12820_v29  ;;  %v12842_v63 = vsub.f32 %v12514_v7, %v12820_v29  ;;  %v12846_v20 = vsub.f32 %v12519_v21, %v12820_v29 }
 0x33f   : > { %v12850_v26 = vsub.f32 %v12530_v16, %v12820_v29  ;;  %v12858_v27 = vsub.f32 %v14920_v37, %v12820_v29  ;;  %v12862_v7 = vsub.f32 %v12546_v53, %v12820_v29  ;;  %v12868_v16 = vsub.f32 %v12551_v55, %v12820_v29 }
 0x340   : > { %v3445_v34 = vmul.f32 %v12842_v63, %v12842_v63  ;;  %v3446_v8 = vmul.f32 %v12846_v20, %v12846_v20  ;;  %v12874_v9 = vsub.f32 %v12562_v36, %v12820_v29  ;;  %v12880_v22 = vsub.f32 %v12567_v23, %v12820_v29 }
 0x341   : > { %v3447_v21 = vmul.f32 %v12850_v26, %v12850_v26  ;;  %v3448_v50 = vmul.f32 %v12858_v27, %v12858_v27  ;;  %v3449_v53 = vmul.f32 %v12862_v7, %v12862_v7  ;;  %v3450_v55 = vmul.f32 %v12868_v16, %v12868_v16 }
 0x342   : > { %v3477_v0 = vadd.f32 %v3446_v8, %v3445_v34  ;;  %v12886_v13 = vsub.f32 %v12580_v35, %v12820_v29  ;;  %v3451_v36 = vmul.f32 %v12874_v9, %v12874_v9  ;;  %v12892_v46 = vsub.f32 %v12723_v42, %v12820_v29 }
 0x343   : > { %v3452_v23 = vmul.f32 %v12880_v22, %v12880_v22  ;;  %v12898_v56 = vsub.f32 %v12597_v17, %v12820_v29  ;;  %v12904_v24 = vsub.f32 %v12734_v45, %v12820_v29  ;;  %v12910_v15 = vsub.f32 %v12618_v10, %v12820_v29 }
 0x344   : > { %v3478_v31 = vadd.f32 %v3477_v0, %v3447_v21  ;;  %v3453_v35 = vmul.f32 %v12886_v13, %v12886_v13  ;;  %v3454_v42 = vmul.f32 %v12892_v46, %v12892_v46  ;;  %v12916_v41 = vsub.f32 %v12745_v2, %v12820_v29 }
 0x345   : > { %v3455_v17 = vmul.f32 %v12898_v56, %v12898_v56  ;;  %v3456_v45 = vmul.f32 %v12904_v24, %v12904_v24  ;;  %v12922_v4 = vsub.f32 %v12636_v28, %v12820_v29  ;;  %v3457_v10 = vmul.f32 %v12910_v15, %v12910_v15 }
 0x346   : > { %v3479_v62 = vadd.f32 %v3478_v31, %v3448_v50  ;;  %v12928_v49 = vsub.f32 %v12756_v5, %v12820_v29  ;;  %v3458_v2 = vmul.f32 %v12916_v41, %v12916_v41  ;;  %v12934_v34 = vsub.f32 %v12649_v48, %v12820_v29 }
 0x347   : > { %v3459_v28 = vmul.f32 %v12922_v4, %v12922_v4  ;;  %v12940_v37 = vsub.f32 %v12767_v52, %v12820_v29  ;;  %v12946_v0 = vsub.f32 %v12667_v19, %v12820_v29  ;;  %v12952_v31 = vsub.f32 %v12783_v1, %v12820_v29 }
 0x348   : > { %v3480_v44 = vadd.f32 %v3479_v62, %v3449_v53  ;;  %v3460_v5 = vmul.f32 %v12928_v49, %v12928_v49  ;;  %v3461_v48 = vmul.f32 %v12934_v34, %v12934_v34  ;;  %v12958_v62 = vsub.f32 %v12684_v47, %v12820_v29 }
 0x349   : > { %v3462_v52 = vmul.f32 %v12940_v37, %v12940_v37  ;;  %v3463_v19 = vmul.f32 %v12946_v0, %v12946_v0  ;;  %v3464_v1 = vmul.f32 %v12952_v31, %v12952_v31 }
 0x34a   : > { %v3481_v57 = vadd.f32 %v3480_v44, %v3450_v55  ;;  %v12964_v44 = vsub.f32 %v12792_v30, %v12820_v29  ;;  %v3465_v47 = vmul.f32 %v12958_v62, %v12958_v62 }
 0x34c   : > { %v3482_v12 = vadd.f32 %v3481_v57, %v3451_v36  ;;  %v12970_v57 = vsub.f32 %v12798_v33, %v12820_v29  ;;  %v3466_v30 = vmul.f32 %v12964_v44, %v12964_v44 }
 0x34e   : > { %v3483_v54 = vadd.f32 %v3482_v12, %v3452_v23  ;;  %v12976_v12 = vsub.f32 %v12802_v14, %v12820_v29  ;;  %v3467_v33 = vmul.f32 %v12970_v57, %v12970_v57 }
 0x350   : > { %v3484_v43 = vadd.f32 %v3483_v54, %v3453_v35  ;;  %v12982_v54 = vsub.f32 %v12806_v38, %v12820_v29  ;;  %v3468_v14 = vmul.f32 %v12976_v12, %v12976_v12 }
 0x352   : > { %v3485_v39 = vadd.f32 %v3484_v43, %v3454_v42  ;;  %v12988_v43 = vsub.f32 %v12810_v11, %v12820_v29  ;;  %v3472_v11 = vmul.f32 %v12826_v18, %v12826_v18 }
 0x354   : > { %v3486_v58 = vadd.f32 %v3485_v39, %v3455_v17  ;;  %v3469_v39 = vmul.f32 %v12982_v54, %v12982_v54  ;;  %v3470_v38 = vmul.f32 %v12988_v43, %v12988_v43 }
 0x356   : > { %v3487_v3 = vadd.f32 %v3486_v58, %v3456_v45 }
 0x358   : > { %v3488_v40 = vadd.f32 %v3487_v3, %v3457_v10  ;;  %v3471_v10 = vmul.f32 %v12823_v25, %v12823_v25 }
 0x35a   : > { %v3489_v8 = vadd.f32 %v3488_v40, %v3458_v2  ;;  %v3473_v2 = vmul.f32 %v12829_v32, %v12829_v32 }
 0x35c   : > { %v3490_v21 = vadd.f32 %v3489_v8, %v3459_v28  ;;  %v3474_v28 = vmul.f32 %v12832_v61, %v12832_v61 }
 0x35e   : > { %v3491_v50 = vadd.f32 %v3490_v21, %v3460_v5  ;;  %v3475_v5 = vmul.f32 %v12835_v60, %v12835_v60 }
 0x360   : > { %v3492_v53 = vadd.f32 %v3491_v50, %v3461_v48  ;;  %v3476_v48 = vmul.f32 %v12838_v51, %v12838_v51 }
 0x362   : > { %v3493_v55 = vadd.f32 %v3492_v53, %v3462_v52 }
 0x364   : > { %v3494_v36 = vadd.f32 %v3493_v55, %v3463_v19  ;;  %v3696_v55 = vld [vmem:[#allocation4 + $0xc8] sm:$0x1] }
 0x366   : > { %v3495_v23 = vadd.f32 %v3494_v36, %v3464_v1  ;;  %v3697_v36 = vsel %vm12485_vm10, 0, %v3696_v55 }
 0x367   : > { %3698 = vst [vmem:[#allocation4 + $0xc8] sm:$0x1] %v3697_v36 }
 0x368   : > { %v3496_v35 = vadd.f32 %v3495_v23, %v3465_v47 }
 0x36a   : > { %v3497_v42 = vadd.f32 %v3496_v35, %v3466_v30 }
 0x36c   : > { %v3498_v17 = vadd.f32 %v3497_v42, %v3467_v33 }
 0x36e   : > { %v3499_v45 = vadd.f32 %v3498_v17, %v3468_v14 }
 0x370   : > { %v3500_v58 = vadd.f32 %v3499_v45, %v3469_v39 }
 0x372   : > { %v3501_v3 = vadd.f32 %v3500_v58, %v3470_v38 }
 0x374   : > { %v3502_v29 = vadd.f32 %v3501_v3, %v3471_v10 }
 0x376   : > { %v3503_v40 = vadd.f32 %v3502_v29, %v3472_v11 }
 0x378   : > { %v3504_v8 = vadd.f32 %v3503_v40, %v3473_v2 }
 0x37a   : > { %v3505_v21 = vadd.f32 %v3504_v8, %v3474_v28 }
 0x37c   : > { %v3506_v50 = vadd.f32 %v3505_v21, %v3475_v5 }
 0x37e   : > { %v3507_v52 = vadd.f32 %v3506_v50, %v3476_v48 }
 0x380   : > { %v3508_v53 = vrot.slane %v3507_v52, 4 }
 0x382   : > { %v3509_v19 = vadd.f32 %v3508_v53, %v3507_v52 }
 0x384   : > { %v3510_v1 = vrot.slane %v3509_v19, 2 }
 0x386   : > { %v3511_v47 = vadd.f32 %v3510_v1, %v3509_v19 }
 0x388   : > { %v3512_v23 = vrot.slane %v3511_v47, 1 }
 0x38a   : > { %v3513_v30 = vadd.f32 %v3512_v23, %v3511_v47 }
 0x38c   : > { %v3514_v35 = vmul.f32 0.00390625, %v3513_v30 }
 0x38e   : > { %v3515_v33 = vadd.f32 1e-05, %v3514_v35 }
 0x390   : > { %11778 = vrsqrt.f32 %v3515_v33  ;;  %vm3522_vm12 = vweird.f32 %v3515_v33 }
 0x396   : > { %v11779_v42 = vpop.eup %11778 }
 0x397   : > { %v3517_v14 = vmul.f32 %v11779_v42, %v3515_v33  ;;  %vm3523_vm11 = vweird.f32 %v11779_v42 }
 0x398   : > { %vm3524_vm13 = vmor %vm3522_vm12, %vm3523_vm11 }
 0x399   : > { %v3518_v17 = vmul.f32 %v11779_v42, %v3517_v14 }
 0x39b   : > { %v3519_v39 = vmul.f32 0.5, %v3518_v17 }
 0x39d   : > { %v3520_v45 = vsub.f32 1.5, %v3519_v39  ;;  %v11703_v39 = vld [vmem:[%s14872_s2 + $0xb8] sm:$0xff] }
 0x39e   : > { %8288 = vmatpush.bf16.msrb.mxu3 %v11703_v39 }
 0x39f   : > { %v3521_v38 = vmul.f32 %v11779_v42, %v3520_v45 }
 0x3a1   : > { %v3525_v58 = vsel %vm3524_vm13, %v11779_v42, %v3521_v38 }
 0x3a2   : > { %v3556_v59 = vmul.f32 %v3525_v58, %v12835_v60  ;;  %v3557_v10 = vmul.f32 %v3525_v58, %v12838_v51  ;;  %v3526_v40 = vmul.f32 %v3525_v58, %v12842_v63  ;;  %v3527_v28 = vmul.f32 %v3525_v58, %v12846_v20  ;;  %v4132_v63 = vld [vmem:[#allocation4 + $0xc8] sm:$0x1] }
 0x3a3   : > { %v3528_v8 = vmul.f32 %v3525_v58, %v12850_v26  ;;  %v3529_v5 = vmul.f32 %v3525_v58, %v12858_v27  ;;  %v3530_v21 = vmul.f32 %v3525_v58, %v12862_v7  ;;  %v3531_v60 = vmul.f32 %v3525_v58, %v12868_v16 }
 0x3a4   : > { %v13012_v3 = vpack.c.bf16 %v3556_v59, %v3556_v59  ;;  %v3589_v11 = vpack.c.bf16 %v3557_v10, %v3557_v10  ;;  %v3532_v52 = vmul.f32 %v3525_v58, %v12874_v9  ;;  %v3533_v20 = vmul.f32 %v3525_v58, %v12880_v22 }
 0x3a5   : > { %v3534_v26 = vmul.f32 %v3525_v58, %v12886_v13  ;;  %v3535_v27 = vmul.f32 %v3525_v58, %v12892_v46  ;;  %v3536_v7 = vmul.f32 %v3525_v58, %v12898_v56  ;;  %v3537_v9 = vmul.f32 %v3525_v58, %v12904_v24 }
 0x3a6   : > { %v3957_v29 = vshrl.u32 %v13012_v3, 16  ;;  %v3965_v2 = vshrl.u32 %v3589_v11, 16  ;;  %v3968_v50 = vshll.u32 %v3589_v11, 16  ;;  %v3538_v1 = vmul.f32 %v3525_v58, %v12910_v15 }
 0x3a7   : > { %v3539_v36 = vmul.f32 %v3525_v58, %v12916_v41  ;;  %v3540_v47 = vmul.f32 %v3525_v58, %v12922_v4  ;;  %v3541_v22 = vmul.f32 %v3525_v58, %v12928_v49  ;;  %v3542_v56 = vmul.f32 %v3525_v58, %v12934_v34 }
 0x3a8   : > { %v13021_v51 = vrot.slane %v3957_v29, 7  ;;  %v3967_v48 = vrot.slane %v3965_v2, 7  ;;  %v3543_v23 = vmul.f32 %v3525_v58, %v12940_v37  ;;  %v3544_v24 = vmul.f32 %v3525_v58, %v12946_v0 }
 0x3a9   : > { %v3545_v15 = vmul.f32 %v3525_v58, %v12952_v31  ;;  %v3546_v41 = vmul.f32 %v3525_v58, %v12958_v62  ;;  %v3547_v4 = vmul.f32 %v3525_v58, %v12964_v44  ;;  %v3548_v49 = vmul.f32 %v3525_v58, %v12970_v57 }
 0x3aa   : > { %v3963_v16 = vrot.slane %v13021_v51, 4  ;;  %v3970_v19 = vor.u32 %v3968_v50, %v3967_v48  ;;  %v3972_v55 = vrot.slane %v3967_v48, 4  ;;  %v3549_v30 = vmul.f32 %v3525_v58, %v12976_v12 }
 0x3ab   : > { %v3550_v35 = vmul.f32 %v3525_v58, %v12982_v54  ;;  %v3551_v34 = vmul.f32 %v3525_v58, %v12988_v43  ;;  %v3552_v37 = vmul.f32 %v3525_v58, %v12823_v25  ;;  %v3553_v33 = vmul.f32 %v3525_v58, %v12826_v18  ;;  %v11695_v54 = vld [vmem:[%s14872_s2 + $0x78] sm:$0xff] }
 0x3ac   : > { %v3971_v13 = vsel %vm13025_vm15, %v3963_v16, %v3970_v19  ;;  %v4133_v46 = vsel %vm12474_vm8, %v3972_v55, %v4132_v63  ;;  %v13056_v0 = vmul.f32 %v3525_v58, %v12829_v32  ;;  %v13059_v31 = vmul.f32 %v3525_v58, %v12832_v61  ;;  %8199 = vmatpush.bf16.msrb.mxu2 %v11695_v54  ;;  %v11702_v63 = vld [vmem:[%s14872_s2 + $0xb0] sm:$0xff] }
 0x3ad   : > { %4131 = vst [vmem:[#allocation4 + $0xc4] sm:$0xf] %v3971_v13  ;;  %v3960_v62 = vshll.u32 %v13012_v3, 16  ;;  %v13062_v44 = vpack.c.bf16 %v3526_v40, %v3526_v40  ;;  %v3559_v57 = vpack.c.bf16 %v3527_v28, %v3527_v28  ;;  %v13064_v12 = vpack.c.bf16 %v3528_v8, %v3528_v8  ;;  %v11694_v40 = vld [vmem:[%s14872_s2 + $0x70] sm:$0xff]  ;;  %8289 = vmatpush.bf16.msrb.mxu3 %v11702_v63 }
 0x3ae   : > { %4134 = vst [vmem:[#allocation4 + $0xc8] sm:$0x1] %v4133_v46  ;;  %v3561_v25 = vpack.c.bf16 %v3529_v5, %v3529_v5  ;;  %v13069_v43 = vpack.c.bf16 %v3530_v21, %v3530_v21  ;;  %v3563_v18 = vpack.c.bf16 %v3531_v60, %v3531_v60  ;;  %v13071_v32 = vpack.c.bf16 %v3532_v52, %v3532_v52 }
 0x3af   : > { %v13073_v42 = vpack.c.bf16 %v3533_v20, %v3533_v20  ;;  %v13075_v61 = vpack.c.bf16 %v3534_v26, %v3534_v26  ;;  %v13077_v14 = vpack.c.bf16 %v3535_v27, %v3535_v27  ;;  %v13079_v17 = vpack.c.bf16 %v3536_v7, %v3536_v7 }
 0x3b0   : > { %v13084_v45 = vpack.c.bf16 %v3537_v9, %v3537_v9  ;;  %v13086_v38 = vpack.c.bf16 %v3538_v1, %v3538_v1  ;;  %v13088_v58 = vpack.c.bf16 %v3539_v36, %v3539_v36  ;;  %v13090_v59 = vpack.c.bf16 %v3540_v47, %v3540_v47  ;;  %8200 = vmatpush.bf16.msrb.mxu2 %v11694_v40  ;;  %v11693_v1 = vld [vmem:[%s14872_s2 + $0x68] sm:$0xff] }
 0x3b1   : > { %v13092_v10 = vpack.c.bf16 %v3541_v22, %v3541_v22  ;;  %v13094_v11 = vpack.c.bf16 %v3542_v56, %v3542_v56  ;;  %v13096_v29 = vpack.c.bf16 %v3543_v23, %v3543_v23  ;;  %v3702_v2 = vshrl.u32 %v13062_v44, 16 }
 0x3b2   : > { %v13102_v28 = vpack.c.bf16 %v3544_v24, %v3544_v24  ;;  %v13104_v8 = vpack.c.bf16 %v3545_v15, %v3545_v15  ;;  %v3710_v5 = vshrl.u32 %v3559_v57, 16  ;;  %v3719_v21 = vshrl.u32 %v13064_v12, 16  ;;  %v11701_v15 = vld [vmem:[%s14872_s2 + $0xa8] sm:$0xff] }
 0x3b3   : > { %v13107_v60 = vpack.c.bf16 %v3546_v41, %v3546_v41  ;;  %v13109_v48 = vpack.c.bf16 %v3547_v4, %v3547_v4  ;;  %v3704_v50 = vrot.slane %v3702_v2, 7  ;;  %v3727_v52 = vshrl.u32 %v3561_v25, 16  ;;  %8290 = vmatpush.bf16.msrb.mxu3 %v11701_v15 }
 0x3b4   : > { %v13114_v20 = vrot.slane %v3710_v5, 7  ;;  %v3713_v26 = vshll.u32 %v3559_v57, 16  ;;  %v13116_v27 = vrot.slane %v3719_v21, 7  ;;  %v3736_v7 = vshrl.u32 %v13069_v43, 16  ;;  %8201 = vmatpush.bf16.msrb.mxu2 %v11693_v1 }
 0x3b5   : > { %v3708_v16 = vrot.slane %v3704_v50, 4  ;;  %v13119_v19 = vrot.slane %v3727_v52, 7  ;;  %v3730_v55 = vshll.u32 %v3561_v25, 16  ;;  %v3744_v9 = vshrl.u32 %v3563_v18, 16 }
 0x3b6   : > { %v13124_v36 = vpack.c.bf16 %v3548_v49, %v3548_v49  ;;  %v13126_v47 = vpack.c.bf16 %v3549_v30, %v3549_v30  ;;  %v3715_v22 = vor.u32 %v3713_v26, %v13114_v20  ;;  %v3725_v13 = vrot.slane %v13116_v27, 4 }
 0x3b7   : > { %v13130_v46 = vpack.c.bf16 %v3550_v35, %v3550_v35  ;;  %v3732_v56 = vor.u32 %v3730_v55, %v13119_v19  ;;  %v13133_v23 = vrot.slane %v3736_v7, 7  ;;  %v13135_v24 = vrot.slane %v3744_v9, 7 }
 0x3b8   : > { %v13140_v41 = vpack.c.bf16 %v3551_v34, %v3551_v34  ;;  %v3716_v4 = vsel %vm13025_vm15, %v3708_v16, %v3715_v22  ;;  %v3747_v49 = vshll.u32 %v3563_v18, 16  ;;  %v3753_v30 = vshrl.u32 %v13071_v32, 16  ;;  %v11692_v34 = vld [vmem:[%s14872_s2 + $0x60] sm:$0xff] }
 0x3b9   : > { %v13145_v35 = vpack.c.bf16 %v3552_v37, %v3552_v37  ;;  %v13147_v57 = vpack.c.bf16 %v3553_v33, %v3553_v33  ;;  %v3733_v54 = vsel %vm13025_vm15, %v3725_v13, %v3732_v56  ;;  %v3742_v25 = vrot.slane %v13133_v23, 4  ;;  %4026 = vst [vmem:[#allocation4 + $0x10] sm:$0xf] %v3716_v4  ;;  %8202 = vmatpush.bf16.msrb.mxu2 %v11692_v34 }
 0x3ba   : > { %v13157_v18 = vpack.c.bf16 %v13056_v0, %v13056_v0  ;;  %v3749_v37 = vor.u32 %v3747_v49, %v13135_v24  ;;  %v13160_v39 = vrot.slane %v3753_v30, 7  ;;  %v3761_v33 = vshrl.u32 %v13073_v42, 16  ;;  %4033 = vst [vmem:[#allocation4 + $0x1c] sm:$0xf] %v3733_v54  ;;  %v11700_v0 = vld [vmem:[%s14872_s2 + $0xa0] sm:$0xff] }
 0x3bb   : > { %v13165_v2 = vpack.c.bf16 %v13059_v31, %v13059_v31  ;;  %v3705_v40 = vshll.u32 %v13062_v44, 16  ;;  %v3770_v5 = vshrl.u32 %v13075_v61, 16  ;;  %v3778_v21 = vshrl.u32 %v13077_v14, 16  ;;  %8291 = vmatpush.bf16.msrb.mxu3 %v11700_v0 }
 0x3bc   : > { %v3750_v52 = vsel %vm13025_vm15, %v3742_v25, %v3749_v37  ;;  %v3759_v63 = vrot.slane %v13160_v39, 4  ;;  %v13176_v26 = vrot.slane %v3761_v33, 7  ;;  %v3764_v31 = vshll.u32 %v13073_v42, 16  ;;  %v11691_v42 = vld [vmem:[%s14872_s2 + $0x58] sm:$0xff]  ;;  %v11690_v37 = vld [vmem:[%s14872_s2 + $0x50] sm:$0xff] }
 0x3bd   : > { %v13179_v7 = vrot.slane %v3770_v5, 7  ;;  %v13181_v44 = vrot.slane %v3778_v21, 7  ;;  %v3781_v16 = vshll.u32 %v13077_v14, 16  ;;  %v3787_v55 = vshrl.u32 %v13079_v17, 16  ;;  %4040 = vst [vmem:[#allocation4 + $0x28] sm:$0xf] %v3750_v52  ;;  %8203 = vmatpush.bf16.msrb.mxu2 %v11691_v42 }
 0x3be   : > { %v3722_v9 = vshll.u32 %v13064_v12, 16  ;;  %v3739_v1 = vshll.u32 %v13069_v43, 16  ;;  %v3766_v22 = vor.u32 %v3764_v31, %v13176_v26  ;;  %v3795_v13 = vshrl.u32 %v13084_v45, 16  ;;  %v11699_v12 = vld [vmem:[%s14872_s2 + $0x98] sm:$0xff] }
 0x3bf   : > { %v13192_v56 = vor.u32 %v3705_v40, %v3704_v50  ;;  %v3776_v14 = vrot.slane %v13179_v7, 4  ;;  %v3783_v15 = vor.u32 %v3781_v16, %v13181_v44  ;;  %v3798_v4 = vshll.u32 %v13084_v45, 16  ;;  %8292 = vmatpush.bf16.msrb.mxu3 %v11699_v12  ;;  %v11683_v31 = vld [vmem:[%s14872_s2 + $0x18] sm:$0xff] }
 0x3c0   : > { %v3767_v43 = vsel %vm13025_vm15, %v3759_v63, %v3766_v22  ;;  %v13202_v49 = vrot.slane %v3787_v55, 7  ;;  %v13204_v30 = vrot.slane %v3795_v13, 7  ;;  %v3804_v50 = vshrl.u32 %v13086_v38, 16  ;;  %8114 = vmatpush.bf16.msra.mxu1 %v11683_v31 }
 0x3c1   : > { %v13209_v25 = vor.u32 %v3722_v9, %v13116_v27  ;;  %v3784_v45 = vsel %vm13025_vm15, %v3776_v14, %v3783_v15  ;;  %v3812_v34 = vshrl.u32 %v13088_v58, 16  ;;  %4047 = vst [vmem:[#allocation4 + $0x34] sm:$0xf] %v3767_v43  ;;  %v3756_v40 = vshll.u32 %v13071_v32, 16  ;;  %v11698_v32 = vld [vmem:[%s14872_s2 + $0x90] sm:$0xff]  ;;  %8204 = vmatpush.bf16.msrb.mxu2 %v11690_v37 }
 0x3c2   : > { %v3793_v5 = vrot.slane %v13202_v49, 4  ;;  %v3800_v27 = vor.u32 %v3798_v4, %v13204_v30  ;;  %4054 = vst [vmem:[#allocation4 + $0x40] sm:$0xf] %v3784_v45  ;;  %v13221_v21 = vrot.slane %v3804_v50, 7  ;;  %v3815_v52 = vshll.u32 %v13088_v58, 16 }
 0x3c3   : > { %v13223_v0 = vrot.slane %v3812_v34, 7  ;;  %v3821_v63 = vshrl.u32 %v13090_v59, 16  ;;  %v13234_v16 = vor.u32 %v3739_v1, %v13133_v23  ;;  %v3829_v9 = vshrl.u32 %v13092_v10, 16  ;;  %8293 = vmatpush.bf16.msrb.mxu3 %v11698_v32  ;;  %v11689_v23 = vld [vmem:[%s14872_s2 + $0x48] sm:$0xff]  ;;  %v11682_v34 = vld [vmem:[%s14872_s2 + $0x10] sm:$0xff]  ;;  %v11688_v32 = vld [vmem:[%s14872_s2 + $0x40] sm:$0xff] }
 0x3c4   : > { %v3801_v55 = vsel %vm13025_vm15, %v3793_v5, %v3800_v27  ;;  %v3838_v58 = vshrl.u32 %v13094_v11, 16  ;;  %v3773_v13 = vshll.u32 %v13075_v61, 16  ;;  %v3810_v42 = vrot.slane %v13221_v21, 4  ;;  %8115 = vmatpush.bf16.msra.mxu1 %v11682_v34  ;;  %v13385_v37 = vld [vmem:[#allocation4 + $0x54] sm:$0xf] }
 0x3c5   : > { %v3817_v14 = vor.u32 %v3815_v52, %v13223_v0  ;;  %4061 = vst [vmem:[#allocation4 + $0x4c] sm:$0xf] %v3801_v55  ;;  %v13247_v1 = vrot.slane %v3821_v63, 7  ;;  %v13249_v15 = vrot.slane %v3829_v9, 7  ;;  %v3832_v4 = vshll.u32 %v13092_v10, 16  ;;  %v11697_v10 = vld [vmem:[%s14872_s2 + $0x88] sm:$0xff]  ;;  %8205 = vmatpush.bf16.msrb.mxu2 %v11689_v23 }
 0x3c6   : > { %v13252_v12 = vrot.slane %v3838_v58, 7  ;;  %v13255_v61 = vor.u32 %v3756_v40, %v13160_v39  ;;  %v3846_v50 = vshrl.u32 %v13096_v29, 16  ;;  %v3855_v45 = vshrl.u32 %v13102_v28, 16 }
 0x3c7   : > { %v3818_v43 = vsel %vm13025_vm15, %v3810_v42, %v3817_v14  ;;  %v3790_v39 = vshll.u32 %v13079_v17, 16  ;;  %v3827_v40 = vrot.slane %v13247_v1, 4  ;;  %v3834_v5 = vor.u32 %v3832_v4, %v13249_v15  ;;  %8294 = vmatpush.bf16.msrb.mxu3 %v11697_v10 }
 0x3c8   : > { %4068 = vst [vmem:[#allocation4 + $0x58] sm:$0xf] %v3818_v43  ;;  %v3844_v27 = vrot.slane %v13252_v12, 4  ;;  %v13272_v52 = vrot.slane %v3846_v50, 7  ;;  %v3849_v63 = vshll.u32 %v13096_v29, 16  ;;  %v3857_v31 = vrot.slane %v3855_v45, 7 }
 0x3c9   : > { %v13279_v17 = vor.u32 %v3773_v13, %v13179_v7  ;;  %v3835_v9 = vsel %vm13025_vm15, %v3827_v40, %v3834_v5  ;;  %v3863_v58 = vshrl.u32 %v13104_v8, 16  ;;  %v13286_v29 = vor.u32 %v3790_v39, %v13202_v49  ;;  %v11681_v7 = vld [vmem:[%s14872_s2 + $0x8] sm:$0xff]  ;;  %8206 = vmatpush.bf16.msrb.mxu2 %v11688_v32  ;;  %v11711_v49 = vld [vmem:[%s14872_s2 + $0xf8] sm:$0xff] }
 0x3ca   : > { %v3807_v42 = vshll.u32 %v13086_v38, 16  ;;  %v3851_v14 = vor.u32 %v3849_v63, %v13272_v52  ;;  %v3872_v23 = vshrl.u32 %v13107_v60, 16  ;;  %4075 = vst [vmem:[#allocation4 + $0x64] sm:$0xf] %v3835_v9  ;;  %v3861_v13 = vrot.slane %v3857_v31, 4  ;;  %v11696_v38 = vld [vmem:[%s14872_s2 + $0x80] sm:$0xff]  ;;  %8116 = vmatpush.bf16.msra.mxu1 %v11681_v7  ;;  %8377 = vmatpush.bf16.msrb.mxu0 %v11711_v49 }
 0x3cb   : > { %v13294_v4 = vrot.slane %v3863_v58, 7  ;;  %v3866_v43 = vshll.u32 %v13104_v8, 16  ;;  %v3880_v50 = vshrl.u32 %v13109_v48, 16  ;;  %v3889_v39 = vshrl.u32 %v13124_v36, 16  ;;  %8295 = vmatpush.bf16.msrb.mxu3 %v11696_v38 }
 0x3cc   : > { %v3852_v34 = vsel %vm13025_vm15, %v3844_v27, %v3851_v14  ;;  %v3874_v10 = vrot.slane %v3872_v23, 7  ;;  %v3824_v8 = vshll.u32 %v13090_v59, 16  ;;  %v3883_v63 = vshll.u32 %v13109_v48, 16  ;;  %v11680_v14 = vld [vmem:[%s14872_s2] sm:$0xff] }
 0x3cd   : > { %v3868_v40 = vor.u32 %v3866_v43, %v13294_v4  ;;  %v13310_v5 = vrot.slane %v3880_v50, 7  ;;  %4082 = vst [vmem:[#allocation4 + $0x70] sm:$0xf] %v3852_v34  ;;  %v3841_v32 = vshll.u32 %v13094_v11, 16  ;;  %v3891_v58 = vrot.slane %v3889_v39, 7 }
 0x3ce   : > { %v3878_v9 = vrot.slane %v3874_v10, 4  ;;  %v3897_v27 = vshrl.u32 %v13126_v47, 16  ;;  %v3858_v59 = vshll.u32 %v13102_v28, 16  ;;  %v3900_v7 = vshll.u32 %v13126_v47, 16  ;;  %8117 = vmatpush.bf16.msra.mxu1 %v11680_v14  ;;  %v11710_v28 = vld [vmem:[%s14872_s2 + $0xf0] sm:$0xff] }
 0x3cf   : > { %v3869_v23 = vsel %vm13025_vm15, %v3861_v13, %v3868_v40  ;;  %v3885_v48 = vor.u32 %v3883_v63, %v13310_v5  ;;  %v13324_v43 = vor.u32 %v3807_v42, %v13221_v21  ;;  %v3895_v11 = vrot.slane %v3891_v58, 4  ;;  %8378 = vmatpush.bf16.msrb.mxu0 %v11710_v28 }
 0x3d0   : > { %v13326_v50 = vrot.slane %v3897_v27, 7  ;;  %v3906_v38 = vshrl.u32 %v13130_v46, 16  ;;  %4089 = vst [vmem:[#allocation4 + $0x7c] sm:$0xf] %v3869_v23  ;;  %v13333_v13 = vor.u32 %v3824_v8, %v13247_v1  ;;  %v13336_v49 = vor.u32 %v3841_v32, %v13252_v12  ;;  %v11709_v1 = vld [vmem:[%s14872_s2 + $0xe8] sm:$0xff] }
 0x3d1   : > { %v3886_v47 = vsel %vm13025_vm15, %v3878_v9, %v3885_v48  ;;  %v3914_v21 = vshrl.u32 %v13140_v41, 16  ;;  %v13341_v42 = vor.u32 %v3858_v59, %v3857_v31  ;;  %v3923_v40 = vshrl.u32 %v13145_v35, 16  ;;  %v4023_v12 = vld [vmem:[#allocation4 + $0xc] sm:$0xf]  ;;  %v4027_v9 = vld [vmem:[#allocation4 + $0x14] sm:$0x1] }
 0x3d2   : > { %v3902_v34 = vor.u32 %v3900_v7, %v13326_v50  ;;  %v3908_v39 = vrot.slane %v3906_v38, 7  ;;  %4096 = vst [vmem:[#allocation4 + $0x88] sm:$0xf] %v3886_v47  ;;  %v3875_v8 = vshll.u32 %v13107_v60, 16  ;;  %v3917_v32 = vshll.u32 %v13140_v41, 16 }
 0x3d3   : > { %v13349_v63 = vrot.slane %v3914_v21, 7  ;;  %v3931_v31 = vshrl.u32 %v13147_v57, 16  ;;  %v3892_v27 = vshll.u32 %v13124_v36, 16  ;;  %v3925_v23 = vrot.slane %v3923_v40, 7  ;;  %v4030_v60 = vld [vmem:[#allocation4 + $0x18] sm:$0xf]  ;;  %8379 = vmatpush.bf16.msrb.mxu0 %v11709_v1 }
 0x3d4   : > { %v3903_v14 = vsel %vm13025_vm15, %v3895_v11, %v3902_v34  ;;  %v3912_v59 = vrot.slane %v3908_v39, 4  ;;  %v4034_v7 = vld [vmem:[#allocation4 + $0x20] sm:$0x1]  ;;  %v3934_v28 = vshll.u32 %v13147_v57, 16  ;;  %v3940_v36 = vshrl.u32 %v13157_v18, 16 }
 0x3d5   : > { %v3919_v41 = vor.u32 %v3917_v32, %v13349_v63  ;;  %v13363_v38 = vrot.slane %v3931_v31, 7  ;;  %4103 = vst [vmem:[#allocation4 + $0x94] sm:$0xf] %v3903_v14  ;;  %v4037_v11 = vld [vmem:[#allocation4 + $0x24] sm:$0xf]  ;;  %v13369_v34 = vor.u32 %v3875_v8, %v3874_v10  ;;  %v13371_v40 = vor.u32 %v3892_v27, %v3891_v58 }
 0x3d6   : > { %v4041_v47 = vld [vmem:[#allocation4 + $0x2c] sm:$0x1]  ;;  %v13367_v21 = vld [vmem:[#allocation4 + $0x30] sm:$0xf]  ;;  %v3929_v45 = vrot.slane %v3925_v23, 4  ;;  %v3948_v55 = vshrl.u32 %v13165_v2, 16  ;;  %v13395_v54 = vor.u32 %v3960_v62, %v13021_v51 }
 0x3d7   : > { %v11708_v32 = vld [vmem:[%s14872_s2 + $0xe0] sm:$0xff]  ;;  %v13377_v57 = vld [vmem:[#allocation4 + $0x3c] sm:$0xf]  ;;  %v13379_v31 = vld [vmem:[#allocation4 + $0x48] sm:$0xf]  ;;  %v3909_v14 = vshll.u32 %v13130_v46, 16  ;;  %v3920_v10 = vsel %vm13025_vm15, %v3912_v59, %v3919_v41  ;;  %v3936_v58 = vor.u32 %v3934_v28, %v13363_v38  ;;  %v4024_v46 = vsel %vm13358_vm1, %v13192_v56, %v4023_v12 }
 0x3d8   : > { %v3942_v8 = vrot.slane %v3940_v36, 7  ;;  %v4048_v27 = vld [vmem:[#allocation4 + $0x38] sm:$0x1]  ;;  %v13387_v1 = vld [vmem:[#allocation4 + $0x60] sm:$0xf]  ;;  %v13389_v22 = vrot.slane %v3948_v55, 7  ;;  %8380 = vmatpush.bf16.msrb.mxu0 %v11708_v32 }
 0x3d9   : > { %v3951_v33 = vshll.u32 %v13165_v2, 16  ;;  %4110 = vst [vmem:[#allocation4 + $0xa0] sm:$0xf] %v3920_v10  ;;  %v13400_v59 = vld [vmem:[#allocation4 + $0x6c] sm:$0xf]  ;;  %v13404_v28 = vor.u32 %v3909_v14, %v3908_v39  ;;  %v13408_v55 = vsel %vm13025_vm15, %v3929_v45, %v3936_v58  ;;  %v14925_v3 = vrot.slane %v13114_v20, 4 }
 0x3da   : > { %v13402_v41 = vld [vmem:[#allocation4 + $0x78] sm:$0xf]  ;;  %v3946_v2 = vrot.slane %v3942_v8, 4  ;;  %4025 = vst [vmem:[#allocation4 + $0xc] sm:$0xf] %v4024_v46  ;;  %v3926_v12 = vshll.u32 %v13145_v35, 16  ;;  %v4031_v45 = vsel %vm13358_vm1, %v13209_v25, %v4030_v60  ;;  %v4038_v35 = vsel %vm13358_vm1, %v13234_v16, %v4037_v11 }
 0x3db   : > { %v4028_v51 = vsel %vm12474_vm8, %v14925_v3, %v4027_v9  ;;  %v4055_v62 = vld [vmem:[#allocation4 + $0x44] sm:$0x1]  ;;  %v3953_v36 = vor.u32 %v3951_v33, %v13389_v22  ;;  %v14926_v39 = vrot.slane %v13119_v19, 4  ;;  %v13425_v14 = vld [vmem:[#allocation4 + $0x90] sm:$0xf]  ;;  %v3943_v9 = vshll.u32 %v13157_v18, 16 }
 0x3dc   : > { %v13414_v56 = vld [vmem:[#allocation4 + $0x84] sm:$0xf]  ;;  %4029 = vst [vmem:[#allocation4 + $0x14] sm:$0x1] %v4028_v51  ;;  %v14927_v33 = vrot.slane %v13135_v24, 4  ;;  %v4045_v19 = vsel %vm13358_vm1, %v13255_v61, %v13367_v21  ;;  %v13443_v18 = vor.u32 %v3926_v12, %v3925_v23  ;;  %v4052_v24 = vsel %vm13358_vm1, %v13279_v17, %v13377_v57 }
 0x3dd   : > { %v4035_v20 = vsel %vm12474_vm8, %v14926_v39, %v4034_v7  ;;  %4032 = vst [vmem:[#allocation4 + $0x18] sm:$0xf] %v4031_v45  ;;  %v4062_v60 = vld [vmem:[#allocation4 + $0x50] sm:$0x1]  ;;  %v13439_v7 = vld [vmem:[#allocation4 + $0x9c] sm:$0xf]  ;;  %v13447_v16 = vsel %vm13025_vm15, %v3946_v2, %v3953_v36  ;;  %v4059_v61 = vsel %vm13358_vm1, %v13286_v29, %v13379_v31  ;;  %v13461_v23 = vor.u32 %v3943_v9, %v3942_v8 }
 0x3de   : > { %v4042_v25 = vsel %vm12474_vm8, %v14927_v33, %v4041_v47  ;;  %v13441_v32 = vld [vmem:[#allocation4 + $0xa8] sm:$0xf]  ;;  %4036 = vst [vmem:[#allocation4 + $0x20] sm:$0x1] %v4035_v20  ;;  %v13457_v11 = vld [vmem:[#allocation4 + $0xb4] sm:$0xf]  ;;  %v4066_v17 = vsel %vm13358_vm1, %v13324_v43, %v13385_v37  ;;  %v4073_v29 = vsel %vm13358_vm1, %v13333_v13, %v13387_v1  ;;  %v4087_v10 = vsel %vm13358_vm1, %v13341_v42, %v13402_v41 }
 0x3df   : > { %v13459_v47 = vld [vmem:[#allocation4 + $0xc0] sm:$0xf]  ;;  %4039 = vst [vmem:[#allocation4 + $0x24] sm:$0xf] %v4038_v35  ;;  %v14928_v53 = vrot.slane %v13176_v26, 4  ;;  %v3819_v31 = vrot.slane %v13223_v0, 4  ;;  %v4080_v26 = vsel %vm13358_vm1, %v13336_v49, %v13400_v59  ;;  %v4094_v49 = vsel %vm13358_vm1, %v13369_v34, %v13414_v56 }
 0x3e0   : > { %v4069_v57 = vld [vmem:[#allocation4 + $0x5c] sm:$0x1]  ;;  %4043 = vst [vmem:[#allocation4 + $0x2c] sm:$0x1] %v4042_v25  ;;  %v14929_v0 = vrot.slane %v13181_v44, 4  ;;  %v4101_v42 = vsel %vm13358_vm1, %v13371_v40, %v13425_v14  ;;  %v4108_v44 = vsel %vm13358_vm1, %v13404_v28, %v13439_v7  ;;  %v3836_v46 = vrot.slane %v13249_v15, 4 }
 0x3e1   : > { %v4049_v21 = vsel %vm12474_vm8, %v14928_v53, %v4048_v27  ;;  %v11719_v37 = vld [vmem:[%s14872_s2 + $0x138] sm:$0xff]  ;;  %4046 = vst [vmem:[#allocation4 + $0x30] sm:$0xf] %v4045_v19  ;;  %v11536_v58 = vld [vmem:[#allocation2 + $0x4] sm:$0xf]  ;;  %v4115_v27 = vsel %vm13358_vm1, %v13443_v18, %v13441_v32  ;;  %v14930_v59 = vrot.slane %v13204_v30, 4  ;;  %v4122_v2 = vsel %vm13358_vm1, %v13461_v23, %v13457_v11 }
 0x3e2   : > { %v11707_v43 = vld [vmem:[%s14872_s2 + $0xd8] sm:$0xff]  ;;  %v4056_v13 = vsel %vm12474_vm8, %v14929_v0, %v4055_v62  ;;  %v10425_v8 = vld [vmem:[#allocation2 + $0x24] sm:$0xf0]  ;;  %4050 = vst [vmem:[#allocation4 + $0x38] sm:$0x1] %v4049_v21  ;;  %v4129_v3 = vsel %vm13358_vm1, %v13395_v54, %v13459_v47  ;;  %v3853_v62 = vrot.slane %v13272_v52, 4  ;;  %8466 = vmatpush.bf16.msrb.mxu1 %v11719_v37  ;;  %v4070_v15 = vsel %vm12474_vm8, %v3819_v31, %v4069_v57 }
 0x3e3   : > { %v10431_v1 = vld [vmem:[#allocation2 + $0x8] sm:$0xf]  ;;  %v11541_v34 = vld [vmem:[#allocation2 + $0x28] sm:$0xf0]  ;;  %4053 = vst [vmem:[#allocation4 + $0x3c] sm:$0xf] %v4052_v24  ;;  %v4063_v41 = vsel %vm12474_vm8, %v14930_v59, %v4062_v60  ;;  %8381 = vmatpush.bf16.msrb.mxu0 %v11707_v43  ;;  %v10428_v56 = vor.u32 %v11536_v58, %v10425_v8 }
 0x3e4   : > { %v4076_v51 = vld [vmem:[#allocation4 + $0x68] sm:$0x1]  ;;  %4057 = vst [vmem:[#allocation4 + $0x44] sm:$0x1] %v4056_v13  ;;  %v11706_v30 = vld [vmem:[%s14872_s2 + $0xd0] sm:$0xff]  ;;  %v10432_v12 = vor.u32 %v11541_v34, %v10431_v1  ;;  %v3870_v20 = vrot.slane %v13294_v4, 4 }
 0x3e5   : > { %4060 = vst [vmem:[#allocation4 + $0x48] sm:$0xf] %v4059_v61  ;;  %v10423_v36 = vld [vmem:[#allocation2] sm:$0xf]  ;;  %v11540_v45 = vld [vmem:[#allocation2 + $0x20] sm:$0xf0]  ;;  %v4077_v52 = vsel %vm12474_vm8, %v3836_v46, %v4076_v51  ;;  %8207 = vmatmul.bf16.vlgmr.msrb.gmra.mxu2 %v10428_v56 }
 0x3e6   : > { %v4083_v39 = vld [vmem:[#allocation4 + $0x74] sm:$0x1]  ;;  %4064 = vst [vmem:[#allocation4 + $0x50] sm:$0x1] %v4063_v41  ;;  %8296 = vmatmul.bf16.vlgmr.msrb.gmra.mxu3 %v10432_v12  ;;  %v4090_v9 = vld [vmem:[#allocation4 + $0x80] sm:$0x1]  ;;  %v10424_v35 = vor.u32 %v11540_v45, %v10423_v36 }
 0x3e7   : > { %4067 = vst [vmem:[#allocation4 + $0x54] sm:$0xf] %v4066_v17  ;;  %8382 = vmatpush.bf16.msrb.mxu0 %v11706_v30  ;;  %v11705_v33 = vld [vmem:[%s14872_s2 + $0xc8] sm:$0xff]  ;;  %v3887_v25 = vrot.slane %v13310_v5, 4  ;;  %v4084_v4 = vsel %vm12474_vm8, %v3853_v62, %v4083_v39  ;;  %v3904_v60 = vrot.slane %v13326_v50, 4  ;;  %v4091_v24 = vsel %vm12474_vm8, %v3870_v20, %v4090_v9  ;;  %v11704_v5 = vld [vmem:[%s14872_s2 + $0xc0] sm:$0xff] }
 0x3e8   : > { %4071 = vst [vmem:[#allocation4 + $0x5c] sm:$0x1] %v4070_v15  ;;  %v4097_v19 = vld [vmem:[#allocation4 + $0x8c] sm:$0x1]  ;;  %8118 = vmatmul.bf16.vlgmr.msra.gmra.mxu1 %v10424_v35  ;;  %v4104_v61 = vld [vmem:[#allocation4 + $0x98] sm:$0x1] }
 0x3e9   : > { %4074 = vst [vmem:[#allocation4 + $0x60] sm:$0xf] %v4073_v29  ;;  %v3921_v53 = vrot.slane %v13349_v63, 4  ;;  %v4098_v21 = vsel %vm12474_vm8, %v3887_v25, %v4097_v19  ;;  %v4202_v17 = vld [vmem:[#allocation4 + $0xc] sm:$0xf]  ;;  %v3938_v57 = vrot.slane %v13363_v38, 4  ;;  %v4105_v63 = vsel %vm12474_vm8, %v3904_v60, %v4104_v61 }
 0x3ea   : > { %4078 = vst [vmem:[#allocation4 + $0x68] sm:$0x1] %v4077_v52  ;;  %v4203_v29 = vld [vmem:[#allocation4 + $0x10] sm:$0xf]  ;;  %v4111_v50 = vld [vmem:[#allocation4 + $0xa4] sm:$0x1] }
 0x3eb   : > { %4081 = vst [vmem:[#allocation4 + $0x6c] sm:$0xf] %v4080_v26  ;;  %8383 = vmatpush.bf16.msrb.mxu0 %v11705_v33  ;;  %v4275_v31 = vshrl.u32 %v4202_v17, 16  ;;  %v4278_v26 = vshll.u32 %v4202_v17, 16  ;;  %v4702_v37 = vld [vmem:[#allocation4 + $0x10] sm:$0xf]  ;;  %v4112_v38 = vsel %vm12474_vm8, %v3921_v53, %v4111_v50 }
 0x3ec   : > { %4085 = vst [vmem:[#allocation4 + $0x74] sm:$0x1] %v4084_v4  ;;  %v4284_v43 = vshll.u32 %v4203_v29, 16  ;;  %v4118_v0 = vld [vmem:[#allocation4 + $0xb0] sm:$0x1]  ;;  %v4806_v58 = vrot.slane %v4702_v37, 5 }
 0x3ed   : > { %4088 = vst [vmem:[#allocation4 + $0x78] sm:$0xf] %v4087_v10  ;;  %v4288_v10 = vshrl.u32 %v4203_v29, 16  ;;  %v4125_v13 = vld [vmem:[#allocation4 + $0xbc] sm:$0x1]  ;;  %v4277_v8 = vrot.slane %v4275_v31, 4  ;;  %v4119_v40 = vsel %vm12474_vm8, %v3938_v57, %v4118_v0 }
 0x3ee   : > { %4092 = vst [vmem:[#allocation4 + $0x80] sm:$0x1] %v4091_v24  ;;  %v4280_v1 = vrot.slane %v4278_v26, 5  ;;  %v4701_v14 = vld [vmem:[#allocation4 + $0xc] sm:$0xe]  ;;  %v4808_v41 = vrot.slane %v4806_v58, 4 }
 0x3ef   : > { %4095 = vst [vmem:[#allocation4 + $0x84] sm:$0xf] %v4094_v49  ;;  %8384 = vmatpush.bf16.msrb.mxu0 %v11704_v5  ;;  %v3955_v49 = vrot.slane %v13389_v22, 4  ;;  %v4290_v34 = vrot.slane %v4288_v10, 4  ;;  %v4204_v22 = vld [vmem:[#allocation4 + $0x14] sm:$0x1] }
 0x3f0   : > { %4099 = vst [vmem:[#allocation4 + $0x8c] sm:$0x1] %v4098_v21  ;;  %v4205_v28 = vld [vmem:[#allocation4 + $0x18] sm:$0xf]  ;;  %v4703_v46 = vld [vmem:[#allocation4 + $0x14] sm:$0x1]  ;;  %v4281_v51 = vor.u32 %v4280_v1, %v4277_v8 }
 0x3f1   : > { %4102 = vst [vmem:[#allocation4 + $0x90] sm:$0xf] %v4101_v42  ;;  %v13565_v42 = vrot.slane %v4284_v43, 5  ;;  %v4126_v7 = vsel %vm12474_vm8, %v3955_v49, %v4125_v13  ;;  %v10374_v59 = vrot.slane %v4701_v14, 9  ;;  %v4206_v62 = vld [vmem:[#allocation4 + $0x1c] sm:$0xf] }
 0x3f2   : > { %4106 = vst [vmem:[#allocation4 + $0x98] sm:$0x1] %v4105_v63  ;;  %v4138_v32 = vld [vmem:[#allocation4 + $0x10] sm:$0xf]  ;;  %v13581_v18 = vld [vmem:[#allocation4 + $0x1c] sm:$0xf] }
 0x3f3   : > { %4109 = vst [vmem:[#allocation4 + $0x9c] sm:$0xf] %v4108_v44  ;;  %v4137_v44 = vld [vmem:[#allocation4 + $0xc] sm:$0xf]  ;;  %v4302_v6 = vshll.u32 %v4205_v28, 16  ;;  %v4294_v15 = vshll.u32 %v4204_v22, 16  ;;  %v4807_v19 = vsel %vm12101_vm5, %v10374_v59, %v4806_v58 }
 0x3f4   : > { %4113 = vst [vmem:[#allocation4 + $0xa4] sm:$0x1] %v4112_v38  ;;  %v4973_v30 = vld [vmem:[#allocation4 + $0xc] sm:$0xf]  ;;  %v11718_v56 = vld [vmem:[%s14872_s2 + $0x130] sm:$0xff]  ;;  %v4308_v12 = vshll.u32 %v4206_v62, 16 }
 0x3f5   : > { %4116 = vst [vmem:[#allocation4 + $0xa8] sm:$0xf] %v4115_v27  ;;  %v4299_v27 = vshrl.u32 %v4205_v28, 16  ;;  %v4312_v36 = vshrl.u32 %v4206_v62, 16  ;;  %v4974_v11 = vld [vmem:[#allocation4 + $0x10] sm:$0xf]  ;;  %8467 = vmatpush.bf16.msrb.mxu1 %v11718_v56 }
 0x3f6   : > { %4117 = vst [vmem:[#allocation4 + $0xac] sm:$0xf] %v13408_v55  ;;  %v4291_v55 = vor.u32 %v4290_v34, %v13565_v42  ;;  %v4704_v23 = vld [vmem:[#allocation4 + $0x18] sm:$0xe]  ;;  %v4304_v39 = vrot.slane %v4302_v6, 5  ;;  %v4813_v20 = vrot.slane %v13581_v18, 5 }
 0x3f7   : > { %4120 = vst [vmem:[#allocation4 + $0xb0] sm:$0x1] %v4119_v40  ;;  %v4301_v45 = vrot.slane %v4299_v27, 4  ;;  %v13593_v52 = vrot.slane %v4308_v12, 5  ;;  %v4314_v9 = vrot.slane %v4312_v36, 4  ;;  %v4809_v35 = vrot.slane %v4703_v46, 5 }
 0x3f8   : > { %4123 = vst [vmem:[#allocation4 + $0xb4] sm:$0xf] %v4122_v2  ;;  %v4207_v2 = vld [vmem:[#allocation4 + $0x20] sm:$0x1]  ;;  %v4292_v33 = vrot.slane %v4291_v55, 4  ;;  %v4296_v47 = vrot.slane %v4294_v15, 5 }
 0x3f9   : > { %4124 = vst [vmem:[#allocation4 + $0xb8] sm:$0xf] %v13447_v16  ;;  %v4282_v16 = vrot.slane %v4281_v51, 4  ;;  %v4706_v25 = vld [vmem:[#allocation4 + $0x20] sm:$0x1]  ;;  %v4318_v48 = vshll.u32 %v4207_v2, 16  ;;  %v4810_v54 = vsel %vm12101_vm5, %v4808_v41, %v4809_v35  ;;  %v4315_v60 = vor.u32 %v4314_v9, %v13593_v52 }
 0x3fa   : > { %4127 = vst [vmem:[#allocation4 + $0xbc] sm:$0x1] %v4126_v7  ;;  %v4139_v53 = vld [vmem:[#allocation4 + $0x18] sm:$0xf]  ;;  %v10375_v5 = vrot.slane %v4704_v23, 9  ;;  %v4815_v21 = vrot.slane %v4813_v20, 4  ;;  %v4297_v29 = vsel %vm11877_vm2, %v4292_v33, %v4296_v47 }
 0x3fb   : > { %4130 = vst [vmem:[#allocation4 + $0xc0] sm:$0xf] %v4129_v3  ;;  %v4305_v3 = vor.u32 %v4304_v39, %v4301_v45  ;;  %v4287_v61 = vsel %vm11877_vm2, %v4282_v16, %v13565_v42  ;;  %v4816_v17 = vrot.slane %v4706_v25, 5  ;;  %v4140_v50 = vld [vmem:[#allocation4 + $0x1c] sm:$0xf]  ;;  %v4320_v26 = vrot.slane %v4318_v48, 5 }
 0x3fc   : > { %4169 = vst [vmem:[#allocation2 + $0x48] sm:$0xf] %v4137_v44  ;;  %v13605_v57 = vld [vmem:[#allocation4 + $0x28] sm:$0xf]  ;;  %v4208_v63 = vld [vmem:[#allocation4 + $0x24] sm:$0xf]  ;;  %v4814_v7 = vsel %vm12101_vm5, %v10375_v5, %v4813_v20 }
 0x3fd   : > { %4170 = vst [vmem:[#allocation2 + $0x6c] sm:$0xf] %v4138_v32  ;;  %v4975_v31 = vld [vmem:[#allocation4 + $0x18] sm:$0xf]  ;;  %v4209_v37 = vld [vmem:[#allocation4 + $0x28] sm:$0xf]  ;;  %v4817_v41 = vsel %vm12101_vm5, %v4815_v21, %v4816_v17 }
 0x3fe   : > { %5005 = vst [vmem:[#allocation2 + $0xc] sm:$0xf] %v4973_v30  ;;  %v4323_v43 = vshrl.u32 %v4208_v63, 16  ;;  %v4976_v10 = vld [vmem:[#allocation4 + $0x1c] sm:$0xf]  ;;  %v4306_v0 = vrot.slane %v4305_v3, 4 }
 0x3ff   : > { %5006 = vst [vmem:[#allocation2 + $0x30] sm:$0xf] %v4974_v11  ;;  %v4316_v38 = vrot.slane %v4315_v60, 4  ;;  %v4326_v13 = vshll.u32 %v4208_v63, 16  ;;  %v4332_v49 = vshll.u32 %v4209_v37, 16  ;;  %v4336_v1 = vshrl.u32 %v4209_v37, 16 }
 0x400   : > { %4943 = vst [vmem:[#allocation2 + $0x50] sm:$0xf] %v4807_v19  ;;  %v4325_v8 = vrot.slane %v4323_v43, 4  ;;  %v4707_v14 = vld [vmem:[#allocation4 + $0x24] sm:$0xe]  ;;  %v4820_v44 = vrot.slane %v13605_v57, 5  ;;  %v4311_v32 = vsel %vm11877_vm2, %v4306_v0, %v13593_v52 }
 0x401   : > { %4944 = vst [vmem:[#allocation2 + $0x74] sm:$0xf] %v4810_v54  ;;  %v4328_v42 = vrot.slane %v4326_v13, 5  ;;  %v13607_v34 = vrot.slane %v4332_v49, 5  ;;  %v4338_v46 = vrot.slane %v4336_v1, 4  ;;  %v4321_v15 = vsel %vm11877_vm2, %v4316_v38, %v4320_v26 }
 0x402   : > { %4668 = vst [vmem:[#allocation2 + $0x4c] sm:$0xf] %v4287_v61  ;;  %v4210_v51 = vld [vmem:[#allocation4 + $0x2c] sm:$0x1]  ;;  %v4141_v55 = vld [vmem:[#allocation4 + $0x24] sm:$0xf] }
 0x403   : > { %v10459_v58 = vld [vmem:[#allocation2 + $0x48] sm:$0xf]  ;;  %4669 = vst [vmem:[#allocation2 + $0x70] sm:$0xf] %v4297_v29  ;;  %v4709_v18 = vld [vmem:[#allocation4 + $0x2c] sm:$0x1]  ;;  %v4329_v27 = vor.u32 %v4328_v42, %v4325_v8  ;;  %v4339_v12 = vor.u32 %v4338_v46, %v13607_v34 }
 0x404   : > { %v11549_v40 = vld [vmem:[#allocation2 + $0x68] sm:$0xf0]  ;;  %4171 = vst [vmem:[#allocation2 + $0x90] sm:$0xf] %v4139_v53  ;;  %v4142_v56 = vld [vmem:[#allocation4 + $0x28] sm:$0xf] }
 0x405   : > { %v10460_v22 = vor.u32 %v11549_v40, %v10459_v58  ;;  %v11537_v28 = vld [vmem:[#allocation2 + $0xc] sm:$0xf]  ;;  %4172 = vst [vmem:[#allocation2 + $0xb4] sm:$0xf] %v4140_v50  ;;  %v10376_v23 = vrot.slane %v4707_v14, 9  ;;  %v4342_v2 = vshll.u32 %v4210_v51, 16 }
 0x406   : > { %v10433_v59 = vld [vmem:[#allocation2 + $0x2c] sm:$0xf0]  ;;  %5007 = vst [vmem:[#allocation2 + $0x54] sm:$0xf] %v4975_v31  ;;  %v4822_v39 = vrot.slane %v4820_v44, 4  ;;  %v4330_v52 = vrot.slane %v4329_v27, 4 }
 0x407   : > { %8123 = vmatmul.bf16.gmra.mxu1 %v10460_v22  ;;  %v10436_v62 = vor.u32 %v11537_v28, %v10433_v59  ;;  %5008 = vst [vmem:[#allocation2 + $0x78] sm:$0xf] %v4976_v10  ;;  %v10467_v6 = vld [vmem:[#allocation2 + $0x50] sm:$0xf]  ;;  %v4977_v20 = vld [vmem:[#allocation4 + $0x24] sm:$0xf]  ;;  %v4821_v25 = vsel %vm12101_vm5, %v10376_v23, %v4820_v44 }
 0x408   : > { %v11550_v30 = vld [vmem:[#allocation2 + $0x70] sm:$0xf0]  ;;  %4945 = vst [vmem:[#allocation2 + $0x98] sm:$0xf] %v4814_v7  ;;  %v4978_v9 = vld [vmem:[#allocation4 + $0x28] sm:$0xf]  ;;  %v4335_v3 = vsel %vm11877_vm2, %v4330_v52, %v13607_v34 }
 0x409   : > { %8385 = vmatmul.bf16.vlgmr.msrb.gmra.mxu0 %v10436_v62  ;;  %v10468_v36 = vor.u32 %v11550_v30, %v10467_v6  ;;  %v11545_v11 = vld [vmem:[#allocation2 + $0x4c] sm:$0xf]  ;;  %4946 = vst [vmem:[#allocation2 + $0xbc] sm:$0xf] %v4817_v41  ;;  %v4823_v35 = vrot.slane %v4709_v18, 5  ;;  %v4340_v33 = vrot.slane %v4339_v12, 4 }
 0x40a   : > { %v10461_v45 = vld [vmem:[#allocation2 + $0x6c] sm:$0xf0]  ;;  %4670 = vst [vmem:[#allocation2 + $0x94] sm:$0xf] %v4311_v32  ;;  %v4344_v19 = vrot.slane %v4342_v2, 5  ;;  %v11717_v41 = vld [vmem:[%s14872_s2 + $0x128] sm:$0xff] }
 0x40b   : > { %8301 = vmatmul.bf16.gmra.mxu3 %v10468_v36  ;;  %v10464_v16 = vor.u32 %v11545_v11, %v10461_v45  ;;  %4671 = vst [vmem:[#allocation2 + $0xb8] sm:$0xf] %v4321_v15  ;;  %v4824_v48 = vsel %vm12101_vm5, %v4822_v39, %v4823_v35  ;;  %v4710_v54 = vld [vmem:[#allocation4 + $0x30] sm:$0xe]  ;;  %v4711_v47 = vld [vmem:[#allocation4 + $0x34] sm:$0xf]  ;;  %8468 = vmatpush.bf16.msrb.mxu1 %v11717_v41 }
 0x40c   : > { %4173 = vst [vmem:[#allocation2 + $0xd8] sm:$0xf] %v4141_v55  ;;  %v4143_v60 = vld [vmem:[#allocation4 + $0x30] sm:$0xf]  ;;  %v11558_v53 = vld [vmem:[#allocation2 + $0xb0] sm:$0xf0]  ;;  %v4345_v5 = vsel %vm11877_vm2, %v4340_v33, %v4344_v19 }
 0x40d   : > { %8212 = vmatmul.bf16.gmra.mxu2 %v10464_v16  ;;  %4174 = vst [vmem:[#allocation2 + $0xfc] sm:$0xf] %v4142_v56  ;;  %v10495_v61 = vld [vmem:[#allocation2 + $0x90] sm:$0xf]  ;;  %v4144_v21 = vld [vmem:[#allocation4 + $0x34] sm:$0xf] }
 0x40e   : > { %5009 = vst [vmem:[#allocation2 + $0x9c] sm:$0xf] %v4977_v20  ;;  %v4827_v17 = vrot.slane %v4711_v47, 5  ;;  %v4979_v29 = vld [vmem:[#allocation4 + $0x30] sm:$0xf]  ;;  %v10377_v57 = vrot.slane %v4710_v54, 9  ;;  %v10496_v38 = vor.u32 %v11558_v53, %v10495_v61 }
 0x40f   : > { %5010 = vst [vmem:[#allocation2 + $0xc0] sm:$0xf] %v4978_v9  ;;  %v4712_v50 = vld [vmem:[#allocation4 + $0x38] sm:$0x1]  ;;  %v11546_v63 = vld [vmem:[#allocation2 + $0x54] sm:$0xf] }
 0x410   : > { %4947 = vst [vmem:[#allocation2 + $0xe0] sm:$0xf] %v4821_v25  ;;  %v4980_v31 = vld [vmem:[#allocation4 + $0x34] sm:$0xf]  ;;  %v4829_v26 = vrot.slane %v4827_v17, 4  ;;  %v4830_v10 = vrot.slane %v4712_v50, 5  ;;  %v4828_v49 = vsel %vm12101_vm5, %v10377_v57, %v4827_v17 }
 0x411   : > { %4948 = vst [vmem:[#allocation2 + $0x104] sm:$0xf] %v4824_v48  ;;  %v10469_v37 = vld [vmem:[#allocation2 + $0x74] sm:$0xf0]  ;;  %v4211_v43 = vld [vmem:[#allocation4 + $0x30] sm:$0xf] }
 0x412   : > { %4672 = vst [vmem:[#allocation2 + $0xdc] sm:$0xf] %v4335_v3  ;;  %v4212_v0 = vld [vmem:[#allocation4 + $0x34] sm:$0xf]  ;;  %v11559_v13 = vld [vmem:[#allocation2 + $0xb8] sm:$0xf0]  ;;  %v4831_v1 = vsel %vm12101_vm5, %v4829_v26, %v4830_v10  ;;  %v10472_v42 = vor.u32 %v11546_v63, %v10469_v37 }
 0x413   : > { %4673 = vst [vmem:[#allocation2 + $0x100] sm:$0xf] %v4345_v5  ;;  %v10503_v58 = vld [vmem:[#allocation2 + $0x98] sm:$0xf]  ;;  %v11554_v8 = vld [vmem:[#allocation2 + $0x94] sm:$0xf] }
 0x414   : > { %4175 = vst [vmem:[#allocation2 + $0x120] sm:$0xf] %v4143_v60  ;;  %v4347_v40 = vshrl.u32 %v4211_v43, 16  ;;  %v4350_v14 = vshll.u32 %v4211_v43, 16  ;;  %v4213_v34 = vld [vmem:[#allocation4 + $0x38] sm:$0x1]  ;;  %v10504_v59 = vor.u32 %v11559_v13, %v10503_v58 }
 0x415   : > { %4176 = vst [vmem:[#allocation2 + $0x144] sm:$0xf] %v4144_v21  ;;  %v4356_v22 = vshll.u32 %v4212_v0, 16  ;;  %v4360_v28 = vshrl.u32 %v4212_v0, 16  ;;  %v10497_v7 = vld [vmem:[#allocation2 + $0xb4] sm:$0xf0] }
 0x416   : > { %5011 = vst [vmem:[#allocation2 + $0xe4] sm:$0xf] %v4979_v29  ;;  %v4349_v44 = vrot.slane %v4347_v40, 4  ;;  %v4352_v46 = vrot.slane %v4350_v14, 5  ;;  %v4366_v55 = vshll.u32 %v4213_v34, 16  ;;  %v10500_v27 = vor.u32 %v11554_v8, %v10497_v7 }
 0x417   : > { %8128 = vmatmul.bf16.gmra.mxu1 %v10496_v38  ;;  %5012 = vst [vmem:[#allocation2 + $0x108] sm:$0xf] %v4980_v31  ;;  %v4358_v51 = vrot.slane %v4356_v22, 5  ;;  %v4362_v32 = vrot.slane %v4360_v28, 4  ;;  %v4145_v18 = vld [vmem:[#allocation4 + $0x3c] sm:$0xf] }
 0x418   : > { %4949 = vst [vmem:[#allocation2 + $0x128] sm:$0xf] %v4828_v49  ;;  %v4353_v62 = vor.u32 %v4352_v46, %v4349_v44  ;;  %v4146_v6 = vld [vmem:[#allocation4 + $0x40] sm:$0xf]  ;;  %v4981_v56 = vld [vmem:[#allocation4 + $0x3c] sm:$0xf] }
 0x419   : > { %8390 = vmatmul.bf16.gmra.mxu0 %v10472_v42  ;;  %4950 = vst [vmem:[#allocation2 + $0x14c] sm:$0xf] %v4831_v1  ;;  %v4363_v15 = vor.u32 %v4362_v32, %v4358_v51  ;;  %v4982_v12 = vld [vmem:[#allocation4 + $0x40] sm:$0xf]  ;;  %v4368_v23 = vrot.slane %v4366_v55, 5 }
 0x41a   : > { %4177 = vst [vmem:[#allocation2 + $0x168] sm:$0xf] %v4145_v18  ;;  %v4354_v30 = vrot.slane %v4353_v62, 4  ;;  %v4713_v2 = vld [vmem:[#allocation4 + $0x3c] sm:$0xe] }
 0x41b   : > { %8306 = vmatmul.bf16.gmra.mxu3 %v10504_v59  ;;  %4178 = vst [vmem:[#allocation2 + $0x18c] sm:$0xf] %v4146_v6  ;;  %v4364_v11 = vrot.slane %v4363_v15, 4  ;;  %v10531_v45 = vld [vmem:[#allocation2 + $0xd8] sm:$0xf]  ;;  %v10378_v9 = vrot.slane %v4713_v2, 9 }
 0x41c   : > { %v4359_v36 = vsel %vm11877_vm2, %v4354_v30, %v4358_v51  ;;  %5013 = vst [vmem:[#allocation2 + $0x12c] sm:$0xf] %v4981_v56  ;;  %v11567_v39 = vld [vmem:[#allocation2 + $0xf8] sm:$0xf0]  ;;  %v4714_v20 = vld [vmem:[#allocation4 + $0x40] sm:$0xf] }
 0x41d   : > { %8217 = vmatmul.bf16.gmra.mxu2 %v10500_v27  ;;  %4674 = vst [vmem:[#allocation2 + $0x124] sm:$0xf] %v4359_v36  ;;  %v4369_v16 = vsel %vm11877_vm2, %v4364_v11, %v4368_v23  ;;  %v4715_v52 = vld [vmem:[#allocation4 + $0x44] sm:$0x1]  ;;  %v4834_v35 = vrot.slane %v4714_v20, 5  ;;  %v10532_v21 = vor.u32 %v11567_v39, %v10531_v45 }
 0x41e   : > { %5014 = vst [vmem:[#allocation2 + $0x150] sm:$0xf] %v4982_v12  ;;  %v11555_v33 = vld [vmem:[#allocation2 + $0x9c] sm:$0xf]  ;;  %v10505_v25 = vld [vmem:[#allocation2 + $0xbc] sm:$0xf0] }
 0x41f   : > { %4675 = vst [vmem:[#allocation2 + $0x148] sm:$0xf] %v4369_v16  ;;  %v4214_v19 = vld [vmem:[#allocation4 + $0x3c] sm:$0xf]  ;;  %v4835_v48 = vsel %vm12101_vm5, %v10378_v9, %v4834_v35  ;;  %v4836_v54 = vrot.slane %v4834_v35, 4  ;;  %v4837_v47 = vrot.slane %v4715_v52, 5  ;;  %v10508_v37 = vor.u32 %v11555_v33, %v10505_v25 }
 0x420   : > { %v4215_v3 = vld [vmem:[#allocation4 + $0x40] sm:$0xf]  ;;  %v4371_v60 = vshrl.u32 %v4214_v19, 16  ;;  %4951 = vst [vmem:[#allocation2 + $0x170] sm:$0xf] %v4835_v48  ;;  %v4374_v53 = vshll.u32 %v4214_v19, 16 }
 0x421   : > { %v4216_v61 = vld [vmem:[#allocation4 + $0x44] sm:$0x1]  ;;  %v4380_v5 = vshll.u32 %v4215_v3, 16  ;;  %v4838_v17 = vsel %vm12101_vm5, %v4836_v54, %v4837_v47  ;;  %v4384_v50 = vshrl.u32 %v4215_v3, 16  ;;  %v10539_v57 = vld [vmem:[#allocation2 + $0xe0] sm:$0xf] }
 0x422   : > { %v4373_v29 = vrot.slane %v4371_v60, 4  ;;  %v11568_v63 = vld [vmem:[#allocation2 + $0x100] sm:$0xf0]  ;;  %4952 = vst [vmem:[#allocation2 + $0x194] sm:$0xf] %v4838_v17  ;;  %v4376_v31 = vrot.slane %v4374_v53, 5 }
 0x423   : > { %v4382_v26 = vrot.slane %v4380_v5, 5  ;;  %v11563_v43 = vld [vmem:[#allocation2 + $0xdc] sm:$0xf]  ;;  %v4386_v10 = vrot.slane %v4384_v50, 4  ;;  %v4390_v0 = vshll.u32 %v4216_v61, 16  ;;  %v10540_v8 = vor.u32 %v11568_v63, %v10539_v57 }
 0x424   : > { %v4147_v38 = vld [vmem:[#allocation4 + $0x48] sm:$0xf]  ;;  %v10533_v13 = vld [vmem:[#allocation2 + $0xfc] sm:$0xf0]  ;;  %v4377_v49 = vor.u32 %v4376_v31, %v4373_v29  ;;  %v4148_v58 = vld [vmem:[#allocation4 + $0x4c] sm:$0xf] }
 0x425   : > { %4179 = vst [vmem:[#allocation2 + $0x1b0] sm:$0xf] %v4147_v38  ;;  %v4387_v1 = vor.u32 %v4386_v10, %v4382_v26  ;;  %v4983_v40 = vld [vmem:[#allocation4 + $0x48] sm:$0xf]  ;;  %v4984_v14 = vld [vmem:[#allocation4 + $0x4c] sm:$0xf]  ;;  %v10536_v22 = vor.u32 %v11563_v43, %v10533_v13 }
 0x426   : > { %4180 = vst [vmem:[#allocation2 + $0x1d4] sm:$0xf] %v4148_v58  ;;  %v4378_v42 = vrot.slane %v4377_v49, 4  ;;  %v4716_v34 = vld [vmem:[#allocation4 + $0x48] sm:$0xe]  ;;  %v4392_v7 = vrot.slane %v4390_v0, 5 }
 0x427   : > { %8133 = vmatmul.bf16.gmra.mxu1 %v10532_v21  ;;  %5015 = vst [vmem:[#allocation2 + $0x174] sm:$0xf] %v4983_v40  ;;  %v4388_v28 = vrot.slane %v4387_v1, 4  ;;  %v10379_v44 = vrot.slane %v4716_v34, 9  ;;  %v4717_v59 = vld [vmem:[#allocation4 + $0x4c] sm:$0xf] }
 0x428   : > { %5016 = vst [vmem:[#allocation2 + $0x198] sm:$0xf] %v4984_v14  ;;  %v4383_v46 = vsel %vm11877_vm2, %v4378_v42, %v4382_v26  ;;  %v4718_v41 = vld [vmem:[#allocation4 + $0x50] sm:$0x1]  ;;  %v4217_v51 = vld [vmem:[#allocation4 + $0x48] sm:$0xf] }
 0x429   : > { %8395 = vmatmul.bf16.gmra.mxu0 %v10508_v37  ;;  %v4393_v62 = vsel %vm11877_vm2, %v4388_v28, %v4392_v7  ;;  %4676 = vst [vmem:[#allocation2 + $0x16c] sm:$0xf] %v4383_v46  ;;  %v4841_v32 = vrot.slane %v4717_v59, 5  ;;  %v4844_v55 = vrot.slane %v4718_v41, 5  ;;  %v4218_v18 = vld [vmem:[#allocation4 + $0x4c] sm:$0xf] }
 0x42a   : > { %4677 = vst [vmem:[#allocation2 + $0x190] sm:$0xf] %v4393_v62  ;;  %v4395_v30 = vshrl.u32 %v4217_v51, 16  ;;  %v4398_v15 = vshll.u32 %v4217_v51, 16  ;;  %v10567_v56 = vld [vmem:[#allocation2 + $0x120] sm:$0xf] }
 0x42b   : > { %8311 = vmatmul.bf16.gmra.mxu3 %v10540_v8  ;;  %v4842_v27 = vsel %vm12101_vm5, %v10379_v44, %v4841_v32  ;;  %v4843_v6 = vrot.slane %v4841_v32, 4  ;;  %v4219_v12 = vld [vmem:[#allocation4 + $0x50] sm:$0x1]  ;;  %v4404_v36 = vshll.u32 %v4218_v18, 16  ;;  %v4408_v11 = vshrl.u32 %v4218_v18, 16  ;;  %v11716_v38 = vld [vmem:[%s14872_s2 + $0x120] sm:$0xff] }
 0x42c   : > { %4953 = vst [vmem:[#allocation2 + $0x1b8] sm:$0xf] %v4842_v27  ;;  %v11576_v23 = vld [vmem:[#allocation2 + $0x140] sm:$0xf0]  ;;  %v4397_v45 = vrot.slane %v4395_v30, 4  ;;  %v4400_v39 = vrot.slane %v4398_v15, 5  ;;  %8469 = vmatpush.bf16.msrb.mxu1 %v11716_v38 }
 0x42d   : > { %8222 = vmatmul.bf16.gmra.mxu2 %v10536_v22  ;;  %v4845_v2 = vsel %vm12101_vm5, %v4843_v6, %v4844_v55  ;;  %v4149_v16 = vld [vmem:[#allocation4 + $0x54] sm:$0xf]  ;;  %v11564_v20 = vld [vmem:[#allocation2 + $0xe4] sm:$0xf]  ;;  %v4406_v52 = vrot.slane %v4404_v36, 5  ;;  %v4410_v9 = vrot.slane %v4408_v11, 4  ;;  %v10568_v47 = vor.u32 %v11576_v23, %v10567_v56 }
 0x42e   : > { %4954 = vst [vmem:[#allocation2 + $0x1dc] sm:$0xf] %v4845_v2  ;;  %v4401_v35 = vor.u32 %v4400_v39, %v4397_v45  ;;  %v4414_v33 = vshll.u32 %v4219_v12, 16  ;;  %v4150_v25 = vld [vmem:[#allocation4 + $0x58] sm:$0xf] }
 0x42f   : > { %4181 = vst [vmem:[#allocation2 + $0x1f8] sm:$0xf] %v4149_v16  ;;  %v10541_v19 = vld [vmem:[#allocation2 + $0x104] sm:$0xf0]  ;;  %v4411_v48 = vor.u32 %v4410_v9, %v4406_v52  ;;  %v4985_v54 = vld [vmem:[#allocation4 + $0x54] sm:$0xf] }
 0x430   : > { %4182 = vst [vmem:[#allocation2 + $0x21c] sm:$0xf] %v4150_v25  ;;  %v11577_v3 = vld [vmem:[#allocation2 + $0x148] sm:$0xf0]  ;;  %v4402_v60 = vrot.slane %v4401_v35, 4  ;;  %v4416_v17 = vrot.slane %v4414_v33, 5  ;;  %v10544_v50 = vor.u32 %v11564_v20, %v10541_v19 }
 0x431   : > { %v4986_v61 = vld [vmem:[#allocation4 + $0x58] sm:$0xf]  ;;  %v10575_v53 = vld [vmem:[#allocation2 + $0x128] sm:$0xf]  ;;  %v11572_v5 = vld [vmem:[#allocation2 + $0x124] sm:$0xf] }
 0x432   : > { %v4412_v21 = vrot.slane %v4411_v48, 4  ;;  %5017 = vst [vmem:[#allocation2 + $0x1bc] sm:$0xf] %v4985_v54  ;;  %v4719_v29 = vld [vmem:[#allocation4 + $0x54] sm:$0xe]  ;;  %v4407_v63 = vsel %vm11877_vm2, %v4402_v60, %v4406_v52  ;;  %v10576_v0 = vor.u32 %v11577_v3, %v10575_v53 }
 0x433   : > { %v10569_v57 = vld [vmem:[#allocation2 + $0x144] sm:$0xf0]  ;;  %5018 = vst [vmem:[#allocation2 + $0x1e0] sm:$0xf] %v4986_v61  ;;  %v4720_v31 = vld [vmem:[#allocation4 + $0x58] sm:$0xf] }
 0x434   : > { %v4417_v26 = vsel %vm11877_vm2, %v4412_v21, %v4416_v17  ;;  %4678 = vst [vmem:[#allocation2 + $0x1b4] sm:$0xf] %v4407_v63  ;;  %v4721_v37 = vld [vmem:[#allocation4 + $0x5c] sm:$0x1]  ;;  %v10380_v43 = vrot.slane %v4719_v29, 9  ;;  %v4848_v10 = vrot.slane %v4720_v31, 5  ;;  %v10572_v1 = vor.u32 %v11572_v5, %v10569_v57 }
 0x435   : > { %4679 = vst [vmem:[#allocation2 + $0x1d8] sm:$0xf] %v4417_v26  ;;  %v4851_v58 = vrot.slane %v4721_v37, 5  ;;  %v4220_v8 = vld [vmem:[#allocation4 + $0x54] sm:$0xf] }
 0x436   : > { %v4849_v13 = vsel %vm12101_vm5, %v10380_v43, %v4848_v10  ;;  %v4850_v49 = vrot.slane %v4848_v10, 4  ;;  %v4221_v40 = vld [vmem:[#allocation4 + $0x58] sm:$0xf]  ;;  %v4222_v42 = vld [vmem:[#allocation4 + $0x5c] sm:$0x1]  ;;  %v4419_v34 = vshrl.u32 %v4220_v8, 16 }
 0x437   : > { %8138 = vmatmul.bf16.gmra.mxu1 %v10568_v47  ;;  %4955 = vst [vmem:[#allocation2 + $0x200] sm:$0xf] %v4849_v13  ;;  %v4422_v22 = vshll.u32 %v4220_v8, 16  ;;  %v4428_v28 = vshll.u32 %v4221_v40, 16  ;;  %v4432_v7 = vshrl.u32 %v4221_v40, 16  ;;  %v4438_v62 = vshll.u32 %v4222_v42, 16 }
 0x438   : > { %v4852_v14 = vsel %vm12101_vm5, %v4850_v49, %v4851_v58  ;;  %v4151_v44 = vld [vmem:[#allocation4 + $0x60] sm:$0xf]  ;;  %v4421_v46 = vrot.slane %v4419_v34, 4  ;;  %v4152_v32 = vld [vmem:[#allocation4 + $0x64] sm:$0xf] }
 0x439   : > { %8400 = vmatmul.bf16.gmra.mxu0 %v10544_v50  ;;  %4956 = vst [vmem:[#allocation2 + $0x224] sm:$0xf] %v4852_v14  ;;  %v4424_v59 = vrot.slane %v4422_v22, 5  ;;  %v4430_v41 = vrot.slane %v4428_v28, 5  ;;  %v4434_v51 = vrot.slane %v4432_v7, 4  ;;  %v4440_v23 = vrot.slane %v4438_v62, 5 }
 0x43a   : > { %v10603_v55 = vld [vmem:[#allocation2 + $0x168] sm:$0xf]  ;;  %v11585_v18 = vld [vmem:[#allocation2 + $0x188] sm:$0xf0]  ;;  %4183 = vst [vmem:[#allocation2 + $0x240] sm:$0xf] %v4151_v44 }
 0x43b   : > { %8316 = vmatmul.bf16.gmra.mxu3 %v10576_v0  ;;  %v4425_v27 = vor.u32 %v4424_v59, %v4421_v46  ;;  %v11573_v6 = vld [vmem:[#allocation2 + $0x12c] sm:$0xf]  ;;  %v4435_v30 = vor.u32 %v4434_v51, %v4430_v41  ;;  %4184 = vst [vmem:[#allocation2 + $0x264] sm:$0xf] %v4152_v32  ;;  %v4987_v15 = vld [vmem:[#allocation4 + $0x60] sm:$0xf]  ;;  %v10604_v52 = vor.u32 %v11585_v18, %v10603_v55 }
 0x43c   : > { %v4988_v56 = vld [vmem:[#allocation4 + $0x64] sm:$0xf]  ;;  %v10577_v12 = vld [vmem:[#allocation2 + $0x14c] sm:$0xf0]  ;;  %5019 = vst [vmem:[#allocation2 + $0x204] sm:$0xf] %v4987_v15 }
 0x43d   : > { %8227 = vmatmul.bf16.gmra.mxu2 %v10572_v1  ;;  %v4426_v36 = vrot.slane %v4425_v27, 4  ;;  %v4436_v11 = vrot.slane %v4435_v30, 4  ;;  %5020 = vst [vmem:[#allocation2 + $0x228] sm:$0xf] %v4988_v56  ;;  %v4722_v2 = vld [vmem:[#allocation4 + $0x60] sm:$0xe]  ;;  %v10580_v19 = vor.u32 %v11573_v6, %v10577_v12 }
 0x43e   : > { %v11586_v45 = vld [vmem:[#allocation2 + $0x190] sm:$0xf0]  ;;  %v4723_v16 = vld [vmem:[#allocation4 + $0x64] sm:$0xf]  ;;  %v4724_v20 = vld [vmem:[#allocation4 + $0x68] sm:$0x1] }
 0x43f   : > { %v4431_v39 = vsel %vm11877_vm2, %v4426_v36, %v4430_v41  ;;  %v4441_v9 = vsel %vm11877_vm2, %v4436_v11, %v4440_v23  ;;  %v10381_v35 = vrot.slane %v4722_v2, 9  ;;  %v4855_v33 = vrot.slane %v4723_v16, 5  ;;  %v4223_v25 = vld [vmem:[#allocation4 + $0x60] sm:$0xf]  ;;  %v10611_v48 = vld [vmem:[#allocation2 + $0x170] sm:$0xf] }
 0x440   : > { %4680 = vst [vmem:[#allocation2 + $0x1fc] sm:$0xf] %v4431_v39  ;;  %v11581_v54 = vld [vmem:[#allocation2 + $0x16c] sm:$0xf]  ;;  %v4224_v47 = vld [vmem:[#allocation4 + $0x64] sm:$0xf]  ;;  %v10612_v57 = vor.u32 %v11586_v45, %v10611_v48 }
 0x441   : > { %4681 = vst [vmem:[#allocation2 + $0x220] sm:$0xf] %v4441_v9  ;;  %v4443_v3 = vshrl.u32 %v4223_v25, 16  ;;  %v10605_v60 = vld [vmem:[#allocation2 + $0x18c] sm:$0xf0]  ;;  %v4856_v61 = vsel %vm12101_vm5, %v10381_v35, %v4855_v33  ;;  %v4857_v53 = vrot.slane %v4855_v33, 4 }
 0x442   : > { %v4858_v5 = vrot.slane %v4724_v20, 5  ;;  %v4446_v21 = vshll.u32 %v4223_v25, 16  ;;  %4957 = vst [vmem:[#allocation2 + $0x248] sm:$0xf] %v4856_v61  ;;  %v4225_v17 = vld [vmem:[#allocation4 + $0x68] sm:$0x1]  ;;  %v10608_v10 = vor.u32 %v11581_v54, %v10605_v60 }
 0x443   : > { %v4445_v29 = vrot.slane %v4443_v3, 4  ;;  %v4452_v50 = vshll.u32 %v4224_v47, 16  ;;  %v4456_v26 = vshrl.u32 %v4224_v47, 16  ;;  %v4153_v37 = vld [vmem:[#allocation4 + $0x6c] sm:$0xf]  ;;  %v4462_v13 = vshll.u32 %v4225_v17, 16 }
 0x444   : > { %v4859_v63 = vsel %vm12101_vm5, %v4857_v53, %v4858_v5  ;;  %v4448_v31 = vrot.slane %v4446_v21, 5  ;;  %v4154_v49 = vld [vmem:[#allocation4 + $0x70] sm:$0xf]  ;;  %4185 = vst [vmem:[#allocation2 + $0x288] sm:$0xf] %v4153_v37  ;;  %v11715_v53 = vld [vmem:[%s14872_s2 + $0x118] sm:$0xff] }
 0x445   : > { %4958 = vst [vmem:[#allocation2 + $0x26c] sm:$0xf] %v4859_v63  ;;  %v4454_v43 = vrot.slane %v4452_v50, 5  ;;  %v4458_v38 = vrot.slane %v4456_v26, 4  ;;  %v4989_v1 = vld [vmem:[#allocation4 + $0x6c] sm:$0xf]  ;;  %8470 = vmatpush.bf16.msrb.mxu1 %v11715_v53 }
 0x446   : > { %v4449_v0 = vor.u32 %v4448_v31, %v4445_v29  ;;  %4186 = vst [vmem:[#allocation2 + $0x2ac] sm:$0xf] %v4154_v49  ;;  %v4990_v40 = vld [vmem:[#allocation4 + $0x70] sm:$0xf]  ;;  %v4725_v14 = vld [vmem:[#allocation4 + $0x6c] sm:$0xe] }
 0x447   : > { %8143 = vmatmul.bf16.gmra.mxu1 %v10604_v52  ;;  %v4459_v8 = vor.u32 %v4458_v38, %v4454_v43  ;;  %5021 = vst [vmem:[#allocation2 + $0x24c] sm:$0xf] %v4989_v1  ;;  %v4464_v22 = vrot.slane %v4462_v13, 5  ;;  %v10382_v28 = vrot.slane %v4725_v14, 9  ;;  %v10639_v7 = vld [vmem:[#allocation2 + $0x1b0] sm:$0xf] }
 0x448   : > { %v4450_v58 = vrot.slane %v4449_v0, 4  ;;  %5022 = vst [vmem:[#allocation2 + $0x270] sm:$0xf] %v4990_v40  ;;  %v4726_v44 = vld [vmem:[#allocation4 + $0x70] sm:$0xf] }
 0x449   : > { %8405 = vmatmul.bf16.gmra.mxu0 %v10580_v19  ;;  %v4460_v34 = vrot.slane %v4459_v8, 4  ;;  %v4727_v46 = vld [vmem:[#allocation4 + $0x74] sm:$0x1]  ;;  %v4862_v51 = vrot.slane %v4726_v44, 5  ;;  %v4226_v62 = vld [vmem:[#allocation4 + $0x6c] sm:$0xf] }
 0x44a   : > { %v4455_v42 = vsel %vm11877_vm2, %v4450_v58, %v4454_v43  ;;  %v11594_v59 = vld [vmem:[#allocation2 + $0x1d0] sm:$0xf0]  ;;  %v10613_v55 = vld [vmem:[#allocation2 + $0x194] sm:$0xf0]  ;;  %v4227_v18 = vld [vmem:[#allocation4 + $0x70] sm:$0xf] }
 0x44b   : > { %8321 = vmatmul.bf16.gmra.mxu3 %v10612_v57  ;;  %4682 = vst [vmem:[#allocation2 + $0x244] sm:$0xf] %v4455_v42  ;;  %v4465_v41 = vsel %vm11877_vm2, %v4460_v34, %v4464_v22  ;;  %v11582_v32 = vld [vmem:[#allocation2 + $0x174] sm:$0xf]  ;;  %v4863_v27 = vsel %vm12101_vm5, %v10382_v28, %v4862_v51  ;;  %v4864_v6 = vrot.slane %v4862_v51, 4  ;;  %v4865_v30 = vrot.slane %v4727_v46, 5 }
 0x44c   : > { %4683 = vst [vmem:[#allocation2 + $0x268] sm:$0xf] %v4465_v41  ;;  %v4228_v15 = vld [vmem:[#allocation4 + $0x74] sm:$0x1]  ;;  %v4467_v56 = vshrl.u32 %v4226_v62, 16  ;;  %v4470_v12 = vshll.u32 %v4226_v62, 16  ;;  %v10640_v23 = vor.u32 %v11594_v59, %v10639_v7  ;;  %v10616_v33 = vor.u32 %v11582_v32, %v10613_v55 }
 0x44d   : > { %8232 = vmatmul.bf16.gmra.mxu2 %v10608_v10  ;;  %4959 = vst [vmem:[#allocation2 + $0x290] sm:$0xf] %v4863_v27  ;;  %v4476_v36 = vshll.u32 %v4227_v18, 16  ;;  %v4480_v11 = vshrl.u32 %v4227_v18, 16  ;;  %v11595_v2 = vld [vmem:[#allocation2 + $0x1d8] sm:$0xf0]  ;;  %v4866_v45 = vsel %vm12101_vm5, %v4864_v6, %v4865_v30 }
 0x44e   : > { %v4469_v39 = vrot.slane %v4467_v56, 4  ;;  %v4155_v16 = vld [vmem:[#allocation4 + $0x78] sm:$0xf]  ;;  %v11590_v52 = vld [vmem:[#allocation2 + $0x1b4] sm:$0xf]  ;;  %v4472_v9 = vrot.slane %v4470_v12, 5 }
 0x44f   : > { %v10647_v20 = vld [vmem:[#allocation2 + $0x1b8] sm:$0xf]  ;;  %4960 = vst [vmem:[#allocation2 + $0x2b4] sm:$0xf] %v4866_v45  ;;  %v4478_v35 = vrot.slane %v4476_v36, 5  ;;  %v4482_v19 = vrot.slane %v4480_v11, 4 }
 0x450   : > { %v10641_v25 = vld [vmem:[#allocation2 + $0x1d4] sm:$0xf0]  ;;  %v4486_v48 = vshll.u32 %v4228_v15, 16  ;;  %v4156_v54 = vld [vmem:[#allocation4 + $0x7c] sm:$0xf]  ;;  %v4473_v47 = vor.u32 %v4472_v9, %v4469_v39  ;;  %v10648_v61 = vor.u32 %v11595_v2, %v10647_v20 }
 0x451   : > { %4187 = vst [vmem:[#allocation2 + $0x2d0] sm:$0xf] %v4155_v16  ;;  %v4991_v3 = vld [vmem:[#allocation4 + $0x78] sm:$0xf]  ;;  %v4992_v60 = vld [vmem:[#allocation4 + $0x7c] sm:$0xf]  ;;  %v4483_v5 = vor.u32 %v4482_v19, %v4478_v35  ;;  %v10644_v29 = vor.u32 %v11590_v52, %v10641_v25 }
 0x452   : > { %4188 = vst [vmem:[#allocation2 + $0x2f4] sm:$0xf] %v4156_v54  ;;  %v4474_v21 = vrot.slane %v4473_v47, 4  ;;  %v4728_v17 = vld [vmem:[#allocation4 + $0x78] sm:$0xe]  ;;  %v4488_v57 = vrot.slane %v4486_v48, 5 }
 0x453   : > { %5023 = vst [vmem:[#allocation2 + $0x294] sm:$0xf] %v4991_v3  ;;  %v4484_v50 = vrot.slane %v4483_v5, 4  ;;  %v10383_v63 = vrot.slane %v4728_v17, 9  ;;  %v4729_v26 = vld [vmem:[#allocation4 + $0x7c] sm:$0xf] }
 0x454   : > { %5024 = vst [vmem:[#allocation2 + $0x2b8] sm:$0xf] %v4992_v60  ;;  %v4479_v31 = vsel %vm11877_vm2, %v4474_v21, %v4478_v35  ;;  %v4730_v37 = vld [vmem:[#allocation4 + $0x80] sm:$0x1]  ;;  %v4229_v43 = vld [vmem:[#allocation4 + $0x78] sm:$0xf] }
 0x455   : > { %v4489_v10 = vsel %vm11877_vm2, %v4484_v50, %v4488_v57  ;;  %4684 = vst [vmem:[#allocation2 + $0x28c] sm:$0xf] %v4479_v31  ;;  %v4869_v0 = vrot.slane %v4729_v26, 5  ;;  %v4872_v38 = vrot.slane %v4730_v37, 5  ;;  %v4230_v13 = vld [vmem:[#allocation4 + $0x7c] sm:$0xf] }
 0x456   : > { %4685 = vst [vmem:[#allocation2 + $0x2b0] sm:$0xf] %v4489_v10  ;;  %v4491_v8 = vshrl.u32 %v4229_v43, 16  ;;  %v4494_v1 = vshll.u32 %v4229_v43, 16  ;;  %v10675_v40 = vld [vmem:[#allocation2 + $0x1f8] sm:$0xf] }
 0x457   : > { %8148 = vmatmul.bf16.gmra.mxu1 %v10640_v23  ;;  %v4870_v49 = vsel %vm12101_vm5, %v10383_v63, %v4869_v0  ;;  %v4871_v58 = vrot.slane %v4869_v0, 4  ;;  %v4231_v14 = vld [vmem:[#allocation4 + $0x80] sm:$0x1]  ;;  %v4500_v42 = vshll.u32 %v4230_v13, 16  ;;  %v4504_v34 = vshrl.u32 %v4230_v13, 16 }
 0x458   : > { %4961 = vst [vmem:[#allocation2 + $0x2d8] sm:$0xf] %v4870_v49  ;;  %v11603_v22 = vld [vmem:[#allocation2 + $0x218] sm:$0xf0]  ;;  %v4493_v7 = vrot.slane %v4491_v8, 4  ;;  %v4496_v44 = vrot.slane %v4494_v1, 5 }
 0x459   : > { %8410 = vmatmul.bf16.gmra.mxu0 %v10616_v33  ;;  %v4873_v28 = vsel %vm12101_vm5, %v4871_v58, %v4872_v38  ;;  %v4157_v46 = vld [vmem:[#allocation4 + $0x84] sm:$0xf]  ;;  %v11591_v59 = vld [vmem:[#allocation2 + $0x1bc] sm:$0xf]  ;;  %v4502_v41 = vrot.slane %v4500_v42, 5  ;;  %v4506_v51 = vrot.slane %v4504_v34, 4  ;;  %v10676_v30 = vor.u32 %v11603_v22, %v10675_v40 }
 0x45a   : > { %4962 = vst [vmem:[#allocation2 + $0x2fc] sm:$0xf] %v4873_v28  ;;  %v4497_v62 = vor.u32 %v4496_v44, %v4493_v7  ;;  %v4510_v32 = vshll.u32 %v4231_v14, 16  ;;  %v4158_v55 = vld [vmem:[#allocation4 + $0x88] sm:$0xf] }
 0x45b   : > { %8326 = vmatmul.bf16.gmra.mxu3 %v10648_v61  ;;  %4189 = vst [vmem:[#allocation2 + $0x318] sm:$0xf] %v4157_v46  ;;  %v10649_v18 = vld [vmem:[#allocation2 + $0x1dc] sm:$0xf0]  ;;  %v4507_v27 = vor.u32 %v4506_v51, %v4502_v41  ;;  %v4993_v6 = vld [vmem:[#allocation4 + $0x84] sm:$0xf] }
 0x45c   : > { %4190 = vst [vmem:[#allocation2 + $0x33c] sm:$0xf] %v4158_v55  ;;  %v11604_v15 = vld [vmem:[#allocation2 + $0x220] sm:$0xf0]  ;;  %v4498_v56 = vrot.slane %v4497_v62, 4  ;;  %v4512_v2 = vrot.slane %v4510_v32, 5  ;;  %v10652_v39 = vor.u32 %v11591_v59, %v10649_v18 }
 0x45d   : > { %8237 = vmatmul.bf16.gmra.mxu2 %v10644_v29  ;;  %v4994_v12 = vld [vmem:[#allocation4 + $0x88] sm:$0xf]  ;;  %v10683_v36 = vld [vmem:[#allocation2 + $0x200] sm:$0xf]  ;;  %v11599_v11 = vld [vmem:[#allocation2 + $0x1fc] sm:$0xf] }
 0x45e   : > { %v4508_v23 = vrot.slane %v4507_v27, 4  ;;  %5025 = vst [vmem:[#allocation2 + $0x2dc] sm:$0xf] %v4993_v6  ;;  %v4731_v45 = vld [vmem:[#allocation4 + $0x84] sm:$0xe]  ;;  %v4503_v20 = vsel %vm11877_vm2, %v4498_v56, %v4502_v41  ;;  %v10684_v19 = vor.u32 %v11604_v15, %v10683_v36 }
 0x45f   : > { %v10677_v16 = vld [vmem:[#allocation2 + $0x21c] sm:$0xf0]  ;;  %5026 = vst [vmem:[#allocation2 + $0x300] sm:$0xf] %v4994_v12  ;;  %v4732_v52 = vld [vmem:[#allocation4 + $0x88] sm:$0xf] }
 0x460   : > { %v4513_v9 = vsel %vm11877_vm2, %v4508_v23, %v4512_v2  ;;  %4686 = vst [vmem:[#allocation2 + $0x2d4] sm:$0xf] %v4503_v20  ;;  %v4733_v35 = vld [vmem:[#allocation4 + $0x8c] sm:$0x1]  ;;  %v10384_v33 = vrot.slane %v4731_v45, 9  ;;  %v4876_v25 = vrot.slane %v4732_v52, 5  ;;  %v10680_v5 = vor.u32 %v11599_v11, %v10677_v16 }
 0x461   : > { %4687 = vst [vmem:[#allocation2 + $0x2f8] sm:$0xf] %v4513_v9  ;;  %v4879_v60 = vrot.slane %v4733_v35, 5  ;;  %v4232_v61 = vld [vmem:[#allocation4 + $0x84] sm:$0xf] }
 0x462   : > { %v4877_v47 = vsel %vm12101_vm5, %v10384_v33, %v4876_v25  ;;  %v4878_v3 = vrot.slane %v4876_v25, 4  ;;  %v4233_v21 = vld [vmem:[#allocation4 + $0x88] sm:$0xf]  ;;  %v4234_v50 = vld [vmem:[#allocation4 + $0x8c] sm:$0x1]  ;;  %v4515_v57 = vshrl.u32 %v4232_v61, 16 }
 0x463   : > { %4963 = vst [vmem:[#allocation2 + $0x320] sm:$0xf] %v4877_v47  ;;  %v4518_v63 = vshll.u32 %v4232_v61, 16  ;;  %v4524_v26 = vshll.u32 %v4233_v21, 16  ;;  %v4528_v37 = vshrl.u32 %v4233_v21, 16  ;;  %v4534_v49 = vshll.u32 %v4234_v50, 16 }
 0x464   : > { %v4880_v29 = vsel %vm12101_vm5, %v4878_v3, %v4879_v60  ;;  %v4159_v43 = vld [vmem:[#allocation4 + $0x90] sm:$0xf]  ;;  %v4517_v10 = vrot.slane %v4515_v57, 4  ;;  %v4160_v58 = vld [vmem:[#allocation4 + $0x94] sm:$0xf] }
 0x465   : > { %v8119_v48 = vpop.f32.mrf.mxu1  ;;  %4964 = vst [vmem:[#allocation2 + $0x344] sm:$0xf] %v4880_v29  ;;  %v4520_v0 = vrot.slane %v4518_v63, 5  ;;  %v4526_v38 = vrot.slane %v4524_v26, 5  ;;  %v4530_v13 = vrot.slane %v4528_v37, 4  ;;  %v4536_v46 = vrot.slane %v4534_v49, 5 }
 0x466   : > { %v10711_v8 = vld [vmem:[#allocation2 + $0x240] sm:$0xf]  ;;  %v11612_v1 = vld [vmem:[#allocation2 + $0x260] sm:$0xf0]  ;;  %4191 = vst [vmem:[#allocation2 + $0x360] sm:$0xf] %v4159_v43 }
 0x467   : > { %8153 = vmatmul.bf16.gmra.mxu1 %v10676_v30  ;;  %v4521_v40 = vor.u32 %v4520_v0, %v4517_v10  ;;  %v4531_v14 = vor.u32 %v4530_v13, %v4526_v38  ;;  %4192 = vst [vmem:[#allocation2 + $0x384] sm:$0xf] %v4160_v58  ;;  %v4995_v42 = vld [vmem:[#allocation4 + $0x90] sm:$0xf]  ;;  %v4996_v34 = vld [vmem:[#allocation4 + $0x94] sm:$0xf]  ;;  %v10712_v55 = vor.u32 %v11612_v1, %v10711_v8 }
 0x468   : > { %v8208_v54 = vpop.f32.mrf.mxu2  ;;  %v11600_v22 = vld [vmem:[#allocation2 + $0x204] sm:$0xf]  ;;  %v10685_v28 = vld [vmem:[#allocation2 + $0x224] sm:$0xf0]  ;;  %5027 = vst [vmem:[#allocation2 + $0x324] sm:$0xf] %v4995_v42 }
 0x469   : > { %8415 = vmatmul.bf16.gmra.mxu0 %v10652_v39  ;;  %v8209_v53 = vadd.f32 %v8208_v54, %v8119_v48  ;;  %v8297_v17 = vpop.f32.mrf.mxu3  ;;  %v4522_v7 = vrot.slane %v4521_v40, 4  ;;  %v4532_v44 = vrot.slane %v4531_v14, 4  ;;  %5028 = vst [vmem:[#allocation2 + $0x348] sm:$0xf] %v4996_v34  ;;  %v4734_v59 = vld [vmem:[#allocation4 + $0x90] sm:$0xe]  ;;  %v10688_v36 = vor.u32 %v11600_v22, %v10685_v28 }
 0x46a   : > { %v11613_v41 = vld [vmem:[#allocation2 + $0x268] sm:$0xf0]  ;;  %v4735_v62 = vld [vmem:[#allocation4 + $0x94] sm:$0xf]  ;;  %v4736_v32 = vld [vmem:[#allocation4 + $0x98] sm:$0x1] }
 0x46b   : > { %8331 = vmatmul.bf16.gmra.mxu3 %v10684_v19  ;;  %v13698_v31 = vadd.f32 %v8297_v17, %v8209_v53  ;;  %v4527_v51 = vsel %vm11877_vm2, %v4522_v7, %v4526_v38  ;;  %v4537_v18 = vsel %vm11877_vm2, %v4532_v44, %v4536_v46  ;;  %v10385_v27 = vrot.slane %v4734_v59, 9  ;;  %v4235_v6 = vld [vmem:[#allocation4 + $0x90] sm:$0xf]  ;;  %v10719_v30 = vld [vmem:[#allocation2 + $0x248] sm:$0xf] }
 0x46c   : > { %4688 = vst [vmem:[#allocation2 + $0x31c] sm:$0xf] %v4527_v51  ;;  %v11608_v15 = vld [vmem:[#allocation2 + $0x244] sm:$0xf]  ;;  %v4883_v56 = vrot.slane %v4735_v62, 5  ;;  %v4886_v23 = vrot.slane %v4736_v32, 5  ;;  %v10720_v35 = vor.u32 %v11613_v41, %v10719_v30 }
 0x46d   : > { %8242 = vmatmul.bf16.gmra.mxu2 %v10680_v5  ;;  %4689 = vst [vmem:[#allocation2 + $0x340] sm:$0xf] %v4537_v18  ;;  %v4236_v12 = vld [vmem:[#allocation4 + $0x94] sm:$0xf]  ;;  %v10713_v11 = vld [vmem:[#allocation2 + $0x264] sm:$0xf0]  ;;  %v13711_v53 = vpop.f32.mrf.mxu1 }
 0x46e   : > { %v4539_v2 = vshrl.u32 %v4235_v6, 16  ;;  %v4542_v45 = vshll.u32 %v4235_v6, 16  ;;  %v4884_v39 = vsel %vm12101_vm5, %v10385_v27, %v4883_v56  ;;  %v4885_v16 = vrot.slane %v4883_v56, 4  ;;  %v4237_v20 = vld [vmem:[#allocation4 + $0x98] sm:$0x1]  ;;  %v11714_v33 = vld [vmem:[%s14872_s2 + $0x110] sm:$0xff] }
 0x46f   : > { %v4548_v52 = vshll.u32 %v4236_v12, 16  ;;  %v4552_v9 = vshrl.u32 %v4236_v12, 16  ;;  %4965 = vst [vmem:[#allocation2 + $0x368] sm:$0xf] %v4884_v39  ;;  %v10716_v3 = vor.u32 %v11608_v15, %v10713_v11  ;;  %8471 = vmatpush.bf16.msrb.mxu1 %v11714_v33  ;;  %v4558_v60 = vshll.u32 %v4237_v20, 16 }
 0x470   : > { %v4541_v25 = vrot.slane %v4539_v2, 4  ;;  %v4887_v19 = vsel %vm12101_vm5, %v4885_v16, %v4886_v23  ;;  %v4544_v48 = vrot.slane %v4542_v45, 5  ;;  %v4161_v61 = vld [vmem:[#allocation4 + $0x9c] sm:$0xf]  ;;  %v4162_v17 = vld [vmem:[#allocation4 + $0xa0] sm:$0xf] }
 0x471   : > { %v4550_v54 = vrot.slane %v4548_v52, 5  ;;  %v4554_v47 = vrot.slane %v4552_v9, 4  ;;  %4966 = vst [vmem:[#allocation2 + $0x38c] sm:$0xf] %v4887_v19  ;;  %v4560_v29 = vrot.slane %v4558_v60, 5  ;;  %v13729_v15 = vpop.f32.mrf.mxu3  ;;  %v13736_v9 = vpop.f32.mrf.mxu2 }
 0x472   : > { %v4545_v5 = vor.u32 %v4544_v48, %v4541_v25  ;;  %4193 = vst [vmem:[#allocation2 + $0x3a8] sm:$0xf] %v4161_v61  ;;  %v4997_v63 = vld [vmem:[#allocation4 + $0x9c] sm:$0xf]  ;;  %v4998_v26 = vld [vmem:[#allocation4 + $0xa0] sm:$0xf] }
 0x473   : > { %v4555_v21 = vor.u32 %v4554_v47, %v4550_v54  ;;  %4194 = vst [vmem:[#allocation2 + $0x3cc] sm:$0xf] %v4162_v17  ;;  %v4737_v37 = vld [vmem:[#allocation4 + $0x9c] sm:$0xe]  ;;  %v4738_v43 = vld [vmem:[#allocation4 + $0xa0] sm:$0xf] }
 0x474   : > { %v4546_v50 = vrot.slane %v4545_v5, 4  ;;  %5029 = vst [vmem:[#allocation2 + $0x36c] sm:$0xf] %v4997_v63  ;;  %v10747_v10 = vld [vmem:[#allocation2 + $0x288] sm:$0xf]  ;;  %v10386_v58 = vrot.slane %v4737_v37, 9 }
 0x475   : > { %v4556_v57 = vrot.slane %v4555_v21, 4  ;;  %5030 = vst [vmem:[#allocation2 + $0x390] sm:$0xf] %v4998_v26  ;;  %v4739_v13 = vld [vmem:[#allocation4 + $0xa4] sm:$0x1]  ;;  %v4890_v8 = vrot.slane %v4738_v43, 5 }
 0x476   : > { %v4551_v0 = vsel %vm11877_vm2, %v4546_v50, %v4550_v54  ;;  %v11621_v49 = vld [vmem:[#allocation2 + $0x2a8] sm:$0xf0]  ;;  %v10721_v14 = vld [vmem:[#allocation2 + $0x26c] sm:$0xf0]  ;;  %v4238_v42 = vld [vmem:[#allocation4 + $0x9c] sm:$0xf] }
 0x477   : > { %8158 = vmatmul.bf16.gmra.mxu1 %v10712_v55  ;;  %v4561_v38 = vsel %vm11877_vm2, %v4556_v57, %v4560_v29  ;;  %4690 = vst [vmem:[#allocation2 + $0x364] sm:$0xf] %v4551_v0  ;;  %v13717_v1 = vld [vmem:[#allocation4 + $0xc] sm:$0xf]  ;;  %v4891_v34 = vsel %vm12101_vm5, %v10386_v58, %v4890_v8  ;;  %v4892_v22 = vrot.slane %v4890_v8, 4  ;;  %v4893_v28 = vrot.slane %v4739_v13, 5 }
 0x478   : > { %v11609_v40 = vld [vmem:[#allocation2 + $0x24c] sm:$0xf]  ;;  %4691 = vst [vmem:[#allocation2 + $0x388] sm:$0xf] %v4561_v38  ;;  %v4239_v7 = vld [vmem:[#allocation4 + $0xa0] sm:$0xf]  ;;  %v10748_v62 = vor.u32 %v11621_v49, %v10747_v10 }
 0x479   : > { %8420 = vmatmul.bf16.gmra.mxu0 %v10688_v36  ;;  %v4563_v44 = vshrl.u32 %v4238_v42, 16  ;;  %v13721_v46 = vld [vmem:[#allocation4 + $0x10] sm:$0xf]  ;;  %v11622_v41 = vld [vmem:[#allocation2 + $0x2b0] sm:$0xf0]  ;;  %v4894_v32 = vsel %vm12101_vm5, %v4892_v22, %v4893_v28  ;;  %v4566_v18 = vshll.u32 %v4238_v42, 16  ;;  %v10724_v39 = vor.u32 %v11609_v40, %v10721_v14 }
 0x47a   : > { %4967 = vst [vmem:[#allocation2 + $0x3b0] sm:$0xf] %v4891_v34  ;;  %v4240_v51 = vld [vmem:[#allocation4 + $0xa4] sm:$0x1]  ;;  %v4163_v27 = vld [vmem:[#allocation4 + $0xa8] sm:$0xf] }
 0x47b   : > { %8336 = vmatmul.bf16.gmra.mxu3 %v10720_v35  ;;  %v4565_v55 = vrot.slane %v4563_v44, 4  ;;  %v4164_v6 = vld [vmem:[#allocation4 + $0xac] sm:$0xf]  ;;  %v13727_v30 = vld [vmem:[#allocation4 + $0x10] sm:$0xf]  ;;  %v4572_v11 = vshll.u32 %v4239_v7, 16 }
 0x47c   : > { %v10755_v12 = vld [vmem:[#allocation2 + $0x290] sm:$0xf]  ;;  %v11617_v36 = vld [vmem:[#allocation2 + $0x28c] sm:$0xf]  ;;  %4968 = vst [vmem:[#allocation2 + $0x3d4] sm:$0xf] %v4894_v32 }
 0x47d   : > { %8247 = vmatmul.bf16.gmra.mxu2 %v10716_v3  ;;  %v4576_v23 = vshrl.u32 %v4239_v7, 16  ;;  %v5086_v2 = vshrl.u32 %v13717_v1, 16  ;;  %v10749_v16 = vld [vmem:[#allocation2 + $0x2ac] sm:$0xf0]  ;;  %v4568_v20 = vrot.slane %v4566_v18, 5  ;;  %v5089_v52 = vshll.u32 %v13717_v1, 16 }
 0x47e   : > { %4195 = vst [vmem:[#allocation2 + $0x3f0] sm:$0xf] %v4163_v27  ;;  %v4574_v35 = vrot.slane %v4572_v11, 5  ;;  %v4582_v25 = vshll.u32 %v4240_v51, 16  ;;  %v5095_v19 = vshll.u32 %v13721_v46, 16  ;;  %v5099_v48 = vshrl.u32 %v13721_v46, 16 }
 0x47f   : > { %v4578_v33 = vrot.slane %v4576_v23, 4  ;;  %4196 = vst [vmem:[#allocation2 + $0x414] sm:$0xf] %v4164_v6  ;;  %v13740_v54 = vld [vmem:[#allocation4 + $0x1c] sm:$0xf]  ;;  %v4569_v47 = vor.u32 %v4568_v20, %v4565_v55  ;;  %v5631_v21 = vrot.slane %v13727_v30, 5  ;;  %v10752_v17 = vor.u32 %v11617_v36, %v10749_v16 }
 0x480   : > { %v4999_v3 = vld [vmem:[#allocation4 + $0xa8] sm:$0xf]  ;;  %v5000_v61 = vld [vmem:[#allocation4 + $0xac] sm:$0xf]  ;;  %v4584_v26 = vrot.slane %v4582_v25, 5  ;;  %v13745_v10 = vrot.slane %v5086_v2, 4 }
 0x481   : > { %v4579_v60 = vor.u32 %v4578_v33, %v4574_v35  ;;  %5031 = vst [vmem:[#allocation2 + $0x3b4] sm:$0xf] %v4999_v3  ;;  %v4740_v5 = vld [vmem:[#allocation4 + $0xa8] sm:$0xe]  ;;  %v4570_v29 = vrot.slane %v4569_v47, 4  ;;  %v5928_v0 = vshll.u32 %v13740_v54, 16 }
 0x482   : > { %5032 = vst [vmem:[#allocation2 + $0x3d8] sm:$0xf] %v5000_v61  ;;  %v10387_v50 = vrot.slane %v4740_v5, 9  ;;  %v4741_v37 = vld [vmem:[#allocation4 + $0xac] sm:$0xf]  ;;  %v13750_v58 = vrot.slane %v5089_v52, 5 }
 0x483   : > { %v4580_v63 = vrot.slane %v4579_v60, 4  ;;  %v4742_v43 = vld [vmem:[#allocation4 + $0xb0] sm:$0x1]  ;;  %v4575_v38 = vsel %vm11877_vm2, %v4570_v29, %v4574_v35  ;;  %v4897_v13 = vrot.slane %v4741_v37, 5  ;;  %v4241_v49 = vld [vmem:[#allocation4 + $0xa8] sm:$0xf] }
 0x484   : > { %v13723_v59 = vpop.f32.mrf.mxu1  ;;  %v13752_v8 = vrot.slane %v5095_v19, 5  ;;  %4692 = vst [vmem:[#allocation2 + $0x3ac] sm:$0xf] %v4575_v38  ;;  %v4242_v42 = vld [vmem:[#allocation4 + $0xac] sm:$0xf]  ;;  %v4900_v28 = vrot.slane %v4742_v43, 5 }
 0x485   : > { %v4585_v14 = vsel %vm11877_vm2, %v4580_v63, %v4584_v26  ;;  %v4898_v34 = vsel %vm12101_vm5, %v10387_v50, %v4897_v13  ;;  %v4899_v22 = vrot.slane %v4897_v13, 4  ;;  %v4587_v7 = vshrl.u32 %v4241_v49, 16  ;;  %v4243_v51 = vld [vmem:[#allocation4 + $0xb0] sm:$0x1]  ;;  %v13760_v55 = vld [vmem:[#allocation4 + $0x18] sm:$0xf] }
 0x486   : > { %v8386_v56 = vpop.f32.mrf.mxu0  ;;  %4693 = vst [vmem:[#allocation2 + $0x3d0] sm:$0xf] %v4585_v14  ;;  %v4596_v32 = vshll.u32 %v4242_v42, 16  ;;  %v11630_v27 = vld [vmem:[#allocation2 + $0x2f0] sm:$0xf0]  ;;  %v4606_v52 = vshll.u32 %v4243_v51, 16 }
 0x487   : > { %v13733_v45 = vadd.f32 %v8386_v56, %v13698_v31  ;;  %8163 = vmatmul.bf16.gmra.mxu1 %v10748_v62  ;;  %v10756_v31 = vor.u32 %v11622_v41, %v10755_v12  ;;  %v10783_v41 = vld [vmem:[#allocation2 + $0x2d0] sm:$0xf]  ;;  %4969 = vst [vmem:[#allocation2 + $0x3f8] sm:$0xf] %v4898_v34  ;;  %v4590_v62 = vshll.u32 %v4241_v49, 16  ;;  %v4901_v6 = vsel %vm12101_vm5, %v4899_v22, %v4900_v28 }
 0x488   : > { %v4589_v56 = vrot.slane %v4587_v7, 4  ;;  %v4600_v12 = vshrl.u32 %v4242_v42, 16  ;;  %v4165_v36 = vld [vmem:[#allocation4 + $0xb4] sm:$0xf]  ;;  %v10757_v23 = vld [vmem:[#allocation2 + $0x2b4] sm:$0xf0]  ;;  %v10784_v3 = vor.u32 %v11630_v27, %v10783_v41  ;;  %v5092_v28 = vor.u32 %v13750_v58, %v13745_v10 }
 0x489   : > { %8425 = vmatmul.bf16.gmra.mxu0 %v10724_v39  ;;  %v11618_v11 = vld [vmem:[#allocation2 + $0x294] sm:$0xf]  ;;  %4970 = vst [vmem:[#allocation2 + $0x41c] sm:$0xf] %v4901_v6  ;;  %v4592_v2 = vrot.slane %v4590_v62, 5  ;;  %v4598_v39 = vrot.slane %v4596_v32, 5 }
 0x48a   : > { %v4602_v20 = vrot.slane %v4600_v12, 4  ;;  %v4166_v35 = vld [vmem:[#allocation4 + $0xb8] sm:$0xf]  ;;  %4197 = vst [vmem:[#allocation2 + $0x438] sm:$0xf] %v4165_v36  ;;  %v13773_v47 = vrot.slane %v5631_v21, 4  ;;  %v10760_v46 = vor.u32 %v11618_v11, %v10757_v23 }
 0x48b   : > { %8341 = vmatmul.bf16.gmra.mxu3 %v10756_v31  ;;  %4198 = vst [vmem:[#allocation2 + $0x45c] sm:$0xf] %v4166_v35  ;;  %v5001_v25 = vld [vmem:[#allocation4 + $0xb4] sm:$0xf]  ;;  %v5002_v19 = vld [vmem:[#allocation4 + $0xb8] sm:$0xf] }
 0x48c   : > { %v13743_v57 = vpop.f32.mrf.mxu1  ;;  %v13769_v31 = vrot.slane %v5099_v48, 4  ;;  %v11631_v60 = vld [vmem:[#allocation2 + $0x2f8] sm:$0xf0]  ;;  %v4603_v61 = vor.u32 %v4602_v20, %v4598_v39  ;;  %5033 = vst [vmem:[#allocation2 + $0x3fc] sm:$0xf] %v5001_v25  ;;  %v5919_v5 = vshrl.u32 %v13760_v55, 16 }
 0x48d   : > { %8252 = vmatmul.bf16.gmra.mxu2 %v10752_v17  ;;  %v10791_v50 = vld [vmem:[#allocation2 + $0x2d8] sm:$0xf]  ;;  %v11626_v63 = vld [vmem:[#allocation2 + $0x2d4] sm:$0xf]  ;;  %5034 = vst [vmem:[#allocation2 + $0x420] sm:$0xf] %v5002_v19 }
 0x48e   : > { %v13754_v1 = vpop.f32.mrf.mxu0  ;;  %v8302_v40 = vpop.f32.mrf.mxu3  ;;  %v10785_v48 = vld [vmem:[#allocation2 + $0x2f4] sm:$0xf0]  ;;  %v4604_v43 = vrot.slane %v4603_v61, 4  ;;  %v4608_v38 = vrot.slane %v4606_v52, 5  ;;  %v4743_v13 = vld [vmem:[#allocation4 + $0xb4] sm:$0xe]  ;;  %v5102_v20 = vor.u32 %v13769_v31, %v13752_v8 }
 0x48f   : > { %v5922_v49 = vshll.u32 %v13760_v55, 16  ;;  %v4744_v42 = vld [vmem:[#allocation4 + $0xb8] sm:$0xf]  ;;  %v4745_v34 = vld [vmem:[#allocation4 + $0xbc] sm:$0x1]  ;;  %v10388_v22 = vrot.slane %v4743_v13, 9  ;;  %v10788_v58 = vor.u32 %v11626_v63, %v10785_v48 }
 0x490   : > { %v8213_v44 = vpop.f32.mrf.mxu2  ;;  %v11713_v41 = vld [vmem:[%s14872_s2 + $0x108] sm:$0xff]  ;;  %v4609_v51 = vsel %vm11877_vm2, %v4604_v43, %v4608_v38  ;;  %v4904_v62 = vrot.slane %v4744_v42, 5  ;;  %v13789_v32 = vrot.slane %v5919_v5, 4  ;;  %v13793_v55 = vrot.slane %v5928_v0, 5  ;;  %v4245_v11 = vld [vmem:[#allocation4 + $0xb8] sm:$0xf] }
 0x491   : > { %v8214_v18 = vadd.f32 %v8213_v44, %v13723_v59  ;;  %v4593_v59 = vor.u32 %v4592_v2, %v4589_v56  ;;  %v10792_v44 = vor.u32 %v11631_v60, %v10791_v50  ;;  %v5932_v10 = vshrl.u32 %v13740_v54, 16  ;;  %4695 = vst [vmem:[#allocation2 + $0x418] sm:$0xf] %v4609_v51  ;;  %8472 = vmatpush.bf16.msrb.mxu1 %v11713_v41  ;;  %v4244_v56 = vld [vmem:[#allocation4 + $0xb4] sm:$0xf] }
 0x492   : > { %v4906_v27 = vrot.slane %v4904_v62, 4  ;;  %v4907_v6 = vrot.slane %v4745_v34, 5  ;;  %v5924_v12 = vrot.slane %v5922_v49, 5  ;;  %v5093_v0 = vrot.slane %v5092_v28, 4  ;;  %v5533_v23 = vld [vmem:[#allocation4 + $0xc] sm:$0xe] }
 0x493   : > { %v8303_v16 = vadd.f32 %v8302_v40, %v8214_v18  ;;  %v4594_v26 = vrot.slane %v4593_v59, 4  ;;  %v4905_v18 = vsel %vm12101_vm5, %v10388_v22, %v4904_v62  ;;  %v4246_v2 = vld [vmem:[#allocation4 + $0xbc] sm:$0x1]  ;;  %v13804_v52 = vrot.slane %v5932_v10, 4  ;;  %v10819_v63 = vld [vmem:[#allocation2 + $0x318] sm:$0xf] }
 0x494   : > { %v13765_v33 = vpop.f32.mrf.mxu1  ;;  %4971 = vst [vmem:[#allocation2 + $0x440] sm:$0xf] %v4905_v18  ;;  %v4908_v54 = vsel %vm12101_vm5, %v4906_v27, %v4907_v6  ;;  %v4620_v25 = vshll.u32 %v4245_v11, 16  ;;  %v4624_v19 = vshrl.u32 %v4245_v11, 16  ;;  %v5098_v31 = vsel %vm11877_vm2, %v5093_v0, %v13752_v8  ;;  %v5039_v13 = vld [vmem:[#allocation4 + $0x14] sm:$0x1] }
 0x495   : > { %v4599_v14 = vsel %vm11877_vm2, %v4594_v26, %v4598_v39  ;;  %v4611_v39 = vshrl.u32 %v4244_v56, 16  ;;  %4972 = vst [vmem:[#allocation2 + $0x464] sm:$0xf] %v4908_v54  ;;  %v11639_v26 = vld [vmem:[#allocation2 + $0x338] sm:$0xf0]  ;;  %v5103_v49 = vrot.slane %v5102_v20, 4 }
 0x496   : > { %v8391_v17 = vpop.f32.mrf.mxu0  ;;  %v8304_v29 = vpop.f32.mrf.mxu3  ;;  %4694 = vst [vmem:[#allocation2 + $0x3f4] sm:$0xf] %v4599_v14  ;;  %v4626_v48 = vrot.slane %v4624_v19, 4  ;;  %v11627_v14 = vld [vmem:[#allocation2 + $0x2dc] sm:$0xf]  ;;  %v5105_v22 = vshll.u32 %v5039_v13, 16 }
 0x497   : > { %v13776_v37 = vadd.f32 %v8391_v17, %v8303_v16  ;;  %8168 = vmatmul.bf16.gmra.mxu1 %v10784_v3  ;;  %v4614_v16 = vshll.u32 %v4244_v56, 16  ;;  %v4630_v3 = vshll.u32 %v4246_v2, 16  ;;  %v4613_v61 = vrot.slane %v4611_v39, 4  ;;  %v5003_v17 = vld [vmem:[#allocation4 + $0xc0] sm:$0xf] }
 0x498   : > { %v8215_v40 = vpop.f32.mrf.mxu2  ;;  %5035 = vst [vmem:[#allocation2 + $0x444] sm:$0xf] %v5003_v17  ;;  %v10793_v42 = vld [vmem:[#allocation2 + $0x2fc] sm:$0xf0]  ;;  %v5806_v28 = vld [vmem:[#allocation4 + $0x18] sm:$0xf] }
 0x499   : > { %8430 = vmatmul.bf16.gmra.mxu0 %v10760_v46  ;;  %v8216_v7 = vadd.f32 %v8215_v40, %v13743_v57  ;;  %v4616_v5 = vrot.slane %v4614_v16, 5  ;;  %v4622_v46 = vrot.slane %v4620_v25, 5  ;;  %v5925_v40 = vor.u32 %v5924_v12, %v13789_v32  ;;  %v11640_v41 = vld [vmem:[#allocation2 + $0x340] sm:$0xf0]  ;;  %5501 = vst [vmem:[#allocation2 + $0x10] sm:$0xf] %v5098_v31 }
 0x49a   : > { %v4632_v62 = vrot.slane %v4630_v3, 5  ;;  %5838 = vst [vmem:[#allocation2 + $0x18] sm:$0xf] %v5806_v28  ;;  %v10820_v32 = vor.u32 %v11639_v26, %v10819_v63  ;;  %v11635_v18 = vld [vmem:[#allocation2 + $0x31c] sm:$0xf]  ;;  %v10796_v20 = vor.u32 %v11627_v14, %v10793_v42 }
 0x49b   : > { %8346 = vmatmul.bf16.gmra.mxu3 %v10792_v44  ;;  %v8305_v57 = vadd.f32 %v8304_v29, %v8216_v7  ;;  %v5004_v29 = vld [vmem:[#allocation4 + $0xc4] sm:$0xf]  ;;  %v4617_v38 = vor.u32 %v4616_v5, %v4613_v61  ;;  %v4627_v34 = vor.u32 %v4626_v48, %v4622_v46  ;;  %v10389_v7 = vrot.slane %v5533_v23, 9  ;;  %v5535_v6 = vld [vmem:[#allocation4 + $0x14] sm:$0x1] }
 0x49c   : > { %v13798_v36 = vpop.f32.mrf.mxu1  ;;  %5036 = vst [vmem:[#allocation2 + $0x468] sm:$0xf] %v5004_v29  ;;  %v5926_v56 = vrot.slane %v5925_v40, 4  ;;  %v5634_v2 = vrot.slane %v5535_v6, 5  ;;  %v5040_v39 = vld [vmem:[#allocation4 + $0x18] sm:$0xf] }
 0x49d   : > { %8257 = vmatmul.bf16.gmra.mxu2 %v10788_v58  ;;  %v4618_v51 = vrot.slane %v4617_v38, 4  ;;  %v4628_v10 = vrot.slane %v4627_v34, 4  ;;  %v5107_v58 = vrot.slane %v5105_v22, 5  ;;  %v5632_v54 = vsel %vm12101_vm5, %v10389_v7, %v5631_v21  ;;  %v5041_v25 = vld [vmem:[#allocation4 + $0x1c] sm:$0xf] }
 0x49e   : > { %v8393_v35 = vpop.f32.mrf.mxu0  ;;  %v8307_v59 = vpop.f32.mrf.mxu3  ;;  %v5635_v3 = vsel %vm12101_vm5, %v13773_v47, %v5634_v2  ;;  %v5042_v30 = vld [vmem:[#allocation4 + $0x20] sm:$0x1]  ;;  %v5110_v61 = vshrl.u32 %v5040_v39, 16  ;;  %v5113_v5 = vshll.u32 %v5040_v39, 16  ;;  %v5935_v21 = vor.u32 %v13804_v52, %v13793_v55  ;;  %5773 = vst [vmem:[#allocation2 + $0x14] sm:$0xf] %v5632_v54 }
 0x49f   : > { %v13806_v60 = vadd.f32 %v8393_v35, %v8305_v57  ;;  %v5807_v57 = vld [vmem:[#allocation4 + $0x1c] sm:$0xf]  ;;  %v4623_v27 = vsel %vm11877_vm2, %v4618_v51, %v4622_v46  ;;  %v4633_v0 = vsel %vm11877_vm2, %v4628_v10, %v4632_v62  ;;  %v5108_v23 = vsel %vm11877_vm2, %v5103_v49, %v5107_v58  ;;  %5774 = vst [vmem:[#allocation2 + $0x38] sm:$0xf] %v5635_v3  ;;  %v5808_v42 = vld [vmem:[#allocation4 + $0x24] sm:$0xf] }
 0x4a0   : > { %v8218_v50 = vpop.f32.mrf.mxu2  ;;  %5839 = vst [vmem:[#allocation2 + $0x3c] sm:$0xf] %v5807_v57  ;;  %v5119_v29 = vshll.u32 %v5041_v25, 16  ;;  %v5931_v63 = vsel %vm11877_vm2, %v5926_v56, %v13793_v55  ;;  %v5112_v46 = vrot.slane %v5110_v61, 4  ;;  %v5115_v47 = vrot.slane %v5113_v5, 5 }
 0x4a1   : > { %v8219_v43 = vadd.f32 %v8218_v50, %v13765_v33  ;;  %v10827_v33 = vld [vmem:[#allocation2 + $0x320] sm:$0xf]  ;;  %4696 = vst [vmem:[#allocation2 + $0x43c] sm:$0xf] %v4623_v27  ;;  %v5123_v50 = vshrl.u32 %v5041_v25, 16  ;;  %v5129_v38 = vshll.u32 %v5042_v30, 16 }
 0x4a2   : > { %v10828_v35 = vor.u32 %v11640_v41, %v10827_v33  ;;  %4697 = vst [vmem:[#allocation2 + $0x460] sm:$0xf] %v4633_v0  ;;  %v5121_v31 = vrot.slane %v5119_v29, 5  ;;  %v5116_v13 = vor.u32 %v5115_v47, %v5112_v46  ;;  %v5936_v40 = vrot.slane %v5935_v21, 4  ;;  %v5809_v28 = vld [vmem:[#allocation4 + $0x28] sm:$0xf] }
 0x4a3   : > { %v8308_v44 = vadd.f32 %v8307_v59, %v8219_v43  ;;  %v10821_v59 = vld [vmem:[#allocation2 + $0x33c] sm:$0xf0]  ;;  %5502 = vst [vmem:[#allocation2 + $0x34] sm:$0xf] %v5108_v23  ;;  %v5125_v43 = vrot.slane %v5123_v50, 4  ;;  %v5131_v41 = vrot.slane %v5129_v38, 5 }
 0x4a4   : > { %v13813_v8 = vpop.f32.mrf.mxu1  ;;  %v10824_v26 = vor.u32 %v11635_v18, %v10821_v59  ;;  %6334 = vst [vmem:[#allocation2 + $0x1c] sm:$0xf] %v5931_v63  ;;  %v5117_v22 = vrot.slane %v5116_v13, 4  ;;  %v10855_v33 = vld [vmem:[#allocation2 + $0x360] sm:$0xf] }
 0x4a5   : > { %v5126_v49 = vor.u32 %v5125_v43, %v5121_v31  ;;  %5840 = vst [vmem:[#allocation2 + $0x60] sm:$0xf] %v5808_v42  ;;  %v5536_v58 = vld [vmem:[#allocation4 + $0x18] sm:$0xe]  ;;  %v5537_v6 = vld [vmem:[#allocation4 + $0x1c] sm:$0xf] }
 0x4a6   : > { %v8396_v12 = vpop.f32.mrf.mxu0  ;;  %v8309_v11 = vpop.f32.mrf.mxu3  ;;  %v5122_v10 = vsel %vm11877_vm2, %v5117_v22, %v5121_v31  ;;  %5841 = vst [vmem:[#allocation2 + $0x84] sm:$0xf] %v5809_v28  ;;  %v5538_v56 = vld [vmem:[#allocation4 + $0x20] sm:$0x1]  ;;  %v11636_v23 = vld [vmem:[#allocation2 + $0x324] sm:$0xf] }
 0x4a7   : > { %v13825_v16 = vadd.f32 %v8396_v12, %v8308_v44  ;;  %8173 = vmatmul.bf16.gmra.mxu1 %v10820_v32  ;;  %v5127_v44 = vrot.slane %v5126_v49, 4  ;;  %v11648_v32 = vld [vmem:[#allocation2 + $0x380] sm:$0xf0]  ;;  %5503 = vst [vmem:[#allocation2 + $0x58] sm:$0xf] %v5122_v10  ;;  %v10390_v12 = vrot.slane %v5536_v58, 9 }
 0x4a8   : > { %v8220_v19 = vpop.f32.mrf.mxu2  ;;  %v10829_v54 = vld [vmem:[#allocation2 + $0x344] sm:$0xf0]  ;;  %v10856_v25 = vor.u32 %v11648_v32, %v10855_v33  ;;  %v11649_v21 = vld [vmem:[#allocation2 + $0x388] sm:$0xf0]  ;;  %v11644_v38 = vld [vmem:[#allocation2 + $0x364] sm:$0xf] }
 0x4a9   : > { %8435 = vmatmul.bf16.gmra.mxu0 %v10796_v20  ;;  %v8221_v17 = vadd.f32 %v8220_v19, %v13798_v36  ;;  %v5872_v36 = vld [vmem:[#allocation4 + $0x20] sm:$0x1]  ;;  %v5132_v18 = vsel %vm11877_vm2, %v5127_v44, %v5131_v41  ;;  %v5641_v20 = vrot.slane %v5538_v56, 5  ;;  %v5044_v59 = vld [vmem:[#allocation4 + $0x28] sm:$0xf]  ;;  %v10832_v46 = vor.u32 %v11636_v23, %v10829_v54 }
 0x4aa   : > { %v5938_v14 = vshll.u32 %v5872_v36, 16  ;;  %5504 = vst [vmem:[#allocation2 + $0x7c] sm:$0xf] %v5132_v18  ;;  %v5045_v19 = vld [vmem:[#allocation4 + $0x2c] sm:$0x1]  ;;  %v5143_v29 = vshll.u32 %v5044_v59, 16 }
 0x4ab   : > { %8351 = vmatmul.bf16.gmra.mxu3 %v10828_v35  ;;  %v8310_v48 = vadd.f32 %v8309_v11, %v8221_v17  ;;  %v5638_v11 = vrot.slane %v5537_v6, 5  ;;  %v5043_v35 = vld [vmem:[#allocation4 + $0x24] sm:$0xf]  ;;  %v5147_v50 = vshrl.u32 %v5044_v59, 16  ;;  %v5153_v63 = vshll.u32 %v5045_v19, 16  ;;  %v11735_v19 = vld [vmem:[%s14872_s2 + $0x1b8] sm:$0xff] }
 0x4ac   : > { %v13836_v52 = vpop.f32.mrf.mxu1  ;;  %v5940_v51 = vrot.slane %v5938_v14, 5  ;;  %v5134_v3 = vshrl.u32 %v5043_v35, 16  ;;  %v5137_v30 = vshll.u32 %v5043_v35, 16  ;;  %v10863_v47 = vld [vmem:[#allocation2 + $0x368] sm:$0xf]  ;;  %v5145_v36 = vrot.slane %v5143_v29, 5  ;;  %8644 = vmatpush.bf16.msra.mxu3 %v11735_v19 }
 0x4ad   : > { %8262 = vmatmul.bf16.gmra.mxu2 %v10824_v26  ;;  %v5640_v39 = vrot.slane %v5638_v11, 4  ;;  %v10857_v13 = vld [vmem:[#allocation2 + $0x384] sm:$0xf0]  ;;  %v5149_v49 = vrot.slane %v5147_v50, 4  ;;  %v10864_v14 = vor.u32 %v11649_v21, %v10863_v47  ;;  %v11712_v42 = vld [vmem:[%s14872_s2 + $0x100] sm:$0xff]  ;;  %v5155_v28 = vrot.slane %v5153_v63, 5 }
 0x4ae   : > { %v8398_v55 = vpop.f32.mrf.mxu0  ;;  %v8312_v34 = vpop.f32.mrf.mxu3  ;;  %v5941_v27 = vsel %vm11877_vm2, %v5936_v40, %v5940_v51  ;;  %v5139_v31 = vrot.slane %v5137_v30, 5  ;;  %v5874_v44 = vld [vmem:[#allocation4 + $0x28] sm:$0xf]  ;;  %v10860_v51 = vor.u32 %v11644_v38, %v10857_v13  ;;  %8473 = vmatpush.bf16.msrb.mxu1 %v11712_v42  ;;  %v5875_v33 = vld [vmem:[#allocation4 + $0x2c] sm:$0x1]  ;;  %v11734_v50 = vld [vmem:[%s14872_s2 + $0x1b0] sm:$0xff] }
 0x4af   : > { %v13838_v7 = vadd.f32 %v8398_v55, %v8310_v48  ;;  %6335 = vst [vmem:[#allocation2 + $0x40] sm:$0xf] %v5941_v27  ;;  %v5642_v17 = vsel %vm12101_vm5, %v5640_v39, %v5641_v20  ;;  %v5136_v48 = vrot.slane %v5134_v3, 4  ;;  %v5150_v22 = vor.u32 %v5149_v49, %v5145_v36  ;;  %v5810_v58 = vld [vmem:[#allocation4 + $0x30] sm:$0xf]  ;;  %v11727_v3 = vld [vmem:[%s14872_s2 + $0x178] sm:$0xff] }
 0x4b0   : > { %v8223_v62 = vpop.f32.mrf.mxu2  ;;  %5776 = vst [vmem:[#allocation2 + $0x80] sm:$0xf] %v5642_v17  ;;  %v5952_v18 = vshll.u32 %v5874_v44, 16  ;;  %v5956_v27 = vshrl.u32 %v5874_v44, 16  ;;  %v5811_v6 = vld [vmem:[#allocation4 + $0x34] sm:$0xf]  ;;  %8555 = vmatpush.bf16.msra.mxu2 %v11727_v3  ;;  %8645 = vmatpush.bf16.msra.mxu3 %v11734_v50 }
 0x4b1   : > { %v8224_v57 = vadd.f32 %v8223_v62, %v13813_v8  ;;  %v5639_v8 = vsel %vm12101_vm5, %v10390_v12, %v5638_v11  ;;  %v5140_v55 = vor.u32 %v5139_v31, %v5136_v48  ;;  %5842 = vst [vmem:[#allocation2 + $0xa8] sm:$0xf] %v5810_v58  ;;  %v5539_v11 = vld [vmem:[#allocation4 + $0x24] sm:$0xe]  ;;  %v5962_v20 = vshll.u32 %v5875_v33, 16 }
 0x4b2   : > { %5775 = vst [vmem:[#allocation2 + $0x5c] sm:$0xf] %v5639_v8  ;;  %v5954_v39 = vrot.slane %v5952_v18, 5  ;;  %v10891_v59 = vld [vmem:[#allocation2 + $0x3a8] sm:$0xf]  ;;  %v5958_v30 = vrot.slane %v5956_v27, 4 }
 0x4b3   : > { %v8313_v0 = vadd.f32 %v8312_v34, %v8224_v57  ;;  %v5873_v34 = vld [vmem:[#allocation4 + $0x24] sm:$0xf]  ;;  %v5141_v62 = vrot.slane %v5140_v55, 4  ;;  %5843 = vst [vmem:[#allocation2 + $0xcc] sm:$0xf] %v5811_v6  ;;  %v10391_v17 = vrot.slane %v5539_v11, 9 }
 0x4b4   : > { %v13847_v2 = vpop.f32.mrf.mxu1  ;;  %v5943_v10 = vshrl.u32 %v5873_v34, 16  ;;  %v5946_v32 = vshll.u32 %v5873_v34, 16  ;;  %v5540_v21 = vld [vmem:[#allocation4 + $0x28] sm:$0xf]  ;;  %v5959_v63 = vor.u32 %v5958_v30, %v5954_v39  ;;  %v5046_v48 = vld [vmem:[#allocation4 + $0x30] sm:$0xf] }
 0x4b5   : > { %v5146_v56 = vsel %vm11877_vm2, %v5141_v62, %v5145_v36  ;;  %v5645_v47 = vrot.slane %v5540_v21, 5  ;;  %v11645_v31 = vld [vmem:[#allocation2 + $0x36c] sm:$0xf]  ;;  %v5964_v13 = vrot.slane %v5962_v20, 5  ;;  %v5047_v49 = vld [vmem:[#allocation4 + $0x34] sm:$0xf] }
 0x4b6   : > { %v8401_v61 = vpop.f32.mrf.mxu0  ;;  %v8314_v5 = vpop.f32.mrf.mxu3  ;;  %v5945_v12 = vrot.slane %v5943_v10, 4  ;;  %5505 = vst [vmem:[#allocation2 + $0xa0] sm:$0xf] %v5146_v56  ;;  %v5948_v8 = vrot.slane %v5946_v32, 5  ;;  %v13877_v42 = vld [vmem:[#allocation2 + $0x3ac] sm:$0xf] }
 0x4b7   : > { %v13853_v26 = vadd.f32 %v8401_v61, %v8313_v0  ;;  %8178 = vmatmul.bf16.gmra.mxu1 %v10856_v25  ;;  %v11657_v25 = vld [vmem:[#allocation2 + $0x3c8] sm:$0xf0]  ;;  %v5646_v55 = vsel %vm12101_vm5, %v10391_v17, %v5645_v47  ;;  %v5647_v34 = vrot.slane %v5645_v47, 4  ;;  %v10899_v44 = vld [vmem:[#allocation2 + $0x3b0] sm:$0xf]  ;;  %v5158_v62 = vshrl.u32 %v5046_v48, 16 }
 0x4b8   : > { %v8225_v43 = vpop.f32.mrf.mxu2  ;;  %5777 = vst [vmem:[#allocation2 + $0xa4] sm:$0xf] %v5646_v55  ;;  %v5161_v33 = vshll.u32 %v5046_v48, 16  ;;  %v5167_v32 = vshll.u32 %v5047_v49, 16  ;;  %v5171_v18 = vshrl.u32 %v5047_v49, 16 }
 0x4b9   : > { %8440 = vmatmul.bf16.gmra.mxu0 %v10832_v46  ;;  %v8226_v40 = vadd.f32 %v8225_v43, %v13836_v52  ;;  %v5151_v52 = vrot.slane %v5150_v22, 4  ;;  %v5541_v46 = vld [vmem:[#allocation4 + $0x2c] sm:$0x1]  ;;  %v10865_v43 = vld [vmem:[#allocation2 + $0x38c] sm:$0xf0]  ;;  %v5160_v56 = vrot.slane %v5158_v62, 4 }
 0x4ba   : > { %v5648_v36 = vrot.slane %v5541_v46, 5  ;;  %v5876_v11 = vld [vmem:[#allocation4 + $0x30] sm:$0xf]  ;;  %v5877_v20 = vld [vmem:[#allocation4 + $0x34] sm:$0xf]  ;;  %v5169_v3 = vrot.slane %v5167_v32, 5 }
 0x4bb   : > { %8356 = vmatmul.bf16.gmra.mxu3 %v10864_v14  ;;  %v8315_v41 = vadd.f32 %v8314_v5, %v8226_v40  ;;  %v5156_v54 = vsel %vm11877_vm2, %v5151_v52, %v5155_v28  ;;  %v5949_v5 = vor.u32 %v5948_v8, %v5945_v12  ;;  %v11658_v14 = vld [vmem:[#allocation2 + $0x3d0] sm:$0xf0]  ;;  %v10892_v28 = vor.u32 %v11657_v25, %v10891_v59  ;;  %v5048_v52 = vld [vmem:[#allocation4 + $0x38] sm:$0x1]  ;;  %v11732_v46 = vld [vmem:[%s14872_s2 + $0x1a0] sm:$0xff] }
 0x4bc   : > { %v13859_v57 = vpop.f32.mrf.mxu1  ;;  %5506 = vst [vmem:[#allocation2 + $0xc4] sm:$0xf] %v5156_v54  ;;  %v5649_v58 = vsel %vm12101_vm5, %v5647_v34, %v5648_v36  ;;  %v5163_v12 = vrot.slane %v5161_v33, 5  ;;  %v10900_v54 = vor.u32 %v11658_v14, %v10899_v44  ;;  %v11726_v8 = vld [vmem:[%s14872_s2 + $0x170] sm:$0xff]  ;;  %v5173_v30 = vrot.slane %v5171_v18, 4  ;;  %v11724_v32 = vld [vmem:[%s14872_s2 + $0x160] sm:$0xff] }
 0x4bd   : > { %8267 = vmatmul.bf16.gmra.mxu2 %v10860_v51  ;;  %v5950_v38 = vrot.slane %v5949_v5, 4  ;;  %5778 = vst [vmem:[#allocation2 + $0xc8] sm:$0xf] %v5649_v58  ;;  %v11743_v5 = vld [vmem:[%s14872_s2 + $0x1f8] sm:$0xff]  ;;  %v5177_v21 = vshll.u32 %v5048_v52, 16  ;;  %v5970_v50 = vshll.u32 %v5876_v11, 16 }
 0x4be   : > { %v8403_v0 = vpop.f32.mrf.mxu0  ;;  %v8317_v23 = vpop.f32.mrf.mxu3  ;;  %v5164_v19 = vor.u32 %v5163_v12, %v5160_v56  ;;  %8556 = vmatpush.bf16.msra.mxu2 %v11726_v8  ;;  %v5878_v17 = vld [vmem:[#allocation4 + $0x38] sm:$0x1]  ;;  %v5976_v48 = vshll.u32 %v5877_v20, 16  ;;  %8733 = vmatpush.bf16.msra.mxu0 %v11743_v5  ;;  %v5812_v49 = vld [vmem:[#allocation4 + $0x3c] sm:$0xf]  ;;  %v11742_v52 = vld [vmem:[%s14872_s2 + $0x1f0] sm:$0xff] }
 0x4bf   : > { %v13865_v35 = vadd.f32 %v8403_v0, %v8315_v41  ;;  %v10893_v41 = vld [vmem:[#allocation2 + $0x3cc] sm:$0xf0]  ;;  %v5955_v51 = vsel %vm11877_vm2, %v5950_v38, %v5954_v39  ;;  %v11733_v39 = vld [vmem:[%s14872_s2 + $0x1a8] sm:$0xff]  ;;  %v5179_v38 = vrot.slane %v5177_v21, 5  ;;  %v5972_v36 = vrot.slane %v5970_v50, 5  ;;  %v11731_v18 = vld [vmem:[%s14872_s2 + $0x198] sm:$0xff] }
 0x4c0   : > { %v8228_v61 = vpop.f32.mrf.mxu2  ;;  %6336 = vst [vmem:[#allocation2 + $0x64] sm:$0xf] %v5955_v51  ;;  %v10896_v25 = vor.u32 %v13877_v42, %v10893_v41  ;;  %8646 = vmatpush.bf16.msra.mxu3 %v11733_v39  ;;  %v5165_v47 = vrot.slane %v5164_v19, 4  ;;  %v5813_v33 = vld [vmem:[#allocation4 + $0x40] sm:$0xf] }
 0x4c1   : > { %v8229_v29 = vadd.f32 %v8228_v61, %v13847_v2  ;;  %v5960_v2 = vrot.slane %v5959_v63, 4  ;;  %v11725_v63 = vld [vmem:[%s14872_s2 + $0x168] sm:$0xff]  ;;  %5844 = vst [vmem:[#allocation2 + $0xf0] sm:$0xf] %v5812_v49  ;;  %v10927_v56 = vld [vmem:[#allocation2 + $0x3f0] sm:$0xf] }
 0x4c2   : > { %v5170_v14 = vsel %vm11877_vm2, %v5165_v47, %v5169_v3  ;;  %8557 = vmatpush.bf16.msra.mxu2 %v11725_v63  ;;  %v11666_v12 = vld [vmem:[#allocation2 + $0x410] sm:$0xf0]  ;;  %8734 = vmatpush.bf16.msra.mxu0 %v11742_v52  ;;  %5845 = vst [vmem:[#allocation2 + $0x114] sm:$0xf] %v5813_v33  ;;  %v5051_v50 = vld [vmem:[#allocation4 + $0x44] sm:$0x1] }
 0x4c3   : > { %v8318_v40 = vadd.f32 %v8317_v23, %v8229_v29  ;;  %v5965_v10 = vsel %vm11877_vm2, %v5960_v2, %v5964_v13  ;;  %v10868_v23 = vor.u32 %v11645_v31, %v10865_v43  ;;  %v5967_v29 = vshrl.u32 %v5876_v11, 16  ;;  %5507 = vst [vmem:[#allocation2 + $0xe8] sm:$0xf] %v5170_v14  ;;  %v11741_v11 = vld [vmem:[%s14872_s2 + $0x1e8] sm:$0xff]  ;;  %v5543_v19 = vld [vmem:[#allocation4 + $0x34] sm:$0xf] }
 0x4c4   : > { %v13881_v22 = vpop.f32.mrf.mxu1  ;;  %6337 = vst [vmem:[#allocation2 + $0x88] sm:$0xf] %v5965_v10  ;;  %v5980_v31 = vshrl.u32 %v5877_v20, 16  ;;  %v5978_v2 = vrot.slane %v5976_v48, 5  ;;  %8647 = vmatpush.bf16.msra.mxu3 %v11732_v46  ;;  %v5542_v10 = vld [vmem:[#allocation4 + $0x30] sm:$0xe] }
 0x4c5   : > { %v5969_v13 = vrot.slane %v5967_v29, 4  ;;  %v10392_v20 = vrot.slane %v5542_v10, 9  ;;  %v5652_v5 = vrot.slane %v5543_v19, 5  ;;  %v10901_v46 = vld [vmem:[#allocation2 + $0x3d4] sm:$0xf0]  ;;  %v11722_v33 = vld [vmem:[%s14872_s2 + $0x150] sm:$0xff] }
 0x4c6   : > { %v8406_v27 = vpop.f32.mrf.mxu0  ;;  %v8319_v6 = vpop.f32.mrf.mxu3  ;;  %v5982_v55 = vrot.slane %v5980_v31, 4  ;;  %8558 = vmatpush.bf16.msra.mxu2 %v11724_v32  ;;  %8735 = vmatpush.bf16.msra.mxu0 %v11741_v11  ;;  %v10929_v32 = vld [vmem:[#allocation2 + $0x414] sm:$0xf0] }
 0x4c7   : > { %v13889_v0 = vadd.f32 %v8406_v27, %v8318_v40  ;;  %8183 = vmatmul.bf16.gmra.mxu1 %v10892_v28  ;;  %v5973_v34 = vor.u32 %v5972_v36, %v5969_v13  ;;  %v5986_v28 = vshll.u32 %v5878_v17, 16  ;;  %v5049_v17 = vld [vmem:[#allocation4 + $0x3c] sm:$0xf]  ;;  %v5653_v47 = vsel %vm12101_vm5, %v10392_v20, %v5652_v5  ;;  %v11721_v20 = vld [vmem:[%s14872_s2 + $0x148] sm:$0xff] }
 0x4c8   : > { %v8230_v59 = vpop.f32.mrf.mxu2  ;;  %v5983_v62 = vor.u32 %v5982_v55, %v5978_v2  ;;  %8648 = vmatpush.bf16.msra.mxu3 %v11731_v18  ;;  %v5182_v48 = vshrl.u32 %v5049_v17, 16  ;;  %v5185_v31 = vshll.u32 %v5049_v17, 16  ;;  %5779 = vst [vmem:[#allocation2 + $0xec] sm:$0xf] %v5653_v47  ;;  %v11729_v18 = vld [vmem:[%s14872_s2 + $0x188] sm:$0xff] }
 0x4c9   : > { %8445 = vmatmul.bf16.gmra.mxu0 %v10868_v23  ;;  %v8231_v61 = vadd.f32 %v8230_v59, %v13859_v57  ;;  %v5174_v57 = vor.u32 %v5173_v30, %v5169_v3  ;;  %v5974_v27 = vrot.slane %v5973_v34, 4  ;;  %v11723_v23 = vld [vmem:[%s14872_s2 + $0x158] sm:$0xff]  ;;  %v5988_v39 = vrot.slane %v5986_v28, 5  ;;  %v11654_v30 = vld [vmem:[#allocation2 + $0x3b4] sm:$0xf] }
 0x4ca   : > { %v5984_v8 = vrot.slane %v5983_v62, 4  ;;  %v5544_v3 = vld [vmem:[#allocation4 + $0x38] sm:$0x1]  ;;  %8559 = vmatpush.bf16.msra.mxu2 %v11723_v23  ;;  %v5184_v34 = vrot.slane %v5182_v48, 4  ;;  %v5187_v28 = vrot.slane %v5185_v31, 5  ;;  %v11740_v62 = vld [vmem:[%s14872_s2 + $0x1e0] sm:$0xff] }
 0x4cb   : > { %8361 = vmatmul.bf16.gmra.mxu3 %v10900_v54  ;;  %v8320_v43 = vadd.f32 %v8319_v6, %v8231_v61  ;;  %v5175_v42 = vrot.slane %v5174_v57, 4  ;;  %v11730_v54 = vld [vmem:[%s14872_s2 + $0x190] sm:$0xff]  ;;  %v5655_v21 = vrot.slane %v5544_v3, 5  ;;  %v5654_v57 = vrot.slane %v5652_v5, 4  ;;  %v11751_v23 = vld [vmem:[%s14872_s2 + $0x238] sm:$0xff]  ;;  %8736 = vmatpush.bf16.msra.mxu0 %v11740_v62  ;;  %v11737_v62 = vld [vmem:[%s14872_s2 + $0x1c8] sm:$0xff] }
 0x4cc   : > { %v13908_v40 = vpop.f32.mrf.mxu1  ;;  %v5989_v61 = vsel %vm11877_vm2, %v5984_v8, %v5988_v39  ;;  %8649 = vmatpush.bf16.msra.mxu3 %v11730_v54  ;;  %v11739_v39 = vld [vmem:[%s14872_s2 + $0x1d8] sm:$0xff]  ;;  %8822 = vmatpush.bf16.msra.mxu1 %v11751_v23  ;;  %v5814_v31 = vld [vmem:[#allocation4 + $0x48] sm:$0xf] }
 0x4cd   : > { %8272 = vmatmul.bf16.gmra.mxu2 %v10896_v25  ;;  %v5180_v51 = vsel %vm11877_vm2, %v5175_v42, %v5179_v38  ;;  %v5979_v25 = vsel %vm11877_vm2, %v5974_v27, %v5978_v2  ;;  %6339 = vst [vmem:[#allocation2 + $0xd0] sm:$0xf] %v5989_v61  ;;  %v11667_v38 = vld [vmem:[#allocation2 + $0x418] sm:$0xf0]  ;;  %v10935_v42 = vld [vmem:[#allocation2 + $0x3f8] sm:$0xf]  ;;  %v5656_v55 = vsel %vm12101_vm5, %v5654_v57, %v5655_v21 }
 0x4ce   : > { %v8408_v44 = vpop.f32.mrf.mxu0  ;;  %v8322_v41 = vpop.f32.mrf.mxu3  ;;  %5508 = vst [vmem:[#allocation2 + $0x10c] sm:$0xf] %v5180_v51  ;;  %v11662_v2 = vld [vmem:[#allocation2 + $0x3f4] sm:$0xf]  ;;  %v10904_v51 = vor.u32 %v11654_v30, %v10901_v46  ;;  %v5188_v27 = vor.u32 %v5187_v28, %v5184_v34  ;;  %v10936_v11 = vor.u32 %v11667_v38, %v10935_v42  ;;  %8560 = vmatpush.bf16.msra.mxu2 %v11722_v33  ;;  %v5880_v30 = vld [vmem:[#allocation4 + $0x40] sm:$0xf] }
 0x4cf   : > { %v13914_v58 = vadd.f32 %v8408_v44, %v8320_v43  ;;  %6338 = vst [vmem:[#allocation2 + $0xac] sm:$0xf] %v5979_v25  ;;  %v10928_v43 = vor.u32 %v11666_v12, %v10927_v56  ;;  %v5201_v44 = vshll.u32 %v5051_v50, 16  ;;  %v5879_v56 = vld [vmem:[#allocation4 + $0x3c] sm:$0xf]  ;;  %v10932_v3 = vor.u32 %v11662_v2, %v10929_v32  ;;  %8737 = vmatpush.bf16.msra.mxu0 %v11739_v39  ;;  %v11738_v34 = vld [vmem:[%s14872_s2 + $0x1d0] sm:$0xff] }
 0x4d0   : > { %v8233_v6 = vpop.f32.mrf.mxu2  ;;  %5780 = vst [vmem:[#allocation2 + $0x110] sm:$0xf] %v5656_v55  ;;  %v5991_v54 = vshrl.u32 %v5879_v56, 16  ;;  %v5994_v8 = vshll.u32 %v5879_v56, 16  ;;  %v5881_v61 = vld [vmem:[#allocation4 + $0x44] sm:$0x1]  ;;  %8650 = vmatpush.bf16.msra.mxu3 %v11729_v18 }
 0x4d1   : > { %v8234_v59 = vadd.f32 %v8233_v6, %v13881_v22  ;;  %v5050_v22 = vld [vmem:[#allocation4 + $0x40] sm:$0xf]  ;;  %v6000_v46 = vshll.u32 %v5880_v30, 16  ;;  %v6004_v47 = vshrl.u32 %v5880_v30, 16  ;;  %v6010_v48 = vshll.u32 %v5881_v61, 16 }
 0x4d2   : > { %v5191_v13 = vshll.u32 %v5050_v22, 16  ;;  %v5195_v36 = vshrl.u32 %v5050_v22, 16  ;;  %v5993_v5 = vrot.slane %v5991_v54, 4  ;;  %v5996_v21 = vrot.slane %v5994_v8, 5  ;;  %8561 = vmatpush.bf16.msra.mxu2 %v11721_v20  ;;  %v5815_v2 = vld [vmem:[#allocation4 + $0x4c] sm:$0xf] }
 0x4d3   : > { %v8323_v29 = vadd.f32 %v8322_v41, %v8234_v59  ;;  %v5189_v59 = vrot.slane %v5188_v27, 4  ;;  %v6006_v42 = vrot.slane %v6004_v47, 4  ;;  %v11720_v28 = vld [vmem:[%s14872_s2 + $0x140] sm:$0xff]  ;;  %5846 = vst [vmem:[#allocation2 + $0x138] sm:$0xf] %v5814_v31  ;;  %8738 = vmatpush.bf16.msra.mxu0 %v11738_v34 }
 0x4d4   : > { %v13939_v63 = vpop.f32.mrf.mxu1  ;;  %v5193_v10 = vrot.slane %v5191_v13, 5  ;;  %v5197_v6 = vrot.slane %v5195_v36, 4  ;;  %v5997_v57 = vor.u32 %v5996_v21, %v5993_v5  ;;  %v10963_v13 = vld [vmem:[#allocation2 + $0x438] sm:$0xf]  ;;  %v11675_v36 = vld [vmem:[#allocation2 + $0x458] sm:$0xf0] }
 0x4d5   : > { %5847 = vst [vmem:[#allocation2 + $0x15c] sm:$0xf] %v5815_v2  ;;  %v5546_v27 = vld [vmem:[#allocation4 + $0x40] sm:$0xf]  ;;  %v11663_v56 = vld [vmem:[#allocation2 + $0x3fc] sm:$0xf]  ;;  %v10964_v20 = vor.u32 %v11675_v36, %v10963_v13 }
 0x4d6   : > { %v8411_v49 = vpop.f32.mrf.mxu0  ;;  %v8324_v14 = vpop.f32.mrf.mxu3  ;;  %v5198_v25 = vor.u32 %v5197_v6, %v5193_v10  ;;  %v5194_v22 = vsel %vm11877_vm2, %v5189_v59, %v5193_v10  ;;  %v6012_v10 = vrot.slane %v6010_v48, 5  ;;  %v5547_v6 = vld [vmem:[#allocation4 + $0x44] sm:$0x1]  ;;  %8562 = vmatpush.bf16.msra.mxu2 %v11720_v28  ;;  %v5659_v54 = vrot.slane %v5546_v27, 5  ;;  %v5052_v59 = vld [vmem:[#allocation4 + $0x48] sm:$0xf] }
 0x4d7   : > { %v13945_v41 = vadd.f32 %v8411_v49, %v8323_v29  ;;  %8188 = vmatmul.bf16.gmra.mxu1 %v10928_v43  ;;  %v11728_v29 = vld [vmem:[%s14872_s2 + $0x180] sm:$0xff]  ;;  %5509 = vst [vmem:[#allocation2 + $0x130] sm:$0xf] %v5194_v22  ;;  %v5662_v8 = vrot.slane %v5547_v6, 5  ;;  %v5206_v5 = vshrl.u32 %v5052_v59, 16  ;;  %8739 = vmatpush.bf16.msra.mxu0 %v11737_v62 }
 0x4d8   : > { %v8235_v52 = vpop.f32.mrf.mxu2  ;;  %v5199_v50 = vrot.slane %v5198_v25, 4  ;;  %8651 = vmatpush.bf16.msra.mxu3 %v11728_v29  ;;  %v5053_v25 = vld [vmem:[#allocation4 + $0x4c] sm:$0xf]  ;;  %v5661_v61 = vrot.slane %v5659_v54, 4  ;;  %v5882_v21 = vld [vmem:[#allocation4 + $0x48] sm:$0xf] }
 0x4d9   : > { %8450 = vmatmul.bf16.gmra.mxu0 %v10904_v51  ;;  %v8236_v12 = vadd.f32 %v8235_v52, %v13908_v40  ;;  %v5203_v40 = vrot.slane %v5201_v44, 5  ;;  %v5998_v44 = vrot.slane %v5997_v57, 4  ;;  %v5545_v52 = vld [vmem:[#allocation4 + $0x3c] sm:$0xe]  ;;  %v5209_v29 = vshll.u32 %v5052_v59, 16 }
 0x4da   : > { %v10393_v23 = vrot.slane %v5545_v52, 9  ;;  %v5215_v22 = vshll.u32 %v5053_v25, 16  ;;  %v5663_v48 = vsel %vm12101_vm5, %v5661_v61, %v5662_v8  ;;  %v5208_v31 = vrot.slane %v5206_v5, 4  ;;  %v10971_v36 = vld [vmem:[#allocation2 + $0x440] sm:$0xf] }
 0x4db   : > { %8366 = vmatmul.bf16.gmra.mxu3 %v10936_v11  ;;  %v8325_v19 = vadd.f32 %v8324_v14, %v8236_v12  ;;  %v5204_v49 = vsel %vm11877_vm2, %v5199_v50, %v5203_v40  ;;  %v6002_v14 = vrot.slane %v6000_v46, 5  ;;  %v10937_v12 = vld [vmem:[#allocation2 + $0x41c] sm:$0xf0]  ;;  %v5219_v50 = vshrl.u32 %v5053_v25, 16  ;;  %5782 = vst [vmem:[#allocation2 + $0x158] sm:$0xf] %v5663_v48 }
 0x4dc   : > { %v13966_v17 = vpop.f32.mrf.mxu1  ;;  %5510 = vst [vmem:[#allocation2 + $0x154] sm:$0xf] %v5204_v49  ;;  %v5660_v30 = vsel %vm12101_vm5, %v10393_v23, %v5659_v54  ;;  %v10940_v13 = vor.u32 %v11663_v56, %v10937_v12  ;;  %v11736_v49 = vld [vmem:[%s14872_s2 + $0x1c0] sm:$0xff]  ;;  %v11671_v34 = vld [vmem:[#allocation2 + $0x43c] sm:$0xf]  ;;  %v6018_v6 = vshll.u32 %v5882_v21, 16 }
 0x4dd   : > { %8277 = vmatmul.bf16.gmra.mxu2 %v10932_v3  ;;  %v6007_v33 = vor.u32 %v6006_v42, %v6002_v14  ;;  %v6003_v18 = vsel %vm11877_vm2, %v5998_v44, %v6002_v14  ;;  %5781 = vst [vmem:[#allocation2 + $0x134] sm:$0xf] %v5660_v30  ;;  %v5211_v14 = vrot.slane %v5209_v29, 5  ;;  %v10965_v28 = vld [vmem:[#allocation2 + $0x45c] sm:$0xf0]  ;;  %v5217_v44 = vrot.slane %v5215_v22, 5  ;;  %8740 = vmatpush.bf16.msra.mxu0 %v11736_v49 }
 0x4de   : > { %v8413_v43 = vpop.f32.mrf.mxu0  ;;  %v8327_v38 = vpop.f32.mrf.mxu3  ;;  %6340 = vst [vmem:[#allocation2 + $0xf4] sm:$0xf] %v6003_v18  ;;  %v5883_v52 = vld [vmem:[#allocation4 + $0x4c] sm:$0xf]  ;;  %v10968_v54 = vor.u32 %v11671_v34, %v10965_v28  ;;  %v6020_v25 = vrot.slane %v6018_v6, 5 }
 0x4df   : > { %v13975_v55 = vadd.f32 %v8413_v43, %v8325_v19  ;;  %v6008_v11 = vrot.slane %v6007_v33, 4  ;;  %v11676_v19 = vld [vmem:[#allocation2 + $0x460] sm:$0xf0]  ;;  %v6015_v43 = vshrl.u32 %v5882_v21, 16  ;;  %v5212_v33 = vor.u32 %v5211_v14, %v5208_v31  ;;  %v10439_v31 = vld [vmem:[#allocation2 + $0x10] sm:$0xf] }
 0x4e0   : > { %v8238_v51 = vpop.f32.mrf.mxu2  ;;  %v10972_v2 = vor.u32 %v11676_v19, %v10971_v36  ;;  %v6024_v56 = vshll.u32 %v5883_v52, 16  ;;  %v6028_v12 = vshrl.u32 %v5883_v52, 16  ;;  %v5055_v14 = vld [vmem:[#allocation4 + $0x54] sm:$0xf]  ;;  %v10973_v34 = vld [vmem:[#allocation2 + $0x464] sm:$0xf0] }
 0x4e1   : > { %v8239_v32 = vadd.f32 %v8238_v51, %v13939_v63  ;;  %v5054_v63 = vld [vmem:[#allocation4 + $0x50] sm:$0x1]  ;;  %v6013_v3 = vsel %vm11877_vm2, %v6008_v11, %v6012_v10  ;;  %v5221_v51 = vrot.slane %v5219_v50, 4  ;;  %v6017_v18 = vrot.slane %v6015_v43, 4  ;;  %v5816_v11 = vld [vmem:[#allocation4 + $0x54] sm:$0xf] }
 0x4e2   : > { %6341 = vst [vmem:[#allocation2 + $0x118] sm:$0xf] %v6013_v3  ;;  %v5225_v46 = vshll.u32 %v5054_v63, 16  ;;  %v5213_v8 = vrot.slane %v5212_v33, 4  ;;  %v6026_v63 = vrot.slane %v6024_v56, 5  ;;  %v6030_v19 = vrot.slane %v6028_v12, 4 }
 0x4e3   : > { %v8328_v39 = vadd.f32 %v8327_v38, %v8239_v32  ;;  %v5884_v32 = vld [vmem:[#allocation4 + $0x50] sm:$0x1]  ;;  %v5222_v27 = vor.u32 %v5221_v51, %v5217_v44  ;;  %5848 = vst [vmem:[#allocation2 + $0x180] sm:$0xf] %v5816_v11  ;;  %v6021_v21 = vor.u32 %v6020_v25, %v6017_v18  ;;  %v5548_v50 = vld [vmem:[#allocation4 + $0x48] sm:$0xe] }
 0x4e4   : > { %v13989_v40 = vpop.f32.mrf.mxu1  ;;  %v5227_v10 = vrot.slane %v5225_v46, 5  ;;  %v5218_v3 = vsel %vm11877_vm2, %v5213_v8, %v5217_v44  ;;  %v6031_v29 = vor.u32 %v6030_v19, %v6026_v63  ;;  %v10394_v36 = vrot.slane %v5548_v50, 9  ;;  %v10447_v28 = vld [vmem:[#allocation2 + $0x18] sm:$0xf]  ;;  %v11543_v52 = vld [vmem:[#allocation2 + $0x38] sm:$0xf0] }
 0x4e5   : > { %5511 = vst [vmem:[#allocation2 + $0x178] sm:$0xf] %v5218_v3  ;;  %v6022_v43 = vrot.slane %v6021_v21, 4  ;;  %v5056_v51 = vld [vmem:[#allocation4 + $0x58] sm:$0xf]  ;;  %v5230_v33 = vshrl.u32 %v5055_v14, 16 }
 0x4e6   : > { %v8416_v47 = vpop.f32.mrf.mxu0  ;;  %v8329_v57 = vpop.f32.mrf.mxu3  ;;  %v5233_v12 = vshll.u32 %v5055_v14, 16  ;;  %v5239_v11 = vshll.u32 %v5056_v51, 16  ;;  %v5243_v8 = vshrl.u32 %v5056_v51, 16  ;;  %v5818_v14 = vld [vmem:[#allocation4 + $0x60] sm:$0xf] }
 0x4e7   : > { %v13997_v38 = vadd.f32 %v8416_v47, %v8328_v39  ;;  %8193 = vmatmul.bf16.gmra.mxu1 %v10964_v20  ;;  %v6034_v39 = vshll.u32 %v5884_v32, 16  ;;  %v5817_v20 = vld [vmem:[#allocation4 + $0x58] sm:$0xf]  ;;  %v5549_v47 = vld [vmem:[#allocation4 + $0x4c] sm:$0xf]  ;;  %v6027_v32 = vsel %vm11877_vm2, %v6022_v43, %v6026_v63  ;;  %v5232_v56 = vrot.slane %v5230_v33, 4 }
 0x4e8   : > { %v8240_v42 = vpop.f32.mrf.mxu2  ;;  %5849 = vst [vmem:[#allocation2 + $0x1a4] sm:$0xf] %v5817_v20  ;;  %v5666_v49 = vrot.slane %v5549_v47, 5  ;;  %v5885_v20 = vld [vmem:[#allocation4 + $0x54] sm:$0xf]  ;;  %v5235_v25 = vrot.slane %v5233_v12, 5 }
 0x4e9   : > { %8455 = vmatmul.bf16.gmra.mxu0 %v10940_v13  ;;  %v8241_v62 = vadd.f32 %v8240_v42, %v13966_v17  ;;  %v5223_v17 = vrot.slane %v5222_v27, 4  ;;  %v6036_v22 = vrot.slane %v6034_v39, 5  ;;  %v6032_v13 = vrot.slane %v6031_v29, 4  ;;  %6342 = vst [vmem:[#allocation2 + $0x13c] sm:$0xf] %v6027_v32 }
 0x4ea   : > { %v5667_v27 = vsel %vm12101_vm5, %v10394_v36, %v5666_v49  ;;  %v5668_v6 = vrot.slane %v5666_v49, 4  ;;  %v5241_v63 = vrot.slane %v5239_v11, 5  ;;  %v5245_v21 = vrot.slane %v5243_v8, 4  ;;  %v5886_v47 = vld [vmem:[#allocation4 + $0x58] sm:$0xf] }
 0x4eb   : > { %8371 = vmatmul.bf16.gmra.mxu3 %v10972_v2  ;;  %v8330_v23 = vadd.f32 %v8329_v57, %v8241_v62  ;;  %v5228_v5 = vsel %vm11877_vm2, %v5223_v17, %v5227_v10  ;;  %v5550_v57 = vld [vmem:[#allocation4 + $0x50] sm:$0x1]  ;;  %v11672_v2 = vld [vmem:[#allocation2 + $0x444] sm:$0xf]  ;;  %v5057_v62 = vld [vmem:[#allocation4 + $0x5c] sm:$0x1]  ;;  %v6037_v18 = vsel %vm11877_vm2, %v6032_v13, %v6036_v22  ;;  %v5236_v22 = vor.u32 %v5235_v25, %v5232_v56 }
 0x4ec   : > { %v14003_v59 = vpop.f32.mrf.mxu1  ;;  %5512 = vst [vmem:[#allocation2 + $0x19c] sm:$0xf] %v5228_v5  ;;  %v5669_v44 = vrot.slane %v5550_v57, 5  ;;  %v11542_v10 = vld [vmem:[#allocation2 + $0x30] sm:$0xf0]  ;;  %v5249_v39 = vshll.u32 %v5057_v62, 16 }
 0x4ed   : > { %8282 = vmatmul.bf16.gmra.mxu2 %v10968_v54  ;;  %6343 = vst [vmem:[#allocation2 + $0x160] sm:$0xf] %v6037_v18  ;;  %v10440_v17 = vor.u32 %v11542_v10, %v10439_v31  ;;  %v10441_v5 = vld [vmem:[#allocation2 + $0x34] sm:$0xf0]  ;;  %v5887_v57 = vld [vmem:[#allocation4 + $0x5c] sm:$0x1]  ;;  %v5246_v31 = vor.u32 %v5245_v21, %v5241_v63 }
 0x4ee   : > { %v8418_v30 = vpop.f32.mrf.mxu0  ;;  %v8332_v61 = vpop.f32.mrf.mxu3  ;;  %v5670_v54 = vsel %vm12101_vm5, %v5668_v6, %v5669_v44  ;;  %5783 = vst [vmem:[#allocation2 + $0x17c] sm:$0xf] %v5667_v27  ;;  %v5251_v50 = vrot.slane %v5249_v39, 5  ;;  %v6042_v13 = vshll.u32 %v5885_v20, 16  ;;  %v6048_v36 = vshll.u32 %v5886_v47, 16 }
 0x4ef   : > { %v14009_v46 = vadd.f32 %v8418_v30, %v8330_v23  ;;  %v10976_v30 = vor.u32 %v11672_v2, %v10973_v34  ;;  %5784 = vst [vmem:[#allocation2 + $0x1a0] sm:$0xf] %v5670_v54  ;;  %v6052_v49 = vshrl.u32 %v5886_v47, 16  ;;  %v11750_v2 = vld [vmem:[%s14872_s2 + $0x230] sm:$0xff]  ;;  %v5237_v34 = vrot.slane %v5236_v22, 4 }
 0x4f0   : > { %v8243_v48 = vpop.f32.mrf.mxu2  ;;  %v6058_v44 = vshll.u32 %v5887_v57, 16  ;;  %v11538_v51 = vld [vmem:[#allocation2 + $0x14] sm:$0xf]  ;;  %v5247_v62 = vrot.slane %v5246_v31, 4  ;;  %v6044_v33 = vrot.slane %v6042_v13, 5  ;;  %v6050_v10 = vrot.slane %v6048_v36, 5  ;;  %8823 = vmatpush.bf16.msra.mxu1 %v11750_v2 }
 0x4f1   : > { %v8244_v42 = vadd.f32 %v8243_v48, %v13989_v40  ;;  %v6039_v48 = vshrl.u32 %v5885_v20, 16  ;;  %v10444_v18 = vor.u32 %v11538_v51, %v10441_v5  ;;  %v5242_v27 = vsel %vm11877_vm2, %v5237_v34, %v5241_v63  ;;  %5850 = vst [vmem:[#allocation2 + $0x1c8] sm:$0xf] %v5818_v14  ;;  %v5551_v11 = vld [vmem:[#allocation4 + $0x54] sm:$0xe] }
 0x4f2   : > { %5513 = vst [vmem:[#allocation2 + $0x1c0] sm:$0xf] %v5242_v27  ;;  %v6060_v54 = vrot.slane %v6058_v44, 5  ;;  %v5552_v8 = vld [vmem:[#allocation4 + $0x58] sm:$0xf] }
 0x4f3   : > { %v8333_v40 = vadd.f32 %v8332_v61, %v8244_v42  ;;  %v10448_v61 = vor.u32 %v11543_v52, %v10447_v28  ;;  %v6041_v28 = vrot.slane %v6039_v48, 4  ;;  %v6054_v52 = vrot.slane %v6052_v49, 4  ;;  %v5553_v63 = vld [vmem:[#allocation4 + $0x5c] sm:$0x1]  ;;  %v5058_v5 = vld [vmem:[#allocation4 + $0x60] sm:$0xf] }
 0x4f4   : > { %v14018_v23 = vpop.f32.mrf.mxu1  ;;  %v10475_v22 = vld [vmem:[#allocation2 + $0x58] sm:$0xf]  ;;  %v5059_v57 = vld [vmem:[#allocation4 + $0x64] sm:$0xf]  ;;  %v5060_v48 = vld [vmem:[#allocation4 + $0x68] sm:$0x1] }
 0x4f5   : > { %v6045_v56 = vor.u32 %v6044_v33, %v6041_v28  ;;  %v6055_v12 = vor.u32 %v6054_v52, %v6050_v10  ;;  %v5257_v31 = vshll.u32 %v5058_v5, 16  ;;  %v11539_v36 = vld [vmem:[#allocation2 + $0x1c] sm:$0xf]  ;;  %v10483_v49 = vld [vmem:[#allocation2 + $0x60] sm:$0xf]  ;;  %v5263_v34 = vshll.u32 %v5059_v57, 16 }
 0x4f6   : > { %v8421_v19 = vpop.f32.mrf.mxu0  ;;  %v8334_v3 = vpop.f32.mrf.mxu3  ;;  %v11552_v14 = vld [vmem:[#allocation2 + $0x80] sm:$0xf0]  ;;  %v5888_v28 = vld [vmem:[#allocation4 + $0x60] sm:$0xf]  ;;  %v11551_v44 = vld [vmem:[#allocation2 + $0x78] sm:$0xf0] }
 0x4f7   : > { %v14022_v29 = vadd.f32 %v8421_v19, %v8333_v40  ;;  %8474 = vmatmul.bf16.vlgmr.msrb.gmra.mxu1 %v10440_v17  ;;  %v5252_v40 = vsel %vm11877_vm2, %v5247_v62, %v5251_v50  ;;  %v6046_v17 = vrot.slane %v6045_v56, 4  ;;  %v6056_v25 = vrot.slane %v6055_v12, 4 }
 0x4f8   : > { %v8245_v43 = vpop.f32.mrf.mxu2  ;;  %5514 = vst [vmem:[#allocation2 + $0x1e4] sm:$0xf] %v5252_v40  ;;  %v5259_v62 = vrot.slane %v5257_v31, 5  ;;  %v6063_v40 = vshrl.u32 %v5888_v28, 16  ;;  %v10476_v56 = vor.u32 %v11551_v44, %v10475_v22 }
 0x4f9   : > { %8460 = vmatmul.bf16.gmra.mxu0 %v10976_v30  ;;  %v8246_v42 = vadd.f32 %v8245_v43, %v14003_v59  ;;  %v5819_v59 = vld [vmem:[#allocation4 + $0x64] sm:$0xf]  ;;  %v5673_v30 = vrot.slane %v5552_v8, 5  ;;  %v6051_v50 = vsel %vm11877_vm2, %v6046_v17, %v6050_v10  ;;  %v6061_v47 = vsel %vm11877_vm2, %v6056_v25, %v6060_v54  ;;  %v10449_v10 = vld [vmem:[#allocation2 + $0x3c] sm:$0xf0] }
 0x4fa   : > { %5851 = vst [vmem:[#allocation2 + $0x1ec] sm:$0xf] %v5819_v59  ;;  %v5254_v43 = vshrl.u32 %v5058_v5, 16  ;;  %v5273_v59 = vshll.u32 %v5060_v48, 16  ;;  %v6066_v54 = vshll.u32 %v5888_v28, 16  ;;  %v10484_v17 = vor.u32 %v11552_v14, %v10483_v49 }
 0x4fb   : > { %v8335_v32 = vadd.f32 %v8334_v3, %v8246_v42  ;;  %8652 = vmatmul.bf16.vlgmr.msra.gmra.mxu3 %v10448_v61  ;;  %v10395_v3 = vrot.slane %v5551_v11, 9  ;;  %v5676_v61 = vrot.slane %v5553_v63, 5  ;;  %6344 = vst [vmem:[#allocation2 + $0x184] sm:$0xf] %v6051_v50  ;;  %v5675_v2 = vrot.slane %v5673_v30, 4 }
 0x4fc   : > { %v14030_v6 = vpop.f32.mrf.mxu1  ;;  %6345 = vst [vmem:[#allocation2 + $0x1a8] sm:$0xf] %v6061_v47  ;;  %v5256_v51 = vrot.slane %v5254_v43, 4  ;;  %v5889_v11 = vld [vmem:[#allocation4 + $0x64] sm:$0xf]  ;;  %v5275_v43 = vrot.slane %v5273_v59, 5 }
 0x4fd   : > { %8563 = vmatmul.bf16.vlgmr.msra.gmra.mxu2 %v10444_v18  ;;  %v5674_v42 = vsel %vm12101_vm5, %v10395_v3, %v5673_v30  ;;  %v5677_v52 = vsel %vm12101_vm5, %v5675_v2, %v5676_v61  ;;  %v10477_v25 = vld [vmem:[#allocation2 + $0x7c] sm:$0xf0]  ;;  %v5890_v3 = vld [vmem:[#allocation4 + $0x68] sm:$0x1]  ;;  %v6065_v30 = vrot.slane %v6063_v40, 4  ;;  %v6072_v50 = vshll.u32 %v5889_v11, 16 }
 0x4fe   : > { %v8423_v39 = vpop.f32.mrf.mxu0  ;;  %v8337_v20 = vpop.f32.mrf.mxu3  ;;  %5785 = vst [vmem:[#allocation2 + $0x1c4] sm:$0xf] %v5674_v42  ;;  %v5260_v27 = vor.u32 %v5259_v62, %v5256_v51  ;;  %v5820_v47 = vld [vmem:[#allocation4 + $0x6c] sm:$0xf]  ;;  %v6076_v31 = vshrl.u32 %v5889_v11, 16 }
 0x4ff   : > { %v14034_v19 = vadd.f32 %v8423_v39, %v8335_v32  ;;  %v5267_v32 = vshrl.u32 %v5059_v57, 16  ;;  %5786 = vst [vmem:[#allocation2 + $0x1e8] sm:$0xf] %v5677_v52  ;;  %v5821_v57 = vld [vmem:[#allocation4 + $0x70] sm:$0xf]  ;;  %v6074_v2 = vrot.slane %v6072_v50, 5 }
 0x500   : > { %v8248_v21 = vpop.f32.mrf.mxu2  ;;  %v5261_v63 = vrot.slane %v5260_v27, 4  ;;  %5852 = vst [vmem:[#allocation2 + $0x210] sm:$0xf] %v5820_v47  ;;  %v11547_v49 = vld [vmem:[#allocation2 + $0x5c] sm:$0xf]  ;;  %v6078_v28 = vrot.slane %v6076_v31, 4 }
 0x501   : > { %v8249_v13 = vadd.f32 %v8248_v21, %v14018_v23  ;;  %v5265_v23 = vrot.slane %v5263_v34, 5  ;;  %v5269_v12 = vrot.slane %v5267_v32, 4  ;;  %v6068_v21 = vrot.slane %v6066_v54, 5  ;;  %5853 = vst [vmem:[#allocation2 + $0x234] sm:$0xf] %v5821_v57 }
 0x502   : > { %v10480_v34 = vor.u32 %v11547_v49, %v10477_v25  ;;  %v5556_v32 = vld [vmem:[#allocation4 + $0x68] sm:$0x1]  ;;  %v10511_v25 = vld [vmem:[#allocation2 + $0xa0] sm:$0xf]  ;;  %v11548_v47 = vld [vmem:[#allocation2 + $0x64] sm:$0xf] }
 0x503   : > { %v8338_v33 = vadd.f32 %v8337_v20, %v8249_v13  ;;  %v10452_v20 = vor.u32 %v11539_v36, %v10449_v10  ;;  %v5270_v5 = vor.u32 %v5269_v12, %v5265_v23  ;;  %v5266_v48 = vsel %vm11877_vm2, %v5261_v63, %v5265_v23  ;;  %v5554_v10 = vld [vmem:[#allocation4 + $0x60] sm:$0xe]  ;;  %v5555_v23 = vld [vmem:[#allocation4 + $0x64] sm:$0xf]  ;;  %v5061_v12 = vld [vmem:[#allocation4 + $0x6c] sm:$0xf] }
 0x504   : > { %v14045_v18 = vpop.f32.mrf.mxu1  ;;  %v6082_v13 = vshll.u32 %v5890_v3, 16  ;;  %5515 = vst [vmem:[#allocation2 + $0x208] sm:$0xf] %v5266_v48  ;;  %v6069_v42 = vor.u32 %v6068_v21, %v6065_v30  ;;  %v10396_v59 = vrot.slane %v5554_v10, 9  ;;  %v5680_v40 = vrot.slane %v5555_v23, 5 }
 0x505   : > { %v5271_v14 = vrot.slane %v5270_v5, 4  ;;  %v11560_v63 = vld [vmem:[#allocation2 + $0xc0] sm:$0xf0]  ;;  %v5063_v5 = vld [vmem:[#allocation4 + $0x74] sm:$0x1]  ;;  %v5281_v21 = vshll.u32 %v5061_v12, 16 }
 0x506   : > { %v8426_v8 = vpop.f32.mrf.mxu0  ;;  %v8339_v39 = vpop.f32.mrf.mxu3  ;;  %v6070_v62 = vrot.slane %v6069_v42, 4  ;;  %v5681_v3 = vsel %vm12101_vm5, %v10396_v59, %v5680_v40  ;;  %v5682_v30 = vrot.slane %v5680_v40, 4  ;;  %v10485_v31 = vld [vmem:[#allocation2 + $0x84] sm:$0xf0]  ;;  %v5297_v42 = vshll.u32 %v5063_v5, 16 }
 0x507   : > { %v14047_v61 = vadd.f32 %v8426_v8, %v8338_v33  ;;  %8479 = vmatmul.bf16.gmra.mxu1 %v10476_v56  ;;  %v5276_v51 = vsel %vm11877_vm2, %v5271_v14, %v5275_v43  ;;  %v6084_v33 = vrot.slane %v6082_v13, 5  ;;  %v5683_v56 = vrot.slane %v5556_v32, 5  ;;  %5787 = vst [vmem:[#allocation2 + $0x20c] sm:$0xf] %v5681_v3  ;;  %v5893_v23 = vld [vmem:[#allocation4 + $0x74] sm:$0x1] }
 0x508   : > { %v8250_v22 = vpop.f32.mrf.mxu2  ;;  %5516 = vst [vmem:[#allocation2 + $0x22c] sm:$0xf] %v5276_v51  ;;  %v6075_v27 = vsel %vm11877_vm2, %v6070_v62, %v6074_v2  ;;  %v5892_v51 = vld [vmem:[#allocation4 + $0x70] sm:$0xf]  ;;  %v10512_v10 = vor.u32 %v11560_v63, %v10511_v25  ;;  %v11561_v59 = vld [vmem:[#allocation2 + $0xc8] sm:$0xf0] }
 0x509   : > { %8741 = vmatmul.bf16.vlgmr.msra.gmra.mxu0 %v10452_v20  ;;  %v8251_v36 = vadd.f32 %v8250_v22, %v14030_v6  ;;  %v6079_v6 = vor.u32 %v6078_v28, %v6074_v2  ;;  %6346 = vst [vmem:[#allocation2 + $0x1cc] sm:$0xf] %v6075_v27  ;;  %v5278_v20 = vshrl.u32 %v5061_v12, 16  ;;  %v5684_v13 = vsel %vm12101_vm5, %v5682_v30, %v5683_v56  ;;  %v5891_v2 = vld [vmem:[#allocation4 + $0x6c] sm:$0xf] }
 0x50a   : > { %5788 = vst [vmem:[#allocation2 + $0x230] sm:$0xf] %v5684_v13  ;;  %v6087_v62 = vshrl.u32 %v5891_v2, 16  ;;  %v6090_v32 = vshll.u32 %v5891_v2, 16  ;;  %v6096_v27 = vshll.u32 %v5892_v51, 16  ;;  %v6106_v30 = vshll.u32 %v5893_v23, 16 }
 0x50b   : > { %v8340_v44 = vadd.f32 %v8339_v39, %v8251_v36  ;;  %8657 = vmatmul.bf16.gmra.mxu3 %v10484_v17  ;;  %v6080_v8 = vrot.slane %v6079_v6, 4  ;;  %v5062_v39 = vld [vmem:[#allocation4 + $0x70] sm:$0xf]  ;;  %v5280_v22 = vrot.slane %v5278_v20, 4  ;;  %v5283_v36 = vrot.slane %v5281_v21, 5  ;;  %v11749_v13 = vld [vmem:[%s14872_s2 + $0x228] sm:$0xff] }
 0x50c   : > { %v14054_v52 = vpop.f32.mrf.mxu1  ;;  %v5287_v48 = vshll.u32 %v5062_v39, 16  ;;  %v5291_v49 = vshrl.u32 %v5062_v39, 16  ;;  %v10519_v6 = vld [vmem:[#allocation2 + $0xa8] sm:$0xf]  ;;  %v6089_v12 = vrot.slane %v6087_v62, 4  ;;  %v6092_v20 = vrot.slane %v6090_v32, 5  ;;  %8824 = vmatpush.bf16.msra.mxu1 %v11749_v13 }
 0x50d   : > { %8568 = vmatmul.bf16.gmra.mxu2 %v10480_v34  ;;  %v6085_v57 = vsel %vm11877_vm2, %v6080_v8, %v6084_v33  ;;  %v5284_v28 = vor.u32 %v5283_v36, %v5280_v22  ;;  %v6098_v3 = vrot.slane %v6096_v27, 5  ;;  %v10513_v22 = vld [vmem:[#allocation2 + $0xc4] sm:$0xf0]  ;;  %v5557_v2 = vld [vmem:[#allocation4 + $0x6c] sm:$0xe] }
 0x50e   : > { %v8428_v11 = vpop.f32.mrf.mxu0  ;;  %v8342_v54 = vpop.f32.mrf.mxu3  ;;  %6347 = vst [vmem:[#allocation2 + $0x1f0] sm:$0xf] %v6085_v57  ;;  %v5289_v14 = vrot.slane %v5287_v48, 5  ;;  %v11556_v57 = vld [vmem:[#allocation2 + $0xa4] sm:$0xf]  ;;  %v6093_v48 = vor.u32 %v6092_v20, %v6089_v12 }
 0x50f   : > { %v14058_v17 = vadd.f32 %v8428_v11, %v8340_v44  ;;  %v5293_v44 = vrot.slane %v5291_v49, 4  ;;  %v5285_v40 = vrot.slane %v5284_v28, 4  ;;  %v6100_v11 = vshrl.u32 %v5892_v51, 16  ;;  %v5558_v28 = vld [vmem:[#allocation4 + $0x70] sm:$0xf] }
 0x510   : > { %v8253_v50 = vpop.f32.mrf.mxu2  ;;  %v10516_v62 = vor.u32 %v11556_v57, %v10513_v22  ;;  %v5064_v27 = vld [vmem:[#allocation4 + $0x78] sm:$0xf]  ;;  %v5066_v20 = vld [vmem:[#allocation4 + $0x80] sm:$0x1] }
 0x511   : > { %v8254_v43 = vadd.f32 %v8253_v50, %v14045_v18  ;;  %v10488_v18 = vor.u32 %v11548_v47, %v10485_v31  ;;  %v5294_v56 = vor.u32 %v5293_v44, %v5289_v14  ;;  %v5290_v25 = vsel %vm11877_vm2, %v5285_v40, %v5289_v14 }
 0x512   : > { %v6102_v21 = vrot.slane %v6100_v11, 4  ;;  %v10520_v47 = vor.u32 %v11561_v59, %v10519_v6  ;;  %5517 = vst [vmem:[#allocation2 + $0x250] sm:$0xf] %v5290_v25  ;;  %v6108_v14 = vrot.slane %v6106_v30, 5  ;;  %v10397_v44 = vrot.slane %v5557_v2, 9 }
 0x513   : > { %v8343_v34 = vadd.f32 %v8342_v54, %v8254_v43  ;;  %v5299_v54 = vrot.slane %v5297_v42, 5  ;;  %v5295_v63 = vrot.slane %v5294_v56, 4  ;;  %v5822_v43 = vld [vmem:[#allocation4 + $0x78] sm:$0xf]  ;;  %v5823_v42 = vld [vmem:[#allocation4 + $0x7c] sm:$0xf] }
 0x514   : > { %v14067_v33 = vpop.f32.mrf.mxu1  ;;  %v6103_v49 = vor.u32 %v6102_v21, %v6098_v3  ;;  %5854 = vst [vmem:[#allocation2 + $0x258] sm:$0xf] %v5822_v43  ;;  %v10547_v59 = vld [vmem:[#allocation2 + $0xe8] sm:$0xf]  ;;  %v5065_v11 = vld [vmem:[#allocation4 + $0x7c] sm:$0xf] }
 0x515   : > { %v5300_v36 = vsel %vm11877_vm2, %v5295_v63, %v5299_v54  ;;  %5855 = vst [vmem:[#allocation2 + $0x27c] sm:$0xf] %v5823_v42  ;;  %v5311_v30 = vshll.u32 %v5065_v11, 16  ;;  %v11569_v63 = vld [vmem:[#allocation2 + $0x108] sm:$0xf0]  ;;  %v5321_v43 = vshll.u32 %v5066_v20, 16 }
 0x516   : > { %v8431_v8 = vpop.f32.mrf.mxu0  ;;  %v8344_v39 = vpop.f32.mrf.mxu3  ;;  %5518 = vst [vmem:[#allocation2 + $0x274] sm:$0xf] %v5300_v36  ;;  %v5894_v36 = vld [vmem:[#allocation4 + $0x78] sm:$0xf]  ;;  %v5895_v2 = vld [vmem:[#allocation4 + $0x7c] sm:$0xf] }
 0x517   : > { %v14069_v5 = vadd.f32 %v8431_v8, %v8343_v34  ;;  %8484 = vmatmul.bf16.gmra.mxu1 %v10512_v10  ;;  %v6094_v34 = vrot.slane %v6093_v48, 4  ;;  %v5559_v10 = vld [vmem:[#allocation4 + $0x74] sm:$0x1]  ;;  %v5302_v8 = vshrl.u32 %v5064_v27, 16  ;;  %v5313_v48 = vrot.slane %v5311_v30, 5 }
 0x518   : > { %v8255_v50 = vpop.f32.mrf.mxu2  ;;  %v5690_v32 = vrot.slane %v5559_v10, 5  ;;  %v6120_v10 = vshll.u32 %v5895_v2, 16 }
 0x519   : > { %8746 = vmatmul.bf16.gmra.mxu0 %v10488_v18  ;;  %v8256_v31 = vadd.f32 %v8255_v50, %v14054_v52  ;;  %v6104_v52 = vrot.slane %v6103_v49, 4  ;;  %v5687_v18 = vrot.slane %v5558_v28, 5  ;;  %v6099_v23 = vsel %vm11877_vm2, %v6094_v34, %v6098_v3 }
 0x51a   : > { %6348 = vst [vmem:[#allocation2 + $0x214] sm:$0xf] %v6099_v23  ;;  %v5305_v3 = vshll.u32 %v5064_v27, 16  ;;  %v5304_v50 = vrot.slane %v5302_v8, 4  ;;  %v10548_v49 = vor.u32 %v11569_v63, %v10547_v59  ;;  %v6111_v34 = vshrl.u32 %v5894_v36, 16 }
 0x51b   : > { %v8345_v51 = vadd.f32 %v8344_v39, %v8256_v31  ;;  %8662 = vmatmul.bf16.gmra.mxu3 %v10520_v47  ;;  %v6109_v40 = vsel %vm11877_vm2, %v6104_v52, %v6108_v14  ;;  %v5688_v56 = vsel %vm12101_vm5, %v10397_v44, %v5687_v18  ;;  %v5689_v12 = vrot.slane %v5687_v18, 4  ;;  %v11557_v14 = vld [vmem:[#allocation2 + $0xac] sm:$0xf]  ;;  %v10521_v44 = vld [vmem:[#allocation2 + $0xcc] sm:$0xf0] }
 0x51c   : > { %v14079_v6 = vpop.f32.mrf.mxu1  ;;  %6349 = vst [vmem:[#allocation2 + $0x238] sm:$0xf] %v6109_v40  ;;  %v5315_v47 = vshrl.u32 %v5065_v11, 16  ;;  %v5307_v22 = vrot.slane %v5305_v3, 5  ;;  %v6114_v52 = vshll.u32 %v5894_v36, 16  ;;  %v6113_v27 = vrot.slane %v6111_v34, 4 }
 0x51d   : > { %8573 = vmatmul.bf16.gmra.mxu2 %v10516_v62  ;;  %v5691_v21 = vsel %vm12101_vm5, %v5689_v12, %v5690_v32  ;;  %5789 = vst [vmem:[#allocation2 + $0x254] sm:$0xf] %v5688_v56  ;;  %v5896_v62 = vld [vmem:[#allocation4 + $0x80] sm:$0x1]  ;;  %v5323_v32 = vrot.slane %v5321_v43, 5  ;;  %v6124_v40 = vshrl.u32 %v5895_v2, 16  ;;  %v10524_v20 = vor.u32 %v11557_v14, %v10521_v44 }
 0x51e   : > { %v8433_v39 = vpop.f32.mrf.mxu0  ;;  %v8347_v54 = vpop.f32.mrf.mxu3  ;;  %5790 = vst [vmem:[#allocation2 + $0x278] sm:$0xf] %v5691_v21  ;;  %v5317_v13 = vrot.slane %v5315_v47, 4  ;;  %v5308_v42 = vor.u32 %v5307_v22, %v5304_v50  ;;  %v6116_v12 = vrot.slane %v6114_v52, 5  ;;  %v6122_v59 = vrot.slane %v6120_v10, 5 }
 0x51f   : > { %v14087_v25 = vadd.f32 %v8433_v39, %v8345_v51  ;;  %v6130_v11 = vshll.u32 %v5896_v62, 16  ;;  %v6126_v30 = vrot.slane %v6124_v40, 4  ;;  %v5824_v63 = vld [vmem:[#allocation4 + $0x84] sm:$0xf]  ;;  %v10549_v50 = vld [vmem:[#allocation2 + $0x10c] sm:$0xf0] }
 0x520   : > { %v8258_v57 = vpop.f32.mrf.mxu2  ;;  %v5318_v51 = vor.u32 %v5317_v13, %v5313_v48  ;;  %v5309_v23 = vrot.slane %v5308_v42, 4  ;;  %v5825_v36 = vld [vmem:[#allocation4 + $0x88] sm:$0xf]  ;;  %v5560_v14 = vld [vmem:[#allocation4 + $0x78] sm:$0xe] }
 0x521   : > { %v8259_v31 = vadd.f32 %v8258_v57, %v14067_v33  ;;  %v10555_v33 = vld [vmem:[#allocation2 + $0xf0] sm:$0xf]  ;;  %v6117_v57 = vor.u32 %v6116_v12, %v6113_v27  ;;  %v6132_v22 = vrot.slane %v6130_v11, 5  ;;  %v6127_v13 = vor.u32 %v6126_v30, %v6122_v59  ;;  %5856 = vst [vmem:[#allocation2 + $0x2a0] sm:$0xf] %v5824_v63 }
 0x522   : > { %v5319_v56 = vrot.slane %v5318_v51, 4  ;;  %v5314_v3 = vsel %vm11877_vm2, %v5309_v23, %v5313_v48  ;;  %v10398_v34 = vrot.slane %v5560_v14, 9  ;;  %5857 = vst [vmem:[#allocation2 + $0x2c4] sm:$0xf] %v5825_v36  ;;  %v5562_v44 = vld [vmem:[#allocation4 + $0x80] sm:$0x1] }
 0x523   : > { %v8348_v28 = vadd.f32 %v8347_v54, %v8259_v31  ;;  %v11570_v54 = vld [vmem:[#allocation2 + $0x110] sm:$0xf0]  ;;  %5519 = vst [vmem:[#allocation2 + $0x298] sm:$0xf] %v5314_v3  ;;  %v11565_v31 = vld [vmem:[#allocation2 + $0xec] sm:$0xf] }
 0x524   : > { %v14092_v18 = vpop.f32.mrf.mxu1  ;;  %v5324_v47 = vsel %vm11877_vm2, %v5319_v56, %v5323_v32  ;;  %v10556_v42 = vor.u32 %v11570_v54, %v10555_v33  ;;  %v6118_v2 = vrot.slane %v6117_v57, 4  ;;  %v10552_v52 = vor.u32 %v11565_v31, %v10549_v50  ;;  %v5067_v32 = vld [vmem:[#allocation4 + $0x84] sm:$0xf]  ;;  %v5068_v27 = vld [vmem:[#allocation4 + $0x88] sm:$0xf] }
 0x525   : > { %5520 = vst [vmem:[#allocation2 + $0x2bc] sm:$0xf] %v5324_v47  ;;  %v5697_v23 = vrot.slane %v5562_v44, 5  ;;  %v5069_v12 = vld [vmem:[#allocation4 + $0x8c] sm:$0x1]  ;;  %v5326_v11 = vshrl.u32 %v5067_v32, 16 }
 0x526   : > { %v8436_v8 = vpop.f32.mrf.mxu0  ;;  %v8349_v39 = vpop.f32.mrf.mxu3  ;;  %v6123_v10 = vsel %vm11877_vm2, %v6118_v2, %v6122_v59  ;;  %v5339_v59 = vshrl.u32 %v5068_v27, 16  ;;  %v10583_v3 = vld [vmem:[#allocation2 + $0x130] sm:$0xf]  ;;  %v11578_v47 = vld [vmem:[#allocation2 + $0x150] sm:$0xf0] }
 0x527   : > { %v14096_v21 = vadd.f32 %v8436_v8, %v8348_v28  ;;  %8489 = vmatmul.bf16.gmra.mxu1 %v10548_v49  ;;  %v5561_v49 = vld [vmem:[#allocation4 + $0x7c] sm:$0xf]  ;;  %v6128_v28 = vrot.slane %v6127_v13, 4  ;;  %6350 = vst [vmem:[#allocation2 + $0x25c] sm:$0xf] %v6123_v10  ;;  %v5329_v8 = vshll.u32 %v5067_v32, 16  ;;  %v10584_v2 = vor.u32 %v11578_v47, %v10583_v3 }
 0x528   : > { %v8260_v43 = vpop.f32.mrf.mxu2  ;;  %v5694_v51 = vrot.slane %v5561_v49, 5  ;;  %v5328_v63 = vrot.slane %v5326_v11, 4  ;;  %v5341_v31 = vrot.slane %v5339_v59, 4  ;;  %v5345_v13 = vshll.u32 %v5069_v12, 16  ;;  %v5897_v36 = vld [vmem:[#allocation4 + $0x84] sm:$0xf] }
 0x529   : > { %8751 = vmatmul.bf16.gmra.mxu0 %v10524_v20  ;;  %v8261_v48 = vadd.f32 %v8260_v43, %v14079_v6  ;;  %v6133_v6 = vsel %vm11877_vm2, %v6128_v28, %v6132_v22  ;;  %v5331_v57 = vrot.slane %v5329_v8, 5  ;;  %v11566_v49 = vld [vmem:[#allocation2 + $0xf4] sm:$0xf]  ;;  %v5899_v44 = vld [vmem:[#allocation4 + $0x8c] sm:$0x1] }
 0x52a   : > { %v5695_v33 = vsel %vm12101_vm5, %v10398_v34, %v5694_v51  ;;  %v5696_v56 = vrot.slane %v5694_v51, 4  ;;  %6351 = vst [vmem:[#allocation2 + $0x280] sm:$0xf] %v6133_v6  ;;  %v10557_v34 = vld [vmem:[#allocation2 + $0x114] sm:$0xf0]  ;;  %v6135_v51 = vshrl.u32 %v5897_v36, 16 }
 0x52b   : > { %v8350_v62 = vadd.f32 %v8349_v39, %v8261_v48  ;;  %8667 = vmatmul.bf16.gmra.mxu3 %v10556_v42  ;;  %v5335_v39 = vshll.u32 %v5068_v27, 16  ;;  %5791 = vst [vmem:[#allocation2 + $0x29c] sm:$0xf] %v5695_v33  ;;  %v5332_v48 = vor.u32 %v5331_v57, %v5328_v63  ;;  %v5898_v42 = vld [vmem:[#allocation4 + $0x88] sm:$0xf]  ;;  %v5347_v11 = vrot.slane %v5345_v13, 5 }
 0x52c   : > { %v14103_v40 = vpop.f32.mrf.mxu1  ;;  %v5698_v30 = vsel %vm12101_vm5, %v5696_v56, %v5697_v23  ;;  %v10591_v23 = vld [vmem:[#allocation2 + $0x138] sm:$0xf]  ;;  %v11579_v32 = vld [vmem:[#allocation2 + $0x158] sm:$0xf0]  ;;  %v6144_v33 = vshll.u32 %v5898_v42, 16  ;;  %v6148_v56 = vshrl.u32 %v5898_v42, 16  ;;  %v10560_v13 = vor.u32 %v11566_v49, %v10557_v34 }
 0x52d   : > { %8578 = vmatmul.bf16.gmra.mxu2 %v10552_v52  ;;  %5792 = vst [vmem:[#allocation2 + $0x2c0] sm:$0xf] %v5698_v30  ;;  %v5337_v22 = vrot.slane %v5335_v39, 5  ;;  %v5826_v52 = vld [vmem:[#allocation4 + $0x90] sm:$0xf]  ;;  %v5333_v6 = vrot.slane %v5332_v48, 4 }
 0x52e   : > { %v8438_v20 = vpop.f32.mrf.mxu0  ;;  %v8352_v54 = vpop.f32.mrf.mxu3  ;;  %v10585_v27 = vld [vmem:[#allocation2 + $0x154] sm:$0xf0]  ;;  %v6137_v8 = vrot.slane %v6135_v51, 4  ;;  %v5827_v59 = vld [vmem:[#allocation4 + $0x94] sm:$0xf]  ;;  %v6146_v3 = vrot.slane %v6144_v33, 5 }
 0x52f   : > { %v14111_v50 = vadd.f32 %v8438_v20, %v8350_v62  ;;  %v5342_v28 = vor.u32 %v5341_v31, %v5337_v22  ;;  %v6138_v62 = vshll.u32 %v5897_v36, 16  ;;  %v5338_v20 = vsel %vm11877_vm2, %v5333_v6, %v5337_v22  ;;  %5858 = vst [vmem:[#allocation2 + $0x2e8] sm:$0xf] %v5826_v52  ;;  %v11574_v57 = vld [vmem:[#allocation2 + $0x134] sm:$0xf] }
 0x530   : > { %v8263_v43 = vpop.f32.mrf.mxu2  ;;  %v6150_v30 = vrot.slane %v6148_v56, 4  ;;  %v6154_v63 = vshll.u32 %v5899_v44, 16  ;;  %5521 = vst [vmem:[#allocation2 + $0x2e0] sm:$0xf] %v5338_v20  ;;  %v5563_v48 = vld [vmem:[#allocation4 + $0x84] sm:$0xe]  ;;  %v10588_v44 = vor.u32 %v11574_v57, %v10585_v27 }
 0x531   : > { %v8264_v14 = vadd.f32 %v8263_v43, %v14092_v18  ;;  %v5343_v18 = vrot.slane %v5342_v28, 4  ;;  %v6140_v39 = vrot.slane %v6138_v62, 5  ;;  %v5564_v22 = vld [vmem:[#allocation4 + $0x88] sm:$0xf]  ;;  %v10592_v28 = vor.u32 %v11579_v32, %v10591_v23  ;;  %5859 = vst [vmem:[#allocation2 + $0x30c] sm:$0xf] %v5827_v59 }
 0x532   : > { %v5565_v62 = vld [vmem:[#allocation4 + $0x8c] sm:$0x1]  ;;  %v10399_v52 = vrot.slane %v5563_v48, 9  ;;  %v6156_v49 = vrot.slane %v6154_v63, 5  ;;  %v5701_v34 = vrot.slane %v5564_v22, 5 }
 0x533   : > { %v8353_v10 = vadd.f32 %v8352_v54, %v8264_v14  ;;  %v5348_v43 = vsel %vm11877_vm2, %v5343_v18, %v5347_v11  ;;  %v6141_v31 = vor.u32 %v6140_v39, %v6137_v8  ;;  %v6151_v14 = vor.u32 %v6150_v30, %v6146_v3  ;;  %v5070_v33 = vld [vmem:[#allocation4 + $0x90] sm:$0xf]  ;;  %v5071_v32 = vld [vmem:[#allocation4 + $0x94] sm:$0xf]  ;;  %v5072_v20 = vld [vmem:[#allocation4 + $0x98] sm:$0x1] }
 0x534   : > { %v14114_v12 = vpop.f32.mrf.mxu1  ;;  %5522 = vst [vmem:[#allocation2 + $0x304] sm:$0xf] %v5348_v43  ;;  %v5704_v23 = vrot.slane %v5565_v62, 5  ;;  %v5350_v27 = vshrl.u32 %v5070_v33, 16  ;;  %v5353_v18 = vshll.u32 %v5070_v33, 16  ;;  %v5702_v8 = vsel %vm12101_vm5, %v10399_v52, %v5701_v34 }
 0x535   : > { %v6142_v51 = vrot.slane %v6141_v31, 4  ;;  %v5703_v59 = vrot.slane %v5701_v34, 4  ;;  %5793 = vst [vmem:[#allocation2 + $0x2e4] sm:$0xf] %v5702_v8  ;;  %v5359_v63 = vshll.u32 %v5071_v32, 16  ;;  %v5363_v31 = vshrl.u32 %v5071_v32, 16 }
 0x536   : > { %v8441_v54 = vpop.f32.mrf.mxu0  ;;  %v8354_v47 = vpop.f32.mrf.mxu3  ;;  %v5355_v30 = vrot.slane %v5353_v18, 5  ;;  %v5369_v62 = vshll.u32 %v5072_v20, 16  ;;  %v11588_v34 = vld [vmem:[#allocation2 + $0x1a0] sm:$0xf0]  ;;  %v11575_v32 = vld [vmem:[#allocation2 + $0x13c] sm:$0xf] }
 0x537   : > { %v14120_v36 = vadd.f32 %v8441_v54, %v8353_v10  ;;  %8494 = vmatmul.bf16.gmra.mxu1 %v10584_v2  ;;  %v11748_v10 = vld [vmem:[%s14872_s2 + $0x220] sm:$0xff]  ;;  %v6152_v2 = vrot.slane %v6151_v14, 4  ;;  %v6147_v56 = vsel %vm11877_vm2, %v6142_v51, %v6146_v3  ;;  %v5352_v3 = vrot.slane %v5350_v27, 4  ;;  %v5900_v54 = vld [vmem:[#allocation4 + $0x90] sm:$0xf] }
 0x538   : > { %v8265_v42 = vpop.f32.mrf.mxu2  ;;  %8825 = vmatpush.bf16.msra.mxu1 %v11748_v10  ;;  %6352 = vst [vmem:[#allocation2 + $0x2a4] sm:$0xf] %v6147_v56  ;;  %v5705_v43 = vsel %vm12101_vm5, %v5703_v59, %v5704_v23  ;;  %v5361_v22 = vrot.slane %v5359_v63, 5  ;;  %v10619_v51 = vld [vmem:[#allocation2 + $0x178] sm:$0xf]  ;;  %v6159_v52 = vshrl.u32 %v5900_v54, 16 }
 0x539   : > { %8756 = vmatmul.bf16.gmra.mxu0 %v10560_v13  ;;  %v8266_v6 = vadd.f32 %v8265_v42, %v14103_v40  ;;  %v6157_v40 = vsel %vm11877_vm2, %v6152_v2, %v6156_v49  ;;  %v5901_v13 = vld [vmem:[#allocation4 + $0x94] sm:$0xf]  ;;  %5794 = vst [vmem:[#allocation2 + $0x308] sm:$0xf] %v5705_v43  ;;  %v5356_v48 = vor.u32 %v5355_v30, %v5352_v3  ;;  %v5902_v42 = vld [vmem:[#allocation4 + $0x98] sm:$0x1] }
 0x53a   : > { %6353 = vst [vmem:[#allocation2 + $0x2c8] sm:$0xf] %v6157_v40  ;;  %v11587_v2 = vld [vmem:[#allocation2 + $0x198] sm:$0xf0]  ;;  %v10627_v49 = vld [vmem:[#allocation2 + $0x180] sm:$0xf] }
 0x53b   : > { %v8355_v11 = vadd.f32 %v8354_v47, %v8266_v6  ;;  %8672 = vmatmul.bf16.gmra.mxu3 %v10592_v28  ;;  %v5828_v6 = vld [vmem:[#allocation4 + $0x9c] sm:$0xf]  ;;  %v5357_v33 = vrot.slane %v5356_v48, 4  ;;  %v6162_v56 = vshll.u32 %v5900_v54, 16  ;;  %v6168_v23 = vshll.u32 %v5901_v13, 16 }
 0x53c   : > { %v14132_v39 = vpop.f32.mrf.mxu1  ;;  %v6161_v18 = vrot.slane %v6159_v52, 4  ;;  %v6178_v40 = vshll.u32 %v5902_v42, 16  ;;  %v5829_v8 = vld [vmem:[#allocation4 + $0xa0] sm:$0xf]  ;;  %5860 = vst [vmem:[#allocation2 + $0x330] sm:$0xf] %v5828_v6 }
 0x53d   : > { %8583 = vmatmul.bf16.gmra.mxu2 %v10588_v44  ;;  %v5365_v44 = vrot.slane %v5363_v31, 4  ;;  %v10593_v3 = vld [vmem:[#allocation2 + $0x15c] sm:$0xf0]  ;;  %v5362_v20 = vsel %vm11877_vm2, %v5357_v33, %v5361_v22  ;;  %v6164_v30 = vrot.slane %v6162_v56, 5  ;;  %v6170_v63 = vrot.slane %v6168_v23, 5 }
 0x53e   : > { %v8443_v47 = vpop.f32.mrf.mxu0  ;;  %v8357_v57 = vpop.f32.mrf.mxu3  ;;  %v5371_v43 = vrot.slane %v5369_v62, 5  ;;  %5523 = vst [vmem:[#allocation2 + $0x328] sm:$0xf] %v5362_v20  ;;  %v10620_v31 = vor.u32 %v11587_v2, %v10619_v51  ;;  %v5567_v6 = vld [vmem:[#allocation4 + $0x94] sm:$0xf]  ;;  %v10596_v62 = vor.u32 %v11575_v32, %v10593_v3 }
 0x53f   : > { %v14136_v14 = vadd.f32 %v8443_v47, %v8355_v11  ;;  %v5366_v27 = vor.u32 %v5365_v44, %v5361_v22  ;;  %v6172_v11 = vshrl.u32 %v5901_v13, 16  ;;  %v6165_v48 = vor.u32 %v6164_v30, %v6161_v18  ;;  %5861 = vst [vmem:[#allocation2 + $0x354] sm:$0xf] %v5829_v8  ;;  %v5566_v13 = vld [vmem:[#allocation4 + $0x90] sm:$0xe] }
 0x540   : > { %v8268_v28 = vpop.f32.mrf.mxu2  ;;  %v10621_v44 = vld [vmem:[#allocation2 + $0x19c] sm:$0xf0]  ;;  %v5568_v33 = vld [vmem:[#allocation4 + $0x98] sm:$0x1]  ;;  %v10400_v2 = vrot.slane %v5566_v13, 9 }
 0x541   : > { %v8269_v10 = vadd.f32 %v8268_v28, %v14114_v12  ;;  %v5367_v47 = vrot.slane %v5366_v27, 4  ;;  %v6174_v54 = vrot.slane %v6172_v11, 4  ;;  %v6166_v51 = vrot.slane %v6165_v48, 4  ;;  %v5073_v23 = vld [vmem:[#allocation4 + $0x9c] sm:$0xf] }
 0x542   : > { %v5708_v11 = vrot.slane %v5567_v6, 5  ;;  %v5374_v8 = vshrl.u32 %v5073_v23, 16  ;;  %v5377_v30 = vshll.u32 %v5073_v23, 16 }
 0x543   : > { %v8358_v59 = vadd.f32 %v8357_v57, %v8269_v10  ;;  %v10628_v57 = vor.u32 %v11588_v34, %v10627_v49  ;;  %v5372_v22 = vsel %vm11877_vm2, %v5367_v47, %v5371_v43  ;;  %v6175_v52 = vor.u32 %v6174_v54, %v6170_v63  ;;  %v5074_v34 = vld [vmem:[#allocation4 + $0xa0] sm:$0xf]  ;;  %v5075_v54 = vld [vmem:[#allocation4 + $0xa4] sm:$0x1] }
 0x544   : > { %v14141_v12 = vpop.f32.mrf.mxu1  ;;  %v6180_v10 = vrot.slane %v6178_v40, 5  ;;  %5524 = vst [vmem:[#allocation2 + $0x34c] sm:$0xf] %v5372_v22  ;;  %v5711_v49 = vrot.slane %v5568_v33, 5  ;;  %v11583_v40 = vld [vmem:[#allocation2 + $0x17c] sm:$0xf]  ;;  %v5709_v3 = vsel %vm12101_vm5, %v10400_v2, %v5708_v11 }
 0x545   : > { %v6176_v18 = vrot.slane %v6175_v52, 4  ;;  %v5383_v47 = vshll.u32 %v5074_v34, 16  ;;  %v5710_v43 = vrot.slane %v5708_v11, 4  ;;  %v10624_v13 = vor.u32 %v11583_v40, %v10621_v44  ;;  %5795 = vst [vmem:[#allocation2 + $0x32c] sm:$0xf] %v5709_v3 }
 0x546   : > { %v8446_v42 = vpop.f32.mrf.mxu0  ;;  %v8359_v28 = vpop.f32.mrf.mxu3  ;;  %v5393_v33 = vshll.u32 %v5075_v54, 16  ;;  %v5905_v44 = vld [vmem:[#allocation4 + $0xa4] sm:$0x1]  ;;  %v10655_v40 = vld [vmem:[#allocation2 + $0x1c0] sm:$0xf] }
 0x547   : > { %v14145_v56 = vadd.f32 %v8446_v42, %v8358_v59  ;;  %8499 = vmatmul.bf16.gmra.mxu1 %v10620_v31  ;;  %v6171_v59 = vsel %vm11877_vm2, %v6166_v51, %v6170_v63  ;;  %v6181_v32 = vsel %vm11877_vm2, %v6176_v18, %v6180_v10  ;;  %v5376_v31 = vrot.slane %v5374_v8, 4  ;;  %v5903_v42 = vld [vmem:[#allocation4 + $0x9c] sm:$0xf]  ;;  %v5830_v8 = vld [vmem:[#allocation4 + $0xa8] sm:$0xf] }
 0x548   : > { %v8270_v27 = vpop.f32.mrf.mxu2  ;;  %6354 = vst [vmem:[#allocation2 + $0x2ec] sm:$0xf] %v6171_v59  ;;  %v5712_v63 = vsel %vm12101_vm5, %v5710_v43, %v5711_v49  ;;  %v5385_v52 = vrot.slane %v5383_v47, 5  ;;  %v5387_v10 = vshrl.u32 %v5074_v34, 16  ;;  %v6183_v2 = vshrl.u32 %v5903_v42, 16 }
 0x549   : > { %8761 = vmatmul.bf16.gmra.mxu0 %v10596_v62  ;;  %v8271_v20 = vadd.f32 %v8270_v27, %v14132_v39  ;;  %6355 = vst [vmem:[#allocation2 + $0x310] sm:$0xf] %v6181_v32  ;;  %v5379_v39 = vrot.slane %v5377_v30, 5  ;;  %v5904_v62 = vld [vmem:[#allocation4 + $0xa0] sm:$0xf]  ;;  %v6186_v23 = vshll.u32 %v5903_v42, 16 }
 0x54a   : > { %5796 = vst [vmem:[#allocation2 + $0x350] sm:$0xf] %v5712_v63  ;;  %v6192_v11 = vshll.u32 %v5904_v62, 16  ;;  %v5831_v49 = vld [vmem:[#allocation4 + $0xac] sm:$0xf]  ;;  %v6185_v47 = vrot.slane %v6183_v2, 4 }
 0x54b   : > { %v8360_v48 = vadd.f32 %v8359_v28, %v8271_v20  ;;  %8677 = vmatmul.bf16.gmra.mxu3 %v10628_v57  ;;  %v5380_v6 = vor.u32 %v5379_v39, %v5376_v31  ;;  %v5389_v57 = vrot.slane %v5387_v10, 4  ;;  %v11596_v34 = vld [vmem:[#allocation2 + $0x1e0] sm:$0xf0]  ;;  %v6188_v32 = vrot.slane %v6186_v23, 5  ;;  %5862 = vst [vmem:[#allocation2 + $0x378] sm:$0xf] %v5830_v8 }
 0x54c   : > { %v14154_v22 = vpop.f32.mrf.mxu1  ;;  %v11584_v59 = vld [vmem:[#allocation2 + $0x184] sm:$0xf]  ;;  %v6196_v3 = vshrl.u32 %v5904_v62, 16  ;;  %v10629_v54 = vld [vmem:[#allocation2 + $0x1a4] sm:$0xf0]  ;;  %v6202_v10 = vshll.u32 %v5905_v44, 16 }
 0x54d   : > { %8588 = vmatmul.bf16.gmra.mxu2 %v10624_v13  ;;  %v5381_v18 = vrot.slane %v5380_v6, 4  ;;  %v5390_v30 = vor.u32 %v5389_v57, %v5385_v52  ;;  %v6194_v13 = vrot.slane %v6192_v11, 5  ;;  %5863 = vst [vmem:[#allocation2 + $0x39c] sm:$0xf] %v5831_v49  ;;  %v6189_v42 = vor.u32 %v6188_v32, %v6185_v47  ;;  %v10663_v62 = vld [vmem:[#allocation2 + $0x1c8] sm:$0xf] }
 0x54e   : > { %v8448_v51 = vpop.f32.mrf.mxu0  ;;  %v8362_v28 = vpop.f32.mrf.mxu3  ;;  %v6198_v63 = vrot.slane %v6196_v3, 4  ;;  %v11597_v2 = vld [vmem:[#allocation2 + $0x1e8] sm:$0xf0]  ;;  %v10632_v11 = vor.u32 %v11584_v59, %v10629_v54  ;;  %v5571_v49 = vld [vmem:[#allocation4 + $0xa4] sm:$0x1]  ;;  %v6204_v32 = vrot.slane %v6202_v10, 5 }
 0x54f   : > { %v14158_v27 = vadd.f32 %v8448_v51, %v8360_v48  ;;  %v5386_v31 = vsel %vm11877_vm2, %v5381_v18, %v5385_v52  ;;  %v5395_v48 = vrot.slane %v5393_v33, 5  ;;  %v5391_v39 = vrot.slane %v5390_v30, 4  ;;  %v5569_v51 = vld [vmem:[#allocation4 + $0x9c] sm:$0xe]  ;;  %v5570_v52 = vld [vmem:[#allocation4 + $0xa0] sm:$0xf] }
 0x550   : > { %v8273_v20 = vpop.f32.mrf.mxu2  ;;  %5525 = vst [vmem:[#allocation2 + $0x370] sm:$0xf] %v5386_v31  ;;  %v6190_v23 = vrot.slane %v6189_v42, 4  ;;  %v6199_v8 = vor.u32 %v6198_v63, %v6194_v13  ;;  %v10401_v33 = vrot.slane %v5569_v51, 9  ;;  %v10656_v18 = vor.u32 %v11596_v34, %v10655_v40  ;;  %v5077_v59 = vld [vmem:[#allocation4 + $0xac] sm:$0xf] }
 0x551   : > { %14933 = vst [vmem:[#allocation8_spill] sm:$0xff] %v14158_v27  ;;  %v8274_v43 = vadd.f32 %v8273_v20, %v14141_v12  ;;  %v5396_v12 = vsel %vm11877_vm2, %v5391_v39, %v5395_v48  ;;  %v5715_v20 = vrot.slane %v5570_v52, 5  ;;  %v5718_v3 = vrot.slane %v5571_v49, 5  ;;  %v11592_v39 = vld [vmem:[#allocation2 + $0x1c4] sm:$0xf] }
 0x552   : > { %5526 = vst [vmem:[#allocation2 + $0x394] sm:$0xf] %v5396_v12  ;;  %v6200_v47 = vrot.slane %v6199_v8, 4  ;;  %v10657_v42 = vld [vmem:[#allocation2 + $0x1e4] sm:$0xf0]  ;;  %v10664_v10 = vor.u32 %v11597_v2, %v10663_v62  ;;  %v5407_v52 = vshll.u32 %v5077_v59, 16 }
 0x553   : > { %v8363_v6 = vadd.f32 %v8362_v28, %v8274_v43  ;;  %v6195_v28 = vsel %vm11877_vm2, %v6190_v23, %v6194_v13  ;;  %v5076_v43 = vld [vmem:[#allocation4 + $0xa8] sm:$0xf]  ;;  %v5716_v40 = vsel %vm12101_vm5, %v10401_v33, %v5715_v20  ;;  %v5717_v34 = vrot.slane %v5715_v20, 4  ;;  %v5078_v12 = vld [vmem:[#allocation4 + $0xb0] sm:$0x1] }
 0x554   : > { %v14163_v57 = vpop.f32.mrf.mxu1  ;;  %6356 = vst [vmem:[#allocation2 + $0x334] sm:$0xf] %v6195_v28  ;;  %v5398_v54 = vshrl.u32 %v5076_v43, 16  ;;  %v6205_v13 = vsel %vm11877_vm2, %v6200_v47, %v6204_v32  ;;  %v5401_v8 = vshll.u32 %v5076_v43, 16  ;;  %v5411_v33 = vshrl.u32 %v5077_v59, 16 }
 0x555   : > { %5797 = vst [vmem:[#allocation2 + $0x374] sm:$0xf] %v5716_v40  ;;  %v5719_v51 = vsel %vm12101_vm5, %v5717_v34, %v5718_v3  ;;  %v5907_v62 = vld [vmem:[#allocation4 + $0xac] sm:$0xf]  ;;  %v5908_v2 = vld [vmem:[#allocation4 + $0xb0] sm:$0x1] }
 0x556   : > { %v8451_v30 = vpop.f32.mrf.mxu0  ;;  %v8364_v44 = vpop.f32.mrf.mxu3  ;;  %6357 = vst [vmem:[#allocation2 + $0x358] sm:$0xf] %v6205_v13  ;;  %v5400_v23 = vrot.slane %v5398_v54, 4  ;;  %v5403_v20 = vrot.slane %v5401_v8, 5  ;;  %v5413_v28 = vrot.slane %v5411_v33, 4  ;;  %v5417_v47 = vshll.u32 %v5078_v12, 16 }
 0x557   : > { %v14169_v31 = vadd.f32 %v8451_v30, %v8363_v6  ;;  %8504 = vmatmul.bf16.gmra.mxu1 %v10656_v18  ;;  %v11747_v6 = vld [vmem:[%s14872_s2 + $0x218] sm:$0xff]  ;;  %5798 = vst [vmem:[#allocation2 + $0x398] sm:$0xf] %v5719_v51  ;;  %v5409_v30 = vrot.slane %v5407_v52, 5  ;;  %v6216_v40 = vshll.u32 %v5907_v62, 16  ;;  %v6220_v54 = vshrl.u32 %v5907_v62, 16 }
 0x558   : > { %v8275_v48 = vpop.f32.mrf.mxu2  ;;  %8826 = vmatpush.bf16.msra.mxu1 %v11747_v6  ;;  %v5404_v59 = vor.u32 %v5403_v20, %v5400_v23  ;;  %v10691_v13 = vld [vmem:[#allocation2 + $0x208] sm:$0xf]  ;;  %v5833_v12 = vld [vmem:[#allocation4 + $0xb8] sm:$0xf]  ;;  %v10665_v33 = vld [vmem:[#allocation2 + $0x1ec] sm:$0xf0] }
 0x559   : > { %14934 = vst [vmem:[#allocation7_spill] sm:$0xff] %v14169_v31  ;;  %8766 = vmatmul.bf16.gmra.mxu0 %v10632_v11  ;;  %v8276_v63 = vadd.f32 %v8275_v48, %v14154_v22  ;;  %v10660_v11 = vor.u32 %v11592_v39, %v10657_v42  ;;  %v5906_v22 = vld [vmem:[#allocation4 + $0xa8] sm:$0xf]  ;;  %v6226_v48 = vshll.u32 %v5908_v2, 16  ;;  %v5832_v39 = vld [vmem:[#allocation4 + $0xb4] sm:$0xf] }
 0x55a   : > { %v6207_v32 = vshrl.u32 %v5906_v22, 16  ;;  %v6210_v3 = vshll.u32 %v5906_v22, 16  ;;  %v6218_v8 = vrot.slane %v6216_v40, 5  ;;  %v5419_v31 = vrot.slane %v5417_v47, 5  ;;  %5864 = vst [vmem:[#allocation2 + $0x3c0] sm:$0xf] %v5832_v39 }
 0x55b   : > { %v8365_v18 = vadd.f32 %v8364_v44, %v8276_v63  ;;  %8682 = vmatmul.bf16.gmra.mxu3 %v10664_v10  ;;  %v5414_v44 = vor.u32 %v5413_v28, %v5409_v30  ;;  %v11605_v63 = vld [vmem:[#allocation2 + $0x228] sm:$0xf0]  ;;  %v6222_v27 = vrot.slane %v6220_v54, 4  ;;  %v6228_v2 = vrot.slane %v6226_v48, 5  ;;  %5865 = vst [vmem:[#allocation2 + $0x3e4] sm:$0xf] %v5833_v12 }
 0x55c   : > { %v14181_v49 = vpop.f32.mrf.mxu1  ;;  %v11593_v10 = vld [vmem:[#allocation2 + $0x1cc] sm:$0xf]  ;;  %v6209_v6 = vrot.slane %v6207_v32, 4  ;;  %v6212_v51 = vrot.slane %v6210_v3, 5  ;;  %v5574_v40 = vld [vmem:[#allocation4 + $0xb0] sm:$0x1]  ;;  %v10692_v54 = vor.u32 %v11605_v63, %v10691_v13 }
 0x55d   : > { %8593 = vmatmul.bf16.gmra.mxu2 %v10660_v11  ;;  %v5405_v11 = vrot.slane %v5404_v59, 4  ;;  %v5415_v22 = vrot.slane %v5414_v44, 4  ;;  %v6223_v32 = vor.u32 %v6222_v27, %v6218_v8  ;;  %v5573_v3 = vld [vmem:[#allocation4 + $0xac] sm:$0xf]  ;;  %v10668_v48 = vor.u32 %v11593_v10, %v10665_v33  ;;  %v10699_v39 = vld [vmem:[#allocation2 + $0x210] sm:$0xf] }
 0x55e   : > { %v8453_v43 = vpop.f32.mrf.mxu0  ;;  %v8367_v34 = vpop.f32.mrf.mxu3  ;;  %v6213_v62 = vor.u32 %v6212_v51, %v6209_v6  ;;  %v5722_v44 = vrot.slane %v5573_v3, 5  ;;  %v11606_v6 = vld [vmem:[#allocation2 + $0x230] sm:$0xf0]  ;;  %v5725_v51 = vrot.slane %v5574_v40, 5  ;;  %v5080_v12 = vld [vmem:[#allocation4 + $0xb8] sm:$0xf] }
 0x55f   : > { %v14183_v42 = vadd.f32 %v8453_v43, %v8365_v18  ;;  %v5572_v18 = vld [vmem:[#allocation4 + $0xa8] sm:$0xe]  ;;  %v5410_v20 = vsel %vm11877_vm2, %v5405_v11, %v5409_v30  ;;  %v5420_v28 = vsel %vm11877_vm2, %v5415_v22, %v5419_v31  ;;  %v6224_v30 = vrot.slane %v6223_v32, 4  ;;  %v5081_v11 = vld [vmem:[#allocation4 + $0xbc] sm:$0x1] }
 0x560   : > { %v8278_v52 = vpop.f32.mrf.mxu2  ;;  %5527 = vst [vmem:[#allocation2 + $0x3b8] sm:$0xf] %v5410_v20  ;;  %v6214_v47 = vrot.slane %v6213_v62, 4  ;;  %v10402_v59 = vrot.slane %v5572_v18, 9  ;;  %v5431_v10 = vshll.u32 %v5080_v12, 16  ;;  %v5435_v33 = vshrl.u32 %v5080_v12, 16 }
 0x561   : > { %v8279_v23 = vadd.f32 %v8278_v52, %v14163_v57  ;;  %5528 = vst [vmem:[#allocation2 + $0x3dc] sm:$0xf] %v5420_v28  ;;  %v5079_v52 = vld [vmem:[#allocation4 + $0xb4] sm:$0xf]  ;;  %v6229_v13 = vsel %vm11877_vm2, %v6224_v30, %v6228_v2  ;;  %v5441_v32 = vshll.u32 %v5081_v11, 16 }
 0x562   : > { %v6219_v27 = vsel %vm11877_vm2, %v6214_v47, %v6218_v8  ;;  %v5723_v31 = vsel %vm12101_vm5, %v10402_v59, %v5722_v44  ;;  %v5422_v22 = vshrl.u32 %v5079_v52, 16  ;;  %v5425_v63 = vshll.u32 %v5079_v52, 16  ;;  %v10693_v8 = vld [vmem:[#allocation2 + $0x22c] sm:$0xf0]  ;;  %6359 = vst [vmem:[#allocation2 + $0x3a0] sm:$0xf] %v6229_v13 }
 0x563   : > { %v8368_v43 = vadd.f32 %v8367_v34, %v8279_v23  ;;  %v5724_v34 = vrot.slane %v5722_v44, 4  ;;  %6358 = vst [vmem:[#allocation2 + $0x37c] sm:$0xf] %v6219_v27  ;;  %v5433_v47 = vrot.slane %v5431_v10, 5  ;;  %v5909_v59 = vld [vmem:[#allocation4 + $0xb4] sm:$0xf]  ;;  %v10700_v44 = vor.u32 %v11606_v6, %v10699_v39 }
 0x564   : > { %v14190_v57 = vpop.f32.mrf.mxu1  ;;  %v5424_v28 = vrot.slane %v5422_v22, 4  ;;  %5799 = vst [vmem:[#allocation2 + $0x3bc] sm:$0xf] %v5723_v31  ;;  %v5427_v40 = vrot.slane %v5425_v63, 5  ;;  %v11601_v30 = vld [vmem:[#allocation2 + $0x20c] sm:$0xf] }
 0x565   : > { %v5726_v20 = vsel %vm12101_vm5, %v5724_v34, %v5725_v51  ;;  %v5910_v27 = vld [vmem:[#allocation4 + $0xb8] sm:$0xf]  ;;  %v5911_v12 = vld [vmem:[#allocation4 + $0xbc] sm:$0x1]  ;;  %v6231_v34 = vshrl.u32 %v5909_v59, 16  ;;  %v6234_v11 = vshll.u32 %v5909_v59, 16 }
 0x566   : > { %v8456_v23 = vpop.f32.mrf.mxu0  ;;  %v8369_v62 = vpop.f32.mrf.mxu3  ;;  %5800 = vst [vmem:[#allocation2 + $0x3e0] sm:$0xf] %v5726_v20  ;;  %v5428_v52 = vor.u32 %v5427_v40, %v5424_v28  ;;  %v5834_v31 = vld [vmem:[#allocation4 + $0xc0] sm:$0xf]  ;;  %v6240_v63 = vshll.u32 %v5910_v27, 16 }
 0x567   : > { %v14198_v18 = vadd.f32 %v8456_v23, %v8368_v43  ;;  %8509 = vmatmul.bf16.gmra.mxu1 %v10692_v54  ;;  %v5437_v43 = vrot.slane %v5435_v33, 4  ;;  %v10696_v54 = vor.u32 %v11601_v30, %v10693_v8  ;;  %v14205_v39 = vld [vmem:[#allocation4 + $0x1c] sm:$0xf]  ;;  %v6233_v10 = vrot.slane %v6231_v34, 4  ;;  %5866 = vst [vmem:[#allocation2 + $0x408] sm:$0xf] %v5834_v31 }
 0x568   : > { %v8280_v3 = vpop.f32.mrf.mxu2  ;;  %v5429_v13 = vrot.slane %v5428_v52, 4  ;;  %v6236_v33 = vrot.slane %v6234_v11, 5  ;;  %v6250_v8 = vshll.u32 %v5911_v12, 16  ;;  %v6242_v40 = vrot.slane %v6240_v63, 5  ;;  %v11614_v52 = vld [vmem:[#allocation2 + $0x270] sm:$0xf0] }
 0x569   : > { %8771 = vmatmul.bf16.gmra.mxu0 %v10668_v48  ;;  %v8281_v2 = vadd.f32 %v8280_v3, %v14181_v49  ;;  %v5438_v51 = vor.u32 %v5437_v43, %v5433_v47  ;;  %v5443_v48 = vrot.slane %v5441_v32, 5  ;;  %v6244_v49 = vshrl.u32 %v5910_v27, 16  ;;  %v5835_v32 = vld [vmem:[#allocation4 + $0xc4] sm:$0xf]  ;;  %v5575_v43 = vld [vmem:[#allocation4 + $0xb4] sm:$0xe] }
 0x56a   : > { %v5434_v3 = vsel %vm11877_vm2, %v5429_v13, %v5433_v47  ;;  %v6237_v30 = vor.u32 %v6236_v33, %v6233_v10  ;;  %v10403_v47 = vrot.slane %v5575_v43, 9  ;;  %v6252_v34 = vrot.slane %v6250_v8, 5  ;;  %5867 = vst [vmem:[#allocation2 + $0x42c] sm:$0xf] %v5835_v32  ;;  %v11602_v31 = vld [vmem:[#allocation2 + $0x214] sm:$0xf] }
 0x56b   : > { %v8370_v23 = vadd.f32 %v8369_v62, %v8281_v2  ;;  %8687 = vmatmul.bf16.gmra.mxu3 %v10700_v44  ;;  %v5439_v6 = vrot.slane %v5438_v51, 4  ;;  %v8211_v62 = vadd.f32 %v13736_v9, %v13711_v53  ;;  %v6246_v59 = vrot.slane %v6244_v49, 4  ;;  %5529 = vst [vmem:[#allocation2 + $0x400] sm:$0xf] %v5434_v3  ;;  %v10727_v9 = vld [vmem:[#allocation2 + $0x250] sm:$0xf] }
 0x56c   : > { %v14203_v22 = vpop.f32.mrf.mxu1  ;;  %v6238_v51 = vrot.slane %v6237_v30, 4  ;;  %v5082_v49 = vld [vmem:[#allocation4 + $0xc0] sm:$0xf]  ;;  %v10701_v10 = vld [vmem:[#allocation2 + $0x234] sm:$0xf0] }
 0x56d   : > { %8598 = vmatmul.bf16.gmra.mxu2 %v10696_v54  ;;  %v5444_v44 = vsel %vm11877_vm2, %v5439_v6, %v5443_v48  ;;  %v6247_v27 = vor.u32 %v6246_v59, %v6242_v40  ;;  %v8300_v11 = vadd.f32 %v13729_v15, %v8211_v62  ;;  %v5577_v48 = vld [vmem:[#allocation4 + $0xbc] sm:$0x1]  ;;  %v10735_v33 = vld [vmem:[#allocation2 + $0x258] sm:$0xf]  ;;  %v5084_v30 = vld [vmem:[#allocation4 + $0xc8] sm:$0x1] }
 0x56e   : > { %v8458_v20 = vpop.f32.mrf.mxu0  ;;  %v8372_v28 = vpop.f32.mrf.mxu3  ;;  %5530 = vst [vmem:[#allocation2 + $0x424] sm:$0xf] %v5444_v44  ;;  %v6243_v3 = vsel %vm11877_vm2, %v6238_v51, %v6242_v40  ;;  %v5732_v59 = vrot.slane %v5577_v48, 5  ;;  %v5446_v44 = vshrl.u32 %v5082_v49, 16  ;;  %v14220_v8 = vld [vmem:[#allocation4 + $0x18] sm:$0xe]  ;;  %v10728_v40 = vor.u32 %v11614_v52, %v10727_v9 }
 0x56f   : > { %v14211_v2 = vadd.f32 %v8458_v20, %v8370_v23  ;;  %v5576_v23 = vld [vmem:[#allocation4 + $0xb8] sm:$0xf]  ;;  %v6248_v13 = vrot.slane %v6247_v27, 4  ;;  %v11615_v20 = vld [vmem:[#allocation2 + $0x278] sm:$0xf0]  ;;  %v5449_v43 = vshll.u32 %v5082_v49, 16 }
 0x570   : > { %v8283_v53 = vpop.f32.mrf.mxu2  ;;  %v5729_v63 = vrot.slane %v5576_v23, 5  ;;  %6360 = vst [vmem:[#allocation2 + $0x3c4] sm:$0xf] %v6243_v3  ;;  %v5448_v27 = vrot.slane %v5446_v44, 4  ;;  %v5912_v51 = vld [vmem:[#allocation4 + $0xc0] sm:$0xf]  ;;  %v8389_v23 = vadd.f32 %v13754_v1, %v8300_v11  ;;  %v10736_v44 = vor.u32 %v11615_v20, %v10735_v33 }
 0x571   : > { %14935 = vst [vmem:[#allocation9_spill] sm:$0xff] %v14211_v2  ;;  %v8284_v12 = vadd.f32 %v8283_v53, %v14190_v57  ;;  %v5083_v57 = vld [vmem:[#allocation4 + $0xc4] sm:$0xf]  ;;  %v6253_v15 = vsel %vm11877_vm2, %v6248_v13, %v6252_v34  ;;  %v10729_v34 = vld [vmem:[#allocation2 + $0x274] sm:$0xf0]  ;;  %v5465_v52 = vshll.u32 %v5084_v30, 16 }
 0x572   : > { %v5730_v62 = vsel %vm12101_vm5, %v10403_v47, %v5729_v63  ;;  %6361 = vst [vmem:[#allocation2 + $0x3e8] sm:$0xf] %v6253_v15  ;;  %v5451_v47 = vrot.slane %v5449_v43, 5  ;;  %v5913_v15 = vld [vmem:[#allocation4 + $0xc4] sm:$0xf]  ;;  %v6255_v2 = vshrl.u32 %v5912_v51, 16 }
 0x573   : > { %v8373_v6 = vadd.f32 %v8372_v28, %v8284_v12  ;;  %v5731_v28 = vrot.slane %v5729_v63, 4  ;;  %v5455_v12 = vshll.u32 %v5083_v57, 16  ;;  %5801 = vst [vmem:[#allocation2 + $0x404] sm:$0xf] %v5730_v62  ;;  %v5459_v63 = vshrl.u32 %v5083_v57, 16 }
 0x574   : > { %v8475_v32 = vpop.f32.mrf.mxu1  ;;  %v5452_v1 = vor.u32 %v5451_v47, %v5448_v27  ;;  %v5914_v57 = vld [vmem:[#allocation4 + $0xc8] sm:$0x1]  ;;  %v6257_v33 = vrot.slane %v6255_v2, 4  ;;  %v6264_v20 = vshll.u32 %v5913_v15, 16 }
 0x575   : > { %v14227_v53 = vadd.f32 %v8475_v32, %v13733_v45  ;;  %v5733_v13 = vsel %vm12101_vm5, %v5731_v28, %v5732_v59  ;;  %v10704_v45 = vor.u32 %v11602_v31, %v10701_v10  ;;  %v5457_v9 = vrot.slane %v5455_v12, 5  ;;  %v11610_v32 = vld [vmem:[#allocation2 + $0x254] sm:$0xf] }
 0x576   : > { %v8461_v48 = vpop.f32.mrf.mxu0  ;;  %v8374_v54 = vpop.f32.mrf.mxu3  ;;  %5802 = vst [vmem:[#allocation2 + $0x428] sm:$0xf] %v5733_v13  ;;  %v5461_v11 = vrot.slane %v5459_v63, 4  ;;  %v10732_v62 = vor.u32 %v11610_v32, %v10729_v34  ;;  %v6258_v31 = vshll.u32 %v5912_v51, 16  ;;  %v10405_v10 = vrot.slane %v14220_v8, 9 }
 0x577   : > { %v14232_v49 = vadd.f32 %v8461_v48, %v8373_v6  ;;  %8514 = vmatmul.bf16.gmra.mxu1 %v10728_v40  ;;  %v11746_v6 = vld [vmem:[%s14872_s2 + $0x210] sm:$0xff]  ;;  %v5453_v28 = vrot.slane %v5452_v1, 4  ;;  %v5467_v40 = vrot.slane %v5465_v52, 5  ;;  %v6268_v12 = vshrl.u32 %v5913_v15, 16  ;;  %v5580_v32 = vld [vmem:[#allocation4 + $0xc8] sm:$0x1] }
 0x578   : > { %v8285_v3 = vpop.f32.mrf.mxu2  ;;  %v5462_v30 = vor.u32 %v5461_v11, %v5457_v9  ;;  %8827 = vmatpush.bf16.msra.mxu1 %v11746_v6  ;;  %v6260_v27 = vrot.slane %v6258_v31, 5  ;;  %v6266_v47 = vrot.slane %v6264_v20, 5  ;;  %v6274_v51 = vshll.u32 %v5914_v57, 16  ;;  %v6368_v31 = vld [vmem:[#allocation4 + $0x20] sm:$0x1] }
 0x579   : > { %8776 = vmatmul.bf16.gmra.mxu0 %v10704_v45  ;;  %v8286_v59 = vadd.f32 %v8285_v3, %v14203_v22  ;;  %v5578_v22 = vld [vmem:[#allocation4 + $0xc0] sm:$0xe]  ;;  %v5458_v34 = vsel %vm11877_vm2, %v5453_v28, %v5457_v9  ;;  %v6270_v8 = vrot.slane %v6268_v12, 4  ;;  %v14936_v45 = vrot.slane %v14205_v39, 5  ;;  %v6370_v12 = vld [vmem:[#allocation4 + $0x28] sm:$0xf] }
 0x57a   : > { %v5463_v13 = vrot.slane %v5462_v30, 4  ;;  %5531 = vst [vmem:[#allocation2 + $0x448] sm:$0xf] %v5458_v34  ;;  %v6261_v2 = vor.u32 %v6260_v27, %v6257_v33  ;;  %v10404_v1 = vrot.slane %v5578_v22, 9  ;;  %v5739_v33 = vrot.slane %v5580_v32, 5 }
 0x57b   : > { %v8375_v43 = vadd.f32 %v8374_v54, %v8286_v59  ;;  %8692 = vmatmul.bf16.gmra.mxu3 %v10736_v44  ;;  %v5579_v54 = vld [vmem:[#allocation4 + $0xc4] sm:$0xf]  ;;  %v6465_v52 = vsel %vm12101_vm5, %v10405_v10, %v14936_v45  ;;  %v10763_v59 = vld [vmem:[#allocation2 + $0x298] sm:$0xf]  ;;  %v6271_v57 = vor.u32 %v6270_v8, %v6266_v47  ;;  %v6276_v10 = vrot.slane %v6274_v51, 5 }
 0x57c   : > { %v8477_v48 = vpop.f32.mrf.mxu1  ;;  %v5468_v9 = vsel %vm11877_vm2, %v5463_v13, %v5467_v40  ;;  %v6262_v6 = vrot.slane %v6261_v2, 4  ;;  %v5736_v30 = vrot.slane %v5579_v54, 5  ;;  %6606 = vst [vmem:[#allocation2 + $0x20] sm:$0xf] %v6465_v52  ;;  %v6467_v27 = vrot.slane %v6368_v31, 5 }
 0x57d   : > { %v14241_v63 = vadd.f32 %v8477_v48, %v8389_v23  ;;  %8603 = vmatmul.bf16.gmra.mxu2 %v10732_v62  ;;  %v14937_v23 = vmov %v14936_v45  ;;  %v11623_v62 = vld [vmem:[#allocation2 + $0x2b8] sm:$0xf0]  ;;  %5532 = vst [vmem:[#allocation2 + $0x46c] sm:$0xf] %v5468_v9  ;;  %v6272_v39 = vrot.slane %v6271_v57, 4  ;;  %v6471_v54 = vrot.slane %v6370_v12, 5 }
 0x57e   : > { %v8463_v3 = vpop.f32.mrf.mxu0  ;;  %v8653_v44 = vpop.f32.mrf.mxu3  ;;  %v6466_v11 = vrot.slane %v14937_v23, 4  ;;  %v6267_v40 = vsel %vm11877_vm2, %v6262_v6, %v6266_v47  ;;  %v11611_v22 = vld [vmem:[#allocation2 + $0x25c] sm:$0xf]  ;;  %v10737_v48 = vld [vmem:[#allocation2 + $0x27c] sm:$0xf0]  ;;  %v5737_v34 = vsel %vm12101_vm5, %v10404_v1, %v5736_v30  ;;  %v5738_v13 = vrot.slane %v5736_v30, 4 }
 0x57f   : > { %v14251_v15 = vadd.f32 %v8463_v3, %v8375_v43  ;;  %v6369_v43 = vld [vmem:[#allocation4 + $0x24] sm:$0xe]  ;;  %6362 = vst [vmem:[#allocation2 + $0x40c] sm:$0xf] %v6267_v40  ;;  %v6371_v51 = vld [vmem:[#allocation4 + $0x2c] sm:$0x1]  ;;  %v10764_v3 = vor.u32 %v11623_v62, %v10763_v59 }
 0x580   : > { %v8564_v28 = vpop.f32.mrf.mxu2  ;;  %v10406_v2 = vrot.slane %v6369_v43, 9  ;;  %5803 = vst [vmem:[#allocation2 + $0x44c] sm:$0xf] %v5737_v34  ;;  %v6468_v47 = vsel %vm12101_vm5, %v6466_v11, %v6467_v27  ;;  %v6372_v45 = vld [vmem:[#allocation4 + $0x30] sm:$0xe]  ;;  %v5740_v1 = vsel %vm12101_vm5, %v5738_v13, %v5739_v33  ;;  %v6474_v23 = vrot.slane %v6371_v51, 5 }
 0x581   : > { %v8565_v20 = vadd.f32 %v8564_v28, %v14227_v53  ;;  %v6277_v53 = vsel %vm11877_vm2, %v6272_v39, %v6276_v10  ;;  %v10771_v9 = vld [vmem:[#allocation2 + $0x2a0] sm:$0xf]  ;;  %v11624_v32 = vld [vmem:[#allocation2 + $0x2c0] sm:$0xf0]  ;;  %v6373_v6 = vld [vmem:[#allocation4 + $0x34] sm:$0xf]  ;;  %v10740_v33 = vor.u32 %v11611_v22, %v10737_v48 }
 0x582   : > { %6363 = vst [vmem:[#allocation2 + $0x430] sm:$0xf] %v6277_v53  ;;  %v6472_v24 = vsel %vm12101_vm5, %v10406_v2, %v6471_v54  ;;  %v6473_v11 = vrot.slane %v6471_v54, 4  ;;  %v6374_v57 = vld [vmem:[#allocation4 + $0x38] sm:$0x1]  ;;  %v10407_v31 = vrot.slane %v6372_v45, 9  ;;  %v10772_v51 = vor.u32 %v11624_v32, %v10771_v9 }
 0x583   : > { %v8654_v8 = vadd.f32 %v8653_v44, %v8565_v20  ;;  %5804 = vst [vmem:[#allocation2 + $0x470] sm:$0xf] %v5740_v1  ;;  %v10765_v62 = vld [vmem:[#allocation2 + $0x2bc] sm:$0xf0]  ;;  %v6478_v10 = vrot.slane %v6373_v6, 5  ;;  %v6481_v20 = vrot.slane %v6374_v57, 5 }
 0x584   : > { %v8480_v52 = vpop.f32.mrf.mxu1  ;;  %6607 = vst [vmem:[#allocation2 + $0x44] sm:$0xf] %v6468_v47  ;;  %v6375_v40 = vld [vmem:[#allocation4 + $0x3c] sm:$0xe]  ;;  %v6376_v12 = vld [vmem:[#allocation4 + $0x40] sm:$0xf] }
 0x585   : > { %v14265_v44 = vadd.f32 %v8480_v52, %v13776_v37  ;;  %v6475_v37 = vsel %vm12101_vm5, %v6473_v11, %v6474_v23  ;;  %6608 = vst [vmem:[#allocation2 + $0x68] sm:$0xf] %v6472_v24  ;;  %v6479_v27 = vsel %vm12101_vm5, %v10407_v31, %v6478_v10  ;;  %v6480_v43 = vrot.slane %v6478_v10, 4  ;;  %v6377_v22 = vld [vmem:[#allocation4 + $0x44] sm:$0x1] }
 0x586   : > { %v8742_v28 = vpop.f32.mrf.mxu0  ;;  %v8655_v59 = vpop.f32.mrf.mxu3  ;;  %6609 = vst [vmem:[#allocation2 + $0x8c] sm:$0xf] %v6475_v37  ;;  %v10408_v34 = vrot.slane %v6375_v40, 9  ;;  %v11619_v48 = vld [vmem:[#allocation2 + $0x29c] sm:$0xf] }
 0x587   : > { %v14269_v30 = vadd.f32 %v8742_v28, %v8654_v8  ;;  %8519 = vmatmul.bf16.gmra.mxu1 %v10764_v3  ;;  %6610 = vst [vmem:[#allocation2 + $0xb0] sm:$0xf] %v6479_v27  ;;  %v6482_v2 = vsel %vm12101_vm5, %v6480_v43, %v6481_v20  ;;  %v6485_v8 = vrot.slane %v6376_v12, 5  ;;  %v6378_v53 = vld [vmem:[#allocation4 + $0x48] sm:$0xe]  ;;  %v10768_v54 = vor.u32 %v11619_v48, %v10765_v62 }
 0x588   : > { %v8566_v39 = vpop.f32.mrf.mxu2  ;;  %6611 = vst [vmem:[#allocation2 + $0xd4] sm:$0xf] %v6482_v2  ;;  %v6379_v45 = vld [vmem:[#allocation4 + $0x4c] sm:$0xf]  ;;  %v6380_v9 = vld [vmem:[#allocation4 + $0x50] sm:$0x1] }
 0x589   : > { %8781 = vmatmul.bf16.gmra.mxu0 %v10740_v33  ;;  %v8567_v13 = vadd.f32 %v8566_v39, %v14241_v63  ;;  %v6486_v3 = vsel %vm12101_vm5, %v10408_v34, %v6485_v8  ;;  %v6487_v1 = vrot.slane %v6485_v8, 4  ;;  %v6488_v63 = vrot.slane %v6377_v22, 5  ;;  %v6381_v28 = vld [vmem:[#allocation4 + $0x54] sm:$0xe]  ;;  %v10799_v20 = vld [vmem:[#allocation2 + $0x2e0] sm:$0xf] }
 0x58a   : > { %v10409_v32 = vrot.slane %v6378_v53, 9  ;;  %6612 = vst [vmem:[#allocation2 + $0xf8] sm:$0xf] %v6486_v3  ;;  %v6492_v6 = vrot.slane %v6379_v45, 5  ;;  %v6495_v31 = vrot.slane %v6380_v9, 5 }
 0x58b   : > { %8697 = vmatmul.bf16.gmra.mxu3 %v10772_v51  ;;  %v8656_v47 = vadd.f32 %v8655_v59, %v8567_v13  ;;  %v6489_v57 = vsel %vm12101_vm5, %v6487_v1, %v6488_v63  ;;  %v6382_v59 = vld [vmem:[#allocation4 + $0x58] sm:$0xf]  ;;  %v11632_v40 = vld [vmem:[#allocation2 + $0x300] sm:$0xf0]  ;;  %v6383_v39 = vld [vmem:[#allocation4 + $0x5c] sm:$0x1] }
 0x58c   : > { %v8482_v52 = vpop.f32.mrf.mxu1  ;;  %6613 = vst [vmem:[#allocation2 + $0x11c] sm:$0xf] %v6489_v57  ;;  %v6493_v10 = vsel %vm12101_vm5, %v10409_v32, %v6492_v6  ;;  %v6494_v33 = vrot.slane %v6492_v6, 4  ;;  %v6499_v12 = vrot.slane %v6382_v59, 5  ;;  %v6384_v34 = vld [vmem:[#allocation4 + $0x60] sm:$0xe]  ;;  %v10800_v32 = vor.u32 %v11632_v40, %v10799_v20 }
 0x58d   : > { %v14281_v23 = vadd.f32 %v8482_v52, %v13806_v60  ;;  %8608 = vmatmul.bf16.gmra.mxu2 %v10768_v54  ;;  %v10410_v60 = vrot.slane %v6381_v28, 9  ;;  %6614 = vst [vmem:[#allocation2 + $0x140] sm:$0xf] %v6493_v10  ;;  %v6385_v13 = vld [vmem:[#allocation4 + $0x64] sm:$0xf]  ;;  %v6502_v53 = vrot.slane %v6383_v39, 5 }
 0x58e   : > { %v8744_v24 = vpop.f32.mrf.mxu0  ;;  %v8658_v11 = vpop.f32.mrf.mxu3  ;;  %v6496_v43 = vsel %vm12101_vm5, %v6494_v33, %v6495_v31  ;;  %v11620_v51 = vld [vmem:[#allocation2 + $0x2a4] sm:$0xf]  ;;  %v6386_v22 = vld [vmem:[#allocation4 + $0x68] sm:$0x1]  ;;  %v6501_v8 = vrot.slane %v6499_v12, 4  ;;  %v10411_v1 = vrot.slane %v6384_v34, 9 }
 0x58f   : > { %v14285_v62 = vadd.f32 %v8744_v24, %v8656_v47  ;;  %6615 = vst [vmem:[#allocation2 + $0x164] sm:$0xf] %v6496_v43  ;;  %v6500_v2 = vsel %vm12101_vm5, %v10410_v60, %v6499_v12  ;;  %v6387_v47 = vld [vmem:[#allocation4 + $0x6c] sm:$0xe]  ;;  %v6388_v54 = vld [vmem:[#allocation4 + $0x70] sm:$0xf] }
 0x590   : > { %v8569_v37 = vpop.f32.mrf.mxu2  ;;  %v10773_v52 = vld [vmem:[#allocation2 + $0x2c4] sm:$0xf0]  ;;  %v11633_v3 = vld [vmem:[#allocation2 + $0x308] sm:$0xf0]  ;;  %6616 = vst [vmem:[#allocation2 + $0x188] sm:$0xf] %v6500_v2  ;;  %v6503_v6 = vsel %vm12101_vm5, %v6501_v8, %v6502_v53 }
 0x591   : > { %v8570_v27 = vadd.f32 %v8569_v37, %v14265_v44  ;;  %v10807_v44 = vld [vmem:[#allocation2 + $0x2e8] sm:$0xf]  ;;  %v6506_v63 = vrot.slane %v6385_v13, 5  ;;  %v6389_v24 = vld [vmem:[#allocation4 + $0x74] sm:$0x1]  ;;  %v6509_v33 = vrot.slane %v6386_v22, 5 }
 0x592   : > { %v6390_v57 = vld [vmem:[#allocation4 + $0x78] sm:$0xe]  ;;  %6617 = vst [vmem:[#allocation2 + $0x1ac] sm:$0xf] %v6503_v6  ;;  %v6513_v60 = vrot.slane %v6388_v54, 5  ;;  %v6516_v34 = vrot.slane %v6389_v24, 5 }
 0x593   : > { %v8659_v48 = vadd.f32 %v8658_v11, %v8570_v27  ;;  %v10412_v11 = vrot.slane %v6387_v47, 9  ;;  %v6507_v59 = vsel %vm12101_vm5, %v10411_v1, %v6506_v63  ;;  %v6508_v10 = vrot.slane %v6506_v63, 4  ;;  %v10801_v20 = vld [vmem:[#allocation2 + $0x304] sm:$0xf0]  ;;  %v6391_v13 = vld [vmem:[#allocation4 + $0x7c] sm:$0xf] }
 0x594   : > { %v8485_v45 = vpop.f32.mrf.mxu1  ;;  %6618 = vst [vmem:[#allocation2 + $0x1d0] sm:$0xf] %v6507_v59  ;;  %v10413_v40 = vrot.slane %v6390_v57, 9  ;;  %v6515_v12 = vrot.slane %v6513_v60, 4  ;;  %v6392_v2 = vld [vmem:[#allocation4 + $0x80] sm:$0x1] }
 0x595   : > { %v14295_v9 = vadd.f32 %v8485_v45, %v13825_v16  ;;  %v10776_v16 = vor.u32 %v11620_v51, %v10773_v52  ;;  %v6510_v27 = vsel %vm12101_vm5, %v6508_v10, %v6509_v33  ;;  %v6514_v43 = vsel %vm12101_vm5, %v10412_v11, %v6513_v60  ;;  %v11628_v8 = vld [vmem:[#allocation2 + $0x2e4] sm:$0xf]  ;;  %v11745_v51 = vld [vmem:[%s14872_s2 + $0x208] sm:$0xff]  ;;  %v6397_v33 = vld [vmem:[#allocation4 + $0x94] sm:$0xf] }
 0x596   : > { %v8747_v31 = vpop.f32.mrf.mxu0  ;;  %v8660_v28 = vpop.f32.mrf.mxu3  ;;  %6619 = vst [vmem:[#allocation2 + $0x1f4] sm:$0xf] %v6510_v27  ;;  %v6520_v53 = vrot.slane %v6391_v13, 5  ;;  %v10804_v47 = vor.u32 %v11628_v8, %v10801_v20  ;;  %v6517_v54 = vsel %vm12101_vm5, %v6515_v12, %v6516_v34  ;;  %v6523_v45 = vrot.slane %v6392_v2, 5  ;;  %v6393_v52 = vld [vmem:[#allocation4 + $0x84] sm:$0xe]  ;;  %8828 = vmatpush.bf16.msra.mxu1 %v11745_v51 }
 0x597   : > { %v14301_v37 = vadd.f32 %v8747_v31, %v8659_v48  ;;  %8524 = vmatmul.bf16.gmra.mxu1 %v10800_v32  ;;  %v10808_v48 = vor.u32 %v11633_v3, %v10807_v44  ;;  %6620 = vst [vmem:[#allocation2 + $0x218] sm:$0xf] %v6514_v43  ;;  %v10414_v3 = vrot.slane %v6393_v52, 9  ;;  %v6394_v32 = vld [vmem:[#allocation4 + $0x88] sm:$0xf]  ;;  %v6534_v12 = vrot.slane %v6397_v33, 5 }
 0x598   : > { %v8571_v39 = vpop.f32.mrf.mxu2  ;;  %6621 = vst [vmem:[#allocation2 + $0x23c] sm:$0xf] %v6517_v54  ;;  %v6522_v44 = vrot.slane %v6520_v53, 4  ;;  %v6395_v6 = vld [vmem:[#allocation4 + $0x8c] sm:$0x1]  ;;  %v6527_v57 = vrot.slane %v6394_v32, 5 }
 0x599   : > { %8786 = vmatmul.bf16.gmra.mxu0 %v10776_v16  ;;  %v8572_v22 = vadd.f32 %v8571_v39, %v14281_v23  ;;  %v6521_v23 = vsel %vm12101_vm5, %v10413_v40, %v6520_v53  ;;  %v6396_v31 = vld [vmem:[#allocation4 + $0x90] sm:$0xe]  ;;  %v6530_v10 = vrot.slane %v6395_v6, 5  ;;  %v6398_v40 = vld [vmem:[#allocation4 + $0x98] sm:$0x1]  ;;  %v6536_v53 = vrot.slane %v6534_v12, 4 }
 0x59a   : > { %6622 = vst [vmem:[#allocation2 + $0x260] sm:$0xf] %v6521_v23  ;;  %v6524_v11 = vsel %vm12101_vm5, %v6522_v44, %v6523_v45  ;;  %v6528_v16 = vsel %vm12101_vm5, %v10414_v3, %v6527_v57  ;;  %v6529_v20 = vrot.slane %v6527_v57, 4  ;;  %v6399_v39 = vld [vmem:[#allocation4 + $0x9c] sm:$0xe] }
 0x59b   : > { %8702 = vmatmul.bf16.gmra.mxu3 %v10808_v48  ;;  %v8661_v1 = vadd.f32 %v8660_v28, %v8572_v22  ;;  %6623 = vst [vmem:[#allocation2 + $0x284] sm:$0xf] %v6524_v11  ;;  %v10835_v43 = vld [vmem:[#allocation2 + $0x328] sm:$0xf]  ;;  %v11641_v13 = vld [vmem:[#allocation2 + $0x348] sm:$0xf0] }
 0x59c   : > { %v8487_v63 = vpop.f32.mrf.mxu1  ;;  %6624 = vst [vmem:[#allocation2 + $0x2a8] sm:$0xf] %v6528_v16  ;;  %v6531_v2 = vsel %vm12101_vm5, %v6529_v20, %v6530_v10  ;;  %v6400_v22 = vld [vmem:[#allocation4 + $0xa0] sm:$0xf]  ;;  %v6401_v48 = vld [vmem:[#allocation4 + $0xa4] sm:$0x1]  ;;  %v10836_v44 = vor.u32 %v11641_v13, %v10835_v43 }
 0x59d   : > { %v14316_v24 = vadd.f32 %v8487_v63, %v13838_v7  ;;  %8613 = vmatmul.bf16.gmra.mxu2 %v10804_v47  ;;  %v10415_v7 = vrot.slane %v6396_v31, 9  ;;  %v11629_v8 = vld [vmem:[#allocation2 + $0x2ec] sm:$0xf]  ;;  %6625 = vst [vmem:[#allocation2 + $0x2cc] sm:$0xf] %v6531_v2  ;;  %v6537_v47 = vrot.slane %v6398_v40, 5 }
 0x59e   : > { %v8749_v28 = vpop.f32.mrf.mxu0  ;;  %v8663_v59 = vpop.f32.mrf.mxu3  ;;  %v10416_v54 = vrot.slane %v6399_v39, 9  ;;  %v10809_v52 = vld [vmem:[#allocation2 + $0x30c] sm:$0xf0]  ;;  %v6544_v23 = vrot.slane %v6401_v48, 5  ;;  %v6402_v32 = vld [vmem:[#allocation4 + $0xa8] sm:$0xe] }
 0x59f   : > { %v14320_v60 = vadd.f32 %v8749_v28, %v8661_v1  ;;  %v6535_v51 = vsel %vm12101_vm5, %v10415_v7, %v6534_v12  ;;  %v6541_v1 = vrot.slane %v6400_v22, 5  ;;  %v10843_v3 = vld [vmem:[#allocation2 + $0x330] sm:$0xf]  ;;  %v6538_v63 = vsel %vm12101_vm5, %v6536_v53, %v6537_v47  ;;  %v6403_v6 = vld [vmem:[#allocation4 + $0xac] sm:$0xf] }
 0x5a0   : > { %v8574_v27 = vpop.f32.mrf.mxu2  ;;  %6626 = vst [vmem:[#allocation2 + $0x2f0] sm:$0xf] %v6535_v51  ;;  %v6404_v11 = vld [vmem:[#allocation4 + $0xb0] sm:$0x1]  ;;  %v11642_v31 = vld [vmem:[#allocation2 + $0x350] sm:$0xf0] }
 0x5a1   : > { %v8575_v34 = vadd.f32 %v8574_v27, %v14295_v9  ;;  %6627 = vst [vmem:[#allocation2 + $0x314] sm:$0xf] %v6538_v63  ;;  %v6542_v28 = vsel %vm12101_vm5, %v10416_v54, %v6541_v1  ;;  %v10417_v10 = vrot.slane %v6402_v32, 9  ;;  %v10837_v20 = vld [vmem:[#allocation2 + $0x34c] sm:$0xf0]  ;;  %v6548_v40 = vrot.slane %v6403_v6, 5 }
 0x5a2   : > { %6628 = vst [vmem:[#allocation2 + $0x338] sm:$0xf] %v6542_v28  ;;  %v6405_v7 = vld [vmem:[#allocation4 + $0xb4] sm:$0xe]  ;;  %v10812_v27 = vor.u32 %v11629_v8, %v10809_v52  ;;  %v6551_v43 = vrot.slane %v6404_v11, 5  ;;  %v10844_v47 = vor.u32 %v11642_v31, %v10843_v3 }
 0x5a3   : > { %v8664_v45 = vadd.f32 %v8663_v59, %v8575_v34  ;;  %v6543_v59 = vrot.slane %v6541_v1, 4  ;;  %v6406_v12 = vld [vmem:[#allocation4 + $0xb8] sm:$0xf]  ;;  %v6407_v34 = vld [vmem:[#allocation4 + $0xbc] sm:$0x1]  ;;  %v6549_v2 = vsel %vm12101_vm5, %v10417_v10, %v6548_v40  ;;  %v6550_v22 = vrot.slane %v6548_v40, 4 }
 0x5a4   : > { %v8490_v9 = vpop.f32.mrf.mxu1  ;;  %v10418_v48 = vrot.slane %v6405_v7, 9  ;;  %v6555_v51 = vrot.slane %v6406_v12, 5  ;;  %6630 = vst [vmem:[#allocation2 + $0x380] sm:$0xf] %v6549_v2  ;;  %v11637_v8 = vld [vmem:[#allocation2 + $0x32c] sm:$0xf] }
 0x5a5   : > { %v8491_v57 = vadd.f32 %v8490_v9, %v13853_v26  ;;  %v6545_v26 = vsel %vm12101_vm5, %v6543_v59, %v6544_v23  ;;  %v6552_v54 = vsel %vm12101_vm5, %v6550_v22, %v6551_v43  ;;  %v6558_v1 = vrot.slane %v6407_v34, 5  ;;  %v6408_v23 = vld [vmem:[#allocation4 + $0xc0] sm:$0xe]  ;;  %v6409_v63 = vld [vmem:[#allocation4 + $0xc4] sm:$0xf] }
 0x5a6   : > { %v8752_v33 = vpop.f32.mrf.mxu0  ;;  %v8665_v16 = vpop.f32.mrf.mxu3  ;;  %6629 = vst [vmem:[#allocation2 + $0x35c] sm:$0xf] %v6545_v26  ;;  %v6557_v52 = vrot.slane %v6555_v51, 4  ;;  %v6410_v32 = vld [vmem:[#allocation4 + $0xc8] sm:$0x1]  ;;  %v10419_v3 = vrot.slane %v6408_v23, 9 }
 0x5a7   : > { %v14334_v39 = vadd.f32 %v8752_v33, %v8664_v45  ;;  %8529 = vmatmul.bf16.gmra.mxu1 %v10836_v44  ;;  %v6556_v45 = vsel %vm12101_vm5, %v10418_v48, %v6555_v51  ;;  %v10840_v44 = vor.u32 %v11637_v8, %v10837_v20  ;;  %6631 = vst [vmem:[#allocation2 + $0x3a4] sm:$0xf] %v6552_v54  ;;  %v6562_v11 = vrot.slane %v6409_v63, 5  ;;  %v10871_v26 = vld [vmem:[#allocation2 + $0x370] sm:$0xf] }
 0x5a8   : > { %v8576_v13 = vpop.f32.mrf.mxu2  ;;  %6632 = vst [vmem:[#allocation2 + $0x3c8] sm:$0xf] %v6556_v45  ;;  %v11638_v34 = vld [vmem:[#allocation2 + $0x334] sm:$0xf] }
 0x5a9   : > { %8791 = vmatmul.bf16.gmra.mxu0 %v10812_v27  ;;  %v8577_v53 = vadd.f32 %v8576_v13, %v14316_v24  ;;  %v6559_v24 = vsel %vm12101_vm5, %v6557_v52, %v6558_v1  ;;  %v6563_v10 = vsel %vm12101_vm5, %v10419_v3, %v6562_v11  ;;  %v6564_v33 = vrot.slane %v6562_v11, 4  ;;  %v10845_v13 = vld [vmem:[#allocation2 + $0x354] sm:$0xf0]  ;;  %v11744_v1 = vld [vmem:[%s14872_s2 + $0x200] sm:$0xff]  ;;  %v11646_v23 = vld [vmem:[#allocation2 + $0x374] sm:$0xf] }
 0x5aa   : > { %6633 = vst [vmem:[#allocation2 + $0x3ec] sm:$0xf] %v6559_v24  ;;  %v10848_v4 = vor.u32 %v11638_v34, %v10845_v13  ;;  %8829 = vmatpush.bf16.msra.mxu1 %v11744_v1  ;;  %v10909_v13 = vld [vmem:[#allocation2 + $0x3dc] sm:$0xf0] }
 0x5ab   : > { %8707 = vmatmul.bf16.gmra.mxu3 %v10844_v47  ;;  %v8666_v9 = vadd.f32 %v8665_v16, %v8577_v53  ;;  %v6565_v16 = vrot.slane %v6410_v32, 5  ;;  %6634 = vst [vmem:[#allocation2 + $0x410] sm:$0xf] %v6563_v10  ;;  %v10879_v53 = vld [vmem:[#allocation2 + $0x378] sm:$0xf] }
 0x5ac   : > { %v8492_v6 = vpop.f32.mrf.mxu1  ;;  %v11651_v47 = vld [vmem:[#allocation2 + $0x398] sm:$0xf0]  ;;  %v10943_v1 = vld [vmem:[#allocation2 + $0x400] sm:$0xf] }
 0x5ad   : > { %v8493_v31 = vadd.f32 %v8492_v6, %v13865_v35  ;;  %8618 = vmatmul.bf16.gmra.mxu2 %v10840_v44  ;;  %v6566_v7 = vsel %vm12101_vm5, %v6564_v33, %v6565_v16  ;;  %v11650_v35 = vld [vmem:[#allocation2 + $0x390] sm:$0xf0]  ;;  %v10880_v52 = vor.u32 %v11651_v47, %v10879_v53  ;;  %v11647_v33 = vld [vmem:[#allocation2 + $0x37c] sm:$0xf]  ;;  %v10881_v16 = vld [vmem:[#allocation2 + $0x39c] sm:$0xf0] }
 0x5ae   : > { %v8754_v28 = vpop.f32.mrf.mxu0  ;;  %v8668_v59 = vpop.f32.mrf.mxu3  ;;  %6635 = vst [vmem:[#allocation2 + $0x434] sm:$0xf] %v6566_v7  ;;  %v10872_v22 = vor.u32 %v11650_v35, %v10871_v26  ;;  %v10915_v35 = vld [vmem:[#allocation2 + $0x3c0] sm:$0xf] }
 0x5af   : > { %v14350_v20 = vadd.f32 %v8754_v28, %v8666_v9  ;;  %v11659_v28 = vld [vmem:[#allocation2 + $0x3d8] sm:$0xf0] }
 0x5b0   : > { %v8579_v40 = vpop.f32.mrf.mxu2 }
 0x5b1   : > { %v8580_v27 = vadd.f32 %v8579_v40, %v8491_v57  ;;  %v10873_v57 = vld [vmem:[#allocation2 + $0x394] sm:$0xf0] }
 0x5b2   : > { %v10876_v9 = vor.u32 %v11646_v23, %v10873_v57  ;;  %v11668_v23 = vld [vmem:[#allocation2 + $0x420] sm:$0xf0] }
 0x5b3   : > { %v8669_v43 = vadd.f32 %v8668_v59, %v8580_v27 }
 0x5b4   : > { %v8495_v12 = vpop.f32.mrf.mxu1 }
 0x5b5   : > { %v8496_v2 = vadd.f32 %v8495_v12, %v13889_v0  ;;  %v10884_v12 = vor.u32 %v11647_v33, %v10881_v16  ;;  %v10945_v33 = vld [vmem:[#allocation2 + $0x424] sm:$0xf0] }
 0x5b6   : > { %v8757_v48 = vpop.f32.mrf.mxu0  ;;  %v8670_v51 = vpop.f32.mrf.mxu3 }
 0x5b7   : > { %v14355_v8 = vadd.f32 %v8757_v48, %v8669_v43  ;;  %8534 = vmatmul.bf16.gmra.mxu1 %v10872_v22  ;;  %v11655_v48 = vld [vmem:[#allocation2 + $0x3bc] sm:$0xf] }
 0x5b8   : > { %v8581_v54 = vpop.f32.mrf.mxu2  ;;  %v10912_v53 = vor.u32 %v11655_v48, %v10909_v13  ;;  %v11677_v48 = vld [vmem:[#allocation2 + $0x468] sm:$0xf0] }
 0x5b9   : > { %8796 = vmatmul.bf16.gmra.mxu0 %v10848_v4  ;;  %v8582_v45 = vadd.f32 %v8581_v54, %v8493_v31  ;;  %v10907_v31 = vld [vmem:[#allocation2 + $0x3b8] sm:$0xf] }
 0x5ba   : > { %v10908_v7 = vor.u32 %v11659_v28, %v10907_v31  ;;  %v10951_v31 = vld [vmem:[#allocation2 + $0x408] sm:$0xf] }
 0x5bb   : > { %8712 = vmatmul.bf16.gmra.mxu3 %v10880_v52  ;;  %v8671_v0 = vadd.f32 %v8670_v51, %v8582_v45 }
 0x5bc   : > { %v8497_v44 = vpop.f32.mrf.mxu1 }
 0x5bd   : > { %v8498_v63 = vadd.f32 %v8497_v44, %v13914_v58  ;;  %8623 = vmatmul.bf16.gmra.mxu2 %v10876_v9  ;;  %v11660_v58 = vld [vmem:[#allocation2 + $0x3e0] sm:$0xf0] }
 0x5be   : > { %v8759_v32 = vpop.f32.mrf.mxu0  ;;  %v8673_v6 = vpop.f32.mrf.mxu3  ;;  %v10916_v22 = vor.u32 %v11660_v58, %v10915_v35  ;;  %v11656_v44 = vld [vmem:[#allocation2 + $0x3c4] sm:$0xf] }
 0x5bf   : > { %v14361_v24 = vadd.f32 %v8759_v32, %v8671_v0 }
 0x5c0   : > { %v8584_v3 = vpop.f32.mrf.mxu2 }
 0x5c1   : > { %v8585_v11 = vadd.f32 %v8584_v3, %v8496_v2 }
 0x5c3   : > { %v8674_v59 = vadd.f32 %v8673_v6, %v8585_v11  ;;  %v10944_v6 = vor.u32 %v11668_v23, %v10943_v1 }
 0x5c4   : > { %v8500_v10 = vpop.f32.mrf.mxu1 }
 0x5c5   : > { %v8501_v40 = vadd.f32 %v8500_v10, %v13945_v41 }
 0x5c6   : > { %v8762_v27 = vpop.f32.mrf.mxu0  ;;  %v8675_v26 = vpop.f32.mrf.mxu3 }
 0x5c7   : > { %v14364_v43 = vadd.f32 %v8762_v27, %v8674_v59  ;;  %8539 = vmatmul.bf16.gmra.mxu1 %v10908_v7  ;;  %v11664_v7 = vld [vmem:[#allocation2 + $0x404] sm:$0xf] }
 0x5c8   : > { %v8586_v34 = vpop.f32.mrf.mxu2 }
 0x5c9   : > { %8801 = vmatmul.bf16.gmra.mxu0 %v10884_v12  ;;  %v8587_v2 = vadd.f32 %v8586_v34, %v8498_v63  ;;  %v10917_v63 = vld [vmem:[#allocation2 + $0x3e4] sm:$0xf0] }
 0x5ca   : > { %v10920_v59 = vor.u32 %v11656_v44, %v10917_v63  ;;  %v10981_v63 = vld [vmem:[#allocation2 + $0x46c] sm:$0xf0] }
 0x5cb   : > { %8717 = vmatmul.bf16.gmra.mxu3 %v10916_v22  ;;  %v8676_v51 = vadd.f32 %v8675_v26, %v8587_v2  ;;  %v10948_v26 = vor.u32 %v11664_v7, %v10945_v33  ;;  %v10979_v22 = vld [vmem:[#allocation2 + $0x448] sm:$0xf]  ;;  %v11674_v7 = vld [vmem:[#allocation2 + $0x454] sm:$0xf] }
 0x5cc   : > { %v8502_v47 = vpop.f32.mrf.mxu1 }
 0x5cd   : > { %v8503_v41 = vadd.f32 %v8502_v47, %v13975_v55  ;;  %8628 = vmatmul.bf16.gmra.mxu2 %v10912_v53  ;;  %v11669_v55 = vld [vmem:[#allocation2 + $0x428] sm:$0xf0] }
 0x5ce   : > { %v8764_v4 = vpop.f32.mrf.mxu0  ;;  %v8678_v54 = vpop.f32.mrf.mxu3  ;;  %v11665_v53 = vld [vmem:[#allocation2 + $0x40c] sm:$0xf] }
 0x5cf   : > { %v14367_v57 = vadd.f32 %v8764_v4, %v8676_v51  ;;  %v10987_v4 = vld [vmem:[#allocation2 + $0x450] sm:$0xf] }
 0x5d0   : > { %v8589_v45 = vpop.f32.mrf.mxu2 }
 0x5d1   : > { %v8590_v52 = vadd.f32 %v8589_v45, %v8501_v40  ;;  %v10952_v40 = vor.u32 %v11669_v55, %v10951_v31 }
 0x5d3   : > { %v8679_v0 = vadd.f32 %v8678_v54, %v8590_v52  ;;  %v11678_v54 = vld [vmem:[#allocation2 + $0x470] sm:$0xf0]  ;;  %v10980_v52 = vor.u32 %v11677_v48, %v10979_v22 }
 0x5d4   : > { %v8505_v9 = vpop.f32.mrf.mxu1 }
 0x5d5   : > { %v8506_v32 = vadd.f32 %v8505_v9, %v13997_v38  ;;  %v10988_v9 = vor.u32 %v11678_v54, %v10987_v4 }
 0x5d6   : > { %v8767_v3 = vpop.f32.mrf.mxu0  ;;  %v8680_v11 = vpop.f32.mrf.mxu3 }
 0x5d7   : > { %v14370_v28 = vadd.f32 %v8767_v3, %v8679_v0  ;;  %8544 = vmatmul.bf16.gmra.mxu1 %v10944_v6  ;;  %v11673_v6 = vld [vmem:[#allocation2 + $0x44c] sm:$0xf] }
 0x5d8   : > { %v8591_v10 = vpop.f32.mrf.mxu2 }
 0x5d9   : > { %8806 = vmatmul.bf16.gmra.mxu0 %v10920_v59  ;;  %v8592_v16 = vadd.f32 %v8591_v10, %v8503_v41  ;;  %v10953_v41 = vld [vmem:[#allocation2 + $0x42c] sm:$0xf0] }
 0x5da   : > { %v10956_v0 = vor.u32 %v11665_v53, %v10953_v41 }
 0x5db   : > { %8722 = vmatmul.bf16.gmra.mxu3 %v10952_v40  ;;  %v8681_v27 = vadd.f32 %v8680_v11, %v8592_v16  ;;  %v10984_v11 = vor.u32 %v11673_v6, %v10981_v63  ;;  %v11544_v40 = vld [vmem:[#allocation2 + $0x40] sm:$0xf0] }
 0x5dc   : > { %v8507_v35 = vpop.f32.mrf.mxu1 }
 0x5dd   : > { %v8508_v38 = vadd.f32 %v8507_v35, %v14009_v46  ;;  %8633 = vmatmul.bf16.gmra.mxu2 %v10948_v26 }
 0x5de   : > { %v8769_v58 = vpop.f32.mrf.mxu0  ;;  %v8683_v12 = vpop.f32.mrf.mxu3 }
 0x5df   : > { %v14373_v34 = vadd.f32 %v8769_v58, %v8681_v27  ;;  %v10989_v27 = vld [vmem:[#allocation2 + $0x474] sm:$0xf0] }
 0x5e0   : > { %v8594_v13 = vpop.f32.mrf.mxu2 }
 0x5e1   : > { %v8595_v2 = vadd.f32 %v8594_v13, %v8506_v32  ;;  %v10992_v13 = vor.u32 %v11674_v7, %v10989_v27  ;;  %v11562_v27 = vld [vmem:[#allocation2 + $0xd0] sm:$0xf0] }
 0x5e3   : > { %v8684_v51 = vadd.f32 %v8683_v12, %v8595_v2 }
 0x5e4   : > { %v8510_v47 = vpop.f32.mrf.mxu1 }
 0x5e5   : > { %v8511_v45 = vadd.f32 %v8510_v47, %v14022_v29 }
 0x5e6   : > { %v8772_v1 = vpop.f32.mrf.mxu0  ;;  %v8685_v46 = vpop.f32.mrf.mxu3 }
 0x5e7   : > { %v14376_v23 = vadd.f32 %v8772_v1, %v8684_v51  ;;  %8549 = vmatmul.bf16.gmra.mxu1 %v10980_v52  ;;  %v11553_v1 = vld [vmem:[#allocation2 + $0x88] sm:$0xf0] }
 0x5e8   : > { %v8596_v44 = vpop.f32.mrf.mxu2 }
 0x5e9   : > { %8811 = vmatmul.bf16.gmra.mxu0 %v10956_v0  ;;  %v8597_v32 = vadd.f32 %v8596_v44, %v8508_v38  ;;  %v10455_v38 = vld [vmem:[#allocation2 + $0x20] sm:$0xf] }
 0x5ea   : > { %v10456_v12 = vor.u32 %v11544_v40, %v10455_v38 }
 0x5eb   : > { %v8686_v3 = vadd.f32 %v8685_v46, %v8597_v32  ;;  %8727 = vmatmul.bf16.gmra.mxu3 %v10988_v9  ;;  %v10491_v9 = vld [vmem:[#allocation2 + $0x68] sm:$0xf] }
 0x5ec   : > { %v8512_v31 = vpop.f32.mrf.mxu1  ;;  %v10492_v63 = vor.u32 %v11553_v1, %v10491_v9 }
 0x5ed   : > { %v8513_v55 = vadd.f32 %v8512_v31, %v14034_v19  ;;  %8638 = vmatmul.bf16.gmra.mxu2 %v10984_v11 }
 0x5ee   : > { %v8774_v29 = vpop.f32.mrf.mxu0  ;;  %v8688_v59 = vpop.f32.mrf.mxu3 }
 0x5ef   : > { %v14379_v10 = vadd.f32 %v8774_v29, %v8686_v3 }
 0x5f0   : > { %v8599_v33 = vpop.f32.mrf.mxu2 }
 0x5f1   : > { %v8600_v16 = vadd.f32 %v8599_v33, %v8511_v45 }
 0x5f3   : > { %v8689_v26 = vadd.f32 %v8688_v59, %v8600_v16 }
 0x5f4   : > { %v8515_v35 = vpop.f32.mrf.mxu1 }
 0x5f5   : > { %v8516_v58 = vadd.f32 %v8515_v35, %v14047_v61  ;;  %v10527_v35 = vld [vmem:[#allocation2 + $0xb0] sm:$0xf] }
 0x5f6   : > { %v8777_v2 = vpop.f32.mrf.mxu0  ;;  %v8690_v22 = vpop.f32.mrf.mxu3 }
 0x5f7   : > { %v14382_v19 = vadd.f32 %v8777_v2, %v8689_v26  ;;  %8830 = vmatmul.bf16.vlgmr.msra.gmra.mxu1 %v10456_v12 }
 0x5f8   : > { %v8601_v48 = vpop.f32.mrf.mxu2 }
 0x5f9   : > { %8816 = vmatmul.bf16.gmra.mxu0 %v10992_v13  ;;  %v8602_v51 = vadd.f32 %v8601_v48, %v8513_v55 }
 0x5fb   : > { %v8691_v53 = vadd.f32 %v8690_v22, %v8602_v51 }
 0x5fc   : > { %v8517_v47 = vpop.f32.mrf.mxu1 }
 0x5fd   : > { %v8518_v41 = vadd.f32 %v8517_v47, %v14058_v17 }
 0x5fe   : > { %v8779_v4 = vpop.f32.mrf.mxu0  ;;  %v8693_v54 = vpop.f32.mrf.mxu3 }
 0x5ff   : > { %v14385_v45 = vadd.f32 %v8779_v4, %v8691_v53 }
 0x600   : > { %v8604_v52 = vpop.f32.mrf.mxu2 }
 0x601   : > { %v8605_v61 = vadd.f32 %v8604_v52, %v8516_v58  ;;  %v10528_v58 = vor.u32 %v11562_v27, %v10527_v35  ;;  %v14939_v27 = vld [vmem:[#allocation7_spill] sm:$0xff] }
 0x603   : > { %v8694_v46 = vadd.f32 %v8693_v54, %v8605_v61 }
 0x604   : > { %v8520_v0 = vpop.f32.mrf.mxu1 }
 0x605   : > { %v8521_v44 = vadd.f32 %v8520_v0, %v14069_v5 }
 0x606   : > { %v8782_v32 = vpop.f32.mrf.mxu0  ;;  %v8695_v6 = vpop.f32.mrf.mxu3 }
 0x607   : > { %v14388_v3 = vadd.f32 %v8782_v32, %v8694_v46  ;;  %8835 = vmatmul.bf16.gmra.mxu1 %v10492_v63  ;;  %v10563_v46 = vld [vmem:[#allocation2 + $0xf8] sm:$0xf] }
 0x608   : > { %v8606_v11 = vpop.f32.mrf.mxu2 }
 0x609   : > { %v8607_v17 = vadd.f32 %v8606_v11, %v8518_v41 }
 0x60b   : > { %v8696_v31 = vadd.f32 %v8695_v6, %v8607_v17  ;;  %v11580_v6 = vld [vmem:[#allocation2 + $0x160] sm:$0xf0]  ;;  %v10599_v17 = vld [vmem:[#allocation2 + $0x140] sm:$0xf] }
 0x60c   : > { %v8522_v55 = vpop.f32.mrf.mxu1 }
 0x60d   : > { %v8523_v29 = vadd.f32 %v8522_v55, %v14087_v25  ;;  %v10600_v55 = vor.u32 %v11580_v6, %v10599_v17 }
 0x60e   : > { %v8784_v59 = vpop.f32.mrf.mxu0  ;;  %v8698_v33 = vpop.f32.mrf.mxu3 }
 0x60f   : > { %v14391_v16 = vadd.f32 %v8784_v59, %v8696_v31 }
 0x610   : > { %v8609_v40 = vpop.f32.mrf.mxu2 }
 0x611   : > { %v8610_v7 = vadd.f32 %v8609_v40, %v8521_v44 }
 0x613   : > { %v8699_v5 = vadd.f32 %v8698_v33, %v8610_v7  ;;  %v11589_v33 = vld [vmem:[#allocation2 + $0x1a8] sm:$0xf0]  ;;  %v10635_v7 = vld [vmem:[#allocation2 + $0x188] sm:$0xf] }
 0x614   : > { %v8525_v26 = vpop.f32.mrf.mxu1 }
 0x615   : > { %v8526_v38 = vadd.f32 %v8525_v26, %v14096_v21  ;;  %v11571_v21 = vld [vmem:[#allocation2 + $0x118] sm:$0xf0] }
 0x616   : > { %v8787_v12 = vpop.f32.mrf.mxu0  ;;  %v8700_v2 = vpop.f32.mrf.mxu3  ;;  %v10564_v9 = vor.u32 %v11571_v21, %v10563_v46 }
 0x617   : > { %v14394_v13 = vadd.f32 %v8787_v12, %v8699_v5  ;;  %8840 = vmatmul.bf16.gmra.mxu1 %v10528_v58  ;;  %v10671_v58 = vld [vmem:[#allocation2 + $0x1d0] sm:$0xf] }
 0x618   : > { %v8611_v22 = vpop.f32.mrf.mxu2 }
 0x619   : > { %v8612_v25 = vadd.f32 %v8611_v22, %v8523_v29 }
 0x61b   : > { %v8701_v48 = vadd.f32 %v8700_v2, %v8612_v25  ;;  %v14940_v25 = vld [vmem:[#allocation9_spill] sm:$0xff] }
 0x61c   : > { %v8527_v51 = vpop.f32.mrf.mxu1 }
 0x61d   : > { %v14397_v53 = vadd.f32 %v8527_v51, %v14111_v50  ;;  %v11607_v51 = vld [vmem:[#allocation2 + $0x238] sm:$0xf0] }
 0x61e   : > { %v8789_v47 = vpop.f32.mrf.mxu0  ;;  %v8703_v52 = vpop.f32.mrf.mxu3 }
 0x61f   : > { %v14399_v41 = vadd.f32 %v8789_v47, %v8701_v48 }
 0x620   : > { %v8614_v4 = vpop.f32.mrf.mxu2 }
 0x621   : > { %v8615_v54 = vadd.f32 %v8614_v4, %v8526_v38  ;;  %v10707_v4 = vld [vmem:[#allocation2 + $0x218] sm:$0xf] }
 0x623   : > { %v8704_v61 = vadd.f32 %v8703_v52, %v8615_v54 }
 0x624   : > { %v8530_v1 = vpop.f32.mrf.mxu1 }
 0x625   : > { %v14402_v0 = vadd.f32 %v8530_v1, %v14120_v36  ;;  %v14938_v36 = vld [vmem:[#allocation8_spill] sm:$0xff]  ;;  %v10743_v1 = vld [vmem:[#allocation2 + $0x260] sm:$0xf] }
 0x626   : > { %v8792_v44 = vpop.f32.mrf.mxu0 }
 0x627   : > { %v14404_v63 = vadd.f32 %v8792_v44, %v8704_v61  ;;  %8845 = vmatmul.bf16.gmra.mxu1 %v10564_v9 }
 0x62c   : > { %v8532_v50 = vpop.f32.mrf.mxu1 }
 0x62d   : > { %v14407_v32 = vadd.f32 %v8532_v50, %v14136_v14  ;;  %v10636_v14 = vor.u32 %v11589_v33, %v10635_v7  ;;  %v10815_v33 = vld [vmem:[#allocation2 + $0x2f0] sm:$0xf] }
 0x634   : > { %v8535_v11 = vpop.f32.mrf.mxu1 }
 0x635   : > { %v14410_v31 = vadd.f32 %v8535_v11, %v14145_v56  ;;  %v11598_v56 = vld [vmem:[#allocation2 + $0x1f0] sm:$0xf0]  ;;  %v10779_v11 = vld [vmem:[#allocation2 + $0x2a8] sm:$0xf] }
 0x636   : > { %v10672_v2 = vor.u32 %v11598_v56, %v10671_v58 }
 0x637   : > { %8850 = vmatmul.bf16.gmra.mxu1 %v10600_v55 }
 0x63c   : > { %v8537_v29 = vpop.f32.mrf.mxu1 }
 0x63d   : > { %v14413_v59 = vadd.f32 %v8537_v29, %v14938_v36 }
 0x644   : > { %v8540_v40 = vpop.f32.mrf.mxu1 }
 0x645   : > { %v14416_v5 = vadd.f32 %v8540_v40, %v14939_v27 }
 0x647   : > { %8855 = vmatmul.bf16.gmra.mxu1 %v10636_v14 }
 0x64c   : > { %v8542_v26 = vpop.f32.mrf.mxu1 }
 0x64d   : > { %v14419_v35 = vadd.f32 %v8542_v26, %v14183_v42  ;;  %v10708_v42 = vor.u32 %v11607_v51, %v10707_v4  ;;  %v10851_v26 = vld [vmem:[#allocation2 + $0x338] sm:$0xf] }
 0x654   : > { %v8545_v38 = vpop.f32.mrf.mxu1 }
 0x655   : > { %v14422_v12 = vadd.f32 %v8545_v38, %v14198_v18  ;;  %v11616_v18 = vld [vmem:[#allocation2 + $0x280] sm:$0xf0] }
 0x656   : > { %v10744_v9 = vor.u32 %v11616_v18, %v10743_v1 }
 0x657   : > { %8860 = vmatmul.bf16.gmra.mxu1 %v10672_v2 }
 0x65c   : > { %v8547_v22 = vpop.f32.mrf.mxu1 }
 0x65d   : > { %v14425_v48 = vadd.f32 %v8547_v22, %v14940_v25  ;;  %v10887_v22 = vld [vmem:[#allocation2 + $0x380] sm:$0xf] }
 0x664   : > { %v8550_v47 = vpop.f32.mrf.mxu1 }
 0x665   : > { %v14428_v54 = vadd.f32 %v8550_v47, %v14232_v49  ;;  %v11625_v49 = vld [vmem:[#allocation2 + $0x2c8] sm:$0xf0] }
 0x667   : > { %8865 = vmatmul.bf16.gmra.mxu1 %v10708_v42  ;;  %v10923_v42 = vld [vmem:[#allocation2 + $0x3c8] sm:$0xf] }
 0x66c   : > { %v8552_v52 = vpop.f32.mrf.mxu1 }
 0x66d   : > { %v14431_v21 = vadd.f32 %v8552_v52, %v14251_v15  ;;  %v10780_v15 = vor.u32 %v11625_v49, %v10779_v11  ;;  %v11679_v11 = vld [vmem:[#allocation2 + $0x478] sm:$0xf0] }
 0x674   : > { %v8831_v61 = vpop.f32.mrf.mxu1 }
 0x675   : > { %v14434_v46 = vadd.f32 %v8831_v61, %v14269_v30  ;;  %v11634_v30 = vld [vmem:[#allocation2 + $0x310] sm:$0xf0] }
 0x677   : > { %8870 = vmatmul.bf16.gmra.mxu1 %v10744_v9  ;;  %v10959_v9 = vld [vmem:[#allocation2 + $0x410] sm:$0xf] }
 0x67c   : > { %v8833_v44 = vpop.f32.mrf.mxu1 }
 0x67d   : > { %v14437_v50 = vadd.f32 %v8833_v44, %v14285_v62  ;;  %v10816_v62 = vor.u32 %v11634_v30, %v10815_v33 }
 0x684   : > { %v8836_v6 = vpop.f32.mrf.mxu1 }
 0x685   : > { %v14440_v17 = vadd.f32 %v8836_v6, %v14301_v37  ;;  %v11643_v37 = vld [vmem:[#allocation2 + $0x358] sm:$0xf0] }
 0x687   : > { %8875 = vmatmul.bf16.gmra.mxu1 %v10780_v15 }
 0x68c   : > { %v8838_v55 = vpop.f32.mrf.mxu1 }
 0x68d   : > { %v14443_v29 = vadd.f32 %v8838_v55, %v14320_v60  ;;  %v10852_v60 = vor.u32 %v11643_v37, %v10851_v26  ;;  %v8705_v37 = vpop.f32.mrf.mxu3  ;;  %v8794_v26 = vpop.f32.mrf.mxu0 }
 0x694   : > { %v8841_v36 = vpop.f32.mrf.mxu1 }
 0x695   : > { %v14446_v40 = vadd.f32 %v8841_v36, %v14334_v39  ;;  %v11652_v39 = vld [vmem:[#allocation2 + $0x3a0] sm:$0xf0] }
 0x697   : > { %8880 = vmatmul.bf16.gmra.mxu1 %v10816_v62  ;;  %v8616_v62 = vpop.f32.mrf.mxu2 }
 0x69c   : > { %v8843_v7 = vpop.f32.mrf.mxu1 }
 0x69d   : > { %v14449_v27 = vadd.f32 %v8843_v7, %v14350_v20  ;;  %v10888_v20 = vor.u32 %v11652_v39, %v10887_v22 }
 0x6a4   : > { %v8846_v14 = vpop.f32.mrf.mxu1 }
 0x6a5   : > { %v14452_v56 = vadd.f32 %v8846_v14, %v14355_v8  ;;  %v11661_v8 = vld [vmem:[#allocation2 + $0x3e8] sm:$0xf0] }
 0x6a7   : > { %8885 = vmatmul.bf16.gmra.mxu1 %v10852_v60  ;;  %v8619_v60 = vpop.f32.mrf.mxu2 }
 0x6ac   : > { %v8848_v38 = vpop.f32.mrf.mxu1 }
 0x6ad   : > { %v14455_v58 = vadd.f32 %v8848_v38, %v14361_v24  ;;  %v10924_v24 = vor.u32 %v11661_v8, %v10923_v42  ;;  %v8708_v38 = vpop.f32.mrf.mxu3 }
 0x6b4   : > { %v8851_v2 = vpop.f32.mrf.mxu1 }
 0x6b5   : > { %v14458_v25 = vadd.f32 %v8851_v2, %v14364_v43  ;;  %v11670_v43 = vld [vmem:[#allocation2 + $0x430] sm:$0xf0]  ;;  %v8797_v2 = vpop.f32.mrf.mxu0 }
 0x6b7   : > { %8890 = vmatmul.bf16.gmra.mxu1 %v10888_v20 }
 0x6bc   : > { %v8853_v51 = vpop.f32.mrf.mxu1 }
 0x6bd   : > { %v14461_v47 = vadd.f32 %v8853_v51, %v14367_v57  ;;  %v10960_v57 = vor.u32 %v11670_v43, %v10959_v9  ;;  %v8799_v51 = vpop.f32.mrf.mxu0 }
 0x6c4   : > { %v8856_v4 = vpop.f32.mrf.mxu1 }
 0x6c5   : > { %v14464_v52 = vadd.f32 %v8856_v4, %v14370_v28  ;;  %v10995_v28 = vld [vmem:[#allocation2 + $0x458] sm:$0xf]  ;;  %v8975_v4 = vadd.f32 %v14437_v50, %v14434_v46  ;;  %v8802_v43 = vpop.f32.mrf.mxu0 }
 0x6c6   : > { %v10996_v15 = vor.u32 %v11679_v11, %v10995_v28 }
 0x6c7   : > { %14941 = vst [vmem:[#allocation10_spill] sm:$0xff] %v14464_v52  ;;  %8895 = vmatmul.bf16.gmra.mxu1 %v10924_v24  ;;  %v8976_v42 = vadd.f32 %v8975_v4, %v14440_v17 }
 0x6c9   : > { %v8977_v24 = vadd.f32 %v8976_v42, %v14443_v29 }
 0x6cc   : > { %v8858_v18 = vpop.f32.mrf.mxu1 }
 0x6cd   : > { %v14467_v61 = vadd.f32 %v8858_v18, %v14373_v34 }
 0x6d4   : > { %v8861_v1 = vpop.f32.mrf.mxu1 }
 0x6d5   : > { %v14470_v44 = vadd.f32 %v8861_v1, %v14376_v23 }
 0x6d7   : > { %14942 = vst [vmem:[#allocation11_spill] sm:$0xff] %v14470_v44  ;;  %8900 = vmatmul.bf16.gmra.mxu1 %v10960_v57 }
 0x6dc   : > { %v8863_v49 = vpop.f32.mrf.mxu1 }
 0x6dd   : > { %v14473_v6 = vadd.f32 %v8863_v49, %v14379_v10 }
 0x6df   : > { %14943 = vst [vmem:[#allocation12_spill] sm:$0xff] %v14473_v6 }
 0x6e4   : > { %v8866_v55 = vpop.f32.mrf.mxu1 }
 0x6e5   : > { %v14476_v30 = vadd.f32 %v8866_v55, %v14382_v19 }
 0x6e7   : > { %8905 = vmatmul.bf16.gmra.mxu1 %v10996_v15 }
 0x6ec   : > { %v8868_v34 = vpop.f32.mrf.mxu1 }
 0x6ed   : > { %v14479_v36 = vadd.f32 %v8868_v34, %v14385_v45  ;;  %v8804_v34 = vpop.f32.mrf.mxu0 }
 0x6ef   : > { %14944 = vst [vmem:[#allocation13_spill] sm:$0xff] %v14479_v36 }
 0x6f4   : > { %v8871_v23 = vpop.f32.mrf.mxu1 }
 0x6f5   : > { %v14482_v33 = vadd.f32 %v8871_v23, %v14388_v3  ;;  %v8621_v3 = vpop.f32.mrf.mxu2 }
 0x6fc   : > { %v8873_v7 = vpop.f32.mrf.mxu1 }
 0x6fd   : > { %v14485_v10 = vadd.f32 %v8873_v7, %v14391_v16  ;;  %v8710_v16 = vpop.f32.mrf.mxu3  ;;  %v8624_v8 = vpop.f32.mrf.mxu2 }
 0x704   : > { %v8876_v14 = vpop.f32.mrf.mxu1 }
 0x705   : > { %v14488_v19 = vadd.f32 %v8876_v14, %v14394_v13  ;;  %v8713_v18 = vpop.f32.mrf.mxu3  ;;  %v8626_v9 = vpop.f32.mrf.mxu2 }
 0x70c   : > { %v8878_v39 = vpop.f32.mrf.mxu1 }
 0x70d   : > { %v14491_v45 = vadd.f32 %v8878_v39, %v14399_v41  ;;  %v8978_v41 = vadd.f32 %v8977_v24, %v14446_v40  ;;  %v8715_v11 = vpop.f32.mrf.mxu3  ;;  %v8629_v7 = vpop.f32.mrf.mxu2  ;;  %v8617_v24 = vadd.f32 %v8616_v62, %v14397_v53 }
 0x70f   : > { %v8979_v1 = vadd.f32 %v8978_v41, %v14449_v27 }
 0x711   : > { %v8980_v57 = vadd.f32 %v8979_v1, %v14452_v56  ;;  %v8620_v1 = vadd.f32 %v8619_v60, %v14402_v0 }
 0x713   : > { %v8981_v49 = vadd.f32 %v8980_v57, %v14455_v58  ;;  %v8807_v57 = vpop.f32.mrf.mxu0 }
 0x714   : > { %v8881_v22 = vpop.f32.mrf.mxu1 }
 0x715   : > { %v14494_v20 = vadd.f32 %v8881_v22, %v14404_v63  ;;  %v8982_v28 = vadd.f32 %v8981_v49, %v14458_v25  ;;  %v8718_v4 = vpop.f32.mrf.mxu3 }
 0x717   : > { %v8983_v15 = vadd.f32 %v8982_v28, %v14461_v47  ;;  %v8631_v28 = vpop.f32.mrf.mxu2 }
 0x719   : > { %v8984_v23 = vadd.f32 %v8983_v15, %v14464_v52  ;;  %v8706_v15 = vadd.f32 %v8705_v37, %v8617_v24  ;;  %v8622_v52 = vadd.f32 %v8621_v3, %v14407_v32  ;;  %v8630_v37 = vadd.f32 %v8629_v7, %v14416_v5 }
 0x71b   : > { %v8985_v14 = vadd.f32 %v8984_v23, %v14467_v61  ;;  %v8795_v53 = vadd.f32 %v8794_v26, %v8706_v15  ;;  %v8711_v62 = vadd.f32 %v8710_v16, %v8622_v52  ;;  %v8719_v16 = vadd.f32 %v8718_v4, %v8630_v37 }
 0x71c   : > { %v8883_v13 = vpop.f32.mrf.mxu1 }
 0x71d   : > { %v8986_v39 = vadd.f32 %v8985_v14, %v14470_v44  ;;  %v8625_v14 = vadd.f32 %v8624_v8, %v14410_v31  ;;  %v14522_v3 = vadd.f32 %v8883_v13, %v8795_v53  ;;  %v8800_v31 = vadd.f32 %v8799_v51, %v8711_v62  ;;  %v8809_v8 = vpop.f32.mrf.mxu0 }
 0x71f   : > { %v8987_v22 = vadd.f32 %v8986_v39, %v14473_v6  ;;  %v8709_v39 = vadd.f32 %v8708_v38, %v8620_v1  ;;  %v8714_v60 = vadd.f32 %v8713_v18, %v8625_v14 }
 0x721   : > { %v8988_v41 = vadd.f32 %v8987_v22, %v14476_v30  ;;  %v8627_v22 = vadd.f32 %v8626_v9, %v14413_v59  ;;  %v8803_v52 = vadd.f32 %v8802_v43, %v8714_v60  ;;  %v8634_v59 = vpop.f32.mrf.mxu2 }
 0x723   : > { %v8989_v49 = vadd.f32 %v8988_v41, %v14479_v36  ;;  %v8720_v41 = vpop.f32.mrf.mxu3  ;;  %v8798_v36 = vadd.f32 %v8797_v2, %v8709_v39  ;;  %v8716_v38 = vadd.f32 %v8715_v11, %v8627_v22  ;;  %v8808_v11 = vadd.f32 %v8807_v57, %v8719_v16 }
 0x724   : > { %v8886_v63 = vpop.f32.mrf.mxu1 }
 0x725   : > { %v8990_v23 = vadd.f32 %v8989_v49, %v14482_v33  ;;  %v14525_v26 = vadd.f32 %v8886_v63, %v8798_v36  ;;  %v8805_v9 = vadd.f32 %v8804_v34, %v8716_v38  ;;  %v8812_v49 = vpop.f32.mrf.mxu0 }
 0x727   : > { %v8991_v6 = vadd.f32 %v8990_v23, %v14485_v10 }
 0x729   : > { %v8992_v0 = vadd.f32 %v8991_v6, %v14488_v19  ;;  %v8632_v6 = vadd.f32 %v8631_v28, %v14419_v35  ;;  %v8636_v28 = vpop.f32.mrf.mxu2 }
 0x72b   : > { %v8993_v32 = vadd.f32 %v8992_v0, %v14491_v45  ;;  %v8721_v7 = vadd.f32 %v8720_v41, %v8632_v6  ;;  %v8723_v43 = vpop.f32.mrf.mxu3 }
 0x72c   : > { %v8888_v55 = vpop.f32.mrf.mxu1 }
 0x72d   : > { %v8994_v24 = vadd.f32 %v8993_v32, %v14494_v20  ;;  %v14529_v18 = vadd.f32 %v8888_v55, %v8800_v31  ;;  %v8810_v1 = vadd.f32 %v8809_v8, %v8721_v7  ;;  %v8635_v55 = vadd.f32 %v8634_v59, %v14422_v12  ;;  %v8814_v0 = vpop.f32.mrf.mxu0 }
 0x72f   : > { %v8995_v2 = vadd.f32 %v8994_v24, %v14522_v3  ;;  %v8724_v57 = vadd.f32 %v8723_v43, %v8635_v55 }
 0x731   : > { %v8996_v13 = vadd.f32 %v8995_v2, %v14525_v26  ;;  %v8813_v53 = vadd.f32 %v8812_v49, %v8724_v57  ;;  %v8639_v60 = vpop.f32.mrf.mxu2 }
 0x732   : > { %v8640_v31 = vadd.f32 %v8639_v60, %v14428_v54 }
 0x733   : > { %v8997_v36 = vadd.f32 %v8996_v13, %v14529_v18  ;;  %v8725_v39 = vpop.f32.mrf.mxu3 }
 0x734   : > { %v8891_v42 = vpop.f32.mrf.mxu1 }
 0x735   : > { %v14532_v51 = vadd.f32 %v8891_v42, %v8803_v52  ;;  %v8817_v24 = vpop.f32.mrf.mxu0 }
 0x737   : > { %v8998_v4 = vadd.f32 %v8997_v36, %v14532_v51 }
 0x739   : > { %v8641_v16 = vpop.f32.mrf.mxu2 }
 0x73a   : > { %v8642_v2 = vadd.f32 %v8641_v16, %v14431_v21  ;;  %v14945_v16 = vld [vmem:[#allocation10_spill] sm:$0xff] }
 0x73b   : > { %v8728_v12 = vpop.f32.mrf.mxu3 }
 0x73c   : > { %v8893_v44 = vpop.f32.mrf.mxu1  ;;  %v8729_v52 = vadd.f32 %v8728_v12, %v8640_v31 }
 0x73d   : > { %v14535_v63 = vadd.f32 %v8893_v44, %v8805_v9  ;;  %v8637_v44 = vadd.f32 %v8636_v28, %v14425_v48  ;;  %v8819_v7 = vpop.f32.mrf.mxu0 }
 0x73e   : > { %v8818_v6 = vadd.f32 %v8817_v24, %v8729_v52 }
 0x73f   : > { %v8999_v34 = vadd.f32 %v8998_v4, %v14535_v63  ;;  %v8726_v41 = vadd.f32 %v8725_v39, %v8637_v44 }
 0x741   : > { %v8815_v32 = vadd.f32 %v8814_v0, %v8726_v41 }
 0x743   : > { %v8730_v48 = vpop.f32.mrf.mxu3 }
 0x744   : > { %v8896_v5 = vpop.f32.mrf.mxu1  ;;  %v8731_v13 = vadd.f32 %v8730_v48, %v8642_v2 }
 0x745   : > { %v8897_v35 = vadd.f32 %v8896_v5, %v8808_v11 }
 0x746   : > { %v8820_v36 = vadd.f32 %v8819_v7, %v8731_v13 }
 0x747   : > { %v9000_v42 = vadd.f32 %v8999_v34, %v8897_v35 }
 0x74c   : > { %v8898_v15 = vpop.f32.mrf.mxu1 }
 0x74d   : > { %v8899_v23 = vadd.f32 %v8898_v15, %v8810_v1 }
 0x74f   : > { %v9001_v14 = vadd.f32 %v9000_v42, %v8899_v23 }
 0x754   : > { %v8901_v62 = vpop.f32.mrf.mxu1 }
 0x755   : > { %v8902_v22 = vadd.f32 %v8901_v62, %v8813_v53 }
 0x757   : > { %v9002_v37 = vadd.f32 %v9001_v14, %v8902_v22 }
 0x75c   : > { %v8903_v38 = vpop.f32.mrf.mxu1 }
 0x75d   : > { %v8904_v8 = vadd.f32 %v8903_v38, %v8815_v32 }
 0x75f   : > { %v9003_v59 = vadd.f32 %v9002_v37, %v8904_v8 }
 0x764   : > { %v8906_v5 = vpop.f32.mrf.mxu1 }
 0x765   : > { %v8907_v9 = vadd.f32 %v8906_v5, %v8818_v6 }
 0x767   : > { %v9004_v11 = vadd.f32 %v9003_v59, %v8907_v9 }
 0x76c   : > { %v8908_v43 = vpop.f32.mrf.mxu1 }
 0x76d   : > { %v8909_v4 = vadd.f32 %v8908_v43, %v8820_v36  ;;  %v14947_v36 = vld [vmem:[#allocation12_spill] sm:$0xff] }
 0x76f   : > { %v9005_v1 = vadd.f32 %v9004_v11, %v8909_v4 }
 0x771   : > { %v9006_v54 = vrot.slane %v9005_v1, 4 }
 0x773   : > { %v9007_v55 = vadd.f32 %v9006_v54, %v9005_v1 }
 0x775   : > { %v9008_v49 = vrot.slane %v9007_v55, 2 }
 0x777   : > { %v9009_v34 = vadd.f32 %v9008_v49, %v9007_v55  ;;  %v14948_v49 = vld [vmem:[#allocation13_spill] sm:$0xff] }
 0x779   : > { %v9010_v28 = vrot.slane %v9009_v34, 1 }
 0x77b   : > { %v9011_v15 = vadd.f32 %v9010_v28, %v9009_v34 }
 0x77d   : > { %v14543_v42 = vmul.f32 0.00390625, %v9011_v15 }
 0x77f   : > { %v14546_v21 = vsub.f32 %v8897_v35, %v14543_v42  ;;  %v14549_v57 = vsub.f32 %v8899_v23, %v14543_v42  ;;  %v14552_v14 = vsub.f32 %v8902_v22, %v14543_v42  ;;  %v14555_v39 = vsub.f32 %v8904_v8, %v14543_v42 }
 0x780   : > { %v14558_v53 = vsub.f32 %v8907_v9, %v14543_v42  ;;  %v14561_v44 = vsub.f32 %v8909_v4, %v14543_v42  ;;  %v14565_v62 = vsub.f32 %v14434_v46, %v14543_v42  ;;  %v14569_v35 = vsub.f32 %v14437_v50, %v14543_v42  ;;  %v14946_v9 = vld [vmem:[#allocation11_spill] sm:$0xff] }
 0x781   : > { %v14573_v23 = vsub.f32 %v14440_v17, %v14543_v42  ;;  %v14581_v60 = vsub.f32 %v14443_v29, %v14543_v42  ;;  %v14585_v46 = vsub.f32 %v14446_v40, %v14543_v42  ;;  %v14591_v17 = vsub.f32 %v14449_v27, %v14543_v42 }
 0x782   : > { %v9045_v22 = vmul.f32 %v14565_v62, %v14565_v62  ;;  %v9046_v0 = vmul.f32 %v14569_v35, %v14569_v35  ;;  %v14597_v29 = vsub.f32 %v14452_v56, %v14543_v42  ;;  %v14603_v31 = vsub.f32 %v14455_v58, %v14543_v42 }
 0x783   : > { %v9047_v50 = vmul.f32 %v14573_v23, %v14573_v23  ;;  %v9048_v37 = vmul.f32 %v14581_v60, %v14581_v60  ;;  %v9049_v40 = vmul.f32 %v14585_v46, %v14585_v46  ;;  %v9050_v27 = vmul.f32 %v14591_v17, %v14591_v17 }
 0x784   : > { %v9077_v41 = vadd.f32 %v9046_v0, %v9045_v22  ;;  %v14609_v8 = vsub.f32 %v14458_v25, %v14543_v42  ;;  %v9051_v56 = vmul.f32 %v14597_v29, %v14597_v29  ;;  %v14615_v52 = vsub.f32 %v14461_v47, %v14543_v42 }
 0x785   : > { %v9052_v58 = vmul.f32 %v14603_v31, %v14603_v31  ;;  %v14621_v6 = vsub.f32 %v14945_v16, %v14543_v42  ;;  %v14627_v48 = vsub.f32 %v14467_v61, %v14543_v42  ;;  %v14633_v13 = vsub.f32 %v14946_v9, %v14543_v42 }
 0x786   : > { %v9078_v12 = vadd.f32 %v9077_v41, %v9047_v50  ;;  %v9053_v25 = vmul.f32 %v14609_v8, %v14609_v8  ;;  %v9054_v47 = vmul.f32 %v14615_v52, %v14615_v52  ;;  %v14639_v43 = vsub.f32 %v14947_v36, %v14543_v42 }
 0x787   : > { %v9055_v11 = vmul.f32 %v14621_v6, %v14621_v6  ;;  %v9056_v61 = vmul.f32 %v14627_v48, %v14627_v48  ;;  %v14645_v1 = vsub.f32 %v14476_v30, %v14543_v42  ;;  %v9057_v54 = vmul.f32 %v14633_v13, %v14633_v13 }
 0x788   : > { %v9079_v32 = vadd.f32 %v9078_v12, %v9048_v37  ;;  %v14651_v34 = vsub.f32 %v14948_v49, %v14543_v42  ;;  %v9058_v28 = vmul.f32 %v14639_v43, %v14639_v43  ;;  %v14657_v22 = vsub.f32 %v14482_v33, %v14543_v42 }
 0x789   : > { %v9059_v30 = vmul.f32 %v14645_v1, %v14645_v1  ;;  %v14663_v50 = vsub.f32 %v14485_v10, %v14543_v42  ;;  %v14669_v12 = vsub.f32 %v14488_v19, %v14543_v42  ;;  %v14711_v9 = vsub.f32 %v14535_v63, %v14543_v42 }
 0x78a   : > { %v9080_v38 = vadd.f32 %v9079_v32, %v9049_v40  ;;  %v9060_v41 = vmul.f32 %v14651_v34, %v14651_v34  ;;  %v9061_v33 = vmul.f32 %v14657_v22, %v14657_v22  ;;  %v14675_v32 = vsub.f32 %v14491_v45, %v14543_v42 }
 0x78b   : > { %v9062_v10 = vmul.f32 %v14663_v50, %v14663_v50  ;;  %v9063_v19 = vmul.f32 %v14669_v12, %v14669_v12  ;;  %v9072_v63 = vmul.f32 %v14549_v57, %v14549_v57 }
 0x78c   : > { %v9081_v24 = vadd.f32 %v9080_v38, %v9050_v27  ;;  %v14681_v38 = vsub.f32 %v14494_v20, %v14543_v42  ;;  %v9064_v45 = vmul.f32 %v14675_v32, %v14675_v32 }
 0x78e   : > { %v9082_v59 = vadd.f32 %v9081_v24, %v9051_v56  ;;  %v14687_v24 = vsub.f32 %v14522_v3, %v14543_v42  ;;  %v9065_v20 = vmul.f32 %v14681_v38, %v14681_v38 }
 0x790   : > { %v9083_v2 = vadd.f32 %v9082_v59, %v9052_v58  ;;  %v14693_v59 = vsub.f32 %v14525_v26, %v14543_v42  ;;  %v9066_v3 = vmul.f32 %v14687_v24, %v14687_v24 }
 0x792   : > { %v9084_v5 = vadd.f32 %v9083_v2, %v9053_v25  ;;  %v14699_v25 = vsub.f32 %v14529_v18, %v14543_v42  ;;  %v9067_v26 = vmul.f32 %v14693_v59, %v14693_v59 }
 0x794   : > { %v9085_v7 = vadd.f32 %v9084_v5, %v9054_v47  ;;  %v14705_v47 = vsub.f32 %v14532_v51, %v14543_v42  ;;  %v9068_v18 = vmul.f32 %v14699_v25, %v14699_v25  ;;  %v9070_v51 = vmul.f32 %v14711_v9, %v14711_v9 }
 0x796   : > { %v9086_v4 = vadd.f32 %v9085_v7, %v9055_v11  ;;  %v9069_v7 = vmul.f32 %v14705_v47, %v14705_v47 }
 0x798   : > { %v9087_v55 = vadd.f32 %v9086_v4, %v9056_v61  ;;  %v9071_v4 = vmul.f32 %v14546_v21, %v14546_v21 }
 0x79a   : > { %v9088_v15 = vadd.f32 %v9087_v55, %v9057_v54  ;;  %v9073_v55 = vmul.f32 %v14552_v14, %v14552_v14 }
 0x79c   : > { %v9089_v0 = vadd.f32 %v9088_v15, %v9058_v28  ;;  %v9074_v28 = vmul.f32 %v14555_v39, %v14555_v39 }
 0x79e   : > { %v9090_v37 = vadd.f32 %v9089_v0, %v9059_v30  ;;  %v9075_v30 = vmul.f32 %v14558_v53, %v14558_v53 }
 0x7a0   : > { %v9091_v40 = vadd.f32 %v9090_v37, %v9060_v41  ;;  %v9076_v41 = vmul.f32 %v14561_v44, %v14561_v44 }
 0x7a2   : > { %v9092_v27 = vadd.f32 %v9091_v40, %v9061_v33 }
 0x7a4   : > { %v9093_v56 = vadd.f32 %v9092_v27, %v9062_v10 }
 0x7a6   : > { %v9094_v58 = vadd.f32 %v9093_v56, %v9063_v19 }
 0x7a8   : > { %v9095_v16 = vadd.f32 %v9094_v58, %v9064_v45 }
 0x7aa   : > { %v9096_v2 = vadd.f32 %v9095_v16, %v9065_v20 }
 0x7ac   : > { %v9097_v5 = vadd.f32 %v9096_v2, %v9066_v3 }
 0x7ae   : > { %v9098_v11 = vadd.f32 %v9097_v5, %v9067_v26 }
 0x7b0   : > { %v9099_v36 = vadd.f32 %v9098_v11, %v9068_v18 }
 0x7b2   : > { %v9100_v61 = vadd.f32 %v9099_v36, %v9069_v7 }
 0x7b4   : > { %v9101_v54 = vadd.f32 %v9100_v61, %v9070_v51  ;;  %v11285_v61 = vld [vmem:[%s11843_s29 + $0x19] sm:$0xff] }
 0x7b6   : > { %v9102_v42 = vadd.f32 %v9101_v54, %v9071_v4  ;;  %v11286_v4 = vld [vmem:[%s11843_s29 + $0x21] sm:$0xff]  ;;  %v11287_v54 = vld [vmem:[%s11843_s29 + $0x31] sm:$0xff] }
 0x7b8   : > { %v9103_v49 = vadd.f32 %v9102_v42, %v9072_v63  ;;  %v11288_v42 = vld [vmem:[%s11843_s29 + $0x39] sm:$0xff] }
 0x7ba   : > { %v9104_v15 = vadd.f32 %v9103_v49, %v9073_v55 }
 0x7bc   : > { %v9105_v0 = vadd.f32 %v9104_v15, %v9074_v28  ;;  %v11291_v15 = vld [vmem:[%s11843_s29 + $0x61] sm:$0xff] }
 0x7be   : > { %v9106_v37 = vadd.f32 %v9105_v0, %v9075_v30 }
 0x7c0   : > { %v9107_v33 = vadd.f32 %v9106_v37, %v9076_v41  ;;  %v11292_v41 = vld [vmem:[%s11843_s29 + $0x69] sm:$0xff] }
 0x7c2   : > { %v9108_v40 = vrot.slane %v9107_v33, 4 }
 0x7c4   : > { %v9109_v10 = vadd.f32 %v9108_v40, %v9107_v33 }
 0x7c6   : > { %v9110_v27 = vrot.slane %v9109_v10, 2 }
 0x7c8   : > { %v9111_v19 = vadd.f32 %v9110_v27, %v9109_v10  ;;  %v11294_v10 = vld [vmem:[%s11843_s29 + $0x81] sm:$0xff] }
 0x7ca   : > { %v9112_v56 = vrot.slane %v9111_v19, 1 }
 0x7cc   : > { %v9113_v45 = vadd.f32 %v9112_v56, %v9111_v19 }
 0x7ce   : > { %v9114_v58 = vmul.f32 0.00390625, %v9113_v45 }
 0x7d0   : > { %v9147_v20 = vadd.f32 1e-05, %v9114_v58 }
 0x7d2   : > { %11780 = vrsqrt.f32 %v9147_v20  ;;  %vm9154_vm3 = vweird.f32 %v9147_v20 }
 0x7d8   : > { %v11781_v16 = vpop.eup %11780 }
 0x7d9   : > { %v9149_v3 = vmul.f32 %v11781_v16, %v9147_v20  ;;  %vm9155_vm2 = vweird.f32 %v11781_v16 }
 0x7da   : > { %vm9156_vm4 = vmor %vm9154_vm3, %vm9155_vm2 }
 0x7db   : > { %v9150_v2 = vmul.f32 %v11781_v16, %v9149_v3 }
 0x7dd   : > { %v9151_v26 = vmul.f32 0.5, %v9150_v2 }
 0x7df   : > { %v9152_v5 = vsub.f32 1.5, %v9151_v26 }
 0x7e1   : > { %v9153_v18 = vmul.f32 %v11781_v16, %v9152_v5 }
 0x7e3   : > { %v14731_v11 = vsel %vm9156_vm4, %v11781_v16, %v9153_v18 }
 0x7e4   : > { %v9158_v7 = vmul.f32 %v14731_v11, %v14565_v62  ;;  %v9159_v36 = vmul.f32 %v14731_v11, %v14569_v35  ;;  %v9160_v51 = vmul.f32 %v14731_v11, %v14573_v23  ;;  %v9161_v63 = vmul.f32 %v14731_v11, %v14581_v60  ;;  %v11289_v62 = vld [vmem:[%s11843_s29 + $0x49] sm:$0xff]  ;;  %v11290_v23 = vld [vmem:[%s11843_s29 + $0x51] sm:$0xff] }
 0x7e5   : > { %v9162_v55 = vmul.f32 %v14731_v11, %v14585_v46  ;;  %v9163_v35 = vmul.f32 %v14731_v11, %v14591_v17  ;;  %v9164_v60 = vmul.f32 %v14731_v11, %v14597_v29  ;;  %v9165_v30 = vmul.f32 %v14731_v11, %v14603_v31  ;;  %v11293_v29 = vld [vmem:[%s11843_s29 + $0x79] sm:$0xff] }
 0x7e6   : > { %v9190_v49 = vadd.f32 %v11285_v61, %v9158_v7  ;;  %v9191_v28 = vadd.f32 %v11286_v4, %v9159_v36  ;;  %v9192_v46 = vadd.f32 %v11287_v54, %v9160_v51  ;;  %v9193_v0 = vadd.f32 %v11288_v42, %v9161_v63 }
 0x7e7   : > { %v9166_v17 = vmul.f32 %v14731_v11, %v14609_v8  ;;  %v9194_v37 = vadd.f32 %v11289_v62, %v9162_v55  ;;  %v9167_v33 = vmul.f32 %v14731_v11, %v14615_v52  ;;  %v9195_v40 = vadd.f32 %v11290_v23, %v9163_v35  ;;  %v11295_v8 = vld [vmem:[%s11843_s29 + $0x91] sm:$0xff]  ;;  %v11296_v52 = vld [vmem:[%s11843_s29 + $0x99] sm:$0xff] }
 0x7e8   : > { %9222 = vst [vmem:[%s14751_s19] sm:$0xff] %v9190_v49  ;;  %v9168_v31 = vmul.f32 %v14731_v11, %v14621_v6  ;;  %v9196_v27 = vadd.f32 %v11291_v15, %v9164_v60  ;;  %v9169_v19 = vmul.f32 %v14731_v11, %v14627_v48  ;;  %v9197_v56 = vadd.f32 %v11292_v41, %v9165_v30  ;;  %v11297_v6 = vld [vmem:[%s11843_s29 + $0xa9] sm:$0xff]  ;;  %v11298_v48 = vld [vmem:[%s11843_s29 + $0xb1] sm:$0xff] }
 0x7e9   : > { %9223 = vst [vmem:[%s14751_s19 + $0x8] sm:$0xff] %v9191_v28  ;;  %v9170_v45 = vmul.f32 %v14731_v11, %v14633_v13  ;;  %v9198_v58 = vadd.f32 %v11293_v29, %v9166_v17  ;;  %v9171_v20 = vmul.f32 %v14731_v11, %v14639_v43  ;;  %v9199_v16 = vadd.f32 %v11294_v10, %v9167_v33  ;;  %v11299_v13 = vld [vmem:[%s11843_s29 + $0xc1] sm:$0xff]  ;;  %v11300_v43 = vld [vmem:[%s11843_s29 + $0xc9] sm:$0xff] }
 0x7ea   : > { %9224 = vst [vmem:[%s14751_s19 + $0x10] sm:$0xff] %v9192_v46  ;;  %v9172_v3 = vmul.f32 %v14731_v11, %v14645_v1  ;;  %v9200_v2 = vadd.f32 %v11295_v8, %v9168_v31  ;;  %v9173_v26 = vmul.f32 %v14731_v11, %v14651_v34  ;;  %v9201_v5 = vadd.f32 %v11296_v52, %v9169_v19  ;;  %v11301_v1 = vld [vmem:[%s11843_s29 + $0xd9] sm:$0xff]  ;;  %v11302_v34 = vld [vmem:[%s11843_s29 + $0xe1] sm:$0xff] }
 0x7eb   : > { %9225 = vst [vmem:[%s14751_s19 + $0x18] sm:$0xff] %v9193_v0  ;;  %v9174_v18 = vmul.f32 %v14731_v11, %v14657_v22  ;;  %v9202_v7 = vadd.f32 %v11297_v6, %v9170_v45  ;;  %v9175_v36 = vmul.f32 %v14731_v11, %v14663_v50  ;;  %v9203_v51 = vadd.f32 %v11298_v48, %v9171_v20  ;;  %v11303_v22 = vld [vmem:[%s11843_s29 + $0xf1] sm:$0xff]  ;;  %v11304_v50 = vld [vmem:[%s11843_s29 + $0xf9] sm:$0xff] }
 0x7ec   : > { %9226 = vst [vmem:[%s14751_s19 + $0x20] sm:$0xff] %v9194_v37  ;;  %v9176_v61 = vmul.f32 %v14731_v11, %v14669_v12  ;;  %v9204_v4 = vadd.f32 %v11299_v13, %v9172_v3  ;;  %v9177_v54 = vmul.f32 %v14731_v11, %v14675_v32  ;;  %v9205_v63 = vadd.f32 %v11300_v43, %v9173_v26  ;;  %v11305_v12 = vld [vmem:[%s11843_s29 + $0x109] sm:$0xff]  ;;  %v11306_v32 = vld [vmem:[%s11843_s29 + $0x111] sm:$0xff] }
 0x7ed   : > { %9227 = vst [vmem:[%s14751_s19 + $0x28] sm:$0xff] %v9195_v40  ;;  %v9178_v42 = vmul.f32 %v14731_v11, %v14681_v38  ;;  %v9206_v55 = vadd.f32 %v11301_v1, %v9174_v18  ;;  %v9179_v62 = vmul.f32 %v14731_v11, %v14687_v24  ;;  %v9207_v35 = vadd.f32 %v11302_v34, %v9175_v36  ;;  %v11307_v38 = vld [vmem:[%s11843_s29 + $0x121] sm:$0xff]  ;;  %v11308_v24 = vld [vmem:[%s11843_s29 + $0x129] sm:$0xff] }
 0x7ee   : > { %9228 = vst [vmem:[%s14751_s19 + $0x30] sm:$0xff] %v9196_v27  ;;  %v9180_v23 = vmul.f32 %v14731_v11, %v14693_v59  ;;  %v9208_v60 = vadd.f32 %v11303_v22, %v9176_v61  ;;  %v9181_v49 = vmul.f32 %v14731_v11, %v14699_v25  ;;  %v9209_v28 = vadd.f32 %v11304_v50, %v9177_v54  ;;  %v11309_v59 = vld [vmem:[%s11843_s29 + $0x139] sm:$0xff]  ;;  %v11310_v25 = vld [vmem:[%s11843_s29 + $0x141] sm:$0xff] }
 0x7ef   : > { %9229 = vst [vmem:[%s14751_s19 + $0x38] sm:$0xff] %v9197_v56  ;;  %v9182_v46 = vmul.f32 %v14731_v11, %v14705_v47  ;;  %v9210_v15 = vadd.f32 %v11305_v12, %v9178_v42  ;;  %v9183_v30 = vmul.f32 %v14731_v11, %v14711_v9  ;;  %v9211_v0 = vadd.f32 %v11306_v32, %v9179_v62  ;;  %v11311_v47 = vld [vmem:[%s11843_s29 + $0x151] sm:$0xff]  ;;  %v11312_v9 = vld [vmem:[%s11843_s29 + $0x159] sm:$0xff] }
 0x7f0   : > { %9230 = vst [vmem:[%s14751_s19 + $0x40] sm:$0xff] %v9198_v58  ;;  %v9184_v41 = vmul.f32 %v14731_v11, %v14546_v21  ;;  %v9212_v17 = vadd.f32 %v11307_v38, %v9180_v23  ;;  %v9185_v37 = vmul.f32 %v14731_v11, %v14549_v57  ;;  %v9213_v29 = vadd.f32 %v11308_v24, %v9181_v49  ;;  %v11313_v21 = vld [vmem:[%s11843_s29 + $0x169] sm:$0xff]  ;;  %v11314_v57 = vld [vmem:[%s11843_s29 + $0x171] sm:$0xff] }
 0x7f1   : > { %9231 = vst [vmem:[%s14751_s19 + $0x48] sm:$0xff] %v9199_v16  ;;  %v9186_v33 = vmul.f32 %v14731_v11, %v14552_v14  ;;  %v9214_v40 = vadd.f32 %v11309_v59, %v9182_v46  ;;  %v9187_v10 = vmul.f32 %v14731_v11, %v14555_v39  ;;  %v9215_v31 = vadd.f32 %v11310_v25, %v9183_v30  ;;  %v11315_v14 = vld [vmem:[%s11843_s29 + $0x181] sm:$0xff]  ;;  %v11316_v39 = vld [vmem:[%s11843_s29 + $0x189] sm:$0xff] }
 0x7f2   : > { %9232 = vst [vmem:[%s14751_s19 + $0x50] sm:$0xff] %v9200_v2  ;;  %v9188_v27 = vmul.f32 %v14731_v11, %v14558_v53  ;;  %v9216_v8 = vadd.f32 %v11311_v47, %v9184_v41  ;;  %v9189_v19 = vmul.f32 %v14731_v11, %v14561_v44  ;;  %v9217_v56 = vadd.f32 %v11312_v9, %v9185_v37 }
 0x7f3   : > { %9233 = vst [vmem:[%s14751_s19 + $0x58] sm:$0xff] %v9201_v5  ;;  %v9218_v52 = vadd.f32 %v11313_v21, %v9186_v33  ;;  %v9219_v45 = vadd.f32 %v11314_v57, %v9187_v10 }
 0x7f4   : > { %9234 = vst [vmem:[%s14751_s19 + $0x60] sm:$0xff] %v9202_v7  ;;  %v9220_v58 = vadd.f32 %v11315_v14, %v9188_v27  ;;  %v9221_v53 = vadd.f32 %v11316_v39, %v9189_v19 }
 0x7f5   : > { %9235 = vst [vmem:[%s14751_s19 + $0x68] sm:$0xff] %v9203_v51 }
 0x7f6   : > { %9236 = vst [vmem:[%s14751_s19 + $0x70] sm:$0xff] %v9204_v4 }
 0x7f7   : > { %9237 = vst [vmem:[%s14751_s19 + $0x78] sm:$0xff] %v9205_v63 }
 0x7f8   : > { %9238 = vst [vmem:[%s14751_s19 + $0x80] sm:$0xff] %v9206_v55 }
 0x7f9   : > { %9239 = vst [vmem:[%s14751_s19 + $0x88] sm:$0xff] %v9207_v35 }
 0x7fa   : > { %9240 = vst [vmem:[%s14751_s19 + $0x90] sm:$0xff] %v9208_v60 }
 0x7fb   : > { %9241 = vst [vmem:[%s14751_s19 + $0x98] sm:$0xff] %v9209_v28 }
 0x7fc   : > { %9242 = vst [vmem:[%s14751_s19 + $0xa0] sm:$0xff] %v9210_v15 }
 0x7fd   : > { %9243 = vst [vmem:[%s14751_s19 + $0xa8] sm:$0xff] %v9211_v0 }
 0x7fe   : > { %9244 = vst [vmem:[%s14751_s19 + $0xb0] sm:$0xff] %v9212_v17 }
 0x7ff   : > { %9245 = vst [vmem:[%s14751_s19 + $0xb8] sm:$0xff] %v9213_v29 }
 0x800   : > { %9246 = vst [vmem:[%s14751_s19 + $0xc0] sm:$0xff] %v9214_v40 }
 0x801   : > { %9247 = vst [vmem:[%s14751_s19 + $0xc8] sm:$0xff] %v9215_v31 }
 0x802   : > { %9248 = vst [vmem:[%s14751_s19 + $0xd0] sm:$0xff] %v9216_v8 }
 0x803   : > { %9249 = vst [vmem:[%s14751_s19 + $0xd8] sm:$0xff] %v9217_v56 }
 0x804   : > { %9250 = vst [vmem:[%s14751_s19 + $0xe0] sm:$0xff] %v9218_v52 }
 0x805   : > { %9251 = vst [vmem:[%s14751_s19 + $0xe8] sm:$0xff] %v9219_v45 }
 0x806   : > { %9252 = vst [vmem:[%s14751_s19 + $0xf0] sm:$0xff] %v9220_v58 }
 0x807   : > { %9253 = vst [vmem:[%s14751_s19 + $0xf8] sm:$0xff] %v9221_v53 }
 0x808 PF: > { %s13_s12 = sadd.s32 1, %s11788_s12  }
 0x809   : > { %p10_p4 = scmp.ge.s32.totalorder %s13_s12, 4  }
 0x80b   :  { %12 = sbr.rel (!%p10_p4) target bundleno = 1 (0x1), region = 67 }

</bundles_post_ra>
